<compile_context>
chip_gen: v7x
topology: tpu7x:2x2x1
jax: 0.10.0
libtpu: 0.0.40
codegen_flags: <defaults>
</compile_context>

<pallas_src>
import math

import numpy as np

import jax
import jax.numpy as jnp
from jax.experimental import pallas as pl
from jax.experimental.pallas import tpu as pltpu

BN_EPS = 1e-5

# (name, Cin, n1x1, n3x3red, n3x3, n5x5red, n5x5, pool_proj) -- fixed by the module.
_INCEPTION_CFG = (
    ("a3", 48, 16, 24, 32, 4, 8, 8),
    ("b3", 64, 32, 32, 48, 8, 24, 16),
    ("a4", 120, 48, 24, 52, 4, 12, 16),
    ("b4", 128, 40, 28, 56, 6, 16, 16),
    ("c4", 128, 32, 32, 64, 6, 16, 16),
    ("d4", 128, 28, 36, 72, 8, 16, 16),
    ("e4", 132, 64, 40, 80, 8, 32, 32),
    ("a5", 208, 64, 40, 80, 8, 32, 32),
    ("b5", 208, 94, 48, 96, 12, 32, 32),
)


# ----------------------------------------------------------------------------
# Static bookkeeping helpers (host-side, trace-time constants)
# ----------------------------------------------------------------------------
def _round_up(v, m):
    return -(-v // m) * m


def _conv_len(l, k, s, p):
    return (l + 2 * p - k) // s + 1


def _pool_len(l, k, s, p, ceil_mode):
    if ceil_mode:
        lo = -(-(l + 2 * p - k) // s) + 1
        if (lo - 1) * s >= l + p:       # PyTorch rule: last window must start in-bounds
            lo -= 1
    else:
        lo = (l + 2 * p - k) // s + 1
    return lo


def _layout(num_classes):
    """Static channel sizes / 128-aligned lane offsets shared by init and forward."""
    inc = {}
    bias_off = {"conv2": (0, 16), "conv3": (128, 48), "lin": (256, num_classes)}
    off = 256 + _round_up(num_classes, 128)
    for (name, cin, n1, n3r, n3, n5r, n5, pp) in _INCEPTION_CFG:
        ctot = n1 + n3 + n5 + pp
        ctot_pad = _round_up(ctot, 128)        # 128-aligned start of the reduce segment
        n23 = n3r + n5r
        wf_width = _round_up(ctot_pad + n23, 128)
        inc[name] = dict(name=name, cin=cin, n1=n1, n3r=n3r, n3=n3, n5r=n5r, n5=n5,
                         pp=pp, ctot=ctot, ctot_pad=ctot_pad, n23=n23, wf_width=wf_width)
        bias_off[name] = (off, wf_width)
        off += wf_width
    return {"inc": inc, "bias_off": bias_off, "bias_total": off}


def _pool_taps(n, l_in, rows_in, l_out, rows_out, k, stride, pad):
    # Tap j of a strided pool: output row r picks input index r*stride + j - pad
    # (block-diagonal over the folded batch; zero rows = 0-pad; rows padded to 8).
    m = np.zeros((k, rows_out, rows_in), np.float32)
    for j in range(k):
        for b in range(n):
            for r in range(l_out):
                c = r * stride + j - pad
                if 0 <= c < l_in:
                    m[j, b * l_out + r, b * l_in + c] = 1.0
    return jnp.asarray(m)


def _shift_masks(n, l, rows, ds_):
    # mask[i, r, 0] = 1 iff output row r has a valid source row at local offset d
    # inside the same batch block; zero rows kill cross-block wraps and row padding.
    m = np.zeros((len(ds_), rows, 1), np.float32)
    for i, d in enumerate(ds_):
        for b in range(n):
            for r in range(l):
                if 0 <= r + d < l:
                    m[i, b * l + r, 0] = 1.0
    return jnp.asarray(m)


def _mean_mat(n, l, rows):
    m = np.zeros((n, rows), np.float32)
    for b in range(n):
        m[b, b * l:(b + 1) * l] = 1.0 / l
    return jnp.asarray(m)


# ----------------------------------------------------------------------------
# Parameter init: Conv1d + BatchNorm1d(eval) folded, branch weights pre-fused
# ----------------------------------------------------------------------------
def init_convblock(key, cin, cout, k):
    k1, k2, k3, k4, k5, k6 = jax.random.split(key, 6)
    fan_in = cin * k
    w = jax.random.normal(k1, (cout, cin, k), jnp.float32) / math.sqrt(fan_in)
    bias = 0.05 * jax.random.normal(k2, (cout,), jnp.float32)
    gamma = 1.0 + 0.1 * jax.random.normal(k3, (cout,), jnp.float32)
    beta = 0.05 * jax.random.normal(k4, (cout,), jnp.float32)
    running_mean = 0.05 * jax.random.normal(k5, (cout,), jnp.float32)
    running_var = 1.0 + 0.1 * jnp.abs(jax.random.normal(k6, (cout,), jnp.float32))
    # Fold eval-mode BatchNorm (and conv bias) into per-channel scale/shift; fold the
    # scale into the weights.  Layout (K, Cin, Cout) for channels-last matmuls.
    scale = gamma / jnp.sqrt(running_var + BN_EPS)
    shift = (bias - running_mean) * scale + beta
    w_eff = jnp.transpose(w * scale[:, None, None], (2, 1, 0))
    return w_eff, shift


def init_inception(key, m):
    ks = jax.random.split(key, 6)
    cin, n1, n3r, n3, n5r, n5, pp = (m["cin"], m["n1"], m["n3r"], m["n3"],
                                     m["n5r"], m["n5"], m["pp"])
    ctot, ctot_pad, n23, wf_width = m["ctot"], m["ctot_pad"], m["n23"], m["wf_width"]
    w1, b1 = init_convblock(ks[0], cin, n1, 1)
    w2a, b2a = init_convblock(ks[1], cin, n3r, 1)
    w2b, b2b = init_convblock(ks[2], n3r, n3, 3)
    w3a, b3a = init_convblock(ks[3], cin, n5r, 1)
    w3b, b3b = init_convblock(ks[4], n5r, n5, 5)
    w4, b4 = init_convblock(ks[5], cin, pp, 1)
    o1, o2, o3, o4 = 0, n1, n1 + n3, n1 + n3 + n5       # concat slots (disjoint)

    # Fused shared-LHS 1x1s: [branch1 (Ctot slots) | 3x3-reduce | 5x5-reduce].
    wf = jnp.zeros((cin, wf_width), jnp.float32)
    wf = wf.at[:, o1:o1 + n1].set(w1[0])
    wf = wf.at[:, ctot_pad:ctot_pad + n3r].set(w2a[0])
    wf = wf.at[:, ctot_pad + n3r:ctot_pad + n23].set(w3a[0])

    # Fused 3x3 + 5x5 branch convs: 5 taps over the stacked (n3r + n5r) reduce
    # channels; taps d = j - pad, branch2 only occupies taps -1..1.
    w23 = jnp.zeros((5, n23, ctot), jnp.float32)
    w23 = w23.at[1:4, 0:n3r, o2:o2 + n3].set(w2b)
    w23 = w23.at[:, n3r:n23, o3:o3 + n5].set(w3b)

    # Pool-projection 1x1 (branch4 slot).
    w4p = jnp.zeros((cin, ctot), jnp.float32).at[:, o4:o4 + pp].set(w4[0])

    # Fused bias: all four output-branch biases in their Ctot slots + reduce biases.
    bf = jnp.zeros((wf_width,), jnp.float32)
    bf = bf.at[o1:o1 + n1].set(b1).at[o2:o2 + n3].set(b2b)
    bf = bf.at[o3:o3 + n5].set(b3b).at[o4:o4 + pp].set(b4)
    bf = bf.at[ctot_pad:ctot_pad + n3r].set(b2a)
    bf = bf.at[ctot_pad + n3r:ctot_pad + n23].set(b3a)
    return {"wf": wf, "w23": w23, "w4": w4p}, bf


def init_googlenet(key, num_classes):
    meta = _layout(num_classes)
    ks = jax.random.split(key, 14)
    c1w, c1b = init_convblock(ks[0], 1, 16, 7)
    c2w, c2b = init_convblock(ks[1], 16, 16, 1)
    c3w, c3b = init_convblock(ks[2], 16, 48, 3)
    lin_w = 0.05 * jax.random.normal(ks[12], (254, num_classes), jnp.float32)
    lin_b = 0.05 * jax.random.normal(ks[13], (num_classes,), jnp.float32)

    bias = jnp.zeros((1, meta["bias_total"]), jnp.float32)

    def put(b, name, vec):
        off, _ = meta["bias_off"][name]
        return b.at[0, off:off + vec.shape[0]].set(vec)

    bias = put(bias, "conv2", c2b)
    bias = put(bias, "conv3", c3b)
    bias = put(bias, "lin", lin_b)

    params = {
        # conv1: bias folded into an extra input row (patches carry a ones column).
        "conv1_w": jnp.concatenate([c1w.reshape(7, 16), c1b.reshape(1, 16)], axis=0),
        "conv2_w": c2w[0],
        "conv3_w": c3w,
        "lin_w": lin_w,
    }
    for i, cfg in enumerate(_INCEPTION_CFG):
        name = cfg[0]
        q, bf = init_inception(ks[3 + i], meta["inc"][name])
        params[name] = q
        bias = put(bias, name, bf)
    params["bias"] = bias
    return params


# ----------------------------------------------------------------------------
# The single fused Pallas kernel (whole forward, VMEM-resident)
# ----------------------------------------------------------------------------
def _make_kernel(treedef, meta):
    inc_meta = meta["inc"]
    bias_off = meta["bias_off"]

    def kernel(*refs):
        out_ref = refs[-1]
        ins = jax.tree_util.tree_unflatten(treedef, refs[:-1])
        p = ins["params"]
        c = ins["consts"]
        bias_ref = p["bias"]

        def dot(a, b):
            return jnp.dot(a, b, preferred_element_type=jnp.float32)

        def relu(v):
            return jnp.maximum(v, 0.0)

        def bvec(name):
            off, width = bias_off[name]
            return bias_ref[:, off:off + width]          # static, 128-aligned slice

        def shift_rows(v, d, mask):
            # out[r] = v[r + d] inside the same batch block, else 0.  pltpu.roll is an
            # XLU sublane rotate (np.roll semantics, non-negative shift); the
            # precomputed 0/1 mask zeroes rows whose source row wrapped across a
            # batch-block boundary or the row padding.
            rows = v.shape[0]
            return pltpu.roll(v, (-d) % rows, axis=0) * mask

        def pool_max(sel_ref, v):
            # stride-2, k=3 max-pool as 3 selection matmuls.  Zero rows = 0-padding,
            # which equals PyTorch's -inf padding because v >= 0 (post-ReLU).
            y = dot(sel_ref[0], v)
            y = jnp.maximum(y, dot(sel_ref[1], v))
            return jnp.maximum(y, dot(sel_ref[2], v))

        def inception(x_in, name, masks):
            q, m = p[name], inc_meta[name]
            ctot, ctot_pad, n23 = m["ctot"], m["ctot_pad"], m["n23"]
            # Fused shared-LHS 1x1s (+ every branch bias, disjoint channel slots).
            y = dot(x_in, q["wf"][...]) + bvec(name)
            pre = y[:, :ctot]                           # branch1 pre-act (+ out biases)
            t23 = relu(y[:, ctot_pad:ctot_pad + n23])   # stacked [3x3-red | 5x5-red]
            # Fused 3x3 + 5x5 branch convs: 5 taps, center tap is the identity.
            pre = pre + dot(t23, q["w23"][2])
            for d in (-2, -1, 1, 2):
                pre = pre + dot(shift_rows(t23, d, masks[d]), q["w23"][d + 2])
            # Pool branch: k=3 s=1 p=1 max-pool (identity tap = x itself) + 1x1 proj.
            pooled = jnp.maximum(x_in,
                                 jnp.maximum(shift_rows(x_in, -1, masks[-1]),
                                             shift_rows(x_in, 1, masks[1])))
            pre = pre + dot(pooled, q["w4"][...])
            return relu(pre)

        # ---- stem ----
        x = relu(dot(ins["patches"][...], p["conv1_w"][...]))    # bias via ones column
        x = pool_max(c["pool1"], x)
        x = relu(dot(x, p["conv2_w"][...]) + bvec("conv2"))
        mk3 = {d: c["mask_c3"][i] for i, d in enumerate((-1, 1))}
        pre3 = dot(x, p["conv3_w"][1]) + bvec("conv3")           # center tap: identity
        pre3 = pre3 + dot(shift_rows(x, -1, mk3[-1]), p["conv3_w"][0])
        pre3 = pre3 + dot(shift_rows(x, 1, mk3[1]), p["conv3_w"][2])
        x = pool_max(c["pool2"], relu(pre3))

        # ---- inception stages ----
        mka = {d: c["mask_a"][i] for i, d in enumerate((-2, -1, 1, 2))}
        x = inception(x, "a3", mka)
        x = inception(x, "b3", mka)
        x = pool_max(c["pool3"], x)
        mkb = {d: c["mask_b"][i] for i, d in enumerate((-2, -1, 1, 2))}
        x = inception(x, "a4", mkb)
        # aux1 runs only in training mode -> skipped
        x = inception(x, "b4", mkb)
        x = inception(x, "c4", mkb)
        x = inception(x, "d4", mkb)
        # aux2 runs only in training mode -> skipped
        x = inception(x, "e4", mkb)
        x = pool_max(c["pool4"], x)
        mkc = {d: c["mask_c"][i] for i, d in enumerate((-2, -1, 1, 2))}
        x = inception(x, "a5", mkc)
        x = inception(x, "b5", mkc)

        # ---- head: AdaptiveAvgPool1d(1) + Linear (Dropout = identity in eval) ----
        pooled = dot(c["mean"][...], x)                          # (N, 254)
        out_ref[...] = dot(pooled, p["lin_w"][...]) + bvec("lin")

    return kernel


# ----------------------------------------------------------------------------
# Forward wrapper: builds trace-time constants / conv1 patches, one pallas_call
# ----------------------------------------------------------------------------
def googlenet_forward(params, x):
    n, cin, l = x.shape
    assert cin == 1, "GoogLeNet-1D stem expects a single input channel"
    num_classes = params["lin_w"].shape[1]
    meta = _layout(num_classes)

    # Static length chain (conv1 stride 2, then the four max-pools).
    l1 = _conv_len(l, 7, 2, 3)
    lp1 = _pool_len(l1, 3, 2, 1, True)
    lp2 = _pool_len(lp1, 3, 2, 0, True)
    lp3 = _pool_len(lp2, 3, 2, 1, True)
    lp4 = _pool_len(lp3, 3, 2, 1, False)
    # Folded-batch row counts, padded to sublane multiples of 8 (review #4).
    r1 = _round_up(n * l1, 8)
    rp1 = _round_up(n * lp1, 8)
    rp2 = _round_up(n * lp2, 8)
    rp3 = _round_up(n * lp3, 8)
    rp4 = _round_up(n * lp4, 8)

    consts = {
        "pool1": _pool_taps(n, l1, r1, lp1, rp1, 3, 2, 1),
        "pool2": _pool_taps(n, lp1, rp1, lp2, rp2, 3, 2, 0),
        "pool3": _pool_taps(n, lp2, rp2, lp3, rp3, 3, 2, 1),
        "pool4": _pool_taps(n, lp3, rp3, lp4, rp4, 3, 2, 1),
        "mask_c3": _shift_masks(n, lp1, rp1, (-1, 1)),
        "mask_a": _shift_masks(n, lp2, rp2, (-2, -1, 1, 2)),
        "mask_b": _shift_masks(n, lp3, rp3, (-2, -1, 1, 2)),
        "mask_c": _shift_masks(n, lp4, rp4, (-2, -1, 1, 2)),
        "mean": _mean_mat(n, lp4, rp4),
    }

    # conv1 im2col on the raw (N, 1, L) input (tiny, host side).  The extra ones
    # column folds the conv1 bias into the weight matrix; pad rows carry 0.
    xp = jnp.pad(x[:, 0, :].astype(jnp.float32), ((0, 0), (3, 3)))
    cols = [xp[:, j:j + 2 * (l1 - 1) + 1:2] for j in range(7)]
    patches = jnp.concatenate(
        [jnp.stack(cols, axis=-1), jnp.ones((n, l1, 1), jnp.float32)], axis=-1)
    patches = patches.reshape(n * l1, 8)
    patches = jnp.pad(patches, ((0, r1 - n * l1), (0, 0)))

    ins = {"patches": patches, "consts": consts, "params": params}
    leaves, treedef = jax.tree_util.tree_flatten(ins)

    return pl.pallas_call(
        _make_kernel(treedef, meta),
        out_shape=jax.ShapeDtypeStruct((n, num_classes), jnp.float32),
        in_specs=[pl.BlockSpec(memory_space=pltpu.MemorySpace.VMEM)] * len(leaves),
        out_specs=pl.BlockSpec(memory_space=pltpu.MemorySpace.VMEM),
        compiler_params=pltpu.CompilerParams(vmem_limit_bytes=32 * 1024 * 1024),
    )(*leaves)


if __name__ == "__main__":
    key = jax.random.PRNGKey(0)
    pkey, xkey = jax.random.split(key)
    num_classes = 10
    params = init_googlenet(pkey, num_classes)
    x = jax.random.normal(xkey, (2, 1, 128), jnp.float32)   # (N, C_in=1, L)

    fwd = jax.jit(googlenet_forward)
    out = jax.block_until_ready(fwd(params, x))

    assert out.shape == (2, num_classes), out.shape
    assert bool(jnp.all(jnp.isfinite(out)))
    print("KERNEL_OK")
</pallas_src>

<mosaic_0001>
module attributes {stable_mosaic.version = 11 : i64} {
  func.func @kernel(%arg0: memref<4x32x1xf32, #tpu.memory_space<vmem>>, %arg1: memref<4x24x1xf32, #tpu.memory_space<vmem>>, %arg2: memref<4x16x1xf32, #tpu.memory_space<vmem>>, %arg3: memref<2x72x1xf32, #tpu.memory_space<vmem>>, %arg4: memref<2x16xf32, #tpu.memory_space<vmem>>, %arg5: memref<3x72x128xf32, #tpu.memory_space<vmem>>, %arg6: memref<3x32x72xf32, #tpu.memory_space<vmem>>, %arg7: memref<3x24x32xf32, #tpu.memory_space<vmem>>, %arg8: memref<3x16x24xf32, #tpu.memory_space<vmem>>, %arg9: memref<5x28x64xf32, #tpu.memory_space<vmem>>, %arg10: memref<48x64xf32, #tpu.memory_space<vmem>>, %arg11: memref<48x256xf32, #tpu.memory_space<vmem>>, %arg12: memref<5x28x128xf32, #tpu.memory_space<vmem>>, %arg13: memref<120x128xf32, #tpu.memory_space<vmem>>, %arg14: memref<120x256xf32, #tpu.memory_space<vmem>>, %arg15: memref<5x48x208xf32, #tpu.memory_space<vmem>>, %arg16: memref<208x208xf32, #tpu.memory_space<vmem>>, %arg17: memref<208x384xf32, #tpu.memory_space<vmem>>, %arg18: memref<5x40x120xf32, #tpu.memory_space<vmem>>, %arg19: memref<64x120xf32, #tpu.memory_space<vmem>>, %arg20: memref<64x256xf32, #tpu.memory_space<vmem>>, %arg21: memref<5x34x128xf32, #tpu.memory_space<vmem>>, %arg22: memref<128x128xf32, #tpu.memory_space<vmem>>, %arg23: memref<128x256xf32, #tpu.memory_space<vmem>>, %arg24: memref<5x60x254xf32, #tpu.memory_space<vmem>>, %arg25: memref<208x254xf32, #tpu.memory_space<vmem>>, %arg26: memref<208x384xf32, #tpu.memory_space<vmem>>, %arg27: memref<1x3200xf32, #tpu.memory_space<vmem>>, %arg28: memref<5x38x128xf32, #tpu.memory_space<vmem>>, %arg29: memref<128x128xf32, #tpu.memory_space<vmem>>, %arg30: memref<128x256xf32, #tpu.memory_space<vmem>>, %arg31: memref<8x16xf32, #tpu.memory_space<vmem>>, %arg32: memref<16x16xf32, #tpu.memory_space<vmem>>, %arg33: memref<3x16x48xf32, #tpu.memory_space<vmem>>, %arg34: memref<5x44x132xf32, #tpu.memory_space<vmem>>, %arg35: memref<128x132xf32, #tpu.memory_space<vmem>>, %arg36: memref<128x384xf32, #tpu.memory_space<vmem>>, %arg37: memref<5x48x208xf32, #tpu.memory_space<vmem>>, %arg38: memref<132x208xf32, #tpu.memory_space<vmem>>, %arg39: memref<132x384xf32, #tpu.memory_space<vmem>>, %arg40: memref<254x10xf32, #tpu.memory_space<vmem>>, %arg41: memref<128x8xf32, #tpu.memory_space<vmem>>, %arg42: memref<2x10xf32, #tpu.memory_space<vmem>>) attributes {dimension_semantics = [], scalar_prefetch = 0 : i64, scratch_operands = 0 : i64, tpu.core_type = #tpu.core_type<tc>} {
    %c0 = arith.constant 0 : index
    %c0_0 = arith.constant 0 : index
    %0 = vector.load %arg41[%c0, %c0_0] : memref<128x8xf32, #tpu.memory_space<vmem>>, vector<128x8xf32>
    %c0_1 = arith.constant 0 : index
    %c0_2 = arith.constant 0 : index
    %1 = vector.load %arg31[%c0_1, %c0_2] : memref<8x16xf32, #tpu.memory_space<vmem>>, vector<8x16xf32>
    %cst = arith.constant dense<0.000000e+00> : vector<128x16xf32>
    %2 = tpu.matmul %0, %1, %cst {dimension_numbers = #tpu.dot_dimension_numbers<[1], [0], [0], [1], [0, 0, 1, 1], [], []>} : vector<128x8xf32>, vector<8x16xf32>, vector<128x16xf32> -> vector<128x16xf32>
    %cst_3 = arith.constant 0.000000e+00 : f32
    %3 = vector.broadcast %cst_3 : f32 to vector<128x16xf32>
    %4 = arith.maximumf %2, %3 : vector<128x16xf32>
    %c0_4 = arith.constant 0 : index
    %c0_5 = arith.constant 0 : index
    %c0_6 = arith.constant 0 : index
    %5 = vector.load %arg5[%c0_4, %c0_5, %c0_6] : memref<3x72x128xf32, #tpu.memory_space<vmem>>, vector<1x72x128xf32>
    %6 = vector.shape_cast %5 : vector<1x72x128xf32> to vector<72x128xf32>
    %cst_7 = arith.constant dense<0.000000e+00> : vector<72x16xf32>
    %7 = tpu.matmul %6, %4, %cst_7 {dimension_numbers = #tpu.dot_dimension_numbers<[1], [0], [0], [1], [0, 0, 1, 1], [], []>} : vector<72x128xf32>, vector<128x16xf32>, vector<72x16xf32> -> vector<72x16xf32>
    %c1 = arith.constant 1 : index
    %c0_8 = arith.constant 0 : index
    %c0_9 = arith.constant 0 : index
    %8 = vector.load %arg5[%c1, %c0_8, %c0_9] : memref<3x72x128xf32, #tpu.memory_space<vmem>>, vector<1x72x128xf32>
    %9 = vector.shape_cast %8 : vector<1x72x128xf32> to vector<72x128xf32>
    %cst_10 = arith.constant dense<0.000000e+00> : vector<72x16xf32>
    %10 = tpu.matmul %9, %4, %cst_10 {dimension_numbers = #tpu.dot_dimension_numbers<[1], [0], [0], [1], [0, 0, 1, 1], [], []>} : vector<72x128xf32>, vector<128x16xf32>, vector<72x16xf32> -> vector<72x16xf32>
    %11 = arith.maximumf %7, %10 : vector<72x16xf32>
    %c2 = arith.constant 2 : index
    %c0_11 = arith.constant 0 : index
    %c0_12 = arith.constant 0 : index
    %12 = vector.load %arg5[%c2, %c0_11, %c0_12] : memref<3x72x128xf32, #tpu.memory_space<vmem>>, vector<1x72x128xf32>
    %13 = vector.shape_cast %12 : vector<1x72x128xf32> to vector<72x128xf32>
    %cst_13 = arith.constant dense<0.000000e+00> : vector<72x16xf32>
    %14 = tpu.matmul %13, %4, %cst_13 {dimension_numbers = #tpu.dot_dimension_numbers<[1], [0], [0], [1], [0, 0, 1, 1], [], []>} : vector<72x128xf32>, vector<128x16xf32>, vector<72x16xf32> -> vector<72x16xf32>
    %15 = arith.maximumf %11, %14 : vector<72x16xf32>
    %c0_14 = arith.constant 0 : index
    %c0_15 = arith.constant 0 : index
    %16 = vector.load %arg32[%c0_14, %c0_15] : memref<16x16xf32, #tpu.memory_space<vmem>>, vector<16x16xf32>
    %cst_16 = arith.constant dense<0.000000e+00> : vector<72x16xf32>
    %17 = tpu.matmul %15, %16, %cst_16 {dimension_numbers = #tpu.dot_dimension_numbers<[1], [0], [0], [1], [0, 0, 1, 1], [], []>} : vector<72x16xf32>, vector<16x16xf32>, vector<72x16xf32> -> vector<72x16xf32>
    %c0_17 = arith.constant 0 : index
    %c0_18 = arith.constant 0 : index
    %18 = vector.load %arg27[%c0_17, %c0_18] : memref<1x3200xf32, #tpu.memory_space<vmem>>, vector<1x16xf32>
    %19 = vector.broadcast %18 : vector<1x16xf32> to vector<72x16xf32>
    %20 = arith.addf %17, %19 : vector<72x16xf32>
    %cst_19 = arith.constant 0.000000e+00 : f32
    %21 = vector.broadcast %cst_19 : f32 to vector<72x16xf32>
    %22 = arith.maximumf %20, %21 : vector<72x16xf32>
    %c0_20 = arith.constant 0 : index
    %c0_21 = arith.constant 0 : index
    %c0_22 = arith.constant 0 : index
    %23 = vector.load %arg3[%c0_20, %c0_21, %c0_22] : memref<2x72x1xf32, #tpu.memory_space<vmem>>, vector<1x72x1xf32>
    %24 = vector.shape_cast %23 : vector<1x72x1xf32> to vector<72x1xf32>
    %c1_23 = arith.constant 1 : index
    %c0_24 = arith.constant 0 : index
    %c0_25 = arith.constant 0 : index
    %25 = vector.load %arg3[%c1_23, %c0_24, %c0_25] : memref<2x72x1xf32, #tpu.memory_space<vmem>>, vector<1x72x1xf32>
    %26 = vector.shape_cast %25 : vector<1x72x1xf32> to vector<72x1xf32>
    %c1_26 = arith.constant 1 : index
    %c0_27 = arith.constant 0 : index
    %c0_28 = arith.constant 0 : index
    %27 = vector.load %arg33[%c1_26, %c0_27, %c0_28] : memref<3x16x48xf32, #tpu.memory_space<vmem>>, vector<1x16x48xf32>
    %28 = vector.shape_cast %27 : vector<1x16x48xf32> to vector<16x48xf32>
    %cst_29 = arith.constant dense<0.000000e+00> : vector<72x48xf32>
    %29 = tpu.matmul %22, %28, %cst_29 {dimension_numbers = #tpu.dot_dimension_numbers<[1], [0], [0], [1], [0, 0, 1, 1], [], []>} : vector<72x16xf32>, vector<16x48xf32>, vector<72x48xf32> -> vector<72x48xf32>
    %c0_30 = arith.constant 0 : index
    %c128 = arith.constant 128 : index
    %30 = vector.load %arg27[%c0_30, %c128] : memref<1x3200xf32, #tpu.memory_space<vmem>>, vector<1x48xf32>
    %31 = vector.broadcast %30 : vector<1x48xf32> to vector<72x48xf32>
    %32 = arith.addf %29, %31 : vector<72x48xf32>
    %c1_i32 = arith.constant 1 : i32
    %33 = tpu.dynamic_rotate %22 by %c1_i32 dim 0 : vector<72x16xf32>, i32 -> vector<72x16xf32>
    %34 = vector.broadcast %24 : vector<72x1xf32> to vector<72x16xf32>
    %35 = arith.mulf %33, %34 : vector<72x16xf32>
    %c0_31 = arith.constant 0 : index
    %c0_32 = arith.constant 0 : index
    %c0_33 = arith.constant 0 : index
    %36 = vector.load %arg33[%c0_31, %c0_32, %c0_33] : memref<3x16x48xf32, #tpu.memory_space<vmem>>, vector<1x16x48xf32>
    %37 = vector.shape_cast %36 : vector<1x16x48xf32> to vector<16x48xf32>
    %cst_34 = arith.constant dense<0.000000e+00> : vector<72x48xf32>
    %38 = tpu.matmul %35, %37, %cst_34 {dimension_numbers = #tpu.dot_dimension_numbers<[1], [0], [0], [1], [0, 0, 1, 1], [], []>} : vector<72x16xf32>, vector<16x48xf32>, vector<72x48xf32> -> vector<72x48xf32>
    %39 = arith.addf %32, %38 : vector<72x48xf32>
    %c71_i32 = arith.constant 71 : i32
    %40 = tpu.dynamic_rotate %22 by %c71_i32 dim 0 : vector<72x16xf32>, i32 -> vector<72x16xf32>
    %41 = vector.broadcast %26 : vector<72x1xf32> to vector<72x16xf32>
    %42 = arith.mulf %40, %41 : vector<72x16xf32>
    %c2_35 = arith.constant 2 : index
    %c0_36 = arith.constant 0 : index
    %c0_37 = arith.constant 0 : index
    %43 = vector.load %arg33[%c2_35, %c0_36, %c0_37] : memref<3x16x48xf32, #tpu.memory_space<vmem>>, vector<1x16x48xf32>
    %44 = vector.shape_cast %43 : vector<1x16x48xf32> to vector<16x48xf32>
    %cst_38 = arith.constant dense<0.000000e+00> : vector<72x48xf32>
    %45 = tpu.matmul %42, %44, %cst_38 {dimension_numbers = #tpu.dot_dimension_numbers<[1], [0], [0], [1], [0, 0, 1, 1], [], []>} : vector<72x16xf32>, vector<16x48xf32>, vector<72x48xf32> -> vector<72x48xf32>
    %46 = arith.addf %39, %45 : vector<72x48xf32>
    %cst_39 = arith.constant 0.000000e+00 : f32
    %47 = vector.broadcast %cst_39 : f32 to vector<72x48xf32>
    %48 = arith.maximumf %46, %47 : vector<72x48xf32>
    %c0_40 = arith.constant 0 : index
    %c0_41 = arith.constant 0 : index
    %c0_42 = arith.constant 0 : index
    %49 = vector.load %arg6[%c0_40, %c0_41, %c0_42] : memref<3x32x72xf32, #tpu.memory_space<vmem>>, vector<1x32x72xf32>
    %50 = vector.shape_cast %49 : vector<1x32x72xf32> to vector<32x72xf32>
    %cst_43 = arith.constant dense<0.000000e+00> : vector<32x48xf32>
    %51 = tpu.matmul %50, %48, %cst_43 {dimension_numbers = #tpu.dot_dimension_numbers<[1], [0], [0], [1], [0, 0, 1, 1], [], []>} : vector<32x72xf32>, vector<72x48xf32>, vector<32x48xf32> -> vector<32x48xf32>
    %c1_44 = arith.constant 1 : index
    %c0_45 = arith.constant 0 : index
    %c0_46 = arith.constant 0 : index
    %52 = vector.load %arg6[%c1_44, %c0_45, %c0_46] : memref<3x32x72xf32, #tpu.memory_space<vmem>>, vector<1x32x72xf32>
    %53 = vector.shape_cast %52 : vector<1x32x72xf32> to vector<32x72xf32>
    %cst_47 = arith.constant dense<0.000000e+00> : vector<32x48xf32>
    %54 = tpu.matmul %53, %48, %cst_47 {dimension_numbers = #tpu.dot_dimension_numbers<[1], [0], [0], [1], [0, 0, 1, 1], [], []>} : vector<32x72xf32>, vector<72x48xf32>, vector<32x48xf32> -> vector<32x48xf32>
    %55 = arith.maximumf %51, %54 : vector<32x48xf32>
    %c2_48 = arith.constant 2 : index
    %c0_49 = arith.constant 0 : index
    %c0_50 = arith.constant 0 : index
    %56 = vector.load %arg6[%c2_48, %c0_49, %c0_50] : memref<3x32x72xf32, #tpu.memory_space<vmem>>, vector<1x32x72xf32>
    %57 = vector.shape_cast %56 : vector<1x32x72xf32> to vector<32x72xf32>
    %cst_51 = arith.constant dense<0.000000e+00> : vector<32x48xf32>
    %58 = tpu.matmul %57, %48, %cst_51 {dimension_numbers = #tpu.dot_dimension_numbers<[1], [0], [0], [1], [0, 0, 1, 1], [], []>} : vector<32x72xf32>, vector<72x48xf32>, vector<32x48xf32> -> vector<32x48xf32>
    %59 = arith.maximumf %55, %58 : vector<32x48xf32>
    %c0_52 = arith.constant 0 : index
    %c0_53 = arith.constant 0 : index
    %c0_54 = arith.constant 0 : index
    %60 = vector.load %arg0[%c0_52, %c0_53, %c0_54] : memref<4x32x1xf32, #tpu.memory_space<vmem>>, vector<1x32x1xf32>
    %61 = vector.shape_cast %60 : vector<1x32x1xf32> to vector<32x1xf32>
    %c1_55 = arith.constant 1 : index
    %c0_56 = arith.constant 0 : index
    %c0_57 = arith.constant 0 : index
    %62 = vector.load %arg0[%c1_55, %c0_56, %c0_57] : memref<4x32x1xf32, #tpu.memory_space<vmem>>, vector<1x32x1xf32>
    %63 = vector.shape_cast %62 : vector<1x32x1xf32> to vector<32x1xf32>
    %c2_58 = arith.constant 2 : index
    %c0_59 = arith.constant 0 : index
    %c0_60 = arith.constant 0 : index
    %64 = vector.load %arg0[%c2_58, %c0_59, %c0_60] : memref<4x32x1xf32, #tpu.memory_space<vmem>>, vector<1x32x1xf32>
    %65 = vector.shape_cast %64 : vector<1x32x1xf32> to vector<32x1xf32>
    %c3 = arith.constant 3 : index
    %c0_61 = arith.constant 0 : index
    %c0_62 = arith.constant 0 : index
    %66 = vector.load %arg0[%c3, %c0_61, %c0_62] : memref<4x32x1xf32, #tpu.memory_space<vmem>>, vector<1x32x1xf32>
    %67 = vector.shape_cast %66 : vector<1x32x1xf32> to vector<32x1xf32>
    %c0_63 = arith.constant 0 : index
    %c0_64 = arith.constant 0 : index
    %68 = vector.load %arg11[%c0_63, %c0_64] : memref<48x256xf32, #tpu.memory_space<vmem>>, vector<48x256xf32>
    %cst_65 = arith.constant dense<0.000000e+00> : vector<32x256xf32>
    %69 = tpu.matmul %59, %68, %cst_65 {dimension_numbers = #tpu.dot_dimension_numbers<[1], [0], [0], [1], [0, 0, 1, 1], [], []>} : vector<32x48xf32>, vector<48x256xf32>, vector<32x256xf32> -> vector<32x256xf32>
    %c0_66 = arith.constant 0 : index
    %c384 = arith.constant 384 : index
    %70 = vector.load %arg27[%c0_66, %c384] : memref<1x3200xf32, #tpu.memory_space<vmem>>, vector<1x256xf32>
    %71 = vector.broadcast %70 : vector<1x256xf32> to vector<32x256xf32>
    %72 = arith.addf %69, %71 : vector<32x256xf32>
    %73 = vector.extract_strided_slice %72 {offsets = [0, 0], sizes = [32, 64], strides = [1, 1]} : vector<32x256xf32> to vector<32x64xf32>
    %74 = vector.extract_strided_slice %72 {offsets = [0, 128], sizes = [32, 28], strides = [1, 1]} : vector<32x256xf32> to vector<32x28xf32>
    %cst_67 = arith.constant 0.000000e+00 : f32
    %75 = vector.broadcast %cst_67 : f32 to vector<32x28xf32>
    %76 = arith.maximumf %74, %75 : vector<32x28xf32>
    %c2_68 = arith.constant 2 : index
    %c0_69 = arith.constant 0 : index
    %c0_70 = arith.constant 0 : index
    %77 = vector.load %arg9[%c2_68, %c0_69, %c0_70] : memref<5x28x64xf32, #tpu.memory_space<vmem>>, vector<1x28x64xf32>
    %78 = vector.shape_cast %77 : vector<1x28x64xf32> to vector<28x64xf32>
    %cst_71 = arith.constant dense<0.000000e+00> : vector<32x64xf32>
    %79 = tpu.matmul %76, %78, %cst_71 {dimension_numbers = #tpu.dot_dimension_numbers<[1], [0], [0], [1], [0, 0, 1, 1], [], []>} : vector<32x28xf32>, vector<28x64xf32>, vector<32x64xf32> -> vector<32x64xf32>
    %80 = arith.addf %73, %79 : vector<32x64xf32>
    %c2_i32 = arith.constant 2 : i32
    %81 = tpu.dynamic_rotate %76 by %c2_i32 dim 0 : vector<32x28xf32>, i32 -> vector<32x28xf32>
    %82 = vector.broadcast %61 : vector<32x1xf32> to vector<32x28xf32>
    %83 = arith.mulf %81, %82 : vector<32x28xf32>
    %c0_72 = arith.constant 0 : index
    %c0_73 = arith.constant 0 : index
    %c0_74 = arith.constant 0 : index
    %84 = vector.load %arg9[%c0_72, %c0_73, %c0_74] : memref<5x28x64xf32, #tpu.memory_space<vmem>>, vector<1x28x64xf32>
    %85 = vector.shape_cast %84 : vector<1x28x64xf32> to vector<28x64xf32>
    %cst_75 = arith.constant dense<0.000000e+00> : vector<32x64xf32>
    %86 = tpu.matmul %83, %85, %cst_75 {dimension_numbers = #tpu.dot_dimension_numbers<[1], [0], [0], [1], [0, 0, 1, 1], [], []>} : vector<32x28xf32>, vector<28x64xf32>, vector<32x64xf32> -> vector<32x64xf32>
    %87 = arith.addf %80, %86 : vector<32x64xf32>
    %c1_i32_76 = arith.constant 1 : i32
    %88 = tpu.dynamic_rotate %76 by %c1_i32_76 dim 0 : vector<32x28xf32>, i32 -> vector<32x28xf32>
    %89 = vector.broadcast %63 : vector<32x1xf32> to vector<32x28xf32>
    %90 = arith.mulf %88, %89 : vector<32x28xf32>
    %c1_77 = arith.constant 1 : index
    %c0_78 = arith.constant 0 : index
    %c0_79 = arith.constant 0 : index
    %91 = vector.load %arg9[%c1_77, %c0_78, %c0_79] : memref<5x28x64xf32, #tpu.memory_space<vmem>>, vector<1x28x64xf32>
    %92 = vector.shape_cast %91 : vector<1x28x64xf32> to vector<28x64xf32>
    %cst_80 = arith.constant dense<0.000000e+00> : vector<32x64xf32>
    %93 = tpu.matmul %90, %92, %cst_80 {dimension_numbers = #tpu.dot_dimension_numbers<[1], [0], [0], [1], [0, 0, 1, 1], [], []>} : vector<32x28xf32>, vector<28x64xf32>, vector<32x64xf32> -> vector<32x64xf32>
    %94 = arith.addf %87, %93 : vector<32x64xf32>
    %c31_i32 = arith.constant 31 : i32
    %95 = tpu.dynamic_rotate %76 by %c31_i32 dim 0 : vector<32x28xf32>, i32 -> vector<32x28xf32>
    %96 = vector.broadcast %65 : vector<32x1xf32> to vector<32x28xf32>
    %97 = arith.mulf %95, %96 : vector<32x28xf32>
    %c3_81 = arith.constant 3 : index
    %c0_82 = arith.constant 0 : index
    %c0_83 = arith.constant 0 : index
    %98 = vector.load %arg9[%c3_81, %c0_82, %c0_83] : memref<5x28x64xf32, #tpu.memory_space<vmem>>, vector<1x28x64xf32>
    %99 = vector.shape_cast %98 : vector<1x28x64xf32> to vector<28x64xf32>
    %cst_84 = arith.constant dense<0.000000e+00> : vector<32x64xf32>
    %100 = tpu.matmul %97, %99, %cst_84 {dimension_numbers = #tpu.dot_dimension_numbers<[1], [0], [0], [1], [0, 0, 1, 1], [], []>} : vector<32x28xf32>, vector<28x64xf32>, vector<32x64xf32> -> vector<32x64xf32>
    %101 = arith.addf %94, %100 : vector<32x64xf32>
    %c30_i32 = arith.constant 30 : i32
    %102 = tpu.dynamic_rotate %76 by %c30_i32 dim 0 : vector<32x28xf32>, i32 -> vector<32x28xf32>
    %103 = vector.broadcast %67 : vector<32x1xf32> to vector<32x28xf32>
    %104 = arith.mulf %102, %103 : vector<32x28xf32>
    %c4 = arith.constant 4 : index
    %c0_85 = arith.constant 0 : index
    %c0_86 = arith.constant 0 : index
    %105 = vector.load %arg9[%c4, %c0_85, %c0_86] : memref<5x28x64xf32, #tpu.memory_space<vmem>>, vector<1x28x64xf32>
    %106 = vector.shape_cast %105 : vector<1x28x64xf32> to vector<28x64xf32>
    %cst_87 = arith.constant dense<0.000000e+00> : vector<32x64xf32>
    %107 = tpu.matmul %104, %106, %cst_87 {dimension_numbers = #tpu.dot_dimension_numbers<[1], [0], [0], [1], [0, 0, 1, 1], [], []>} : vector<32x28xf32>, vector<28x64xf32>, vector<32x64xf32> -> vector<32x64xf32>
    %108 = arith.addf %101, %107 : vector<32x64xf32>
    %c1_i32_88 = arith.constant 1 : i32
    %109 = tpu.dynamic_rotate %59 by %c1_i32_88 dim 0 : vector<32x48xf32>, i32 -> vector<32x48xf32>
    %110 = vector.broadcast %63 : vector<32x1xf32> to vector<32x48xf32>
    %111 = arith.mulf %109, %110 : vector<32x48xf32>
    %c31_i32_89 = arith.constant 31 : i32
    %112 = tpu.dynamic_rotate %59 by %c31_i32_89 dim 0 : vector<32x48xf32>, i32 -> vector<32x48xf32>
    %113 = vector.broadcast %65 : vector<32x1xf32> to vector<32x48xf32>
    %114 = arith.mulf %112, %113 : vector<32x48xf32>
    %115 = arith.maximumf %111, %114 : vector<32x48xf32>
    %116 = arith.maximumf %59, %115 : vector<32x48xf32>
    %c0_90 = arith.constant 0 : index
    %c0_91 = arith.constant 0 : index
    %117 = vector.load %arg10[%c0_90, %c0_91] : memref<48x64xf32, #tpu.memory_space<vmem>>, vector<48x64xf32>
    %cst_92 = arith.constant dense<0.000000e+00> : vector<32x64xf32>
    %118 = tpu.matmul %116, %117, %cst_92 {dimension_numbers = #tpu.dot_dimension_numbers<[1], [0], [0], [1], [0, 0, 1, 1], [], []>} : vector<32x48xf32>, vector<48x64xf32>, vector<32x64xf32> -> vector<32x64xf32>
    %119 = arith.addf %108, %118 : vector<32x64xf32>
    %cst_93 = arith.constant 0.000000e+00 : f32
    %120 = vector.broadcast %cst_93 : f32 to vector<32x64xf32>
    %121 = arith.maximumf %119, %120 : vector<32x64xf32>
    %c0_94 = arith.constant 0 : index
    %c0_95 = arith.constant 0 : index
    %122 = vector.load %arg20[%c0_94, %c0_95] : memref<64x256xf32, #tpu.memory_space<vmem>>, vector<64x256xf32>
    %cst_96 = arith.constant dense<0.000000e+00> : vector<32x256xf32>
    %123 = tpu.matmul %121, %122, %cst_96 {dimension_numbers = #tpu.dot_dimension_numbers<[1], [0], [0], [1], [0, 0, 1, 1], [], []>} : vector<32x64xf32>, vector<64x256xf32>, vector<32x256xf32> -> vector<32x256xf32>
    %c0_97 = arith.constant 0 : index
    %c640 = arith.constant 640 : index
    %124 = vector.load %arg27[%c0_97, %c640] : memref<1x3200xf32, #tpu.memory_space<vmem>>, vector<1x256xf32>
    %125 = vector.broadcast %124 : vector<1x256xf32> to vector<32x256xf32>
    %126 = arith.addf %123, %125 : vector<32x256xf32>
    %127 = vector.extract_strided_slice %126 {offsets = [0, 0], sizes = [32, 120], strides = [1, 1]} : vector<32x256xf32> to vector<32x120xf32>
    %128 = vector.extract_strided_slice %126 {offsets = [0, 128], sizes = [32, 40], strides = [1, 1]} : vector<32x256xf32> to vector<32x40xf32>
    %cst_98 = arith.constant 0.000000e+00 : f32
    %129 = vector.broadcast %cst_98 : f32 to vector<32x40xf32>
    %130 = arith.maximumf %128, %129 : vector<32x40xf32>
    %c2_99 = arith.constant 2 : index
    %c0_100 = arith.constant 0 : index
    %c0_101 = arith.constant 0 : index
    %131 = vector.load %arg18[%c2_99, %c0_100, %c0_101] : memref<5x40x120xf32, #tpu.memory_space<vmem>>, vector<1x40x120xf32>
    %132 = vector.shape_cast %131 : vector<1x40x120xf32> to vector<40x120xf32>
    %cst_102 = arith.constant dense<0.000000e+00> : vector<32x120xf32>
    %133 = tpu.matmul %130, %132, %cst_102 {dimension_numbers = #tpu.dot_dimension_numbers<[1], [0], [0], [1], [0, 0, 1, 1], [], []>} : vector<32x40xf32>, vector<40x120xf32>, vector<32x120xf32> -> vector<32x120xf32>
    %134 = arith.addf %127, %133 : vector<32x120xf32>
    %c2_i32_103 = arith.constant 2 : i32
    %135 = tpu.dynamic_rotate %130 by %c2_i32_103 dim 0 : vector<32x40xf32>, i32 -> vector<32x40xf32>
    %136 = vector.broadcast %61 : vector<32x1xf32> to vector<32x40xf32>
    %137 = arith.mulf %135, %136 : vector<32x40xf32>
    %c0_104 = arith.constant 0 : index
    %c0_105 = arith.constant 0 : index
    %c0_106 = arith.constant 0 : index
    %138 = vector.load %arg18[%c0_104, %c0_105, %c0_106] : memref<5x40x120xf32, #tpu.memory_space<vmem>>, vector<1x40x120xf32>
    %139 = vector.shape_cast %138 : vector<1x40x120xf32> to vector<40x120xf32>
    %cst_107 = arith.constant dense<0.000000e+00> : vector<32x120xf32>
    %140 = tpu.matmul %137, %139, %cst_107 {dimension_numbers = #tpu.dot_dimension_numbers<[1], [0], [0], [1], [0, 0, 1, 1], [], []>} : vector<32x40xf32>, vector<40x120xf32>, vector<32x120xf32> -> vector<32x120xf32>
    %141 = arith.addf %134, %140 : vector<32x120xf32>
    %c1_i32_108 = arith.constant 1 : i32
    %142 = tpu.dynamic_rotate %130 by %c1_i32_108 dim 0 : vector<32x40xf32>, i32 -> vector<32x40xf32>
    %143 = vector.broadcast %63 : vector<32x1xf32> to vector<32x40xf32>
    %144 = arith.mulf %142, %143 : vector<32x40xf32>
    %c1_109 = arith.constant 1 : index
    %c0_110 = arith.constant 0 : index
    %c0_111 = arith.constant 0 : index
    %145 = vector.load %arg18[%c1_109, %c0_110, %c0_111] : memref<5x40x120xf32, #tpu.memory_space<vmem>>, vector<1x40x120xf32>
    %146 = vector.shape_cast %145 : vector<1x40x120xf32> to vector<40x120xf32>
    %cst_112 = arith.constant dense<0.000000e+00> : vector<32x120xf32>
    %147 = tpu.matmul %144, %146, %cst_112 {dimension_numbers = #tpu.dot_dimension_numbers<[1], [0], [0], [1], [0, 0, 1, 1], [], []>} : vector<32x40xf32>, vector<40x120xf32>, vector<32x120xf32> -> vector<32x120xf32>
    %148 = arith.addf %141, %147 : vector<32x120xf32>
    %c31_i32_113 = arith.constant 31 : i32
    %149 = tpu.dynamic_rotate %130 by %c31_i32_113 dim 0 : vector<32x40xf32>, i32 -> vector<32x40xf32>
    %150 = vector.broadcast %65 : vector<32x1xf32> to vector<32x40xf32>
    %151 = arith.mulf %149, %150 : vector<32x40xf32>
    %c3_114 = arith.constant 3 : index
    %c0_115 = arith.constant 0 : index
    %c0_116 = arith.constant 0 : index
    %152 = vector.load %arg18[%c3_114, %c0_115, %c0_116] : memref<5x40x120xf32, #tpu.memory_space<vmem>>, vector<1x40x120xf32>
    %153 = vector.shape_cast %152 : vector<1x40x120xf32> to vector<40x120xf32>
    %cst_117 = arith.constant dense<0.000000e+00> : vector<32x120xf32>
    %154 = tpu.matmul %151, %153, %cst_117 {dimension_numbers = #tpu.dot_dimension_numbers<[1], [0], [0], [1], [0, 0, 1, 1], [], []>} : vector<32x40xf32>, vector<40x120xf32>, vector<32x120xf32> -> vector<32x120xf32>
    %155 = arith.addf %148, %154 : vector<32x120xf32>
    %c30_i32_118 = arith.constant 30 : i32
    %156 = tpu.dynamic_rotate %130 by %c30_i32_118 dim 0 : vector<32x40xf32>, i32 -> vector<32x40xf32>
    %157 = vector.broadcast %67 : vector<32x1xf32> to vector<32x40xf32>
    %158 = arith.mulf %156, %157 : vector<32x40xf32>
    %c4_119 = arith.constant 4 : index
    %c0_120 = arith.constant 0 : index
    %c0_121 = arith.constant 0 : index
    %159 = vector.load %arg18[%c4_119, %c0_120, %c0_121] : memref<5x40x120xf32, #tpu.memory_space<vmem>>, vector<1x40x120xf32>
    %160 = vector.shape_cast %159 : vector<1x40x120xf32> to vector<40x120xf32>
    %cst_122 = arith.constant dense<0.000000e+00> : vector<32x120xf32>
    %161 = tpu.matmul %158, %160, %cst_122 {dimension_numbers = #tpu.dot_dimension_numbers<[1], [0], [0], [1], [0, 0, 1, 1], [], []>} : vector<32x40xf32>, vector<40x120xf32>, vector<32x120xf32> -> vector<32x120xf32>
    %162 = arith.addf %155, %161 : vector<32x120xf32>
    %c1_i32_123 = arith.constant 1 : i32
    %163 = tpu.dynamic_rotate %121 by %c1_i32_123 dim 0 : vector<32x64xf32>, i32 -> vector<32x64xf32>
    %164 = vector.broadcast %63 : vector<32x1xf32> to vector<32x64xf32>
    %165 = arith.mulf %163, %164 : vector<32x64xf32>
    %c31_i32_124 = arith.constant 31 : i32
    %166 = tpu.dynamic_rotate %121 by %c31_i32_124 dim 0 : vector<32x64xf32>, i32 -> vector<32x64xf32>
    %167 = vector.broadcast %65 : vector<32x1xf32> to vector<32x64xf32>
    %168 = arith.mulf %166, %167 : vector<32x64xf32>
    %169 = arith.maximumf %165, %168 : vector<32x64xf32>
    %170 = arith.maximumf %121, %169 : vector<32x64xf32>
    %c0_125 = arith.constant 0 : index
    %c0_126 = arith.constant 0 : index
    %171 = vector.load %arg19[%c0_125, %c0_126] : memref<64x120xf32, #tpu.memory_space<vmem>>, vector<64x120xf32>
    %cst_127 = arith.constant dense<0.000000e+00> : vector<32x120xf32>
    %172 = tpu.matmul %170, %171, %cst_127 {dimension_numbers = #tpu.dot_dimension_numbers<[1], [0], [0], [1], [0, 0, 1, 1], [], []>} : vector<32x64xf32>, vector<64x120xf32>, vector<32x120xf32> -> vector<32x120xf32>
    %173 = arith.addf %162, %172 : vector<32x120xf32>
    %cst_128 = arith.constant 0.000000e+00 : f32
    %174 = vector.broadcast %cst_128 : f32 to vector<32x120xf32>
    %175 = arith.maximumf %173, %174 : vector<32x120xf32>
    %c0_129 = arith.constant 0 : index
    %c0_130 = arith.constant 0 : index
    %c0_131 = arith.constant 0 : index
    %176 = vector.load %arg7[%c0_129, %c0_130, %c0_131] : memref<3x24x32xf32, #tpu.memory_space<vmem>>, vector<1x24x32xf32>
    %177 = vector.shape_cast %176 : vector<1x24x32xf32> to vector<24x32xf32>
    %cst_132 = arith.constant dense<0.000000e+00> : vector<24x120xf32>
    %178 = tpu.matmul %177, %175, %cst_132 {dimension_numbers = #tpu.dot_dimension_numbers<[1], [0], [0], [1], [0, 0, 1, 1], [], []>} : vector<24x32xf32>, vector<32x120xf32>, vector<24x120xf32> -> vector<24x120xf32>
    %c1_133 = arith.constant 1 : index
    %c0_134 = arith.constant 0 : index
    %c0_135 = arith.constant 0 : index
    %179 = vector.load %arg7[%c1_133, %c0_134, %c0_135] : memref<3x24x32xf32, #tpu.memory_space<vmem>>, vector<1x24x32xf32>
    %180 = vector.shape_cast %179 : vector<1x24x32xf32> to vector<24x32xf32>
    %cst_136 = arith.constant dense<0.000000e+00> : vector<24x120xf32>
    %181 = tpu.matmul %180, %175, %cst_136 {dimension_numbers = #tpu.dot_dimension_numbers<[1], [0], [0], [1], [0, 0, 1, 1], [], []>} : vector<24x32xf32>, vector<32x120xf32>, vector<24x120xf32> -> vector<24x120xf32>
    %182 = arith.maximumf %178, %181 : vector<24x120xf32>
    %c2_137 = arith.constant 2 : index
    %c0_138 = arith.constant 0 : index
    %c0_139 = arith.constant 0 : index
    %183 = vector.load %arg7[%c2_137, %c0_138, %c0_139] : memref<3x24x32xf32, #tpu.memory_space<vmem>>, vector<1x24x32xf32>
    %184 = vector.shape_cast %183 : vector<1x24x32xf32> to vector<24x32xf32>
    %cst_140 = arith.constant dense<0.000000e+00> : vector<24x120xf32>
    %185 = tpu.matmul %184, %175, %cst_140 {dimension_numbers = #tpu.dot_dimension_numbers<[1], [0], [0], [1], [0, 0, 1, 1], [], []>} : vector<24x32xf32>, vector<32x120xf32>, vector<24x120xf32> -> vector<24x120xf32>
    %186 = arith.maximumf %182, %185 : vector<24x120xf32>
    %c0_141 = arith.constant 0 : index
    %c0_142 = arith.constant 0 : index
    %c0_143 = arith.constant 0 : index
    %187 = vector.load %arg1[%c0_141, %c0_142, %c0_143] : memref<4x24x1xf32, #tpu.memory_space<vmem>>, vector<1x24x1xf32>
    %188 = vector.shape_cast %187 : vector<1x24x1xf32> to vector<24x1xf32>
    %c1_144 = arith.constant 1 : index
    %c0_145 = arith.constant 0 : index
    %c0_146 = arith.constant 0 : index
    %189 = vector.load %arg1[%c1_144, %c0_145, %c0_146] : memref<4x24x1xf32, #tpu.memory_space<vmem>>, vector<1x24x1xf32>
    %190 = vector.shape_cast %189 : vector<1x24x1xf32> to vector<24x1xf32>
    %c2_147 = arith.constant 2 : index
    %c0_148 = arith.constant 0 : index
    %c0_149 = arith.constant 0 : index
    %191 = vector.load %arg1[%c2_147, %c0_148, %c0_149] : memref<4x24x1xf32, #tpu.memory_space<vmem>>, vector<1x24x1xf32>
    %192 = vector.shape_cast %191 : vector<1x24x1xf32> to vector<24x1xf32>
    %c3_150 = arith.constant 3 : index
    %c0_151 = arith.constant 0 : index
    %c0_152 = arith.constant 0 : index
    %193 = vector.load %arg1[%c3_150, %c0_151, %c0_152] : memref<4x24x1xf32, #tpu.memory_space<vmem>>, vector<1x24x1xf32>
    %194 = vector.shape_cast %193 : vector<1x24x1xf32> to vector<24x1xf32>
    %c0_153 = arith.constant 0 : index
    %c0_154 = arith.constant 0 : index
    %195 = vector.load %arg14[%c0_153, %c0_154] : memref<120x256xf32, #tpu.memory_space<vmem>>, vector<120x256xf32>
    %cst_155 = arith.constant dense<0.000000e+00> : vector<24x256xf32>
    %196 = tpu.matmul %186, %195, %cst_155 {dimension_numbers = #tpu.dot_dimension_numbers<[1], [0], [0], [1], [0, 0, 1, 1], [], []>} : vector<24x120xf32>, vector<120x256xf32>, vector<24x256xf32> -> vector<24x256xf32>
    %c0_156 = arith.constant 0 : index
    %c896 = arith.constant 896 : index
    %197 = vector.load %arg27[%c0_156, %c896] : memref<1x3200xf32, #tpu.memory_space<vmem>>, vector<1x256xf32>
    %198 = vector.broadcast %197 : vector<1x256xf32> to vector<24x256xf32>
    %199 = arith.addf %196, %198 : vector<24x256xf32>
    %200 = vector.extract_strided_slice %199 {offsets = [0, 0], sizes = [24, 128], strides = [1, 1]} : vector<24x256xf32> to vector<24x128xf32>
    %201 = vector.extract_strided_slice %199 {offsets = [0, 128], sizes = [24, 28], strides = [1, 1]} : vector<24x256xf32> to vector<24x28xf32>
    %cst_157 = arith.constant 0.000000e+00 : f32
    %202 = vector.broadcast %cst_157 : f32 to vector<24x28xf32>
    %203 = arith.maximumf %201, %202 : vector<24x28xf32>
    %c2_158 = arith.constant 2 : index
    %c0_159 = arith.constant 0 : index
    %c0_160 = arith.constant 0 : index
    %204 = vector.load %arg12[%c2_158, %c0_159, %c0_160] : memref<5x28x128xf32, #tpu.memory_space<vmem>>, vector<1x28x128xf32>
    %205 = vector.shape_cast %204 : vector<1x28x128xf32> to vector<28x128xf32>
    %cst_161 = arith.constant dense<0.000000e+00> : vector<24x128xf32>
    %206 = tpu.matmul %203, %205, %cst_161 {dimension_numbers = #tpu.dot_dimension_numbers<[1], [0], [0], [1], [0, 0, 1, 1], [], []>} : vector<24x28xf32>, vector<28x128xf32>, vector<24x128xf32> -> vector<24x128xf32>
    %207 = arith.addf %200, %206 : vector<24x128xf32>
    %c2_i32_162 = arith.constant 2 : i32
    %208 = tpu.dynamic_rotate %203 by %c2_i32_162 dim 0 : vector<24x28xf32>, i32 -> vector<24x28xf32>
    %209 = vector.broadcast %188 : vector<24x1xf32> to vector<24x28xf32>
    %210 = arith.mulf %208, %209 : vector<24x28xf32>
    %c0_163 = arith.constant 0 : index
    %c0_164 = arith.constant 0 : index
    %c0_165 = arith.constant 0 : index
    %211 = vector.load %arg12[%c0_163, %c0_164, %c0_165] : memref<5x28x128xf32, #tpu.memory_space<vmem>>, vector<1x28x128xf32>
    %212 = vector.shape_cast %211 : vector<1x28x128xf32> to vector<28x128xf32>
    %cst_166 = arith.constant dense<0.000000e+00> : vector<24x128xf32>
    %213 = tpu.matmul %210, %212, %cst_166 {dimension_numbers = #tpu.dot_dimension_numbers<[1], [0], [0], [1], [0, 0, 1, 1], [], []>} : vector<24x28xf32>, vector<28x128xf32>, vector<24x128xf32> -> vector<24x128xf32>
    %214 = arith.addf %207, %213 : vector<24x128xf32>
    %c1_i32_167 = arith.constant 1 : i32
    %215 = tpu.dynamic_rotate %203 by %c1_i32_167 dim 0 : vector<24x28xf32>, i32 -> vector<24x28xf32>
    %216 = vector.broadcast %190 : vector<24x1xf32> to vector<24x28xf32>
    %217 = arith.mulf %215, %216 : vector<24x28xf32>
    %c1_168 = arith.constant 1 : index
    %c0_169 = arith.constant 0 : index
    %c0_170 = arith.constant 0 : index
    %218 = vector.load %arg12[%c1_168, %c0_169, %c0_170] : memref<5x28x128xf32, #tpu.memory_space<vmem>>, vector<1x28x128xf32>
    %219 = vector.shape_cast %218 : vector<1x28x128xf32> to vector<28x128xf32>
    %cst_171 = arith.constant dense<0.000000e+00> : vector<24x128xf32>
    %220 = tpu.matmul %217, %219, %cst_171 {dimension_numbers = #tpu.dot_dimension_numbers<[1], [0], [0], [1], [0, 0, 1, 1], [], []>} : vector<24x28xf32>, vector<28x128xf32>, vector<24x128xf32> -> vector<24x128xf32>
    %221 = arith.addf %214, %220 : vector<24x128xf32>
    %c23_i32 = arith.constant 23 : i32
    %222 = tpu.dynamic_rotate %203 by %c23_i32 dim 0 : vector<24x28xf32>, i32 -> vector<24x28xf32>
    %223 = vector.broadcast %192 : vector<24x1xf32> to vector<24x28xf32>
    %224 = arith.mulf %222, %223 : vector<24x28xf32>
    %c3_172 = arith.constant 3 : index
    %c0_173 = arith.constant 0 : index
    %c0_174 = arith.constant 0 : index
    %225 = vector.load %arg12[%c3_172, %c0_173, %c0_174] : memref<5x28x128xf32, #tpu.memory_space<vmem>>, vector<1x28x128xf32>
    %226 = vector.shape_cast %225 : vector<1x28x128xf32> to vector<28x128xf32>
    %cst_175 = arith.constant dense<0.000000e+00> : vector<24x128xf32>
    %227 = tpu.matmul %224, %226, %cst_175 {dimension_numbers = #tpu.dot_dimension_numbers<[1], [0], [0], [1], [0, 0, 1, 1], [], []>} : vector<24x28xf32>, vector<28x128xf32>, vector<24x128xf32> -> vector<24x128xf32>
    %228 = arith.addf %221, %227 : vector<24x128xf32>
    %c22_i32 = arith.constant 22 : i32
    %229 = tpu.dynamic_rotate %203 by %c22_i32 dim 0 : vector<24x28xf32>, i32 -> vector<24x28xf32>
    %230 = vector.broadcast %194 : vector<24x1xf32> to vector<24x28xf32>
    %231 = arith.mulf %229, %230 : vector<24x28xf32>
    %c4_176 = arith.constant 4 : index
    %c0_177 = arith.constant 0 : index
    %c0_178 = arith.constant 0 : index
    %232 = vector.load %arg12[%c4_176, %c0_177, %c0_178] : memref<5x28x128xf32, #tpu.memory_space<vmem>>, vector<1x28x128xf32>
    %233 = vector.shape_cast %232 : vector<1x28x128xf32> to vector<28x128xf32>
    %cst_179 = arith.constant dense<0.000000e+00> : vector<24x128xf32>
    %234 = tpu.matmul %231, %233, %cst_179 {dimension_numbers = #tpu.dot_dimension_numbers<[1], [0], [0], [1], [0, 0, 1, 1], [], []>} : vector<24x28xf32>, vector<28x128xf32>, vector<24x128xf32> -> vector<24x128xf32>
    %235 = arith.addf %228, %234 : vector<24x128xf32>
    %c1_i32_180 = arith.constant 1 : i32
    %236 = tpu.dynamic_rotate %186 by %c1_i32_180 dim 0 : vector<24x120xf32>, i32 -> vector<24x120xf32>
    %237 = vector.broadcast %190 : vector<24x1xf32> to vector<24x120xf32>
    %238 = arith.mulf %236, %237 : vector<24x120xf32>
    %c23_i32_181 = arith.constant 23 : i32
    %239 = tpu.dynamic_rotate %186 by %c23_i32_181 dim 0 : vector<24x120xf32>, i32 -> vector<24x120xf32>
    %240 = vector.broadcast %192 : vector<24x1xf32> to vector<24x120xf32>
    %241 = arith.mulf %239, %240 : vector<24x120xf32>
    %242 = arith.maximumf %238, %241 : vector<24x120xf32>
    %243 = arith.maximumf %186, %242 : vector<24x120xf32>
    %c0_182 = arith.constant 0 : index
    %c0_183 = arith.constant 0 : index
    %244 = vector.load %arg13[%c0_182, %c0_183] : memref<120x128xf32, #tpu.memory_space<vmem>>, vector<120x128xf32>
    %cst_184 = arith.constant dense<0.000000e+00> : vector<24x128xf32>
    %245 = tpu.matmul %243, %244, %cst_184 {dimension_numbers = #tpu.dot_dimension_numbers<[1], [0], [0], [1], [0, 0, 1, 1], [], []>} : vector<24x120xf32>, vector<120x128xf32>, vector<24x128xf32> -> vector<24x128xf32>
    %246 = arith.addf %235, %245 : vector<24x128xf32>
    %cst_185 = arith.constant 0.000000e+00 : f32
    %247 = vector.broadcast %cst_185 : f32 to vector<24x128xf32>
    %248 = arith.maximumf %246, %247 : vector<24x128xf32>
    %c0_186 = arith.constant 0 : index
    %c0_187 = arith.constant 0 : index
    %249 = vector.load %arg23[%c0_186, %c0_187] : memref<128x256xf32, #tpu.memory_space<vmem>>, vector<128x256xf32>
    %cst_188 = arith.constant dense<0.000000e+00> : vector<24x256xf32>
    %250 = tpu.matmul %248, %249, %cst_188 {dimension_numbers = #tpu.dot_dimension_numbers<[1], [0], [0], [1], [0, 0, 1, 1], [], []>} : vector<24x128xf32>, vector<128x256xf32>, vector<24x256xf32> -> vector<24x256xf32>
    %c0_189 = arith.constant 0 : index
    %c1152 = arith.constant 1152 : index
    %251 = vector.load %arg27[%c0_189, %c1152] : memref<1x3200xf32, #tpu.memory_space<vmem>>, vector<1x256xf32>
    %252 = vector.broadcast %251 : vector<1x256xf32> to vector<24x256xf32>
    %253 = arith.addf %250, %252 : vector<24x256xf32>
    %254 = vector.extract_strided_slice %253 {offsets = [0, 0], sizes = [24, 128], strides = [1, 1]} : vector<24x256xf32> to vector<24x128xf32>
    %255 = vector.extract_strided_slice %253 {offsets = [0, 128], sizes = [24, 34], strides = [1, 1]} : vector<24x256xf32> to vector<24x34xf32>
    %cst_190 = arith.constant 0.000000e+00 : f32
    %256 = vector.broadcast %cst_190 : f32 to vector<24x34xf32>
    %257 = arith.maximumf %255, %256 : vector<24x34xf32>
    %c2_191 = arith.constant 2 : index
    %c0_192 = arith.constant 0 : index
    %c0_193 = arith.constant 0 : index
    %258 = vector.load %arg21[%c2_191, %c0_192, %c0_193] : memref<5x34x128xf32, #tpu.memory_space<vmem>>, vector<1x34x128xf32>
    %259 = vector.shape_cast %258 : vector<1x34x128xf32> to vector<34x128xf32>
    %cst_194 = arith.constant dense<0.000000e+00> : vector<24x128xf32>
    %260 = tpu.matmul %257, %259, %cst_194 {dimension_numbers = #tpu.dot_dimension_numbers<[1], [0], [0], [1], [0, 0, 1, 1], [], []>} : vector<24x34xf32>, vector<34x128xf32>, vector<24x128xf32> -> vector<24x128xf32>
    %261 = arith.addf %254, %260 : vector<24x128xf32>
    %c2_i32_195 = arith.constant 2 : i32
    %262 = tpu.dynamic_rotate %257 by %c2_i32_195 dim 0 : vector<24x34xf32>, i32 -> vector<24x34xf32>
    %263 = vector.broadcast %188 : vector<24x1xf32> to vector<24x34xf32>
    %264 = arith.mulf %262, %263 : vector<24x34xf32>
    %c0_196 = arith.constant 0 : index
    %c0_197 = arith.constant 0 : index
    %c0_198 = arith.constant 0 : index
    %265 = vector.load %arg21[%c0_196, %c0_197, %c0_198] : memref<5x34x128xf32, #tpu.memory_space<vmem>>, vector<1x34x128xf32>
    %266 = vector.shape_cast %265 : vector<1x34x128xf32> to vector<34x128xf32>
    %cst_199 = arith.constant dense<0.000000e+00> : vector<24x128xf32>
    %267 = tpu.matmul %264, %266, %cst_199 {dimension_numbers = #tpu.dot_dimension_numbers<[1], [0], [0], [1], [0, 0, 1, 1], [], []>} : vector<24x34xf32>, vector<34x128xf32>, vector<24x128xf32> -> vector<24x128xf32>
    %268 = arith.addf %261, %267 : vector<24x128xf32>
    %c1_i32_200 = arith.constant 1 : i32
    %269 = tpu.dynamic_rotate %257 by %c1_i32_200 dim 0 : vector<24x34xf32>, i32 -> vector<24x34xf32>
    %270 = vector.broadcast %190 : vector<24x1xf32> to vector<24x34xf32>
    %271 = arith.mulf %269, %270 : vector<24x34xf32>
    %c1_201 = arith.constant 1 : index
    %c0_202 = arith.constant 0 : index
    %c0_203 = arith.constant 0 : index
    %272 = vector.load %arg21[%c1_201, %c0_202, %c0_203] : memref<5x34x128xf32, #tpu.memory_space<vmem>>, vector<1x34x128xf32>
    %273 = vector.shape_cast %272 : vector<1x34x128xf32> to vector<34x128xf32>
    %cst_204 = arith.constant dense<0.000000e+00> : vector<24x128xf32>
    %274 = tpu.matmul %271, %273, %cst_204 {dimension_numbers = #tpu.dot_dimension_numbers<[1], [0], [0], [1], [0, 0, 1, 1], [], []>} : vector<24x34xf32>, vector<34x128xf32>, vector<24x128xf32> -> vector<24x128xf32>
    %275 = arith.addf %268, %274 : vector<24x128xf32>
    %c23_i32_205 = arith.constant 23 : i32
    %276 = tpu.dynamic_rotate %257 by %c23_i32_205 dim 0 : vector<24x34xf32>, i32 -> vector<24x34xf32>
    %277 = vector.broadcast %192 : vector<24x1xf32> to vector<24x34xf32>
    %278 = arith.mulf %276, %277 : vector<24x34xf32>
    %c3_206 = arith.constant 3 : index
    %c0_207 = arith.constant 0 : index
    %c0_208 = arith.constant 0 : index
    %279 = vector.load %arg21[%c3_206, %c0_207, %c0_208] : memref<5x34x128xf32, #tpu.memory_space<vmem>>, vector<1x34x128xf32>
    %280 = vector.shape_cast %279 : vector<1x34x128xf32> to vector<34x128xf32>
    %cst_209 = arith.constant dense<0.000000e+00> : vector<24x128xf32>
    %281 = tpu.matmul %278, %280, %cst_209 {dimension_numbers = #tpu.dot_dimension_numbers<[1], [0], [0], [1], [0, 0, 1, 1], [], []>} : vector<24x34xf32>, vector<34x128xf32>, vector<24x128xf32> -> vector<24x128xf32>
    %282 = arith.addf %275, %281 : vector<24x128xf32>
    %c22_i32_210 = arith.constant 22 : i32
    %283 = tpu.dynamic_rotate %257 by %c22_i32_210 dim 0 : vector<24x34xf32>, i32 -> vector<24x34xf32>
    %284 = vector.broadcast %194 : vector<24x1xf32> to vector<24x34xf32>
    %285 = arith.mulf %283, %284 : vector<24x34xf32>
    %c4_211 = arith.constant 4 : index
    %c0_212 = arith.constant 0 : index
    %c0_213 = arith.constant 0 : index
    %286 = vector.load %arg21[%c4_211, %c0_212, %c0_213] : memref<5x34x128xf32, #tpu.memory_space<vmem>>, vector<1x34x128xf32>
    %287 = vector.shape_cast %286 : vector<1x34x128xf32> to vector<34x128xf32>
    %cst_214 = arith.constant dense<0.000000e+00> : vector<24x128xf32>
    %288 = tpu.matmul %285, %287, %cst_214 {dimension_numbers = #tpu.dot_dimension_numbers<[1], [0], [0], [1], [0, 0, 1, 1], [], []>} : vector<24x34xf32>, vector<34x128xf32>, vector<24x128xf32> -> vector<24x128xf32>
    %289 = arith.addf %282, %288 : vector<24x128xf32>
    %c1_i32_215 = arith.constant 1 : i32
    %290 = tpu.dynamic_rotate %248 by %c1_i32_215 dim 0 : vector<24x128xf32>, i32 -> vector<24x128xf32>
    %291 = vector.broadcast %190 : vector<24x1xf32> to vector<24x128xf32>
    %292 = arith.mulf %290, %291 : vector<24x128xf32>
    %c23_i32_216 = arith.constant 23 : i32
    %293 = tpu.dynamic_rotate %248 by %c23_i32_216 dim 0 : vector<24x128xf32>, i32 -> vector<24x128xf32>
    %294 = vector.broadcast %192 : vector<24x1xf32> to vector<24x128xf32>
    %295 = arith.mulf %293, %294 : vector<24x128xf32>
    %296 = arith.maximumf %292, %295 : vector<24x128xf32>
    %297 = arith.maximumf %248, %296 : vector<24x128xf32>
    %c0_217 = arith.constant 0 : index
    %c0_218 = arith.constant 0 : index
    %298 = vector.load %arg22[%c0_217, %c0_218] : memref<128x128xf32, #tpu.memory_space<vmem>>, vector<128x128xf32>
    %cst_219 = arith.constant dense<0.000000e+00> : vector<24x128xf32>
    %299 = tpu.matmul %297, %298, %cst_219 {dimension_numbers = #tpu.dot_dimension_numbers<[1], [0], [0], [1], [0, 0, 1, 1], [], []>} : vector<24x128xf32>, vector<128x128xf32>, vector<24x128xf32> -> vector<24x128xf32>
    %300 = arith.addf %289, %299 : vector<24x128xf32>
    %cst_220 = arith.constant 0.000000e+00 : f32
    %301 = vector.broadcast %cst_220 : f32 to vector<24x128xf32>
    %302 = arith.maximumf %300, %301 : vector<24x128xf32>
    %c0_221 = arith.constant 0 : index
    %c0_222 = arith.constant 0 : index
    %303 = vector.load %arg30[%c0_221, %c0_222] : memref<128x256xf32, #tpu.memory_space<vmem>>, vector<128x256xf32>
    %cst_223 = arith.constant dense<0.000000e+00> : vector<24x256xf32>
    %304 = tpu.matmul %302, %303, %cst_223 {dimension_numbers = #tpu.dot_dimension_numbers<[1], [0], [0], [1], [0, 0, 1, 1], [], []>} : vector<24x128xf32>, vector<128x256xf32>, vector<24x256xf32> -> vector<24x256xf32>
    %c0_224 = arith.constant 0 : index
    %c1408 = arith.constant 1408 : index
    %305 = vector.load %arg27[%c0_224, %c1408] : memref<1x3200xf32, #tpu.memory_space<vmem>>, vector<1x256xf32>
    %306 = vector.broadcast %305 : vector<1x256xf32> to vector<24x256xf32>
    %307 = arith.addf %304, %306 : vector<24x256xf32>
    %308 = vector.extract_strided_slice %307 {offsets = [0, 0], sizes = [24, 128], strides = [1, 1]} : vector<24x256xf32> to vector<24x128xf32>
    %309 = vector.extract_strided_slice %307 {offsets = [0, 128], sizes = [24, 38], strides = [1, 1]} : vector<24x256xf32> to vector<24x38xf32>
    %cst_225 = arith.constant 0.000000e+00 : f32
    %310 = vector.broadcast %cst_225 : f32 to vector<24x38xf32>
    %311 = arith.maximumf %309, %310 : vector<24x38xf32>
    %c2_226 = arith.constant 2 : index
    %c0_227 = arith.constant 0 : index
    %c0_228 = arith.constant 0 : index
    %312 = vector.load %arg28[%c2_226, %c0_227, %c0_228] : memref<5x38x128xf32, #tpu.memory_space<vmem>>, vector<1x38x128xf32>
    %313 = vector.shape_cast %312 : vector<1x38x128xf32> to vector<38x128xf32>
    %cst_229 = arith.constant dense<0.000000e+00> : vector<24x128xf32>
    %314 = tpu.matmul %311, %313, %cst_229 {dimension_numbers = #tpu.dot_dimension_numbers<[1], [0], [0], [1], [0, 0, 1, 1], [], []>} : vector<24x38xf32>, vector<38x128xf32>, vector<24x128xf32> -> vector<24x128xf32>
    %315 = arith.addf %308, %314 : vector<24x128xf32>
    %c2_i32_230 = arith.constant 2 : i32
    %316 = tpu.dynamic_rotate %311 by %c2_i32_230 dim 0 : vector<24x38xf32>, i32 -> vector<24x38xf32>
    %317 = vector.broadcast %188 : vector<24x1xf32> to vector<24x38xf32>
    %318 = arith.mulf %316, %317 : vector<24x38xf32>
    %c0_231 = arith.constant 0 : index
    %c0_232 = arith.constant 0 : index
    %c0_233 = arith.constant 0 : index
    %319 = vector.load %arg28[%c0_231, %c0_232, %c0_233] : memref<5x38x128xf32, #tpu.memory_space<vmem>>, vector<1x38x128xf32>
    %320 = vector.shape_cast %319 : vector<1x38x128xf32> to vector<38x128xf32>
    %cst_234 = arith.constant dense<0.000000e+00> : vector<24x128xf32>
    %321 = tpu.matmul %318, %320, %cst_234 {dimension_numbers = #tpu.dot_dimension_numbers<[1], [0], [0], [1], [0, 0, 1, 1], [], []>} : vector<24x38xf32>, vector<38x128xf32>, vector<24x128xf32> -> vector<24x128xf32>
    %322 = arith.addf %315, %321 : vector<24x128xf32>
    %c1_i32_235 = arith.constant 1 : i32
    %323 = tpu.dynamic_rotate %311 by %c1_i32_235 dim 0 : vector<24x38xf32>, i32 -> vector<24x38xf32>
    %324 = vector.broadcast %190 : vector<24x1xf32> to vector<24x38xf32>
    %325 = arith.mulf %323, %324 : vector<24x38xf32>
    %c1_236 = arith.constant 1 : index
    %c0_237 = arith.constant 0 : index
    %c0_238 = arith.constant 0 : index
    %326 = vector.load %arg28[%c1_236, %c0_237, %c0_238] : memref<5x38x128xf32, #tpu.memory_space<vmem>>, vector<1x38x128xf32>
    %327 = vector.shape_cast %326 : vector<1x38x128xf32> to vector<38x128xf32>
    %cst_239 = arith.constant dense<0.000000e+00> : vector<24x128xf32>
    %328 = tpu.matmul %325, %327, %cst_239 {dimension_numbers = #tpu.dot_dimension_numbers<[1], [0], [0], [1], [0, 0, 1, 1], [], []>} : vector<24x38xf32>, vector<38x128xf32>, vector<24x128xf32> -> vector<24x128xf32>
    %329 = arith.addf %322, %328 : vector<24x128xf32>
    %c23_i32_240 = arith.constant 23 : i32
    %330 = tpu.dynamic_rotate %311 by %c23_i32_240 dim 0 : vector<24x38xf32>, i32 -> vector<24x38xf32>
    %331 = vector.broadcast %192 : vector<24x1xf32> to vector<24x38xf32>
    %332 = arith.mulf %330, %331 : vector<24x38xf32>
    %c3_241 = arith.constant 3 : index
    %c0_242 = arith.constant 0 : index
    %c0_243 = arith.constant 0 : index
    %333 = vector.load %arg28[%c3_241, %c0_242, %c0_243] : memref<5x38x128xf32, #tpu.memory_space<vmem>>, vector<1x38x128xf32>
    %334 = vector.shape_cast %333 : vector<1x38x128xf32> to vector<38x128xf32>
    %cst_244 = arith.constant dense<0.000000e+00> : vector<24x128xf32>
    %335 = tpu.matmul %332, %334, %cst_244 {dimension_numbers = #tpu.dot_dimension_numbers<[1], [0], [0], [1], [0, 0, 1, 1], [], []>} : vector<24x38xf32>, vector<38x128xf32>, vector<24x128xf32> -> vector<24x128xf32>
    %336 = arith.addf %329, %335 : vector<24x128xf32>
    %c22_i32_245 = arith.constant 22 : i32
    %337 = tpu.dynamic_rotate %311 by %c22_i32_245 dim 0 : vector<24x38xf32>, i32 -> vector<24x38xf32>
    %338 = vector.broadcast %194 : vector<24x1xf32> to vector<24x38xf32>
    %339 = arith.mulf %337, %338 : vector<24x38xf32>
    %c4_246 = arith.constant 4 : index
    %c0_247 = arith.constant 0 : index
    %c0_248 = arith.constant 0 : index
    %340 = vector.load %arg28[%c4_246, %c0_247, %c0_248] : memref<5x38x128xf32, #tpu.memory_space<vmem>>, vector<1x38x128xf32>
    %341 = vector.shape_cast %340 : vector<1x38x128xf32> to vector<38x128xf32>
    %cst_249 = arith.constant dense<0.000000e+00> : vector<24x128xf32>
    %342 = tpu.matmul %339, %341, %cst_249 {dimension_numbers = #tpu.dot_dimension_numbers<[1], [0], [0], [1], [0, 0, 1, 1], [], []>} : vector<24x38xf32>, vector<38x128xf32>, vector<24x128xf32> -> vector<24x128xf32>
    %343 = arith.addf %336, %342 : vector<24x128xf32>
    %c1_i32_250 = arith.constant 1 : i32
    %344 = tpu.dynamic_rotate %302 by %c1_i32_250 dim 0 : vector<24x128xf32>, i32 -> vector<24x128xf32>
    %345 = vector.broadcast %190 : vector<24x1xf32> to vector<24x128xf32>
    %346 = arith.mulf %344, %345 : vector<24x128xf32>
    %c23_i32_251 = arith.constant 23 : i32
    %347 = tpu.dynamic_rotate %302 by %c23_i32_251 dim 0 : vector<24x128xf32>, i32 -> vector<24x128xf32>
    %348 = vector.broadcast %192 : vector<24x1xf32> to vector<24x128xf32>
    %349 = arith.mulf %347, %348 : vector<24x128xf32>
    %350 = arith.maximumf %346, %349 : vector<24x128xf32>
    %351 = arith.maximumf %302, %350 : vector<24x128xf32>
    %c0_252 = arith.constant 0 : index
    %c0_253 = arith.constant 0 : index
    %352 = vector.load %arg29[%c0_252, %c0_253] : memref<128x128xf32, #tpu.memory_space<vmem>>, vector<128x128xf32>
    %cst_254 = arith.constant dense<0.000000e+00> : vector<24x128xf32>
    %353 = tpu.matmul %351, %352, %cst_254 {dimension_numbers = #tpu.dot_dimension_numbers<[1], [0], [0], [1], [0, 0, 1, 1], [], []>} : vector<24x128xf32>, vector<128x128xf32>, vector<24x128xf32> -> vector<24x128xf32>
    %354 = arith.addf %343, %353 : vector<24x128xf32>
    %cst_255 = arith.constant 0.000000e+00 : f32
    %355 = vector.broadcast %cst_255 : f32 to vector<24x128xf32>
    %356 = arith.maximumf %354, %355 : vector<24x128xf32>
    %c0_256 = arith.constant 0 : index
    %c0_257 = arith.constant 0 : index
    %357 = vector.load %arg36[%c0_256, %c0_257] : memref<128x384xf32, #tpu.memory_space<vmem>>, vector<128x384xf32>
    %cst_258 = arith.constant dense<0.000000e+00> : vector<24x384xf32>
    %358 = tpu.matmul %356, %357, %cst_258 {dimension_numbers = #tpu.dot_dimension_numbers<[1], [0], [0], [1], [0, 0, 1, 1], [], []>} : vector<24x128xf32>, vector<128x384xf32>, vector<24x384xf32> -> vector<24x384xf32>
    %c0_259 = arith.constant 0 : index
    %c1664 = arith.constant 1664 : index
    %359 = vector.load %arg27[%c0_259, %c1664] : memref<1x3200xf32, #tpu.memory_space<vmem>>, vector<1x384xf32>
    %360 = vector.broadcast %359 : vector<1x384xf32> to vector<24x384xf32>
    %361 = arith.addf %358, %360 : vector<24x384xf32>
    %362 = vector.extract_strided_slice %361 {offsets = [0, 0], sizes = [24, 132], strides = [1, 1]} : vector<24x384xf32> to vector<24x132xf32>
    %363 = vector.extract_strided_slice %361 {offsets = [0, 256], sizes = [24, 44], strides = [1, 1]} : vector<24x384xf32> to vector<24x44xf32>
    %cst_260 = arith.constant 0.000000e+00 : f32
    %364 = vector.broadcast %cst_260 : f32 to vector<24x44xf32>
    %365 = arith.maximumf %363, %364 : vector<24x44xf32>
    %c2_261 = arith.constant 2 : index
    %c0_262 = arith.constant 0 : index
    %c0_263 = arith.constant 0 : index
    %366 = vector.load %arg34[%c2_261, %c0_262, %c0_263] : memref<5x44x132xf32, #tpu.memory_space<vmem>>, vector<1x44x132xf32>
    %367 = vector.shape_cast %366 : vector<1x44x132xf32> to vector<44x132xf32>
    %cst_264 = arith.constant dense<0.000000e+00> : vector<24x132xf32>
    %368 = tpu.matmul %365, %367, %cst_264 {dimension_numbers = #tpu.dot_dimension_numbers<[1], [0], [0], [1], [0, 0, 1, 1], [], []>} : vector<24x44xf32>, vector<44x132xf32>, vector<24x132xf32> -> vector<24x132xf32>
    %369 = arith.addf %362, %368 : vector<24x132xf32>
    %c2_i32_265 = arith.constant 2 : i32
    %370 = tpu.dynamic_rotate %365 by %c2_i32_265 dim 0 : vector<24x44xf32>, i32 -> vector<24x44xf32>
    %371 = vector.broadcast %188 : vector<24x1xf32> to vector<24x44xf32>
    %372 = arith.mulf %370, %371 : vector<24x44xf32>
    %c0_266 = arith.constant 0 : index
    %c0_267 = arith.constant 0 : index
    %c0_268 = arith.constant 0 : index
    %373 = vector.load %arg34[%c0_266, %c0_267, %c0_268] : memref<5x44x132xf32, #tpu.memory_space<vmem>>, vector<1x44x132xf32>
    %374 = vector.shape_cast %373 : vector<1x44x132xf32> to vector<44x132xf32>
    %cst_269 = arith.constant dense<0.000000e+00> : vector<24x132xf32>
    %375 = tpu.matmul %372, %374, %cst_269 {dimension_numbers = #tpu.dot_dimension_numbers<[1], [0], [0], [1], [0, 0, 1, 1], [], []>} : vector<24x44xf32>, vector<44x132xf32>, vector<24x132xf32> -> vector<24x132xf32>
    %376 = arith.addf %369, %375 : vector<24x132xf32>
    %c1_i32_270 = arith.constant 1 : i32
    %377 = tpu.dynamic_rotate %365 by %c1_i32_270 dim 0 : vector<24x44xf32>, i32 -> vector<24x44xf32>
    %378 = vector.broadcast %190 : vector<24x1xf32> to vector<24x44xf32>
    %379 = arith.mulf %377, %378 : vector<24x44xf32>
    %c1_271 = arith.constant 1 : index
    %c0_272 = arith.constant 0 : index
    %c0_273 = arith.constant 0 : index
    %380 = vector.load %arg34[%c1_271, %c0_272, %c0_273] : memref<5x44x132xf32, #tpu.memory_space<vmem>>, vector<1x44x132xf32>
    %381 = vector.shape_cast %380 : vector<1x44x132xf32> to vector<44x132xf32>
    %cst_274 = arith.constant dense<0.000000e+00> : vector<24x132xf32>
    %382 = tpu.matmul %379, %381, %cst_274 {dimension_numbers = #tpu.dot_dimension_numbers<[1], [0], [0], [1], [0, 0, 1, 1], [], []>} : vector<24x44xf32>, vector<44x132xf32>, vector<24x132xf32> -> vector<24x132xf32>
    %383 = arith.addf %376, %382 : vector<24x132xf32>
    %c23_i32_275 = arith.constant 23 : i32
    %384 = tpu.dynamic_rotate %365 by %c23_i32_275 dim 0 : vector<24x44xf32>, i32 -> vector<24x44xf32>
    %385 = vector.broadcast %192 : vector<24x1xf32> to vector<24x44xf32>
    %386 = arith.mulf %384, %385 : vector<24x44xf32>
    %c3_276 = arith.constant 3 : index
    %c0_277 = arith.constant 0 : index
    %c0_278 = arith.constant 0 : index
    %387 = vector.load %arg34[%c3_276, %c0_277, %c0_278] : memref<5x44x132xf32, #tpu.memory_space<vmem>>, vector<1x44x132xf32>
    %388 = vector.shape_cast %387 : vector<1x44x132xf32> to vector<44x132xf32>
    %cst_279 = arith.constant dense<0.000000e+00> : vector<24x132xf32>
    %389 = tpu.matmul %386, %388, %cst_279 {dimension_numbers = #tpu.dot_dimension_numbers<[1], [0], [0], [1], [0, 0, 1, 1], [], []>} : vector<24x44xf32>, vector<44x132xf32>, vector<24x132xf32> -> vector<24x132xf32>
    %390 = arith.addf %383, %389 : vector<24x132xf32>
    %c22_i32_280 = arith.constant 22 : i32
    %391 = tpu.dynamic_rotate %365 by %c22_i32_280 dim 0 : vector<24x44xf32>, i32 -> vector<24x44xf32>
    %392 = vector.broadcast %194 : vector<24x1xf32> to vector<24x44xf32>
    %393 = arith.mulf %391, %392 : vector<24x44xf32>
    %c4_281 = arith.constant 4 : index
    %c0_282 = arith.constant 0 : index
    %c0_283 = arith.constant 0 : index
    %394 = vector.load %arg34[%c4_281, %c0_282, %c0_283] : memref<5x44x132xf32, #tpu.memory_space<vmem>>, vector<1x44x132xf32>
    %395 = vector.shape_cast %394 : vector<1x44x132xf32> to vector<44x132xf32>
    %cst_284 = arith.constant dense<0.000000e+00> : vector<24x132xf32>
    %396 = tpu.matmul %393, %395, %cst_284 {dimension_numbers = #tpu.dot_dimension_numbers<[1], [0], [0], [1], [0, 0, 1, 1], [], []>} : vector<24x44xf32>, vector<44x132xf32>, vector<24x132xf32> -> vector<24x132xf32>
    %397 = arith.addf %390, %396 : vector<24x132xf32>
    %c1_i32_285 = arith.constant 1 : i32
    %398 = tpu.dynamic_rotate %356 by %c1_i32_285 dim 0 : vector<24x128xf32>, i32 -> vector<24x128xf32>
    %399 = vector.broadcast %190 : vector<24x1xf32> to vector<24x128xf32>
    %400 = arith.mulf %398, %399 : vector<24x128xf32>
    %c23_i32_286 = arith.constant 23 : i32
    %401 = tpu.dynamic_rotate %356 by %c23_i32_286 dim 0 : vector<24x128xf32>, i32 -> vector<24x128xf32>
    %402 = vector.broadcast %192 : vector<24x1xf32> to vector<24x128xf32>
    %403 = arith.mulf %401, %402 : vector<24x128xf32>
    %404 = arith.maximumf %400, %403 : vector<24x128xf32>
    %405 = arith.maximumf %356, %404 : vector<24x128xf32>
    %c0_287 = arith.constant 0 : index
    %c0_288 = arith.constant 0 : index
    %406 = vector.load %arg35[%c0_287, %c0_288] : memref<128x132xf32, #tpu.memory_space<vmem>>, vector<128x132xf32>
    %cst_289 = arith.constant dense<0.000000e+00> : vector<24x132xf32>
    %407 = tpu.matmul %405, %406, %cst_289 {dimension_numbers = #tpu.dot_dimension_numbers<[1], [0], [0], [1], [0, 0, 1, 1], [], []>} : vector<24x128xf32>, vector<128x132xf32>, vector<24x132xf32> -> vector<24x132xf32>
    %408 = arith.addf %397, %407 : vector<24x132xf32>
    %cst_290 = arith.constant 0.000000e+00 : f32
    %409 = vector.broadcast %cst_290 : f32 to vector<24x132xf32>
    %410 = arith.maximumf %408, %409 : vector<24x132xf32>
    %c0_291 = arith.constant 0 : index
    %c0_292 = arith.constant 0 : index
    %411 = vector.load %arg39[%c0_291, %c0_292] : memref<132x384xf32, #tpu.memory_space<vmem>>, vector<132x384xf32>
    %cst_293 = arith.constant dense<0.000000e+00> : vector<24x384xf32>
    %412 = tpu.matmul %410, %411, %cst_293 {dimension_numbers = #tpu.dot_dimension_numbers<[1], [0], [0], [1], [0, 0, 1, 1], [], []>} : vector<24x132xf32>, vector<132x384xf32>, vector<24x384xf32> -> vector<24x384xf32>
    %c0_294 = arith.constant 0 : index
    %c2048 = arith.constant 2048 : index
    %413 = vector.load %arg27[%c0_294, %c2048] : memref<1x3200xf32, #tpu.memory_space<vmem>>, vector<1x384xf32>
    %414 = vector.broadcast %413 : vector<1x384xf32> to vector<24x384xf32>
    %415 = arith.addf %412, %414 : vector<24x384xf32>
    %416 = vector.extract_strided_slice %415 {offsets = [0, 0], sizes = [24, 208], strides = [1, 1]} : vector<24x384xf32> to vector<24x208xf32>
    %417 = vector.extract_strided_slice %415 {offsets = [0, 256], sizes = [24, 48], strides = [1, 1]} : vector<24x384xf32> to vector<24x48xf32>
    %cst_295 = arith.constant 0.000000e+00 : f32
    %418 = vector.broadcast %cst_295 : f32 to vector<24x48xf32>
    %419 = arith.maximumf %417, %418 : vector<24x48xf32>
    %c2_296 = arith.constant 2 : index
    %c0_297 = arith.constant 0 : index
    %c0_298 = arith.constant 0 : index
    %420 = vector.load %arg37[%c2_296, %c0_297, %c0_298] : memref<5x48x208xf32, #tpu.memory_space<vmem>>, vector<1x48x208xf32>
    %421 = vector.shape_cast %420 : vector<1x48x208xf32> to vector<48x208xf32>
    %cst_299 = arith.constant dense<0.000000e+00> : vector<24x208xf32>
    %422 = tpu.matmul %419, %421, %cst_299 {dimension_numbers = #tpu.dot_dimension_numbers<[1], [0], [0], [1], [0, 0, 1, 1], [], []>} : vector<24x48xf32>, vector<48x208xf32>, vector<24x208xf32> -> vector<24x208xf32>
    %423 = arith.addf %416, %422 : vector<24x208xf32>
    %c2_i32_300 = arith.constant 2 : i32
    %424 = tpu.dynamic_rotate %419 by %c2_i32_300 dim 0 : vector<24x48xf32>, i32 -> vector<24x48xf32>
    %425 = vector.broadcast %188 : vector<24x1xf32> to vector<24x48xf32>
    %426 = arith.mulf %424, %425 : vector<24x48xf32>
    %c0_301 = arith.constant 0 : index
    %c0_302 = arith.constant 0 : index
    %c0_303 = arith.constant 0 : index
    %427 = vector.load %arg37[%c0_301, %c0_302, %c0_303] : memref<5x48x208xf32, #tpu.memory_space<vmem>>, vector<1x48x208xf32>
    %428 = vector.shape_cast %427 : vector<1x48x208xf32> to vector<48x208xf32>
    %cst_304 = arith.constant dense<0.000000e+00> : vector<24x208xf32>
    %429 = tpu.matmul %426, %428, %cst_304 {dimension_numbers = #tpu.dot_dimension_numbers<[1], [0], [0], [1], [0, 0, 1, 1], [], []>} : vector<24x48xf32>, vector<48x208xf32>, vector<24x208xf32> -> vector<24x208xf32>
    %430 = arith.addf %423, %429 : vector<24x208xf32>
    %c1_i32_305 = arith.constant 1 : i32
    %431 = tpu.dynamic_rotate %419 by %c1_i32_305 dim 0 : vector<24x48xf32>, i32 -> vector<24x48xf32>
    %432 = vector.broadcast %190 : vector<24x1xf32> to vector<24x48xf32>
    %433 = arith.mulf %431, %432 : vector<24x48xf32>
    %c1_306 = arith.constant 1 : index
    %c0_307 = arith.constant 0 : index
    %c0_308 = arith.constant 0 : index
    %434 = vector.load %arg37[%c1_306, %c0_307, %c0_308] : memref<5x48x208xf32, #tpu.memory_space<vmem>>, vector<1x48x208xf32>
    %435 = vector.shape_cast %434 : vector<1x48x208xf32> to vector<48x208xf32>
    %cst_309 = arith.constant dense<0.000000e+00> : vector<24x208xf32>
    %436 = tpu.matmul %433, %435, %cst_309 {dimension_numbers = #tpu.dot_dimension_numbers<[1], [0], [0], [1], [0, 0, 1, 1], [], []>} : vector<24x48xf32>, vector<48x208xf32>, vector<24x208xf32> -> vector<24x208xf32>
    %437 = arith.addf %430, %436 : vector<24x208xf32>
    %c23_i32_310 = arith.constant 23 : i32
    %438 = tpu.dynamic_rotate %419 by %c23_i32_310 dim 0 : vector<24x48xf32>, i32 -> vector<24x48xf32>
    %439 = vector.broadcast %192 : vector<24x1xf32> to vector<24x48xf32>
    %440 = arith.mulf %438, %439 : vector<24x48xf32>
    %c3_311 = arith.constant 3 : index
    %c0_312 = arith.constant 0 : index
    %c0_313 = arith.constant 0 : index
    %441 = vector.load %arg37[%c3_311, %c0_312, %c0_313] : memref<5x48x208xf32, #tpu.memory_space<vmem>>, vector<1x48x208xf32>
    %442 = vector.shape_cast %441 : vector<1x48x208xf32> to vector<48x208xf32>
    %cst_314 = arith.constant dense<0.000000e+00> : vector<24x208xf32>
    %443 = tpu.matmul %440, %442, %cst_314 {dimension_numbers = #tpu.dot_dimension_numbers<[1], [0], [0], [1], [0, 0, 1, 1], [], []>} : vector<24x48xf32>, vector<48x208xf32>, vector<24x208xf32> -> vector<24x208xf32>
    %444 = arith.addf %437, %443 : vector<24x208xf32>
    %c22_i32_315 = arith.constant 22 : i32
    %445 = tpu.dynamic_rotate %419 by %c22_i32_315 dim 0 : vector<24x48xf32>, i32 -> vector<24x48xf32>
    %446 = vector.broadcast %194 : vector<24x1xf32> to vector<24x48xf32>
    %447 = arith.mulf %445, %446 : vector<24x48xf32>
    %c4_316 = arith.constant 4 : index
    %c0_317 = arith.constant 0 : index
    %c0_318 = arith.constant 0 : index
    %448 = vector.load %arg37[%c4_316, %c0_317, %c0_318] : memref<5x48x208xf32, #tpu.memory_space<vmem>>, vector<1x48x208xf32>
    %449 = vector.shape_cast %448 : vector<1x48x208xf32> to vector<48x208xf32>
    %cst_319 = arith.constant dense<0.000000e+00> : vector<24x208xf32>
    %450 = tpu.matmul %447, %449, %cst_319 {dimension_numbers = #tpu.dot_dimension_numbers<[1], [0], [0], [1], [0, 0, 1, 1], [], []>} : vector<24x48xf32>, vector<48x208xf32>, vector<24x208xf32> -> vector<24x208xf32>
    %451 = arith.addf %444, %450 : vector<24x208xf32>
    %c1_i32_320 = arith.constant 1 : i32
    %452 = tpu.dynamic_rotate %410 by %c1_i32_320 dim 0 : vector<24x132xf32>, i32 -> vector<24x132xf32>
    %453 = vector.broadcast %190 : vector<24x1xf32> to vector<24x132xf32>
    %454 = arith.mulf %452, %453 : vector<24x132xf32>
    %c23_i32_321 = arith.constant 23 : i32
    %455 = tpu.dynamic_rotate %410 by %c23_i32_321 dim 0 : vector<24x132xf32>, i32 -> vector<24x132xf32>
    %456 = vector.broadcast %192 : vector<24x1xf32> to vector<24x132xf32>
    %457 = arith.mulf %455, %456 : vector<24x132xf32>
    %458 = arith.maximumf %454, %457 : vector<24x132xf32>
    %459 = arith.maximumf %410, %458 : vector<24x132xf32>
    %c0_322 = arith.constant 0 : index
    %c0_323 = arith.constant 0 : index
    %460 = vector.load %arg38[%c0_322, %c0_323] : memref<132x208xf32, #tpu.memory_space<vmem>>, vector<132x208xf32>
    %cst_324 = arith.constant dense<0.000000e+00> : vector<24x208xf32>
    %461 = tpu.matmul %459, %460, %cst_324 {dimension_numbers = #tpu.dot_dimension_numbers<[1], [0], [0], [1], [0, 0, 1, 1], [], []>} : vector<24x132xf32>, vector<132x208xf32>, vector<24x208xf32> -> vector<24x208xf32>
    %462 = arith.addf %451, %461 : vector<24x208xf32>
    %cst_325 = arith.constant 0.000000e+00 : f32
    %463 = vector.broadcast %cst_325 : f32 to vector<24x208xf32>
    %464 = arith.maximumf %462, %463 : vector<24x208xf32>
    %c0_326 = arith.constant 0 : index
    %c0_327 = arith.constant 0 : index
    %c0_328 = arith.constant 0 : index
    %465 = vector.load %arg8[%c0_326, %c0_327, %c0_328] : memref<3x16x24xf32, #tpu.memory_space<vmem>>, vector<1x16x24xf32>
    %466 = vector.shape_cast %465 : vector<1x16x24xf32> to vector<16x24xf32>
    %cst_329 = arith.constant dense<0.000000e+00> : vector<16x208xf32>
    %467 = tpu.matmul %466, %464, %cst_329 {dimension_numbers = #tpu.dot_dimension_numbers<[1], [0], [0], [1], [0, 0, 1, 1], [], []>} : vector<16x24xf32>, vector<24x208xf32>, vector<16x208xf32> -> vector<16x208xf32>
    %c1_330 = arith.constant 1 : index
    %c0_331 = arith.constant 0 : index
    %c0_332 = arith.constant 0 : index
    %468 = vector.load %arg8[%c1_330, %c0_331, %c0_332] : memref<3x16x24xf32, #tpu.memory_space<vmem>>, vector<1x16x24xf32>
    %469 = vector.shape_cast %468 : vector<1x16x24xf32> to vector<16x24xf32>
    %cst_333 = arith.constant dense<0.000000e+00> : vector<16x208xf32>
    %470 = tpu.matmul %469, %464, %cst_333 {dimension_numbers = #tpu.dot_dimension_numbers<[1], [0], [0], [1], [0, 0, 1, 1], [], []>} : vector<16x24xf32>, vector<24x208xf32>, vector<16x208xf32> -> vector<16x208xf32>
    %471 = arith.maximumf %467, %470 : vector<16x208xf32>
    %c2_334 = arith.constant 2 : index
    %c0_335 = arith.constant 0 : index
    %c0_336 = arith.constant 0 : index
    %472 = vector.load %arg8[%c2_334, %c0_335, %c0_336] : memref<3x16x24xf32, #tpu.memory_space<vmem>>, vector<1x16x24xf32>
    %473 = vector.shape_cast %472 : vector<1x16x24xf32> to vector<16x24xf32>
    %cst_337 = arith.constant dense<0.000000e+00> : vector<16x208xf32>
    %474 = tpu.matmul %473, %464, %cst_337 {dimension_numbers = #tpu.dot_dimension_numbers<[1], [0], [0], [1], [0, 0, 1, 1], [], []>} : vector<16x24xf32>, vector<24x208xf32>, vector<16x208xf32> -> vector<16x208xf32>
    %475 = arith.maximumf %471, %474 : vector<16x208xf32>
    %c0_338 = arith.constant 0 : index
    %c0_339 = arith.constant 0 : index
    %c0_340 = arith.constant 0 : index
    %476 = vector.load %arg2[%c0_338, %c0_339, %c0_340] : memref<4x16x1xf32, #tpu.memory_space<vmem>>, vector<1x16x1xf32>
    %477 = vector.shape_cast %476 : vector<1x16x1xf32> to vector<16x1xf32>
    %c1_341 = arith.constant 1 : index
    %c0_342 = arith.constant 0 : index
    %c0_343 = arith.constant 0 : index
    %478 = vector.load %arg2[%c1_341, %c0_342, %c0_343] : memref<4x16x1xf32, #tpu.memory_space<vmem>>, vector<1x16x1xf32>
    %479 = vector.shape_cast %478 : vector<1x16x1xf32> to vector<16x1xf32>
    %c2_344 = arith.constant 2 : index
    %c0_345 = arith.constant 0 : index
    %c0_346 = arith.constant 0 : index
    %480 = vector.load %arg2[%c2_344, %c0_345, %c0_346] : memref<4x16x1xf32, #tpu.memory_space<vmem>>, vector<1x16x1xf32>
    %481 = vector.shape_cast %480 : vector<1x16x1xf32> to vector<16x1xf32>
    %c3_347 = arith.constant 3 : index
    %c0_348 = arith.constant 0 : index
    %c0_349 = arith.constant 0 : index
    %482 = vector.load %arg2[%c3_347, %c0_348, %c0_349] : memref<4x16x1xf32, #tpu.memory_space<vmem>>, vector<1x16x1xf32>
    %483 = vector.shape_cast %482 : vector<1x16x1xf32> to vector<16x1xf32>
    %c0_350 = arith.constant 0 : index
    %c0_351 = arith.constant 0 : index
    %484 = vector.load %arg17[%c0_350, %c0_351] : memref<208x384xf32, #tpu.memory_space<vmem>>, vector<208x384xf32>
    %cst_352 = arith.constant dense<0.000000e+00> : vector<16x384xf32>
    %485 = tpu.matmul %475, %484, %cst_352 {dimension_numbers = #tpu.dot_dimension_numbers<[1], [0], [0], [1], [0, 0, 1, 1], [], []>} : vector<16x208xf32>, vector<208x384xf32>, vector<16x384xf32> -> vector<16x384xf32>
    %c0_353 = arith.constant 0 : index
    %c2432 = arith.constant 2432 : index
    %486 = vector.load %arg27[%c0_353, %c2432] : memref<1x3200xf32, #tpu.memory_space<vmem>>, vector<1x384xf32>
    %487 = vector.broadcast %486 : vector<1x384xf32> to vector<16x384xf32>
    %488 = arith.addf %485, %487 : vector<16x384xf32>
    %489 = vector.extract_strided_slice %488 {offsets = [0, 0], sizes = [16, 208], strides = [1, 1]} : vector<16x384xf32> to vector<16x208xf32>
    %490 = vector.extract_strided_slice %488 {offsets = [0, 256], sizes = [16, 48], strides = [1, 1]} : vector<16x384xf32> to vector<16x48xf32>
    %cst_354 = arith.constant 0.000000e+00 : f32
    %491 = vector.broadcast %cst_354 : f32 to vector<16x48xf32>
    %492 = arith.maximumf %490, %491 : vector<16x48xf32>
    %c2_355 = arith.constant 2 : index
    %c0_356 = arith.constant 0 : index
    %c0_357 = arith.constant 0 : index
    %493 = vector.load %arg15[%c2_355, %c0_356, %c0_357] : memref<5x48x208xf32, #tpu.memory_space<vmem>>, vector<1x48x208xf32>
    %494 = vector.shape_cast %493 : vector<1x48x208xf32> to vector<48x208xf32>
    %cst_358 = arith.constant dense<0.000000e+00> : vector<16x208xf32>
    %495 = tpu.matmul %492, %494, %cst_358 {dimension_numbers = #tpu.dot_dimension_numbers<[1], [0], [0], [1], [0, 0, 1, 1], [], []>} : vector<16x48xf32>, vector<48x208xf32>, vector<16x208xf32> -> vector<16x208xf32>
    %496 = arith.addf %489, %495 : vector<16x208xf32>
    %c2_i32_359 = arith.constant 2 : i32
    %497 = tpu.dynamic_rotate %492 by %c2_i32_359 dim 0 : vector<16x48xf32>, i32 -> vector<16x48xf32>
    %498 = vector.broadcast %477 : vector<16x1xf32> to vector<16x48xf32>
    %499 = arith.mulf %497, %498 : vector<16x48xf32>
    %c0_360 = arith.constant 0 : index
    %c0_361 = arith.constant 0 : index
    %c0_362 = arith.constant 0 : index
    %500 = vector.load %arg15[%c0_360, %c0_361, %c0_362] : memref<5x48x208xf32, #tpu.memory_space<vmem>>, vector<1x48x208xf32>
    %501 = vector.shape_cast %500 : vector<1x48x208xf32> to vector<48x208xf32>
    %cst_363 = arith.constant dense<0.000000e+00> : vector<16x208xf32>
    %502 = tpu.matmul %499, %501, %cst_363 {dimension_numbers = #tpu.dot_dimension_numbers<[1], [0], [0], [1], [0, 0, 1, 1], [], []>} : vector<16x48xf32>, vector<48x208xf32>, vector<16x208xf32> -> vector<16x208xf32>
    %503 = arith.addf %496, %502 : vector<16x208xf32>
    %c1_i32_364 = arith.constant 1 : i32
    %504 = tpu.dynamic_rotate %492 by %c1_i32_364 dim 0 : vector<16x48xf32>, i32 -> vector<16x48xf32>
    %505 = vector.broadcast %479 : vector<16x1xf32> to vector<16x48xf32>
    %506 = arith.mulf %504, %505 : vector<16x48xf32>
    %c1_365 = arith.constant 1 : index
    %c0_366 = arith.constant 0 : index
    %c0_367 = arith.constant 0 : index
    %507 = vector.load %arg15[%c1_365, %c0_366, %c0_367] : memref<5x48x208xf32, #tpu.memory_space<vmem>>, vector<1x48x208xf32>
    %508 = vector.shape_cast %507 : vector<1x48x208xf32> to vector<48x208xf32>
    %cst_368 = arith.constant dense<0.000000e+00> : vector<16x208xf32>
    %509 = tpu.matmul %506, %508, %cst_368 {dimension_numbers = #tpu.dot_dimension_numbers<[1], [0], [0], [1], [0, 0, 1, 1], [], []>} : vector<16x48xf32>, vector<48x208xf32>, vector<16x208xf32> -> vector<16x208xf32>
    %510 = arith.addf %503, %509 : vector<16x208xf32>
    %c15_i32 = arith.constant 15 : i32
    %511 = tpu.dynamic_rotate %492 by %c15_i32 dim 0 : vector<16x48xf32>, i32 -> vector<16x48xf32>
    %512 = vector.broadcast %481 : vector<16x1xf32> to vector<16x48xf32>
    %513 = arith.mulf %511, %512 : vector<16x48xf32>
    %c3_369 = arith.constant 3 : index
    %c0_370 = arith.constant 0 : index
    %c0_371 = arith.constant 0 : index
    %514 = vector.load %arg15[%c3_369, %c0_370, %c0_371] : memref<5x48x208xf32, #tpu.memory_space<vmem>>, vector<1x48x208xf32>
    %515 = vector.shape_cast %514 : vector<1x48x208xf32> to vector<48x208xf32>
    %cst_372 = arith.constant dense<0.000000e+00> : vector<16x208xf32>
    %516 = tpu.matmul %513, %515, %cst_372 {dimension_numbers = #tpu.dot_dimension_numbers<[1], [0], [0], [1], [0, 0, 1, 1], [], []>} : vector<16x48xf32>, vector<48x208xf32>, vector<16x208xf32> -> vector<16x208xf32>
    %517 = arith.addf %510, %516 : vector<16x208xf32>
    %c14_i32 = arith.constant 14 : i32
    %518 = tpu.dynamic_rotate %492 by %c14_i32 dim 0 : vector<16x48xf32>, i32 -> vector<16x48xf32>
    %519 = vector.broadcast %483 : vector<16x1xf32> to vector<16x48xf32>
    %520 = arith.mulf %518, %519 : vector<16x48xf32>
    %c4_373 = arith.constant 4 : index
    %c0_374 = arith.constant 0 : index
    %c0_375 = arith.constant 0 : index
    %521 = vector.load %arg15[%c4_373, %c0_374, %c0_375] : memref<5x48x208xf32, #tpu.memory_space<vmem>>, vector<1x48x208xf32>
    %522 = vector.shape_cast %521 : vector<1x48x208xf32> to vector<48x208xf32>
    %cst_376 = arith.constant dense<0.000000e+00> : vector<16x208xf32>
    %523 = tpu.matmul %520, %522, %cst_376 {dimension_numbers = #tpu.dot_dimension_numbers<[1], [0], [0], [1], [0, 0, 1, 1], [], []>} : vector<16x48xf32>, vector<48x208xf32>, vector<16x208xf32> -> vector<16x208xf32>
    %524 = arith.addf %517, %523 : vector<16x208xf32>
    %c1_i32_377 = arith.constant 1 : i32
    %525 = tpu.dynamic_rotate %475 by %c1_i32_377 dim 0 : vector<16x208xf32>, i32 -> vector<16x208xf32>
    %526 = vector.broadcast %479 : vector<16x1xf32> to vector<16x208xf32>
    %527 = arith.mulf %525, %526 : vector<16x208xf32>
    %c15_i32_378 = arith.constant 15 : i32
    %528 = tpu.dynamic_rotate %475 by %c15_i32_378 dim 0 : vector<16x208xf32>, i32 -> vector<16x208xf32>
    %529 = vector.broadcast %481 : vector<16x1xf32> to vector<16x208xf32>
    %530 = arith.mulf %528, %529 : vector<16x208xf32>
    %531 = arith.maximumf %527, %530 : vector<16x208xf32>
    %532 = arith.maximumf %475, %531 : vector<16x208xf32>
    %c0_379 = arith.constant 0 : index
    %c0_380 = arith.constant 0 : index
    %533 = vector.load %arg16[%c0_379, %c0_380] : memref<208x208xf32, #tpu.memory_space<vmem>>, vector<208x208xf32>
    %cst_381 = arith.constant dense<0.000000e+00> : vector<16x208xf32>
    %534 = tpu.matmul %532, %533, %cst_381 {dimension_numbers = #tpu.dot_dimension_numbers<[1], [0], [0], [1], [0, 0, 1, 1], [], []>} : vector<16x208xf32>, vector<208x208xf32>, vector<16x208xf32> -> vector<16x208xf32>
    %535 = arith.addf %524, %534 : vector<16x208xf32>
    %cst_382 = arith.constant 0.000000e+00 : f32
    %536 = vector.broadcast %cst_382 : f32 to vector<16x208xf32>
    %537 = arith.maximumf %535, %536 : vector<16x208xf32>
    %c0_383 = arith.constant 0 : index
    %c0_384 = arith.constant 0 : index
    %538 = vector.load %arg26[%c0_383, %c0_384] : memref<208x384xf32, #tpu.memory_space<vmem>>, vector<208x384xf32>
    %cst_385 = arith.constant dense<0.000000e+00> : vector<16x384xf32>
    %539 = tpu.matmul %537, %538, %cst_385 {dimension_numbers = #tpu.dot_dimension_numbers<[1], [0], [0], [1], [0, 0, 1, 1], [], []>} : vector<16x208xf32>, vector<208x384xf32>, vector<16x384xf32> -> vector<16x384xf32>
    %c0_386 = arith.constant 0 : index
    %c2816 = arith.constant 2816 : index
    %540 = vector.load %arg27[%c0_386, %c2816] : memref<1x3200xf32, #tpu.memory_space<vmem>>, vector<1x384xf32>
    %541 = vector.broadcast %540 : vector<1x384xf32> to vector<16x384xf32>
    %542 = arith.addf %539, %541 : vector<16x384xf32>
    %543 = vector.extract_strided_slice %542 {offsets = [0, 0], sizes = [16, 254], strides = [1, 1]} : vector<16x384xf32> to vector<16x254xf32>
    %544 = vector.extract_strided_slice %542 {offsets = [0, 256], sizes = [16, 60], strides = [1, 1]} : vector<16x384xf32> to vector<16x60xf32>
    %cst_387 = arith.constant 0.000000e+00 : f32
    %545 = vector.broadcast %cst_387 : f32 to vector<16x60xf32>
    %546 = arith.maximumf %544, %545 : vector<16x60xf32>
    %c2_388 = arith.constant 2 : index
    %c0_389 = arith.constant 0 : index
    %c0_390 = arith.constant 0 : index
    %547 = vector.load %arg24[%c2_388, %c0_389, %c0_390] : memref<5x60x254xf32, #tpu.memory_space<vmem>>, vector<1x60x254xf32>
    %548 = vector.shape_cast %547 : vector<1x60x254xf32> to vector<60x254xf32>
    %cst_391 = arith.constant dense<0.000000e+00> : vector<16x254xf32>
    %549 = tpu.matmul %546, %548, %cst_391 {dimension_numbers = #tpu.dot_dimension_numbers<[1], [0], [0], [1], [0, 0, 1, 1], [], []>} : vector<16x60xf32>, vector<60x254xf32>, vector<16x254xf32> -> vector<16x254xf32>
    %550 = arith.addf %543, %549 : vector<16x254xf32>
    %c2_i32_392 = arith.constant 2 : i32
    %551 = tpu.dynamic_rotate %546 by %c2_i32_392 dim 0 : vector<16x60xf32>, i32 -> vector<16x60xf32>
    %552 = vector.broadcast %477 : vector<16x1xf32> to vector<16x60xf32>
    %553 = arith.mulf %551, %552 : vector<16x60xf32>
    %c0_393 = arith.constant 0 : index
    %c0_394 = arith.constant 0 : index
    %c0_395 = arith.constant 0 : index
    %554 = vector.load %arg24[%c0_393, %c0_394, %c0_395] : memref<5x60x254xf32, #tpu.memory_space<vmem>>, vector<1x60x254xf32>
    %555 = vector.shape_cast %554 : vector<1x60x254xf32> to vector<60x254xf32>
    %cst_396 = arith.constant dense<0.000000e+00> : vector<16x254xf32>
    %556 = tpu.matmul %553, %555, %cst_396 {dimension_numbers = #tpu.dot_dimension_numbers<[1], [0], [0], [1], [0, 0, 1, 1], [], []>} : vector<16x60xf32>, vector<60x254xf32>, vector<16x254xf32> -> vector<16x254xf32>
    %557 = arith.addf %550, %556 : vector<16x254xf32>
    %c1_i32_397 = arith.constant 1 : i32
    %558 = tpu.dynamic_rotate %546 by %c1_i32_397 dim 0 : vector<16x60xf32>, i32 -> vector<16x60xf32>
    %559 = vector.broadcast %479 : vector<16x1xf32> to vector<16x60xf32>
    %560 = arith.mulf %558, %559 : vector<16x60xf32>
    %c1_398 = arith.constant 1 : index
    %c0_399 = arith.constant 0 : index
    %c0_400 = arith.constant 0 : index
    %561 = vector.load %arg24[%c1_398, %c0_399, %c0_400] : memref<5x60x254xf32, #tpu.memory_space<vmem>>, vector<1x60x254xf32>
    %562 = vector.shape_cast %561 : vector<1x60x254xf32> to vector<60x254xf32>
    %cst_401 = arith.constant dense<0.000000e+00> : vector<16x254xf32>
    %563 = tpu.matmul %560, %562, %cst_401 {dimension_numbers = #tpu.dot_dimension_numbers<[1], [0], [0], [1], [0, 0, 1, 1], [], []>} : vector<16x60xf32>, vector<60x254xf32>, vector<16x254xf32> -> vector<16x254xf32>
    %564 = arith.addf %557, %563 : vector<16x254xf32>
    %c15_i32_402 = arith.constant 15 : i32
    %565 = tpu.dynamic_rotate %546 by %c15_i32_402 dim 0 : vector<16x60xf32>, i32 -> vector<16x60xf32>
    %566 = vector.broadcast %481 : vector<16x1xf32> to vector<16x60xf32>
    %567 = arith.mulf %565, %566 : vector<16x60xf32>
    %c3_403 = arith.constant 3 : index
    %c0_404 = arith.constant 0 : index
    %c0_405 = arith.constant 0 : index
    %568 = vector.load %arg24[%c3_403, %c0_404, %c0_405] : memref<5x60x254xf32, #tpu.memory_space<vmem>>, vector<1x60x254xf32>
    %569 = vector.shape_cast %568 : vector<1x60x254xf32> to vector<60x254xf32>
    %cst_406 = arith.constant dense<0.000000e+00> : vector<16x254xf32>
    %570 = tpu.matmul %567, %569, %cst_406 {dimension_numbers = #tpu.dot_dimension_numbers<[1], [0], [0], [1], [0, 0, 1, 1], [], []>} : vector<16x60xf32>, vector<60x254xf32>, vector<16x254xf32> -> vector<16x254xf32>
    %571 = arith.addf %564, %570 : vector<16x254xf32>
    %c14_i32_407 = arith.constant 14 : i32
    %572 = tpu.dynamic_rotate %546 by %c14_i32_407 dim 0 : vector<16x60xf32>, i32 -> vector<16x60xf32>
    %573 = vector.broadcast %483 : vector<16x1xf32> to vector<16x60xf32>
    %574 = arith.mulf %572, %573 : vector<16x60xf32>
    %c4_408 = arith.constant 4 : index
    %c0_409 = arith.constant 0 : index
    %c0_410 = arith.constant 0 : index
    %575 = vector.load %arg24[%c4_408, %c0_409, %c0_410] : memref<5x60x254xf32, #tpu.memory_space<vmem>>, vector<1x60x254xf32>
    %576 = vector.shape_cast %575 : vector<1x60x254xf32> to vector<60x254xf32>
    %cst_411 = arith.constant dense<0.000000e+00> : vector<16x254xf32>
    %577 = tpu.matmul %574, %576, %cst_411 {dimension_numbers = #tpu.dot_dimension_numbers<[1], [0], [0], [1], [0, 0, 1, 1], [], []>} : vector<16x60xf32>, vector<60x254xf32>, vector<16x254xf32> -> vector<16x254xf32>
    %578 = arith.addf %571, %577 : vector<16x254xf32>
    %c1_i32_412 = arith.constant 1 : i32
    %579 = tpu.dynamic_rotate %537 by %c1_i32_412 dim 0 : vector<16x208xf32>, i32 -> vector<16x208xf32>
    %580 = vector.broadcast %479 : vector<16x1xf32> to vector<16x208xf32>
    %581 = arith.mulf %579, %580 : vector<16x208xf32>
    %c15_i32_413 = arith.constant 15 : i32
    %582 = tpu.dynamic_rotate %537 by %c15_i32_413 dim 0 : vector<16x208xf32>, i32 -> vector<16x208xf32>
    %583 = vector.broadcast %481 : vector<16x1xf32> to vector<16x208xf32>
    %584 = arith.mulf %582, %583 : vector<16x208xf32>
    %585 = arith.maximumf %581, %584 : vector<16x208xf32>
    %586 = arith.maximumf %537, %585 : vector<16x208xf32>
    %c0_414 = arith.constant 0 : index
    %c0_415 = arith.constant 0 : index
    %587 = vector.load %arg25[%c0_414, %c0_415] : memref<208x254xf32, #tpu.memory_space<vmem>>, vector<208x254xf32>
    %cst_416 = arith.constant dense<0.000000e+00> : vector<16x254xf32>
    %588 = tpu.matmul %586, %587, %cst_416 {dimension_numbers = #tpu.dot_dimension_numbers<[1], [0], [0], [1], [0, 0, 1, 1], [], []>} : vector<16x208xf32>, vector<208x254xf32>, vector<16x254xf32> -> vector<16x254xf32>
    %589 = arith.addf %578, %588 : vector<16x254xf32>
    %cst_417 = arith.constant 0.000000e+00 : f32
    %590 = vector.broadcast %cst_417 : f32 to vector<16x254xf32>
    %591 = arith.maximumf %589, %590 : vector<16x254xf32>
    %c0_418 = arith.constant 0 : index
    %c0_419 = arith.constant 0 : index
    %592 = vector.load %arg4[%c0_418, %c0_419] : memref<2x16xf32, #tpu.memory_space<vmem>>, vector<2x16xf32>
    %cst_420 = arith.constant dense<0.000000e+00> : vector<2x254xf32>
    %593 = tpu.matmul %592, %591, %cst_420 {dimension_numbers = #tpu.dot_dimension_numbers<[1], [0], [0], [1], [0, 0, 1, 1], [], []>} : vector<2x16xf32>, vector<16x254xf32>, vector<2x254xf32> -> vector<2x254xf32>
    %c0_421 = arith.constant 0 : index
    %c0_422 = arith.constant 0 : index
    %594 = vector.load %arg40[%c0_421, %c0_422] : memref<254x10xf32, #tpu.memory_space<vmem>>, vector<254x10xf32>
    %cst_423 = arith.constant dense<0.000000e+00> : vector<2x10xf32>
    %595 = tpu.matmul %593, %594, %cst_423 {dimension_numbers = #tpu.dot_dimension_numbers<[1], [0], [0], [1], [0, 0, 1, 1], [], []>} : vector<2x254xf32>, vector<254x10xf32>, vector<2x10xf32> -> vector<2x10xf32>
    %c0_424 = arith.constant 0 : index
    %c256 = arith.constant 256 : index
    %596 = vector.load %arg27[%c0_424, %c256] : memref<1x3200xf32, #tpu.memory_space<vmem>>, vector<1x10xf32>
    %597 = vector.broadcast %596 : vector<1x10xf32> to vector<2x10xf32>
    %598 = arith.addf %595, %597 : vector<2x10xf32>
    %c0_425 = arith.constant 0 : index
    %c0_426 = arith.constant 0 : index
    %599 = vector.load %arg42[%c0_425, %c0_426] : memref<2x10xf32, #tpu.memory_space<vmem>>, vector<2x10xf32>
    tpu.vector_store %arg42[%c0_425, %c0_426], %598 {strides = array<i32>} : memref<2x10xf32, #tpu.memory_space<vmem>>, vector<2x10xf32>,
    return
  }
}

</mosaic_0001>

<bundles_post_ra>
// kernel: googlenet_forward.1
= control target key start
LH: loop header
LB: loop body
LE: loop exit
PB: predicated region body
PF: predicated region fallthrough
CT: control target
= control target key end

     0   :  { %s15946_s6 = smov 1   ;;  %s15947_s10 = smov 2   ;;  %s18899_s0 = inlined_call_operand.smem [shape: u32[43], index: -1, kind: input, shape index: {}] }
   0x1   :  { %s16043_s5 = sld [smem:[%s18899_s0]]   ;;  %s15948_s14 = smov 3  }
   0x2   :  { %s16048_s9 = sld [smem:[%s18899_s0 + %s15946_s6]]   ;;  %s15949_s18 = smov 4  }
   0x3   :  { %s16053_s13 = sld [smem:[%s18899_s0 + %s15947_s10]]   ;;  %s15950_s22 = smov 5  }
   0x4   :  { %s16058_s17 = sld [smem:[%s18899_s0 + %s15948_s14]]   ;;  %s15951_s26 = smov 6  }
   0x5   :  { %s16063_s21 = sld [smem:[%s18899_s0 + %s15949_s18]]   ;;  %s15952_s30 = smov 7  }
   0x6   :  { %s16068_s25 = sld [smem:[%s18899_s0 + %s15950_s22]]   ;;  %s15953_s4 = smov 8  }
   0x7   :  { %18926 = sst [smem:[#allocation76_spill]] %s16043_s5  ;;  %s15954_s10 = smov 9  }
   0x8   :  { %18927 = sst [smem:[#allocation77_spill]] %s16048_s9  ;;  %s15955_s15 = smov 10  }
   0x9   :  { %s16073_s29 = sld [smem:[%s18899_s0 + %s15951_s26]]   ;;  %s15956_s20 = smov 11  }
   0xa   :  { %18928 = sst [smem:[#allocation78_spill]] %s16058_s17  ;;  %s15957_s26 = smov 12  }
   0xb   :  { %18929 = sst [smem:[#allocation79_spill]] %s16063_s21  ;;  %s15958_s1 = smov 13  }
   0xc   :  { %s16078_s3 = sld [smem:[%s18899_s0 + %s15952_s30]]   ;;  %s15959_s7 = smov 14  }
   0xd   :  { %s16083_s8 = sld [smem:[%s18899_s0 + %s15953_s4]]   ;;  %s15961_s22 = smov 16  }
   0xe   :  { %s16088_s14 = sld [smem:[%s18899_s0 + %s15954_s10]]   ;;  %s15962_s28 = smov 17  }
   0xf   :  { %18930 = sst [smem:[#allocation80_spill]] %s16073_s29 }
  0x10   :  { %s16093_s19 = sld [smem:[%s18899_s0 + %s15955_s15]]   ;;  %s15960_s15 = smov 15  }
  0x11   :  { %s16098_s24 = sld [smem:[%s18899_s0 + %s15956_s20]]  }
  0x12   :  { %s16103_s30 = sld [smem:[%s18899_s0 + %s15957_s26]]  }
  0x13   :  { %18931 = sst [smem:[#allocation81_spill]] %s16083_s8 }
  0x14   :  { %s16108_s6 = sld [smem:[%s18899_s0 + %s15958_s1]]  }
  0x15   :  { %s16113_s12 = sld [smem:[%s18899_s0 + %s15959_s7]]   ;;  %s15963_s7 = smov 18  }
  0x16   :  { %18932 = sst [smem:[#allocation82_spill]] %s16093_s19 }
  0x17   :  { %s16118_s20 = sld [smem:[%s18899_s0 + %s15960_s15]]   ;;  %s15964_s15 = smov 19  }
  0x18   :  { %18933 = sst [smem:[#allocation83_spill]] %s16103_s30 }
  0x19   :  { %s16123_s27 = sld [smem:[%s18899_s0 + %s15961_s22]]   ;;  %s15965_s22 = smov 20  }
  0x1a   :  { %s16128_s4 = sld [smem:[%s18899_s0 + %s15962_s28]]   ;;  %s15966_s28 = smov 21  }
  0x1b   :  { %18934 = sst [smem:[#allocation84_spill]] %s16113_s12 }
  0x1c   :  { %s16133_s21 = sld [smem:[%s18899_s0 + %s15963_s7]]   ;;  %s15967_s7 = smov 22  }
  0x1d   :  { %s16138_s9 = sld [smem:[%s18899_s0 + %s15964_s15]]   ;;  %s15968_s15 = smov 23  }
  0x1e   :  { %s16148_s12 = sld [smem:[%s18899_s0 + %s15966_s28]]   ;;  %s15970_s28 = smov 25  }
  0x1f   :  { %18935 = sst [smem:[#allocation85_spill]] %s16123_s27 }
  0x20   :  { %s16143_s27 = sld [smem:[%s18899_s0 + %s15965_s22]]   ;;  %s15969_s22 = smov 24  }
  0x21   :  { %s16158_s30 = sld [smem:[%s18899_s0 + %s15968_s15]]   ;;  %s15972_s15 = smov 27  }
  0x22   :  { %18936 = sst [smem:[#allocation86_spill]] %s16133_s21 }
  0x23   :  { %s16153_s21 = sld [smem:[%s18899_s0 + %s15967_s7]]   ;;  %s15971_s7 = smov 26  }
  0x24   :  { %s16168_s19 = sld [smem:[%s18899_s0 + %s15970_s28]]   ;;  %s15974_s28 = smov 29  }
  0x25   :  { %s16178_s8 = sld [smem:[%s18899_s0 + %s15972_s15]]   ;;  %s15976_s15 = smov 31  }
  0x26   :  { %18937 = sst [smem:[#allocation87_spill]] %s16143_s27 }
  0x27   :  { %s16163_s27 = sld [smem:[%s18899_s0 + %s15969_s22]]   ;;  %s15973_s22 = smov 28  }
  0x29   :  { %18938 = sst [smem:[#allocation88_spill]] %s16153_s21 }
  0x2a   :  { %18940 = sst [smem:[#allocation90_spill]] %s16168_s19 }
  0x2b   :  { %s16173_s21 = sld [smem:[%s18899_s0 + %s15971_s7]]   ;;  %s15975_s7 = smov 30  }
  0x2c   :  { %18941 = sst [smem:[#allocation91_spill]] %s16178_s8 }
  0x2d   :  { %18939 = sst [smem:[#allocation89_spill]] %s16163_s27 }
  0x2e   :  { %s16183_s27 = sld [smem:[%s18899_s0 + %s15973_s22]]   ;;  %s15977_s22 = smov 32  }
  0x2f   :  { %s16188_s19 = sld [smem:[%s18899_s0 + %s15974_s28]]   ;;  %s15978_s28 = smov 33  }
  0x30   :  { %s16193_s29 = sld [smem:[%s18899_s0 + %s15975_s7]]   ;;  %s15979_s7 = smov 34  }
  0x31   :  { %s16198_s8 = sld [smem:[%s18899_s0 + %s15976_s15]]   ;;  %s15980_s15 = smov 35  }
  0x32   :  { %s16203_s17 = sld [smem:[%s18899_s0 + %s15977_s22]]   ;;  %s15981_s22 = smov 36  }
  0x33   :  { %s16213_s5 = sld [smem:[%s18899_s0 + %s15979_s7]]   ;;  %s15983_s7 = smov 38  }
  0x35   :  { %18942 = sst [smem:[#allocation92_spill]] %s16188_s19 }
  0x36   :  { %s16208_s19 = sld [smem:[%s18899_s0 + %s15978_s28]]   ;;  %s15982_s28 = smov 37  }
  0x37   :  { %18943 = sst [smem:[#allocation93_spill]] %s16198_s8 }
  0x38   :  { %18944 = sst [smem:[#allocation94_spill]] %s16203_s17 }
  0x39   :  { %18946 = sst [smem:[#allocation96_spill]] %s16213_s5 }
  0x3a   :  { %s16218_s8 = sld [smem:[%s18899_s0 + %s15980_s15]]   ;;  %s15984_s15 = smov 39  }
  0x3b   :  { %s16223_s17 = sld [smem:[%s18899_s0 + %s15981_s22]]   ;;  %s15985_s22 = smov 40  }
  0x3c   :  { %18945 = sst [smem:[#allocation95_spill]] %s16208_s19 }
  0x3d   :  { %s16228_s19 = sld [smem:[%s18899_s0 + %s15982_s28]]   ;;  %s15986_s28 = smov 41  }
  0x3e   :  { %s16233_s5 = sld [smem:[%s18899_s0 + %s15983_s7]]   ;;  %s15987_s7 = smov 42  }
  0x40   :  { %18947 = sst [smem:[#allocation97_spill]] %s16218_s8 }
  0x41   :  { %18948 = sst [smem:[#allocation98_spill]] %s16223_s17 }
  0x42   :  { %s16238_s8 = sld [smem:[%s18899_s0 + %s15984_s15]]  }
  0x43   :  { %18949 = sst [smem:[#allocation99_spill]] %s16228_s19 }
  0x44   :  { %18950 = sst [smem:[#allocation100_spill]] %s16233_s5 }
  0x45   :  { %s16243_s17 = sld [smem:[%s18899_s0 + %s15985_s22]]  }
  0x46   :  { %s16248_s19 = sld [smem:[%s18899_s0 + %s15986_s28]]  }
  0x47   :  { %s16253_s5 = sld [smem:[%s18899_s0 + %s15987_s7]]  }
  0x48   :  { %90 = vsyncpa [#allocation3], 0 }
  0x49   :  { %91 = vsyncpa [#allocation6], 0 }
  0x4a   :  { %92 = vsyncpa [#allocation9], 0 }
  0x4b   :  { %93 = vsyncpa [#allocation12], 0 }
  0x4c   :  { %94 = vsyncpa [#allocation15], 0 }
  0x4d   :  { %95 = vsyncpa [#allocation18], 0 }
  0x4e   :  { %96 = vsyncpa [#allocation21], 0 }
  0x4f   :  { %97 = vsyncpa [#allocation24], 0 }
  0x50   :  { %98 = vsyncpa [#allocation27], 0 }
  0x51   :  { %99 = vsyncpa [#allocation30], 0 }
  0x52   :  { %100 = vsyncpa [#allocation33], 0 }
  0x53   :  { %101 = vsyncpa [#allocation36], 0 }
  0x54   :  { %102 = vsyncpa [#allocation39], 0 }
  0x55   :  { %103 = vsyncpa [#allocation42], 0 }
  0x56   :  { %104 = vsyncpa [#allocation45], 0 }
  0x57   :  { %105 = vsyncpa [#allocation48], 0 }
  0x58   :  { %106 = vsyncpa [#allocation51], 0 }
  0x59   :  { %107 = vsyncpa [#allocation54], 0 }
  0x5a   :  { %108 = vsyncpa [#allocation4], 0  ;;  %s15988_s0 = smov [#allocation5]   ;;  %s15989_s16 = smov [#allocation8]  }
  0x5b   :  { %s128_s15 = sshll.u32 %s15988_s0, 4  ;;  %s154_s18 = sshll.u32 %s15989_s16, 4  ;;  %s129_s15 = int_to_ptr.vmem [resolvable:$true] %s128_s15  ;;  %s16255_s18 = int_to_ptr.vmem [resolvable:$true] %s154_s18 }
  0x5c   :  { %s15116_s22 = scalar_lea.hbm %s16053_s13, 1024 }
  0x5d   :  { %p15117_p0 = scmp.ne.s32.totalorder %s16053_s13, %s15116_s22  ;;  %p15120_p1 = scmp.lt.u32.totalorder %s15116_s22, %s16053_s13 }
  0x5f   :  { %p15122_p2 = pnand %p15120_p1, %p15117_p0 }
  0x61   :  { %15125 = shalt.err (!%p15122_p2)
}
  0x62   :  { %s15126_s23 = scalar_lea.vmem %s129_s15, 1024  ;;  %p15131_p4 = scmp.lt.s32.totalorder %s129_s15, %s129_s15 }
  0x63   :  { %p15127_p3 = scmp.ne.s32.totalorder %s129_s15, %s15126_s23  ;;  %p15132_p5 = scmp.lt.s32.totalorder %s15126_s23, %s15126_s23 }
  0x65   :  { %p15133_p6 = por %p15132_p5, %p15131_p4 }
  0x67   :  { %p15134_p7 = pnand %p15133_p6, %p15127_p3 }
  0x69   :  { %15137 = shalt.err (!%p15134_p7)
}
  0x6a   :  { %s15990_s26 = smov 128   ;;  %s15991_s28 = smov 8  }
  0x6b   :  { %134 = dma.hbm_to_vmem [thread:$0]  %s16053_s13, 1024, %s129_s15, [#allocation6], %s15990_s26, %s15990_s26, %s15991_s28  }
  0x6c   :  { %s15138_s1 = scalar_lea.hbm %s16068_s25, 3456 }
  0x6d   :  { %p15139_p8 = scmp.ne.s32.totalorder %s16068_s25, %s15138_s1  ;;  %p15142_p9 = scmp.lt.u32.totalorder %s15138_s1, %s16068_s25 }
  0x6f   :  { %p15144_p10 = pnand %p15142_p9, %p15139_p8 }
  0x71   :  { %15147 = shalt.err (!%p15144_p10)
}
  0x72   :  { %s15148_s2 = scalar_lea.vmem %s16255_s18, 3456  ;;  %p15153_p12 = scmp.lt.s32.totalorder %s16255_s18, %s16255_s18 }
  0x73   :  { %p15149_p11 = scmp.ne.s32.totalorder %s16255_s18, %s15148_s2  ;;  %p15154_p13 = scmp.lt.s32.totalorder %s15148_s2, %s15148_s2 }
  0x75   :  { %p15155_p0 = por %p15154_p13, %p15153_p12 }
  0x77   :  { %p15156_p1 = pnand %p15155_p0, %p15149_p11 }
  0x79   :  { %15159 = shalt.err (!%p15156_p1)
}
  0x7a   :  { %160 = dma.hbm_to_vmem [thread:$0]  %s16068_s25, 3456, %s16255_s18, [#allocation9], %s15990_s26, %s15990_s26, %s15991_s28  }
  0x7b   :  { %s15992_s13 = smov [#allocation11]   ;;  %s15993_s10 = smov [#allocation14]  }
  0x7c   :  { %s178_s7 = sshll.u32 %s15992_s13, 4  ;;  %s202_s11 = sshll.u32 %s15993_s10, 4  ;;  %s179_s7 = int_to_ptr.vmem [resolvable:$true] %s178_s7  ;;  %s16276_s11 = int_to_ptr.vmem [resolvable:$true] %s202_s11 }
  0x7d   :  { %s15160_s0 = scalar_lea.hbm %s16078_s3, 1152 }
  0x7e   :  { %p15161_p2 = scmp.ne.s32.totalorder %s16078_s3, %s15160_s0  ;;  %p15164_p3 = scmp.lt.u32.totalorder %s15160_s0, %s16078_s3 }
  0x80   :  { %p15166_p4 = pnand %p15164_p3, %p15161_p2 }
  0x82   :  { %15169 = shalt.err (!%p15166_p4)
}
  0x83   :  { %s15170_s15 = scalar_lea.vmem %s179_s7, 1152  ;;  %p15175_p6 = scmp.lt.s32.totalorder %s179_s7, %s179_s7 }
  0x84   :  { %p15171_p5 = scmp.ne.s32.totalorder %s179_s7, %s15170_s15  ;;  %p15176_p7 = scmp.lt.s32.totalorder %s15170_s15, %s15170_s15 }
  0x86   :  { %p15177_p8 = por %p15176_p7, %p15175_p6 }
  0x88   :  { %p15178_p9 = pnand %p15177_p8, %p15171_p5 }
  0x8a   :  { %15181 = shalt.err (!%p15178_p9)
}
  0x8b   :  { %184 = dma.hbm_to_vmem [thread:$0]  %s16078_s3, 1152, %s179_s7, [#allocation12], %s15990_s26, %s15990_s26, %s15991_s28  }
  0x8c   :  { %s15182_s25 = scalar_lea.hbm %s16088_s14, 2560 }
  0x8d   :  { %p15183_p10 = scmp.ne.s32.totalorder %s16088_s14, %s15182_s25  ;;  %p15186_p11 = scmp.lt.u32.totalorder %s15182_s25, %s16088_s14 }
  0x8f   :  { %p15188_p12 = pnand %p15186_p11, %p15183_p10 }
  0x91   :  { %15191 = shalt.err (!%p15188_p12)
}
  0x92   :  { %s15192_s16 = scalar_lea.vmem %s16276_s11, 2560  ;;  %p15197_p0 = scmp.lt.s32.totalorder %s16276_s11, %s16276_s11 }
  0x93   :  { %p15193_p13 = scmp.ne.s32.totalorder %s16276_s11, %s15192_s16  ;;  %p15198_p1 = scmp.lt.s32.totalorder %s15192_s16, %s15192_s16 }
  0x95   :  { %p15199_p2 = por %p15198_p1, %p15197_p0 }
  0x97   :  { %p15200_p3 = pnand %p15199_p2, %p15193_p13 }
  0x99   :  { %15203 = shalt.err (!%p15200_p3)
}
  0x9a   :  { %208 = dma.hbm_to_vmem [thread:$0]  %s16088_s14, 2560, %s16276_s11, [#allocation15], %s15990_s26, %s15990_s26, %s15991_s28  }
  0x9b   :  { %s15994_s3 = smov [#allocation17]   ;;  %s15204_s22 = scalar_lea.hbm %s16098_s24, 1536 }
  0x9c   :  { %s226_s18 = sshll.u32 %s15994_s3, 4  ;;  %p15205_p4 = scmp.ne.s32.totalorder %s16098_s24, %s15204_s22  ;;  %s227_s18 = int_to_ptr.vmem [resolvable:$true] %s226_s18 }
  0x9d   :  { %p15208_p5 = scmp.lt.u32.totalorder %s15204_s22, %s16098_s24 }
  0x9f   :  { %p15210_p6 = pnand %p15208_p5, %p15205_p4 }
  0xa1   :  { %15213 = shalt.err (!%p15210_p6)
}
  0xa2   :  { %s15214_s23 = scalar_lea.vmem %s227_s18, 1536  ;;  %p15219_p8 = scmp.lt.s32.totalorder %s227_s18, %s227_s18 }
  0xa3   :  { %p15215_p7 = scmp.ne.s32.totalorder %s227_s18, %s15214_s23  ;;  %p15220_p9 = scmp.lt.s32.totalorder %s15214_s23, %s15214_s23 }
  0xa5   :  { %p15221_p10 = por %p15220_p9, %p15219_p8 }
  0xa7   :  { %p15222_p11 = pnand %p15221_p10, %p15215_p7 }
  0xa9   :  { %15225 = shalt.err (!%p15222_p11)
}
  0xaa   :  { %s15995_s1 = smov 256   ;;  %s15996_s14 = smov 16  }
  0xab   :  { %232 = dma.hbm_to_vmem [thread:$0]  %s16098_s24, 1536, %s227_s18, [#allocation18], %s15995_s1, %s15995_s1, %s15996_s14  }
  0xac   :  { %s15997_s2 = smov [#allocation20]   ;;  %s15998_s7 = smov [#allocation23]  }
  0xad   :  { %s250_s13 = sshll.u32 %s15997_s2, 4  ;;  %s274_s10 = sshll.u32 %s15998_s7, 4  ;;  %s251_s13 = int_to_ptr.vmem [resolvable:$true] %s250_s13  ;;  %s275_s10 = int_to_ptr.vmem [resolvable:$true] %s274_s10 }
  0xae   :  { %s15226_s11 = scalar_lea.hbm %s16108_s6, 1920 }
  0xaf   :  { %p15227_p12 = scmp.ne.s32.totalorder %s16108_s6, %s15226_s11  ;;  %p15230_p13 = scmp.lt.u32.totalorder %s15226_s11, %s16108_s6 }
  0xb1   :  { %p15232_p0 = pnand %p15230_p13, %p15227_p12 }
  0xb3   :  { %15235 = shalt.err (!%p15232_p0)
}
  0xb4   :  { %s15236_s0 = scalar_lea.vmem %s251_s13, 1920  ;;  %p15241_p2 = scmp.lt.s32.totalorder %s251_s13, %s251_s13 }
  0xb5   :  { %p15237_p1 = scmp.ne.s32.totalorder %s251_s13, %s15236_s0  ;;  %p15242_p3 = scmp.lt.s32.totalorder %s15236_s0, %s15236_s0 }
  0xb7   :  { %p15243_p4 = por %p15242_p3, %p15241_p2 }
  0xb9   :  { %p15244_p5 = pnand %p15243_p4, %p15237_p1 }
  0xbb   :  { %15247 = shalt.err (!%p15244_p5)
}
  0xbc   :  { %256 = dma.hbm_to_vmem [thread:$0]  %s16108_s6, 1920, %s251_s13, [#allocation21], %s15990_s26, %s15990_s26, %s15991_s28  }
  0xbd   :  { %s15248_s24 = scalar_lea.hbm %s16118_s20, 7680 }
  0xbe   :  { %p15249_p6 = scmp.ne.s32.totalorder %s16118_s20, %s15248_s24  ;;  %p15252_p7 = scmp.lt.u32.totalorder %s15248_s24, %s16118_s20 }
  0xc0   :  { %p15254_p8 = pnand %p15252_p7, %p15249_p6 }
  0xc2   :  { %15257 = shalt.err (!%p15254_p8)
}
  0xc3   :  { %s15258_s15 = scalar_lea.vmem %s275_s10, 7680  ;;  %p15263_p10 = scmp.lt.s32.totalorder %s275_s10, %s275_s10 }
  0xc4   :  { %p15259_p9 = scmp.ne.s32.totalorder %s275_s10, %s15258_s15  ;;  %p15264_p11 = scmp.lt.s32.totalorder %s15258_s15, %s15258_s15 }
  0xc6   :  { %p15265_p12 = por %p15264_p11, %p15263_p10 }
  0xc8   :  { %p15266_p13 = pnand %p15265_p12, %p15259_p9 }
  0xca   :  { %15269 = shalt.err (!%p15266_p13)
}
  0xcb   :  { %280 = dma.hbm_to_vmem [thread:$0]  %s16118_s20, 7680, %s275_s10, [#allocation24], %s15995_s1, %s15995_s1, %s15996_s14  }
  0xcc   :  { %s15999_s6 = smov [#allocation26]   ;;  %s15270_s16 = scalar_lea.hbm %s16128_s4, 9984 }
  0xcd   :  { %s298_s25 = sshll.u32 %s15999_s6, 4  ;;  %p15271_p0 = scmp.ne.s32.totalorder %s16128_s4, %s15270_s16  ;;  %s299_s25 = int_to_ptr.vmem [resolvable:$true] %s298_s25 }
  0xce   :  { %p15274_p1 = scmp.lt.u32.totalorder %s15270_s16, %s16128_s4 }
  0xd0   :  { %p15276_p2 = pnand %p15274_p1, %p15271_p0 }
  0xd2   :  { %15279 = shalt.err (!%p15276_p2)
}
  0xd3   :  { %s15280_s3 = scalar_lea.vmem %s299_s25, 9984  ;;  %p15285_p4 = scmp.lt.s32.totalorder %s299_s25, %s299_s25 }
  0xd4   :  { %p15281_p3 = scmp.ne.s32.totalorder %s299_s25, %s15280_s3  ;;  %p15286_p5 = scmp.lt.s32.totalorder %s15280_s3, %s15280_s3 }
  0xd6   :  { %p15287_p6 = por %p15286_p5, %p15285_p4 }
  0xd8   :  { %p15288_p7 = pnand %p15287_p6, %p15281_p3 }
  0xda   :  { %15291 = shalt.err (!%p15288_p7)
}
  0xdb   :  { %s16000_s18 = smov 384   ;;  %s16001_s20 = smov 24  }
  0xdc   :  { %304 = dma.hbm_to_vmem [thread:$0]  %s16128_s4, 9984, %s299_s25, [#allocation27], %s16000_s18, %s16000_s18, %s16001_s20  }
  0xdd   :  { %s16002_s22 = smov [#allocation29]   ;;  %s16003_s2 = smov [#allocation32]  }
  0xde   :  { %s322_s23 = sshll.u32 %s16002_s22, 4  ;;  %s346_s13 = sshll.u32 %s16003_s2, 4  ;;  %s323_s23 = int_to_ptr.vmem [resolvable:$true] %s322_s23  ;;  %s16325_s13 = int_to_ptr.vmem [resolvable:$true] %s346_s13 }
  0xdf   :  { %s15292_s7 = scalar_lea.hbm %s16138_s9, 1024 }
  0xe0   :  { %p15293_p8 = scmp.ne.s32.totalorder %s16138_s9, %s15292_s7  ;;  %p15296_p9 = scmp.lt.u32.totalorder %s15292_s7, %s16138_s9 }
  0xe2   :  { %p15298_p10 = pnand %p15296_p9, %p15293_p8 }
  0xe4   :  { %15301 = shalt.err (!%p15298_p10)
}
  0xe5   :  { %s15302_s10 = scalar_lea.vmem %s323_s23, 1024  ;;  %p15307_p12 = scmp.lt.s32.totalorder %s323_s23, %s323_s23 }
  0xe6   :  { %p15303_p11 = scmp.ne.s32.totalorder %s323_s23, %s15302_s10  ;;  %p15308_p13 = scmp.lt.s32.totalorder %s15302_s10, %s15302_s10 }
  0xe8   :  { %p15309_p0 = por %p15308_p13, %p15307_p12 }
  0xea   :  { %p15310_p1 = pnand %p15309_p0, %p15303_p11 }
  0xec   :  { %15313 = shalt.err (!%p15310_p1)
}
  0xed   :  { %328 = dma.hbm_to_vmem [thread:$0]  %s16138_s9, 1024, %s323_s23, [#allocation30], %s15990_s26, %s15990_s26, %s15991_s28  }
  0xee   :  { %s15314_s4 = scalar_lea.hbm %s16148_s12, 3200 }
  0xef   :  { %p15315_p2 = scmp.ne.s32.totalorder %s16148_s12, %s15314_s4  ;;  %p15318_p3 = scmp.lt.u32.totalorder %s15314_s4, %s16148_s12 }
  0xf1   :  { %p15320_p4 = pnand %p15318_p3, %p15315_p2 }
  0xf3   :  { %15323 = shalt.err (!%p15320_p4)
}
  0xf4   :  { %s15324_s11 = scalar_lea.vmem %s16325_s13, 3200  ;;  %p15329_p6 = scmp.lt.s32.totalorder %s16325_s13, %s16325_s13 }
  0xf5   :  { %p15325_p5 = scmp.ne.s32.totalorder %s16325_s13, %s15324_s11  ;;  %p15330_p7 = scmp.lt.s32.totalorder %s15324_s11, %s15324_s11 }
  0xf7   :  { %p15331_p8 = por %p15330_p7, %p15329_p6 }
  0xf9   :  { %p15332_p9 = pnand %p15331_p8, %p15325_p5 }
  0xfb   :  { %15335 = shalt.err (!%p15332_p9)
}
  0xfc   :  { %352 = dma.hbm_to_vmem [thread:$0]  %s16148_s12, 3200, %s16325_s13, [#allocation33], %s15990_s26, %s15990_s26, %s15991_s28  }
  0xfd   :  { %s16004_s9 = smov [#allocation35]   ;;  %s16005_s24 = smov [#allocation38]  }
  0xfe   :  { %s370_s0 = sshll.u32 %s16004_s9, 4  ;;  %s396_s15 = sshll.u32 %s16005_s24, 4  ;;  %s371_s0 = int_to_ptr.vmem [resolvable:$true] %s370_s0  ;;  %s16346_s15 = int_to_ptr.vmem [resolvable:$true] %s396_s15 }
  0xff   :  { %s15336_s6 = scalar_lea.hbm %s16158_s30, 4096 }
 0x100   :  { %p15337_p10 = scmp.ne.s32.totalorder %s16158_s30, %s15336_s6  ;;  %p15340_p11 = scmp.lt.u32.totalorder %s15336_s6, %s16158_s30 }
 0x102   :  { %p15342_p12 = pnand %p15340_p11, %p15337_p10 }
 0x104   :  { %15345 = shalt.err (!%p15342_p12)
}
 0x105   :  { %s15346_s25 = scalar_lea.vmem %s371_s0, 4096  ;;  %p15351_p0 = scmp.lt.s32.totalorder %s371_s0, %s371_s0 }
 0x106   :  { %p15347_p13 = scmp.ne.s32.totalorder %s371_s0, %s15346_s25  ;;  %p15352_p1 = scmp.lt.s32.totalorder %s15346_s25, %s15346_s25 }
 0x108   :  { %p15353_p2 = por %p15352_p1, %p15351_p0 }
 0x10a   :  { %p15354_p3 = pnand %p15353_p2, %p15347_p13 }
 0x10c   :  { %15357 = shalt.err (!%p15354_p3)
}
 0x10d   :  { %376 = dma.hbm_to_vmem [thread:$0]  %s16158_s30, 4096, %s371_s0, [#allocation36], %s15995_s1, %s15995_s1, %s15996_s14  }
 0x10e   :  { %s15358_s12 = scalar_lea.hbm %s16173_s21, 9984 }
 0x10f   :  { %p15359_p4 = scmp.ne.s32.totalorder %s16173_s21, %s15358_s12  ;;  %p15362_p5 = scmp.lt.u32.totalorder %s15358_s12, %s16173_s21 }
 0x111   :  { %p15364_p6 = pnand %p15362_p5, %p15359_p4 }
 0x113   :  { %15367 = shalt.err (!%p15364_p6)
}
 0x114   :  { %s15368_s16 = scalar_lea.vmem %s16346_s15, 9984  ;;  %p15373_p8 = scmp.lt.s32.totalorder %s16346_s15, %s16346_s15 }
 0x115   :  { %p15369_p7 = scmp.ne.s32.totalorder %s16346_s15, %s15368_s16  ;;  %p15374_p9 = scmp.lt.s32.totalorder %s15368_s16, %s15368_s16 }
 0x117   :  { %p15375_p10 = por %p15374_p9, %p15373_p8 }
 0x119   :  { %p15376_p11 = pnand %p15375_p10, %p15369_p7 }
 0x11b   :  { %15379 = shalt.err (!%p15376_p11)
}
 0x11c   :  { %402 = dma.hbm_to_vmem [thread:$0]  %s16173_s21, 9984, %s16346_s15, [#allocation39], %s16000_s18, %s16000_s18, %s16001_s20  }
 0x11d   :  { %s16006_s30 = smov [#allocation41]   ;;  %s16007_s22 = smov [#allocation44]  }
 0x11e   :  { %s418_s3 = sshll.u32 %s16006_s30, 4  ;;  %s442_s23 = sshll.u32 %s16007_s22, 4  ;;  %s419_s3 = int_to_ptr.vmem [resolvable:$true] %s418_s3  ;;  %s16367_s23 = int_to_ptr.vmem [resolvable:$true] %s442_s23 }
 0x11f   :  { %s15380_s2 = scalar_lea.hbm %s16183_s27, 3200 }
 0x120   :  { %p15381_p12 = scmp.ne.s32.totalorder %s16183_s27, %s15380_s2  ;;  %p15384_p13 = scmp.lt.u32.totalorder %s15380_s2, %s16183_s27 }
 0x122   :  { %p15386_p0 = pnand %p15384_p13, %p15381_p12 }
 0x124   :  { %15389 = shalt.err (!%p15386_p0)
}
 0x125   :  { %s15390_s13 = scalar_lea.vmem %s419_s3, 3200  ;;  %p15395_p2 = scmp.lt.s32.totalorder %s419_s3, %s419_s3 }
 0x126   :  { %p15391_p1 = scmp.ne.s32.totalorder %s419_s3, %s15390_s13  ;;  %p15396_p3 = scmp.lt.s32.totalorder %s15390_s13, %s15390_s13 }
 0x128   :  { %p15397_p4 = por %p15396_p3, %p15395_p2 }
 0x12a   :  { %p15398_p5 = pnand %p15397_p4, %p15391_p1 }
 0x12c   :  { %15401 = shalt.err (!%p15398_p5)
}
 0x12d   :  { %424 = dma.hbm_to_vmem [thread:$0]  %s16183_s27, 3200, %s419_s3, [#allocation42], %s15990_s26, %s15990_s26, %s15991_s28  }
 0x12e   :  { %s15402_s21 = scalar_lea.hbm %s16193_s29, 4096 }
 0x12f   :  { %p15403_p6 = scmp.ne.s32.totalorder %s16193_s29, %s15402_s21  ;;  %p15406_p7 = scmp.lt.u32.totalorder %s15402_s21, %s16193_s29 }
 0x131   :  { %p15408_p8 = pnand %p15406_p7, %p15403_p6 }
 0x133   :  { %15411 = shalt.err (!%p15408_p8)
}
 0x134   :  { %s15412_s7 = scalar_lea.vmem %s16367_s23, 4096  ;;  %p15417_p10 = scmp.lt.s32.totalorder %s16367_s23, %s16367_s23 }
 0x135   :  { %p15413_p9 = scmp.ne.s32.totalorder %s16367_s23, %s15412_s7  ;;  %p15418_p11 = scmp.lt.s32.totalorder %s15412_s7, %s15412_s7 }
 0x137   :  { %p15419_p12 = por %p15418_p11, %p15417_p10 }
 0x139   :  { %p15420_p13 = pnand %p15419_p12, %p15413_p9 }
 0x13b   :  { %15423 = shalt.err (!%p15420_p13)
}
 0x13c   :  { %s18951_s27 = sld [smem:[#allocation94_spill]]  ;;  %s16008_s10 = smov [#allocation47]  }
 0x13d   :  { %448 = dma.hbm_to_vmem [thread:$0]  %s16193_s29, 4096, %s16367_s23, [#allocation45], %s15995_s1, %s15995_s1, %s15996_s14  }
 0x13e   :  { %s464_s4 = sshll.u32 %s16008_s10, 4  ;;  %s16009_s11 = smov [#allocation50]   ;;  %s465_s4 = int_to_ptr.vmem [resolvable:$true] %s464_s4 }
 0x13f   :  { %s488_s9 = sshll.u32 %s16009_s11, 4  ;;  %s16388_s9 = int_to_ptr.vmem [resolvable:$true] %s488_s9 }
 0x142   :  { %s15424_s0 = scalar_lea.hbm %s18951_s27, 256 }
 0x143   :  { %p15425_p0 = scmp.ne.s32.totalorder %s18951_s27, %s15424_s0  ;;  %p15428_p1 = scmp.lt.u32.totalorder %s15424_s0, %s18951_s27 }
 0x145   :  { %p15430_p2 = pnand %p15428_p1, %p15425_p0 }
 0x147   :  { %15433 = shalt.err (!%p15430_p2)
}
 0x148   :  { %s15434_s24 = scalar_lea.vmem %s465_s4, 256  ;;  %p15439_p4 = scmp.lt.s32.totalorder %s465_s4, %s465_s4 }
 0x149   :  { %p15435_p3 = scmp.ne.s32.totalorder %s465_s4, %s15434_s24  ;;  %p15440_p5 = scmp.lt.s32.totalorder %s15434_s24, %s15434_s24 }
 0x14b   :  { %p15441_p6 = por %p15440_p5, %p15439_p4 }
 0x14d   :  { %p15442_p7 = pnand %p15441_p6, %p15435_p3 }
 0x14f   :  { %15445 = shalt.err (!%p15442_p7)
}
 0x150   :  { %s18952_s29 = sld [smem:[#allocation96_spill]] }
 0x151   :  { %470 = dma.hbm_to_vmem [thread:$0]  %s18951_s27, 256, %s465_s4, [#allocation48], %s15990_s26, %s15990_s26, %s15991_s28  }
 0x156   :  { %s15446_s15 = scalar_lea.hbm %s18952_s29, 7680 }
 0x157   :  { %p15447_p8 = scmp.ne.s32.totalorder %s18952_s29, %s15446_s15  ;;  %p15450_p9 = scmp.lt.u32.totalorder %s15446_s15, %s18952_s29 }
 0x159   :  { %p15452_p10 = pnand %p15450_p9, %p15447_p8 }
 0x15b   :  { %15455 = shalt.err (!%p15452_p10)
}
 0x15c   :  { %s15456_s6 = scalar_lea.vmem %s16388_s9, 7680  ;;  %p15461_p12 = scmp.lt.s32.totalorder %s16388_s9, %s16388_s9 }
 0x15d   :  { %p15457_p11 = scmp.ne.s32.totalorder %s16388_s9, %s15456_s6  ;;  %p15462_p13 = scmp.lt.s32.totalorder %s15456_s6, %s15456_s6 }
 0x15f   :  { %p15463_p0 = por %p15462_p13, %p15461_p12 }
 0x161   :  { %p15464_p1 = pnand %p15463_p0, %p15457_p11 }
 0x163   :  { %15467 = shalt.err (!%p15464_p1)
}
 0x164   :  { %s18953_s25 = sld [smem:[#allocation99_spill]]  ;;  %s16010_s12 = smov [#allocation53]  }
 0x165   :  { %494 = dma.hbm_to_vmem [thread:$0]  %s18952_s29, 7680, %s16388_s9, [#allocation51], %s15995_s1, %s15995_s1, %s15996_s14  }
 0x166   :  { %s514_s16 = sshll.u32 %s16010_s12, 4  ;;  %s16011_s30 = smov [#allocation2]   ;;  %s515_s16 = int_to_ptr.vmem [resolvable:$true] %s514_s16 }
 0x167   :  { %s114_s3 = sshll.u32 %s16011_s30, 4  ;;  %s16409_s3 = int_to_ptr.vmem [resolvable:$true] %s114_s3 }
 0x16a   :  { %s15468_s22 = scalar_lea.hbm %s18953_s25, 7680 }
 0x16b   :  { %p15469_p2 = scmp.ne.s32.totalorder %s18953_s25, %s15468_s22  ;;  %p15472_p3 = scmp.lt.u32.totalorder %s15468_s22, %s18953_s25 }
 0x16d   :  { %p15474_p4 = pnand %p15472_p3, %p15469_p2 }
 0x16f   :  { %15477 = shalt.err (!%p15474_p4)
}
 0x170   :  { %s15478_s23 = scalar_lea.vmem %s515_s16, 7680  ;;  %p15483_p6 = scmp.lt.s32.totalorder %s515_s16, %s515_s16 }
 0x171   :  { %p15479_p5 = scmp.ne.s32.totalorder %s515_s16, %s15478_s23  ;;  %p15484_p7 = scmp.lt.s32.totalorder %s15478_s23, %s15478_s23 }
 0x173   :  { %p15485_p8 = por %p15484_p7, %p15483_p6 }
 0x175   :  { %p15486_p9 = pnand %p15485_p8, %p15479_p5 }
 0x177   :  { %15489 = shalt.err (!%p15486_p9)
}
 0x178   :  { %s18954_s2 = sld [smem:[#allocation76_spill]] }
 0x179   :  { %520 = dma.hbm_to_vmem [thread:$0]  %s18953_s25, 7680, %s515_s16, [#allocation54], %s15995_s1, %s15995_s1, %s15996_s14  }
 0x17e   :  { %s15490_s13 = scalar_lea.hbm %s18954_s2, 2048 }
 0x17f   :  { %p15491_p10 = scmp.ne.s32.totalorder %s18954_s2, %s15490_s13  ;;  %p15494_p11 = scmp.lt.u32.totalorder %s15490_s13, %s18954_s2 }
 0x181   :  { %p15496_p12 = pnand %p15494_p11, %p15491_p10 }
 0x183   :  { %15499 = shalt.err (!%p15496_p12)
}
 0x184   :  { %s15500_s21 = scalar_lea.vmem %s16409_s3, 2048  ;;  %p15505_p0 = scmp.lt.s32.totalorder %s16409_s3, %s16409_s3 }
 0x185   :  { %p15501_p13 = scmp.ne.s32.totalorder %s16409_s3, %s15500_s21  ;;  %p15506_p1 = scmp.lt.s32.totalorder %s15500_s21, %s15500_s21 }
 0x187   :  { %p15507_p2 = por %p15506_p1, %p15505_p0 }
 0x189   :  { %p15508_p3 = pnand %p15507_p2, %p15501_p13 }
 0x18b   :  { %15511 = shalt.err (!%p15508_p3)
}
 0x18c   :  { %s18955_s7 = sld [smem:[#allocation78_spill]]  ;;  %s16012_s27 = smov [#allocation7]  }
 0x18d   :  { %120 = dma.hbm_to_vmem [thread:$0]  %s18954_s2, 2048, %s16409_s3, [#allocation3], %s15990_s26, %s15990_s26, %s15991_s28  }
 0x18e   :  { %s140_s10 = sshll.u32 %s16012_s27, 4  ;;  %s16013_s4 = smov [#allocation10]   ;;  %s141_s10 = int_to_ptr.vmem [resolvable:$true] %s140_s10 }
 0x18f   :  { %s166_s11 = sshll.u32 %s16013_s4, 4  ;;  %s16430_s11 = int_to_ptr.vmem [resolvable:$true] %s166_s11 }
 0x192   :  { %s15512_s9 = scalar_lea.hbm %s18955_s7, 2304 }
 0x193   :  { %p15513_p4 = scmp.ne.s32.totalorder %s18955_s7, %s15512_s9  ;;  %p15516_p5 = scmp.lt.u32.totalorder %s15512_s9, %s18955_s7 }
 0x195   :  { %p15518_p6 = pnand %p15516_p5, %p15513_p4 }
 0x197   :  { %15521 = shalt.err (!%p15518_p6)
}
 0x198   :  { %s15522_s0 = scalar_lea.vmem %s141_s10, 2304  ;;  %p15527_p8 = scmp.lt.s32.totalorder %s141_s10, %s141_s10 }
 0x199   :  { %p15523_p7 = scmp.ne.s32.totalorder %s141_s10, %s15522_s0  ;;  %p15528_p9 = scmp.lt.s32.totalorder %s15522_s0, %s15522_s0 }
 0x19b   :  { %p15529_p10 = por %p15528_p9, %p15527_p8 }
 0x19d   :  { %p15530_p11 = pnand %p15529_p10, %p15523_p7 }
 0x19f   :  { %15533 = shalt.err (!%p15530_p11)
}
 0x1a0   :  { %s18956_s24 = sld [smem:[#allocation80_spill]] }
 0x1a1   :  { %146 = dma.hbm_to_vmem [thread:$0]  %s18955_s7, 2304, %s141_s10, [#allocation6], %s15990_s26, %s15990_s26, %s15991_s28  }
 0x1a6   :  { %s15534_s29 = scalar_lea.hbm %s18956_s24, 1536 }
 0x1a7   :  { %p15535_p12 = scmp.ne.s32.totalorder %s18956_s24, %s15534_s29  ;;  %p15538_p13 = scmp.lt.u32.totalorder %s15534_s29, %s18956_s24 }
 0x1a9   :  { %p15540_p0 = pnand %p15538_p13, %p15535_p12 }
 0x1ab   :  { %15543 = shalt.err (!%p15540_p0)
}
 0x1ac   :  { %s15544_s15 = scalar_lea.vmem %s16430_s11, 1536  ;;  %p15549_p2 = scmp.lt.s32.totalorder %s16430_s11, %s16430_s11 }
 0x1ad   :  { %p15545_p1 = scmp.ne.s32.totalorder %s16430_s11, %s15544_s15  ;;  %p15550_p3 = scmp.lt.s32.totalorder %s15544_s15, %s15544_s15 }
 0x1af   :  { %p15551_p4 = por %p15550_p3, %p15549_p2 }
 0x1b1   :  { %p15552_p5 = pnand %p15551_p4, %p15545_p1 }
 0x1b3   :  { %15555 = shalt.err (!%p15552_p5)
}
 0x1b4   :  { %s18957_s6 = sld [smem:[#allocation81_spill]]  ;;  %s16014_s25 = smov [#allocation13]  }
 0x1b5   :  { %172 = dma.hbm_to_vmem [thread:$0]  %s18956_s24, 1536, %s16430_s11, [#allocation9], %s15990_s26, %s15990_s26, %s15991_s28  }
 0x1b6   :  { %s190_s12 = sshll.u32 %s16014_s25, 4  ;;  %s16015_s16 = smov [#allocation16]   ;;  %s191_s12 = int_to_ptr.vmem [resolvable:$true] %s190_s12 }
 0x1b7   :  { %s214_s30 = sshll.u32 %s16015_s16, 4  ;;  %s16451_s30 = int_to_ptr.vmem [resolvable:$true] %s214_s30 }
 0x1ba   :  { %s15556_s3 = scalar_lea.hbm %s18957_s6, 768 }
 0x1bb   :  { %p15557_p6 = scmp.ne.s32.totalorder %s18957_s6, %s15556_s3  ;;  %p15560_p7 = scmp.lt.u32.totalorder %s15556_s3, %s18957_s6 }
 0x1bd   :  { %p15562_p8 = pnand %p15560_p7, %p15557_p6 }
 0x1bf   :  { %15565 = shalt.err (!%p15562_p8)
}
 0x1c0   :  { %s15566_s22 = scalar_lea.vmem %s191_s12, 768  ;;  %p15571_p10 = scmp.lt.s32.totalorder %s191_s12, %s191_s12 }
 0x1c1   :  { %p15567_p9 = scmp.ne.s32.totalorder %s191_s12, %s15566_s22  ;;  %p15572_p11 = scmp.lt.s32.totalorder %s15566_s22, %s15566_s22 }
 0x1c3   :  { %p15573_p12 = por %p15572_p11, %p15571_p10 }
 0x1c5   :  { %p15574_p13 = pnand %p15573_p12, %p15567_p9 }
 0x1c7   :  { %15577 = shalt.err (!%p15574_p13)
}
 0x1c8   :  { %s18958_s23 = sld [smem:[#allocation82_spill]] }
 0x1c9   :  { %196 = dma.hbm_to_vmem [thread:$0]  %s18957_s6, 768, %s191_s12, [#allocation12], %s15990_s26, %s15990_s26, %s15991_s28  }
 0x1ce   :  { %s15578_s2 = scalar_lea.hbm %s18958_s23, 768 }
 0x1cf   :  { %p15579_p0 = scmp.ne.s32.totalorder %s18958_s23, %s15578_s2  ;;  %p15582_p1 = scmp.lt.u32.totalorder %s15578_s2, %s18958_s23 }
 0x1d1   :  { %p15584_p2 = pnand %p15582_p1, %p15579_p0 }
 0x1d3   :  { %15587 = shalt.err (!%p15584_p2)
}
 0x1d4   :  { %s15588_s13 = scalar_lea.vmem %s16451_s30, 768  ;;  %p15593_p4 = scmp.lt.s32.totalorder %s16451_s30, %s16451_s30 }
 0x1d5   :  { %p15589_p3 = scmp.ne.s32.totalorder %s16451_s30, %s15588_s13  ;;  %p15594_p5 = scmp.lt.s32.totalorder %s15588_s13, %s15588_s13 }
 0x1d7   :  { %p15595_p6 = por %p15594_p5, %p15593_p4 }
 0x1d9   :  { %p15596_p7 = pnand %p15595_p6, %p15589_p3 }
 0x1db   :  { %15599 = shalt.err (!%p15596_p7)
}
 0x1dc   :  { %s18959_s21 = sld [smem:[#allocation83_spill]]  ;;  %s16016_s7 = smov [#allocation19]  }
 0x1dd   :  { %220 = dma.hbm_to_vmem [thread:$0]  %s18958_s23, 768, %s16451_s30, [#allocation15], %s15990_s26, %s15990_s26, %s15991_s28  }
 0x1de   :  { %s238_s27 = sshll.u32 %s16016_s7, 4  ;;  %s16017_s10 = smov [#allocation22]   ;;  %s239_s27 = int_to_ptr.vmem [resolvable:$true] %s238_s27 }
 0x1df   :  { %s262_s4 = sshll.u32 %s16017_s10, 4  ;;  %s16472_s4 = int_to_ptr.vmem [resolvable:$true] %s262_s4 }
 0x1e2   :  { %s15600_s11 = scalar_lea.hbm %s18959_s21, 2560 }
 0x1e3   :  { %p15601_p8 = scmp.ne.s32.totalorder %s18959_s21, %s15600_s11  ;;  %p15604_p9 = scmp.lt.u32.totalorder %s15600_s11, %s18959_s21 }
 0x1e5   :  { %p15606_p10 = pnand %p15604_p9, %p15601_p8 }
 0x1e7   :  { %15609 = shalt.err (!%p15606_p10)
}
 0x1e8   :  { %s15610_s9 = scalar_lea.vmem %s239_s27, 2560  ;;  %p15615_p12 = scmp.lt.s32.totalorder %s239_s27, %s239_s27 }
 0x1e9   :  { %p15611_p11 = scmp.ne.s32.totalorder %s239_s27, %s15610_s9  ;;  %p15616_p13 = scmp.lt.s32.totalorder %s15610_s9, %s15610_s9 }
 0x1eb   :  { %p15617_p0 = por %p15616_p13, %p15615_p12 }
 0x1ed   :  { %p15618_p1 = pnand %p15617_p0, %p15611_p11 }
 0x1ef   :  { %15621 = shalt.err (!%p15618_p1)
}
 0x1f0   :  { %s18960_s0 = sld [smem:[#allocation84_spill]] }
 0x1f1   :  { %244 = dma.hbm_to_vmem [thread:$0]  %s18959_s21, 2560, %s239_s27, [#allocation18], %s15990_s26, %s15990_s26, %s15991_s28  }
 0x1f6   :  { %s15622_s24 = scalar_lea.hbm %s18960_s0, 3840 }
 0x1f7   :  { %p15623_p2 = scmp.ne.s32.totalorder %s18960_s0, %s15622_s24  ;;  %p15626_p3 = scmp.lt.u32.totalorder %s15622_s24, %s18960_s0 }
 0x1f9   :  { %p15628_p4 = pnand %p15626_p3, %p15623_p2 }
 0x1fb   :  { %15631 = shalt.err (!%p15628_p4)
}
 0x1fc   :  { %s15632_s29 = scalar_lea.vmem %s16472_s4, 3840  ;;  %p15637_p6 = scmp.lt.s32.totalorder %s16472_s4, %s16472_s4 }
 0x1fd   :  { %p15633_p5 = scmp.ne.s32.totalorder %s16472_s4, %s15632_s29  ;;  %p15638_p7 = scmp.lt.s32.totalorder %s15632_s29, %s15632_s29 }
 0x1ff   :  { %p15639_p8 = por %p15638_p7, %p15637_p6 }
 0x201   :  { %p15640_p9 = pnand %p15639_p8, %p15633_p5 }
 0x203   :  { %15643 = shalt.err (!%p15640_p9)
}
 0x204   :  { %s18961_s15 = sld [smem:[#allocation85_spill]]  ;;  %s16018_s6 = smov [#allocation25]  }
 0x205   :  { %268 = dma.hbm_to_vmem [thread:$0]  %s18960_s0, 3840, %s16472_s4, [#allocation21], %s15995_s1, %s15995_s1, %s15996_s14  }
 0x206   :  { %s286_s25 = sshll.u32 %s16018_s6, 4  ;;  %s16019_s12 = smov [#allocation28]   ;;  %s287_s25 = int_to_ptr.vmem [resolvable:$true] %s286_s25 }
 0x207   :  { %s310_s16 = sshll.u32 %s16019_s12, 4  ;;  %s16493_s16 = int_to_ptr.vmem [resolvable:$true] %s310_s16 }
 0x20a   :  { %s15644_s30 = scalar_lea.hbm %s18961_s15, 6656 }
 0x20b   :  { %p15645_p10 = scmp.ne.s32.totalorder %s18961_s15, %s15644_s30  ;;  %p15648_p11 = scmp.lt.u32.totalorder %s15644_s30, %s18961_s15 }
 0x20d   :  { %p15650_p12 = pnand %p15648_p11, %p15645_p10 }
 0x20f   :  { %15653 = shalt.err (!%p15650_p12)
}
 0x210   :  { %s15654_s3 = scalar_lea.vmem %s287_s25, 6656  ;;  %p15659_p0 = scmp.lt.s32.totalorder %s287_s25, %s287_s25 }
 0x211   :  { %p15655_p13 = scmp.ne.s32.totalorder %s287_s25, %s15654_s3  ;;  %p15660_p1 = scmp.lt.s32.totalorder %s15654_s3, %s15654_s3 }
 0x213   :  { %p15661_p2 = por %p15660_p1, %p15659_p0 }
 0x215   :  { %p15662_p3 = pnand %p15661_p2, %p15655_p13 }
 0x217   :  { %15665 = shalt.err (!%p15662_p3)
}
 0x218   :  { %s18962_s22 = sld [smem:[#allocation86_spill]] }
 0x219   :  { %292 = dma.hbm_to_vmem [thread:$0]  %s18961_s15, 6656, %s287_s25, [#allocation24], %s15995_s1, %s15995_s1, %s15996_s14  }
 0x21e   :  { %s15666_s23 = scalar_lea.hbm %s18962_s22, 3200 }
 0x21f   :  { %p15667_p4 = scmp.ne.s32.totalorder %s18962_s22, %s15666_s23  ;;  %p15670_p5 = scmp.lt.u32.totalorder %s15666_s23, %s18962_s22 }
 0x221   :  { %p15672_p6 = pnand %p15670_p5, %p15667_p4 }
 0x223   :  { %15675 = shalt.err (!%p15672_p6)
}
 0x224   :  { %s15676_s2 = scalar_lea.vmem %s16493_s16, 3200  ;;  %p15681_p8 = scmp.lt.s32.totalorder %s16493_s16, %s16493_s16 }
 0x225   :  { %p15677_p7 = scmp.ne.s32.totalorder %s16493_s16, %s15676_s2  ;;  %p15682_p9 = scmp.lt.s32.totalorder %s15676_s2, %s15676_s2 }
 0x227   :  { %p15683_p10 = por %p15682_p9, %p15681_p8 }
 0x229   :  { %p15684_p11 = pnand %p15683_p10, %p15677_p7 }
 0x22b   :  { %15687 = shalt.err (!%p15684_p11)
}
 0x22c   :  { %s18963_s13 = sld [smem:[#allocation87_spill]]  ;;  %s16020_s21 = smov [#allocation31]  }
 0x22d   :  { %316 = dma.hbm_to_vmem [thread:$0]  %s18962_s22, 3200, %s16493_s16, [#allocation27], %s15990_s26, %s15990_s26, %s15991_s28  }
 0x22e   :  { %s334_s7 = sshll.u32 %s16020_s21, 4  ;;  %s16021_s27 = smov [#allocation34]   ;;  %s335_s7 = int_to_ptr.vmem [resolvable:$true] %s334_s7 }
 0x22f   :  { %s358_s10 = sshll.u32 %s16021_s27, 4  ;;  %s16514_s10 = int_to_ptr.vmem [resolvable:$true] %s358_s10 }
 0x232   :  { %s15688_s4 = scalar_lea.hbm %s18963_s13, 2048 }
 0x233   :  { %p15689_p12 = scmp.ne.s32.totalorder %s18963_s13, %s15688_s4  ;;  %p15692_p13 = scmp.lt.u32.totalorder %s15688_s4, %s18963_s13 }
 0x235   :  { %p15694_p0 = pnand %p15692_p13, %p15689_p12 }
 0x237   :  { %15697 = shalt.err (!%p15694_p0)
}
 0x238   :  { %s15698_s11 = scalar_lea.vmem %s335_s7, 2048  ;;  %p15703_p2 = scmp.lt.s32.totalorder %s335_s7, %s335_s7 }
 0x239   :  { %p15699_p1 = scmp.ne.s32.totalorder %s335_s7, %s15698_s11  ;;  %p15704_p3 = scmp.lt.s32.totalorder %s15698_s11, %s15698_s11 }
 0x23b   :  { %p15705_p4 = por %p15704_p3, %p15703_p2 }
 0x23d   :  { %p15706_p5 = pnand %p15705_p4, %p15699_p1 }
 0x23f   :  { %15709 = shalt.err (!%p15706_p5)
}
 0x240   :  { %s18964_s9 = sld [smem:[#allocation88_spill]] }
 0x241   :  { %340 = dma.hbm_to_vmem [thread:$0]  %s18963_s13, 2048, %s335_s7, [#allocation30], %s15995_s1, %s15995_s1, %s15996_s14  }
 0x246   :  { %s15710_s0 = scalar_lea.hbm %s18964_s9, 2048 }
 0x247   :  { %p15711_p6 = scmp.ne.s32.totalorder %s18964_s9, %s15710_s0  ;;  %p15714_p7 = scmp.lt.u32.totalorder %s15710_s0, %s18964_s9 }
 0x249   :  { %p15716_p8 = pnand %p15714_p7, %p15711_p6 }
 0x24b   :  { %15719 = shalt.err (!%p15716_p8)
}
 0x24c   :  { %s15720_s24 = scalar_lea.vmem %s16514_s10, 2048  ;;  %p15725_p10 = scmp.lt.s32.totalorder %s16514_s10, %s16514_s10 }
 0x24d   :  { %p15721_p9 = scmp.ne.s32.totalorder %s16514_s10, %s15720_s24  ;;  %p15726_p11 = scmp.lt.s32.totalorder %s15720_s24, %s15720_s24 }
 0x24f   :  { %p15727_p12 = por %p15726_p11, %p15725_p10 }
 0x251   :  { %p15728_p13 = pnand %p15727_p12, %p15721_p9 }
 0x253   :  { %15731 = shalt.err (!%p15728_p13)
}
 0x254   :  { %s18965_s29 = sld [smem:[#allocation90_spill]]  ;;  %s16022_s15 = smov [#allocation37]  }
 0x255   :  { %364 = dma.hbm_to_vmem [thread:$0]  %s18964_s9, 2048, %s16514_s10, [#allocation33], %s15990_s26, %s15990_s26, %s15991_s28  }
 0x256   :  { %s384_s6 = sshll.u32 %s16022_s15, 4  ;;  %s16023_s25 = smov [#allocation40]   ;;  %s385_s6 = int_to_ptr.vmem [resolvable:$true] %s384_s6 }
 0x257   :  { %s409_s12 = sshll.u32 %s16023_s25, 4  ;;  %s410_s12 = int_to_ptr.vmem [resolvable:$true] %s409_s12 }
 0x25a   :  { %s15732_s16 = scalar_lea.hbm %s18965_s29, 6656 }
 0x25b   :  { %p15733_p0 = scmp.ne.s32.totalorder %s18965_s29, %s15732_s16  ;;  %p15736_p1 = scmp.lt.u32.totalorder %s15732_s16, %s18965_s29 }
 0x25d   :  { %p15738_p2 = pnand %p15736_p1, %p15733_p0 }
 0x25f   :  { %15741 = shalt.err (!%p15738_p2)
}
 0x260   :  { %s15742_s30 = scalar_lea.vmem %s385_s6, 6656  ;;  %p15747_p4 = scmp.lt.s32.totalorder %s385_s6, %s385_s6 }
 0x261   :  { %p15743_p3 = scmp.ne.s32.totalorder %s385_s6, %s15742_s30  ;;  %p15748_p5 = scmp.lt.s32.totalorder %s15742_s30, %s15742_s30 }
 0x263   :  { %p15749_p6 = por %p15748_p5, %p15747_p4 }
 0x265   :  { %p15750_p7 = pnand %p15749_p6, %p15743_p3 }
 0x267   :  { %15753 = shalt.err (!%p15750_p7)
}
 0x268   :  { %s18966_s3 = sld [smem:[#allocation91_spill]] }
 0x269   :  { %390 = dma.hbm_to_vmem [thread:$0]  %s18965_s29, 6656, %s385_s6, [#allocation36], %s15995_s1, %s15995_s1, %s15996_s14  }
 0x26e   :  { %s15754_s22 = scalar_lea.hbm %s18966_s3, 400 }
 0x26f   :  { %p15755_p8 = scmp.ne.s32.totalorder %s18966_s3, %s15754_s22  ;;  %p15758_p9 = scmp.lt.u32.totalorder %s15754_s22, %s18966_s3 }
 0x271   :  { %p15760_p10 = pnand %p15758_p9, %p15755_p8 }
 0x273   :  { %15763 = shalt.err (!%p15760_p10)
}
 0x274   :  { %s15764_s23 = scalar_lea.vmem %s410_s12, 400  ;;  %s15768_s2 = scalar_lea.vmem %s410_s12, 416 }
 0x275   :  { %p15765_p11 = scmp.ne.s32.totalorder %s410_s12, %s15764_s23  ;;  %p15769_p12 = scmp.lt.s32.totalorder %s410_s12, %s410_s12 }
 0x276   :  { %p15770_p13 = scmp.lt.s32.totalorder %s15768_s2, %s15764_s23 }
 0x278   :  { %p15771_p0 = por %p15770_p13, %p15769_p12 }
 0x27a   :  { %p15772_p1 = pnand %p15771_p0, %p15765_p11 }
 0x27c   :  { %15775 = shalt.err (!%p15772_p1)
}
 0x27d   :  { %s18967_s13 = sld [smem:[#allocation92_spill]]  ;;  %s16024_s21 = smov [#allocation43]  }
 0x27e   :  { %412 = dma.hbm_to_vmem [thread:$0]  %s18966_s3, 400, %s410_s12, [#allocation39]  }
 0x27f   :  { %s430_s1 = sshll.u32 %s16024_s21, 4  ;;  %s16025_s14 = smov [#allocation46]   ;;  %s431_s1 = int_to_ptr.vmem [resolvable:$true] %s430_s1 }
 0x280   :  { %s455_s7 = sshll.u32 %s16025_s14, 4  ;;  %s456_s7 = int_to_ptr.vmem [resolvable:$true] %s455_s7 }
 0x283   :  { %s15776_s27 = scalar_lea.hbm %s18967_s13, 2048 }
 0x284   :  { %p15777_p2 = scmp.ne.s32.totalorder %s18967_s13, %s15776_s27  ;;  %p15780_p3 = scmp.lt.u32.totalorder %s15776_s27, %s18967_s13 }
 0x286   :  { %p15782_p4 = pnand %p15780_p3, %p15777_p2 }
 0x288   :  { %15785 = shalt.err (!%p15782_p4)
}
 0x289   :  { %s15786_s10 = scalar_lea.vmem %s431_s1, 2048  ;;  %p15791_p6 = scmp.lt.s32.totalorder %s431_s1, %s431_s1 }
 0x28a   :  { %p15787_p5 = scmp.ne.s32.totalorder %s431_s1, %s15786_s10  ;;  %p15792_p7 = scmp.lt.s32.totalorder %s15786_s10, %s15786_s10 }
 0x28c   :  { %p15793_p8 = por %p15792_p7, %p15791_p6 }
 0x28e   :  { %p15794_p9 = pnand %p15793_p8, %p15787_p5 }
 0x290   :  { %15797 = shalt.err (!%p15794_p9)
}
 0x291   :  { %s18968_s4 = sld [smem:[#allocation93_spill]] }
 0x292   :  { %436 = dma.hbm_to_vmem [thread:$0]  %s18967_s13, 2048, %s431_s1, [#allocation42], %s15990_s26, %s15990_s26, %s15991_s28  }
 0x297   :  { %s15798_s11 = scalar_lea.hbm %s18968_s4, 128 }
 0x298   :  { %p15799_p10 = scmp.ne.s32.totalorder %s18968_s4, %s15798_s11  ;;  %p15802_p11 = scmp.lt.u32.totalorder %s15798_s11, %s18968_s4 }
 0x29a   :  { %p15804_p12 = pnand %p15802_p11, %p15799_p10 }
 0x29c   :  { %15807 = shalt.err (!%p15804_p12)
}
 0x29d   :  { %s15808_s9 = scalar_lea.vmem %s456_s7, 128  ;;  %p15813_p0 = scmp.lt.s32.totalorder %s456_s7, %s456_s7 }
 0x29e   :  { %p15809_p13 = scmp.ne.s32.totalorder %s456_s7, %s15808_s9  ;;  %p15814_p1 = scmp.lt.s32.totalorder %s15808_s9, %s15808_s9 }
 0x2a0   :  { %p15815_p2 = por %p15814_p1, %p15813_p0 }
 0x2a2   :  { %p15816_p3 = pnand %p15815_p2, %p15809_p13 }
 0x2a4   :  { %15819 = shalt.err (!%p15816_p3)
}
 0x2a5   :  { %s18969_s0 = sld [smem:[#allocation95_spill]]  ;;  %s16026_s24 = smov [#allocation49]  }
 0x2a6   :  { %458 = dma.hbm_to_vmem [thread:$0]  %s18968_s4, 128, %s456_s7, [#allocation45]  }
 0x2a7   :  { %s476_s29 = sshll.u32 %s16026_s24, 4  ;;  %s16027_s15 = smov [#allocation52]   ;;  %s477_s29 = int_to_ptr.vmem [resolvable:$true] %s476_s29 }
 0x2a8   :  { %s502_s6 = sshll.u32 %s16027_s15, 4  ;;  %s16557_s6 = int_to_ptr.vmem [resolvable:$true] %s502_s6 }
 0x2ab   :  { %s15820_s25 = scalar_lea.hbm %s18969_s0, 768 }
 0x2ac   :  { %p15821_p4 = scmp.ne.s32.totalorder %s18969_s0, %s15820_s25  ;;  %p15824_p5 = scmp.lt.u32.totalorder %s15820_s25, %s18969_s0 }
 0x2ae   :  { %p15826_p6 = pnand %p15824_p5, %p15821_p4 }
 0x2b0   :  { %15829 = shalt.err (!%p15826_p6)
}
 0x2b1   :  { %s15830_s12 = scalar_lea.vmem %s477_s29, 768  ;;  %p15835_p8 = scmp.lt.s32.totalorder %s477_s29, %s477_s29 }
 0x2b2   :  { %p15831_p7 = scmp.ne.s32.totalorder %s477_s29, %s15830_s12  ;;  %p15836_p9 = scmp.lt.s32.totalorder %s15830_s12, %s15830_s12 }
 0x2b4   :  { %p15837_p10 = por %p15836_p9, %p15835_p8 }
 0x2b6   :  { %p15838_p11 = pnand %p15837_p10, %p15831_p7 }
 0x2b8   :  { %15841 = shalt.err (!%p15838_p11)
}
 0x2b9   :  { %s18970_s16 = sld [smem:[#allocation98_spill]] }
 0x2ba   :  { %482 = dma.hbm_to_vmem [thread:$0]  %s18969_s0, 768, %s477_s29, [#allocation48], %s15990_s26, %s15990_s26, %s15991_s28  }
 0x2bf   :  { %s15842_s30 = scalar_lea.hbm %s18970_s16, 6144 }
 0x2c0   :  { %p15843_p12 = scmp.ne.s32.totalorder %s18970_s16, %s15842_s30  ;;  %p15846_p13 = scmp.lt.u32.totalorder %s15842_s30, %s18970_s16 }
 0x2c2   :  { %p15848_p0 = pnand %p15846_p13, %p15843_p12 }
 0x2c4   :  { %15851 = shalt.err (!%p15848_p0)
}
 0x2c5   :  { %s15852_s3 = scalar_lea.vmem %s16557_s6, 6144  ;;  %p15857_p2 = scmp.lt.s32.totalorder %s16557_s6, %s16557_s6 }
 0x2c6   :  { %p15853_p1 = scmp.ne.s32.totalorder %s16557_s6, %s15852_s3  ;;  %p15858_p3 = scmp.lt.s32.totalorder %s15852_s3, %s15852_s3 }
 0x2c8   :  { %p15859_p4 = por %p15858_p3, %p15857_p2 }
 0x2ca   :  { %p15860_p5 = pnand %p15859_p4, %p15853_p1 }
 0x2cc   :  { %15863 = shalt.err (!%p15860_p5)
}
 0x2cd   :  { %508 = dma.hbm_to_vmem [thread:$0]  %s18970_s16, 6144, %s16557_s6, [#allocation51], %s16000_s18, %s16000_s18, %s16001_s20  }
 0x2ce   :  { %s16028_s26 = smov [#allocation55]   ;;  %s15864_s22 = scalar_lea.hbm %s16238_s8, 6528 }
 0x2cf   :  { %s528_s28 = sshll.u32 %s16028_s26, 4  ;;  %p15865_p6 = scmp.ne.s32.totalorder %s16238_s8, %s15864_s22  ;;  %s529_s28 = int_to_ptr.vmem [resolvable:$true] %s528_s28 }
 0x2d0   :  { %p15868_p7 = scmp.lt.u32.totalorder %s15864_s22, %s16238_s8 }
 0x2d2   :  { %p15870_p8 = pnand %p15868_p7, %p15865_p6 }
 0x2d4   :  { %15873 = shalt.err (!%p15870_p8)
}
 0x2d5   :  { %s15874_s23 = scalar_lea.vmem %s529_s28, 6528  ;;  %p15879_p10 = scmp.lt.s32.totalorder %s529_s28, %s529_s28 }
 0x2d6   :  { %p15875_p9 = scmp.ne.s32.totalorder %s529_s28, %s15874_s23  ;;  %p15880_p11 = scmp.lt.s32.totalorder %s15874_s23, %s15874_s23 }
 0x2d8   :  { %p15881_p12 = por %p15880_p11, %p15879_p10 }
 0x2da   :  { %p15882_p13 = pnand %p15881_p12, %p15875_p9 }
 0x2dc   :  { %15885 = shalt.err (!%p15882_p13)
}
 0x2dd   :  { %534 = dma.hbm_to_vmem [thread:$0]  %s16238_s8, 6528, %s529_s28, [#allocation54], %s16000_s18, %s16000_s18, %s16001_s20  }
 0x2de   :  { %15908 = dma.done.wait [#allocation3], 2048  }
 0x2df   :  { %15909 = vsyncadd [#allocation3], 4294965248 }
 0x2e0   :  { %15910 = dma.done.wait [#allocation6], 3328  }
 0x2e1   :  { %15911 = vsyncadd [#allocation6], 4294963968 }
 0x2e2   :  { %15912 = dma.done.wait [#allocation9], 4992  }
 0x2e3   :  { %15913 = vsyncadd [#allocation9], 4294962304 }
 0x2e4   :  { %15914 = dma.done.wait [#allocation12], 1920  }
 0x2e5   :  { %15915 = vsyncadd [#allocation12], 4294965376 }
 0x2e6   :  { %15916 = dma.done.wait [#allocation15], 3328  }
 0x2e7   :  { %15917 = vsyncadd [#allocation15], 4294963968 }
 0x2e8   :  { %15918 = dma.done.wait [#allocation18], 4096  }
 0x2e9   :  { %15919 = vsyncadd [#allocation18], 4294963200 }
 0x2ea   :  { %15920 = dma.done.wait [#allocation21], 5760  }
 0x2eb   :  { %15921 = vsyncadd [#allocation21], 4294961536 }
 0x2ec   :  { %15922 = dma.done.wait [#allocation24], 14336  }
 0x2ed   :  { %15923 = vsyncadd [#allocation24], 4294952960 }
 0x2ee   :  { %15924 = dma.done.wait [#allocation27], 13184  }
 0x2ef   :  { %15925 = vsyncadd [#allocation27], 4294954112 }
 0x2f0   :  { %15926 = dma.done.wait [#allocation30], 3072  }
 0x2f1   :  { %15927 = vsyncadd [#allocation30], 4294964224 }
 0x2f2   :  { %15928 = dma.done.wait [#allocation33], 5248  }
 0x2f3   :  { %15929 = vsyncadd [#allocation33], 4294962048 }
 0x2f4   :  { %15930 = dma.done.wait [#allocation36], 10752  }
 0x2f5   :  { %15931 = vsyncadd [#allocation36], 4294956544 }
 0x2f6   :  { %15932 = dma.done.wait [#allocation39], 10384  }
 0x2f7   :  { %15933 = vsyncadd [#allocation39], 4294956912 }
 0x2f8   :  { %15934 = dma.done.wait [#allocation42], 5248  }
 0x2f9   :  { %15935 = vsyncadd [#allocation42], 4294962048 }
 0x2fa   :  { %15936 = dma.done.wait [#allocation45], 4224  }
 0x2fb   :  { %15937 = vsyncadd [#allocation45], 4294963072 }
 0x2fc   :  { %15938 = dma.done.wait [#allocation48], 1024  }
 0x2fd   :  { %15939 = vsyncadd [#allocation48], 4294966272 }
 0x2fe   :  { %15940 = dma.done.wait [#allocation51], 13824  }
 0x2ff   :  { %15941 = vsyncadd [#allocation51], 4294953472 }
 0x300   :  { %15942 = dma.done.wait [#allocation54], 14208  }
 0x301   :  { %15943 = vsyncadd [#allocation54], 4294953088  ;;  %vm661_vm0 = vcmask 64512   ;;  %v660_v0 = vld [vmem:[#allocation46] sm:$0xff]  ;;  %v644_v1 = vld [vmem:[%s16248_s19] sm:$0xff]  ;;  %v16029_v17 = vmov 0.0|0.0  }
 0x302   :  { %v645_v2 = vld [vmem:[%s16248_s19 + $0x8] sm:$0xff]  ;;  %12420 = vmatprep.subr.mxu1 %v660_v0  ;;  %12422 = vmatprep.mubr.msk.f32.mxu1 %vm661_vm0, %v644_v1  ;;  %v646_v3 = vld [vmem:[%s16248_s19 + $0x10] sm:$0xff]  ;;  %v647_v4 = vld [vmem:[%s16248_s19 + $0x18] sm:$0xff]  ;;  %vm16030_vm1 = vmmov 0   ;;  %v18924_v18 = vmov 0.0   ;;  %s18971_s8 = sld [smem:[#allocation77_spill]] }
 0x303   :  { %12421 = vmatpush3.msra.mxu1 %v660_v0  ;;  %v648_v5 = vld [vmem:[%s16248_s19 + $0x20] sm:$0xff]  ;;  %v649_v6 = vld [vmem:[%s16248_s19 + $0x28] sm:$0xff]  ;;  %v650_v7 = vld [vmem:[%s16248_s19 + $0x30] sm:$0xff]  ;;  %13521 = vmatprep.subr.bf16.mxu0 %v16029_v17  ;;  %vm1257_vm2 = vcmask 130048   ;;  %vm2028_vm5 = vcmask 588800   ;;  %vm2381_vm6 = vcmask 392192  }
 0x304   :  { %12423 = vmatmul.mubr.msk.f32.vlgmr.msra.gmra.mrb[0].mxu1 %vm661_vm0, %v645_v2  ;;  %v651_v8 = vld [vmem:[%s16248_s19 + $0x38] sm:$0xff]  ;;  %v652_v9 = vld [vmem:[%s16248_s19 + $0x40] sm:$0xff]  ;;  %v653_v10 = vld [vmem:[%s16248_s19 + $0x48] sm:$0xff]  ;;  %13497 = vmatprep.subr.bf16.mxu1 %v16029_v17  ;;  %vm2505_vm7 = vcmask 1043456   ;;  %vm16033_vm8 = vmmov 1   ;;  %vm2492_vm10 = vcmask 228352  }
 0x305   :  { %12425 = vmatprep.mubr.msk.f32.mxu1 %vm661_vm0, %v646_v3  ;;  %v654_v11 = vld [vmem:[%s16248_s19 + $0x50] sm:$0xff]  ;;  %v655_v12 = vld [vmem:[%s16248_s19 + $0x58] sm:$0xff]  ;;  %v656_v13 = vld [vmem:[%s16248_s19 + $0x60] sm:$0xff]  ;;  %12537 = vmatprep.mubr.msk.f32.mxu0 %vm16030_vm1, %v18924_v18  ;;  %vm3334_vm13 = vcmask 523264   ;;  %vm3446_vm14 = vcmask 326656   ;;  %vm4171_vm15 = vcmask 261120  }
 0x306   :  { %v657_v14 = vld [vmem:[%s16248_s19 + $0x68] sm:$0xff]  ;;  %v658_v15 = vld [vmem:[%s16248_s19 + $0x70] sm:$0xff]  ;;  %v659_v16 = vld [vmem:[%s16248_s19 + $0x78] sm:$0xff]  ;;  %s18975_s19 = sld [smem:[#allocation97_spill]]  ;;  %s18976_s18 = sld [smem:[#allocation100_spill]] }
 0x307   :  { %v871_v59 = vld [vmem:[#allocation8] sm:$0xff]  ;;  %v991_v60 = vld [vmem:[#allocation8 + $0x48] sm:$0xff]  ;;  %v992_v62 = vld [vmem:[#allocation8 + $0x50] sm:$0xff]  ;;  %s18977_s20 = sld [smem:[#allocation89_spill]]  ;;  %s18978_s2 = sld [smem:[#allocation79_spill]] }
 0x308   :  { %12426 = vmatmul.mubr.msk.f32.gmra.mrb[2].mxu1 %vm661_vm0, %v647_v4  ;;  %v872_v61 = vld [vmem:[#allocation8 + $0x8] sm:$0xff]  ;;  %v873_v63 = vld [vmem:[#allocation8 + $0x10] sm:$0xff]  ;;  %v993_v0 = vld [vmem:[#allocation8 + $0x58] sm:$0xff]  ;;  %s16034_s13 = smov [#allocation56]  }
 0x309   :  { %12428 = vmatprep.mubr.msk.f32.mxu1 %vm661_vm0, %v648_v5  ;;  %v874_v1 = vld [vmem:[#allocation8 + $0x18] sm:$0xff]  ;;  %v994_v2 = vld [vmem:[#allocation8 + $0x60] sm:$0xff]  ;;  %v995_v4 = vld [vmem:[#allocation8 + $0x68] sm:$0xff]  ;;  %s11443_s21 = sshll.u32 %s16034_s13, 4  ;;  %s11444_s21 = int_to_ptr.vmem [resolvable:$true] %s11443_s21 }
 0x30a   :  { %v875_v3 = vld [vmem:[#allocation8 + $0x20] sm:$0xff]  ;;  %v876_v5 = vld [vmem:[#allocation8 + $0x28] sm:$0xff]  ;;  %vm17088_vm9 = vmpackc.low %vm2505_vm7, %vm16033_vm8  ;;  %s15886_s1 = scalar_lea.vmem %s11444_s21, 32  ;;  %p15891_p1 = scmp.lt.s32.totalorder %s11444_s21, %s11444_s21 }
 0x30b   :  { %p15887_p0 = scmp.ne.s32.totalorder %s11444_s21, %s15886_s1  ;;  %p15892_p2 = scmp.lt.s32.totalorder %s15886_s1, %s15886_s1 }
 0x30c   :  { %12429 = vmatmul.mubr.msk.f32.gmra.mrb[4].mxu1 %vm661_vm0, %v649_v6  ;;  %v996_v6 = vld [vmem:[#allocation8 + $0x70] sm:$0xff] }
 0x30d   :  { %12431 = vmatprep.mubr.msk.f32.mxu1 %vm661_vm0, %v650_v7  ;;  %v877_v7 = vld [vmem:[#allocation8 + $0x30] sm:$0xff]  ;;  %p15893_p3 = por %p15892_p2, %p15891_p1 }
 0x30f   :  { %p15894_p4 = pnand %p15893_p3, %p15887_p0 }
 0x310   :  { %12432 = vmatmul.mubr.msk.f32.gmra.mrb[6].mxu1 %vm661_vm0, %v651_v8  ;;  %v997_v8 = vld [vmem:[#allocation8 + $0x78] sm:$0xff] }
 0x311   :  { %12434 = vmatprep.mubr.msk.f32.mxu1 %vm661_vm0, %v652_v9  ;;  %v878_v9 = vld [vmem:[#allocation8 + $0x38] sm:$0xff] }
 0x314   :  { %12435 = vmatmul.mubr.msk.f32.gmra.mrb[8].mxu1 %vm661_vm0, %v653_v10  ;;  %v998_v10 = vld [vmem:[#allocation8 + $0x80] sm:$0xff] }
 0x315   :  { %12437 = vmatprep.mubr.msk.f32.mxu1 %vm661_vm0, %v654_v11  ;;  %v879_v11 = vld [vmem:[#allocation8 + $0x40] sm:$0xff] }
 0x318   :  { %12438 = vmatmul.mubr.msk.f32.gmra.mrb[10].mxu1 %vm661_vm0, %v655_v12  ;;  %v999_v12 = vld [vmem:[#allocation8 + $0x88] sm:$0xff] }
 0x319   :  { %12440 = vmatprep.mubr.msk.f32.mxu1 %vm661_vm0, %v656_v13  ;;  %v1120_v13 = vld [vmem:[#allocation8 + $0x90] sm:$0xff] }
 0x31c   :  { %12441 = vmatmul.mubr.msk.f32.gmra.mrb[12].mxu1 %vm661_vm0, %v657_v14  ;;  %v1121_v14 = vld [vmem:[#allocation8 + $0x98] sm:$0xff] }
 0x31d   :  { %12443 = vmatprep.mubr.msk.f32.mxu1 %vm661_vm0, %v658_v15  ;;  %v1122_v15 = vld [vmem:[#allocation8 + $0xa0] sm:$0xff] }
 0x320   :  { %12444 = vmatmul.mubr.msk.f32.gmra.mrb[14].mxu1 %vm661_vm0, %v659_v16  ;;  %v1123_v16 = vld [vmem:[#allocation8 + $0xa8] sm:$0xff]  ;;  %vm4510_vm0 = vcmask 982016  }
 0x321   :  { %12478 = vmatprep.mubr.msk.f32.mxu1 %vm16030_vm1, %v18924_v18 }
 0x3d7   :  { %v12424_v19 = vpop.f32.mrb[0].mxu1 }
 0x3d8   :  { %v856_v20 = vmax.f32 %v12424_v19, 0.0  ;;  %v776_v21 = vpop.f32.mrb[1].mxu1  ;;  %v1124_v19 = vld [vmem:[#allocation8 + $0xb0] sm:$0xff] }
 0x3d9   :  { %v855_v22 = vmax.f32 %v776_v21, 0.0  ;;  %v1126_v21 = vld [vmem:[#allocation8 + $0xc0] sm:$0xff] }
 0x3db   :  { %v16623_v23 = vpack.c.bf16 %v856_v20, %v855_v22  ;;  %v12427_v24 = vpop.f32.mrb[2].mxu1  ;;  %v1125_v20 = vld [vmem:[#allocation8 + $0xb8] sm:$0xff]  ;;  %v1127_v22 = vld [vmem:[#allocation8 + $0xc8] sm:$0xff] }
 0x3dc   :  { %v858_v25 = vmax.f32 %v12427_v24, 0.0  ;;  %v786_v26 = vpop.f32.mrb[3].mxu1  ;;  %v1248_v24 = vld [vmem:[#allocation47] sm:$0xff] }
 0x3dd   :  { %v857_v27 = vmax.f32 %v786_v26, 0.0  ;;  %13499 = vmatpush3.bf16.msra.mxu1 %v16623_v23  ;;  %13523 = vmatpush3.bf16.msra.mxu0 %v16623_v23 }
 0x3de   :  { %13500 = vmatprep.subr.bf16.mxu1 %v16029_v17  ;;  %13524 = vmatprep.subr.bf16.mxu0 %v16029_v17 }
 0x3df   :  { %v16629_v28 = vpack.c.bf16 %v858_v25, %v857_v27  ;;  %v12430_v29 = vpop.f32.mrb[4].mxu1  ;;  %v1249_v25 = vld [vmem:[#allocation47 + $0x8] sm:$0xff]  ;;  %v16032_v27 = vmov 0  }
 0x3e0   :  { %v860_v30 = vmax.f32 %v12430_v29, 0.0  ;;  %v796_v31 = vpop.f32.mrb[5].mxu1  ;;  %v13570_v26 = vpack.c.bf16 %v1249_v25, %v1248_v24  ;;  %15114 = vset.pattern.permute.xlu0 %v16032_v27  ;;  %15115 = vset.pattern.permute.xlu1 %v16032_v27  ;;  %v1405_v29 = vld [vmem:[#allocation7 + $0x8] sm:$0xff]  ;;  %v11648_v24 = vld [vmem:[%s18971_s8 + $0x20] sm:$0xff] }
 0x3e1   :  { %v859_v32 = vmax.f32 %v796_v31, 0.0  ;;  %13502 = vmatpush3.bf16.msra.mxu1 %v16629_v28  ;;  %13526 = vmatpush3.bf16.msra.mxu0 %v16629_v28  ;;  %v1408_v31 = vld [vmem:[#allocation7 + $0x20] sm:$0xff] }
 0x3e2   :  { %13503 = vmatprep.subr.bf16.mxu1 %v16029_v17  ;;  %13527 = vmatprep.subr.bf16.mxu0 %v16029_v17  ;;  %v11652_v25 = vld [vmem:[%s18971_s8 + $0x40] sm:$0xff] }
 0x3e3   :  { %v16635_v33 = vpack.c.bf16 %v860_v30, %v859_v32  ;;  %v12433_v34 = vpop.f32.mrb[6].mxu1  ;;  %v1406_v30 = vld [vmem:[#allocation7 + $0x10] sm:$0xff]  ;;  %v1407_v32 = vld [vmem:[#allocation7 + $0x18] sm:$0xff] }
 0x3e4   :  { %v862_v35 = vmax.f32 %v12433_v34, 0.0  ;;  %v806_v36 = vpop.f32.mrb[7].mxu1  ;;  %1603 = vperm.xlu1 %15115, %v1406_v30   ;;  %v1409_v34 = vld [vmem:[#allocation7 + $0x28] sm:$0xff] }
 0x3e5   :  { %v861_v37 = vmax.f32 %v806_v36, 0.0  ;;  %13505 = vmatpush3.bf16.msra.mxu1 %v16635_v33  ;;  %13529 = vmatpush3.bf16.msra.mxu0 %v16635_v33  ;;  %v1411_v36 = vld [vmem:[#allocation7 + $0x38] sm:$0xff] }
 0x3e6   :  { %13506 = vmatprep.subr.bf16.mxu1 %v16029_v17  ;;  %13530 = vmatprep.subr.bf16.mxu0 %v16029_v17 }
 0x3e7   :  { %v16641_v38 = vpack.c.bf16 %v862_v35, %v861_v37  ;;  %v12436_v39 = vpop.f32.mrb[8].mxu1  ;;  %v1412_v35 = vld [vmem:[#allocation7 + $0x40] sm:$0xff]  ;;  %v1415_v37 = vld [vmem:[#allocation7 + $0x50] sm:$0xff] }
 0x3e8   :  { %v864_v40 = vmax.f32 %v12436_v39, 0.0  ;;  %v816_v41 = vpop.f32.mrb[9].mxu1  ;;  %1608 = vperm.xlu1 %15115, %v1407_v32   ;;  %v1417_v39 = vld [vmem:[#allocation7 + $0x60] sm:$0xff]  ;;  %v11654_v32 = vld [vmem:[%s18971_s8 + $0x50] sm:$0xff] }
 0x3e9   :  { %v863_v42 = vmax.f32 %v816_v41, 0.0  ;;  %13508 = vmatpush3.bf16.msra.mxu1 %v16641_v38  ;;  %13532 = vmatpush3.bf16.msra.mxu0 %v16641_v38  ;;  %v1419_v41 = vld [vmem:[#allocation7 + $0x70] sm:$0xff] }
 0x3ea   :  { %13509 = vmatprep.subr.bf16.mxu1 %v16029_v17  ;;  %13533 = vmatprep.subr.bf16.mxu0 %v16029_v17 }
 0x3eb   :  { %v16647_v43 = vpack.c.bf16 %v864_v40, %v863_v42  ;;  %v12439_v44 = vpop.f32.mrb[10].mxu1  ;;  %v1416_v40 = vld [vmem:[#allocation7 + $0x58] sm:$0xff]  ;;  %v1418_v42 = vld [vmem:[#allocation7 + $0x68] sm:$0xff] }
 0x3ec   :  { %v866_v45 = vmax.f32 %v12439_v44, 0.0  ;;  %v826_v46 = vpop.f32.mrb[11].mxu1  ;;  %1618 = vperm.xlu1 %15115, %v1409_v34   ;;  %v1420_v44 = vld [vmem:[#allocation7 + $0x78] sm:$0xff] }
 0x3ed   :  { %v865_v47 = vmax.f32 %v826_v46, 0.0  ;;  %13511 = vmatpush3.bf16.msra.mxu1 %v16647_v43  ;;  %13535 = vmatpush3.bf16.msra.mxu0 %v16647_v43  ;;  %v1422_v46 = vld [vmem:[#allocation7 + $0x88] sm:$0xff] }
 0x3ee   :  { %13512 = vmatprep.subr.bf16.mxu1 %v16029_v17  ;;  %13536 = vmatprep.subr.bf16.mxu0 %v16029_v17 }
 0x3ef   :  { %v16653_v48 = vpack.c.bf16 %v866_v45, %v865_v47  ;;  %v12442_v49 = vpop.f32.mrb[12].mxu1  ;;  %v2338_v45 = vld [vmem:[#allocation2] sm:$0xff]  ;;  %v2340_v47 = vld [vmem:[#allocation2 + $0x10] sm:$0xff] }
 0x3f0   :  { %v868_v50 = vmax.f32 %v12442_v49, 0.0  ;;  %v836_v51 = vpop.f32.mrb[13].mxu1  ;;  %1628 = vperm.xlu1 %15115, %v1411_v36   ;;  %v1425_v49 = vld [vmem:[#allocation49 + $0x18] sm:$0xff] }
 0x3f1   :  { %v867_v52 = vmax.f32 %v836_v51, 0.0  ;;  %13514 = vmatpush3.bf16.msra.mxu1 %v16653_v48  ;;  %13538 = vmatpush3.bf16.msra.mxu0 %v16653_v48  ;;  %v2343_v51 = vld [vmem:[#allocation2 + $0x20] sm:$0xff] }
 0x3f2   :  { %13515 = vmatprep.subr.bf16.mxu1 %v16029_v17  ;;  %13539 = vmatprep.subr.bf16.mxu0 %v16029_v17 }
 0x3f3   :  { %v16659_v53 = vpack.c.bf16 %v868_v50, %v867_v52  ;;  %v12445_v54 = vpop.f32.mrb[14].mxu1  ;;  %v2339_v50 = vld [vmem:[#allocation2 + $0x8] sm:$0xff] }
 0x3f4   :  { %v870_v55 = vmax.f32 %v12445_v54, 0.0  ;;  %v846_v56 = vpop.f32.mrb[15].mxu1  ;;  %v2345_v54 = vld [vmem:[#allocation2 + $0x30] sm:$0xff] }
 0x3f5   :  { %v869_v57 = vmax.f32 %v846_v56, 0.0  ;;  %13517 = vmatpush3.bf16.msra.mxu1 %v16659_v53  ;;  %13541 = vmatpush3.bf16.msra.mxu0 %v16659_v53  ;;  %v2348_v56 = vld [vmem:[#allocation2 + $0x40] sm:$0xff] }
 0x3f6   :  { %13518 = vmatprep.subr.bf16.mxu1 %v16029_v17  ;;  %13542 = vmatprep.subr.bf16.mxu0 %v16029_v17 }
 0x3f7   :  { %v16665_v58 = vpack.c.bf16 %v870_v55, %v869_v57  ;;  %v2344_v55 = vld [vmem:[#allocation2 + $0x28] sm:$0xff]  ;;  %v2346_v57 = vld [vmem:[#allocation2 + $0x38] sm:$0xff] }
 0x3f9   :  { %13520 = vmatpush3.bf16.msra.mxu1 %v16665_v58  ;;  %13544 = vmatpush3.bf16.msra.mxu0 %v16665_v58 }
 0x3fa   :  { %13545 = vmatprep.subr.bf16.mxu1 %v16029_v17  ;;  %13569 = vmatprep.subr.bf16.mxu0 %v16029_v17 }
 0x3fc   :  { %12479 = vmatmul.mubr.f32.vlgmr.msra.gmra.mrb[16].mxu1 %v871_v59  ;;  %12538 = vmatmul.mubr.f32.vlgmr.msra.gmra.mrb[0].mxu0 %v991_v60  ;;  %v2349_v59 = vld [vmem:[#allocation2 + $0x48] sm:$0xff]  ;;  %v2353_v60 = vld [vmem:[#allocation2 + $0x60] sm:$0xff] }
 0x3fd   :  { %13547 = vmatpush3.bf16.msra.mxu1 %v16623_v23  ;;  %12481 = vmatprep.mubr.msk.f32.mxu1 %vm16030_vm1, %v18924_v18  ;;  %v1128_v23 = vld [vmem:[#allocation8 + $0xd0] sm:$0xff] }
 0x3fe   :  { %12540 = vmatprep.mubr.msk.f32.mxu0 %vm16030_vm1, %v18924_v18  ;;  %13548 = vmatprep.subr.bf16.mxu1 %v16029_v17 }
 0x3ff   :  { %13571 = vmatpush3.bf16.msra.mxu0 %v13570_v26 }
 0x400   :  { %12482 = vmatmul.mubr.f32.gmra.mrb[18].mxu1 %v872_v61  ;;  %12541 = vmatmul.mubr.f32.gmra.mrb[2].mxu0 %v992_v62  ;;  %v2351_v61 = vld [vmem:[#allocation2 + $0x58] sm:$0xff]  ;;  %v2355_v62 = vld [vmem:[#allocation2 + $0x70] sm:$0xff] }
 0x401   :  { %13550 = vmatpush3.bf16.msra.mxu1 %v16629_v28  ;;  %12484 = vmatprep.mubr.msk.f32.mxu1 %vm16030_vm1, %v18924_v18  ;;  %v1404_v28 = vld [vmem:[#allocation7] sm:$0xff] }
 0x402   :  { %12543 = vmatprep.mubr.msk.f32.mxu0 %vm16030_vm1, %v18924_v18  ;;  %13551 = vmatprep.subr.bf16.mxu1 %v16029_v17 }
 0x403   :  { %1593 = vperm.xlu0 %15114, %v1404_v28  }
 0x404   :  { %12485 = vmatmul.mubr.f32.gmra.mrb[20].mxu1 %v873_v63  ;;  %12544 = vmatmul.mubr.f32.gmra.mrb[4].mxu0 %v993_v0  ;;  %v2354_v63 = vld [vmem:[#allocation2 + $0x68] sm:$0xff]  ;;  %v11650_v0 = vld [vmem:[%s18971_s8 + $0x30] sm:$0xff] }
 0x405   :  { %13553 = vmatpush3.bf16.msra.mxu1 %v16635_v33  ;;  %12487 = vmatprep.mubr.msk.f32.mxu1 %vm16030_vm1, %v18924_v18  ;;  %v1410_v33 = vld [vmem:[#allocation7 + $0x30] sm:$0xff] }
 0x406   :  { %12546 = vmatprep.mubr.msk.f32.mxu0 %vm16030_vm1, %v18924_v18  ;;  %13554 = vmatprep.subr.bf16.mxu1 %v16029_v17 }
 0x407   :  { %1598 = vperm.xlu0 %15114, %v1405_v29  }
 0x408   :  { %12488 = vmatmul.mubr.f32.gmra.mrb[22].mxu1 %v874_v1  ;;  %12547 = vmatmul.mubr.f32.gmra.mrb[6].mxu0 %v994_v2  ;;  %v2356_v1 = vld [vmem:[#allocation2 + $0x78] sm:$0xff]  ;;  %v4454_v2 = vld [vmem:[%s18971_s8 + $0x8] sm:$0xff] }
 0x409   :  { %13556 = vmatpush3.bf16.msra.mxu1 %v16641_v38  ;;  %12490 = vmatprep.mubr.msk.f32.mxu1 %vm16030_vm1, %v18924_v18  ;;  %v1414_v38 = vld [vmem:[#allocation7 + $0x48] sm:$0xff] }
 0x40a   :  { %12549 = vmatprep.mubr.msk.f32.mxu0 %vm16030_vm1, %v18924_v18  ;;  %13557 = vmatprep.subr.bf16.mxu1 %v16029_v17 }
 0x40b   :  { %1613 = vperm.xlu0 %15114, %v1408_v31   ;;  %1814 = vperm.xlu1 %15115, %v1414_v38   ;;  %v11649_v31 = vld [vmem:[%s18971_s8 + $0x28] sm:$0xff] }
 0x40c   :  { %12491 = vmatmul.mubr.f32.gmra.mrb[24].mxu1 %v875_v3  ;;  %12550 = vmatmul.mubr.f32.gmra.mrb[8].mxu0 %v995_v4  ;;  %v11653_v38 = vld [vmem:[%s18971_s8 + $0x48] sm:$0xff] }
 0x40d   :  { %13559 = vmatpush3.bf16.msra.mxu1 %v16647_v43  ;;  %12493 = vmatprep.mubr.msk.f32.mxu1 %vm16030_vm1, %v18924_v18  ;;  %v1421_v43 = vld [vmem:[#allocation7 + $0x80] sm:$0xff] }
 0x40e   :  { %12552 = vmatprep.mubr.msk.f32.mxu0 %vm16030_vm1, %v18924_v18  ;;  %13560 = vmatprep.subr.bf16.mxu1 %v16029_v17 }
 0x40f   :  { %1623 = vperm.xlu0 %15114, %v1410_v33   ;;  %1824 = vperm.xlu1 %15115, %v1416_v40  }
 0x410   :  { %12494 = vmatmul.mubr.f32.gmra.mrb[26].mxu1 %v876_v5  ;;  %12553 = vmatmul.mubr.f32.gmra.mrb[10].mxu0 %v996_v6 }
 0x411   :  { %13562 = vmatpush3.bf16.msra.mxu1 %v16653_v48  ;;  %12496 = vmatprep.mubr.msk.f32.mxu1 %vm16030_vm1, %v18924_v18  ;;  %v1424_v48 = vld [vmem:[#allocation49 + $0x10] sm:$0xff] }
 0x412   :  { %12555 = vmatprep.mubr.msk.f32.mxu0 %vm16030_vm1, %v18924_v18  ;;  %13563 = vmatprep.subr.bf16.mxu1 %v16029_v17  ;;  %v13573_v52 = vpack.c.bf16 %v1425_v49, %v1424_v48 }
 0x413   :  { %1633 = vperm.xlu0 %15114, %v1412_v35   ;;  %1834 = vperm.xlu1 %15115, %v1418_v42  }
 0x414   :  { %12497 = vmatmul.mubr.f32.gmra.mrb[28].mxu1 %v877_v7  ;;  %12556 = vmatmul.mubr.f32.gmra.mrb[12].mxu0 %v997_v8  ;;  %v4453_v8 = vld [vmem:[%s18971_s8] sm:$0xff] }
 0x415   :  { %13565 = vmatpush3.bf16.msra.mxu1 %v16659_v53  ;;  %12499 = vmatprep.mubr.msk.f32.mxu1 %vm16030_vm1, %v18924_v18  ;;  %v2341_v53 = vld [vmem:[#allocation2 + $0x18] sm:$0xff] }
 0x416   :  { %12558 = vmatprep.mubr.msk.f32.mxu0 %vm16030_vm1, %v18924_v18  ;;  %13566 = vmatprep.subr.bf16.mxu1 %v16029_v17 }
 0x417   :  { %1819 = vperm.xlu0 %15114, %v1415_v37   ;;  %1844 = vperm.xlu1 %15115, %v1420_v44  }
 0x418   :  { %12500 = vmatmul.mubr.f32.gmra.mrb[30].mxu1 %v878_v9  ;;  %12559 = vmatmul.mubr.f32.gmra.mrb[14].mxu0 %v998_v10  ;;  %v11647_v9 = vld [vmem:[%s18971_s8 + $0x18] sm:$0xff] }
 0x419   :  { %13568 = vmatpush3.bf16.msra.mxu1 %v16665_v58  ;;  %12502 = vmatprep.mubr.msk.f32.mxu1 %vm16030_vm1, %v18924_v18  ;;  %v2350_v58 = vld [vmem:[#allocation2 + $0x50] sm:$0xff] }
 0x41a   :  { %12561 = vmatprep.mubr.msk.f32.mxu0 %vm16030_vm1, %v18924_v18  ;;  %13572 = vmatprep.subr.bf16.mxu1 %v16029_v17 }
 0x41b   :  { %1829 = vperm.xlu0 %15114, %v1417_v39   ;;  %1854 = vperm.xlu1 %15115, %v1422_v46   ;;  %v9235_v39 = vld [vmem:[#allocation5] sm:$0xff]  ;;  %v9238_v46 = vld [vmem:[#allocation5 + $0x10] sm:$0xff] }
 0x41c   :  { %12503 = vmatmul.mubr.f32.gmra.mrb[32].mxu1 %v879_v11  ;;  %12562 = vmatmul.mubr.f32.gmra.mrb[16].mxu0 %v999_v12 }
 0x41d   :  { %12596 = vmatprep.mubr.msk.f32.mxu1 %vm16030_vm1, %v18924_v18  ;;  %12627 = vmatprep.mubr.msk.f32.mxu0 %vm16030_vm1, %v18924_v18 }
 0x41f   :  { %1839 = vperm.xlu0 %15114, %v1419_v41   ;;  %2614 = vperm.xlu1 %15115, %v2339_v50  }
 0x420   :  { %12597 = vmatmul.mubr.f32.vlgmr.msra.gmra.mrb[34].mxu1 %v1120_v13 }
 0x421   :  { %12599 = vmatprep.mubr.msk.f32.mxu1 %vm16030_vm1, %v18924_v18  ;;  %13574 = vmatpush3.bf16.msra.mxu1 %v13573_v52  ;;  %v9236_v52 = vld [vmem:[#allocation5 + $0x8] sm:$0xff] }
 0x422   :  { %13575 = vmatprep.subr.bf16.mxu1 %v16029_v17 }
 0x423   :  { %1849 = vperm.xlu0 %15114, %v1421_v43   ;;  %2624 = vperm.xlu1 %15115, %v2341_v53   ;;  %v9241_v53 = vld [vmem:[#allocation5 + $0x20] sm:$0xff] }
 0x424   :  { %12600 = vmatmul.mubr.f32.gmra.mrb[36].mxu1 %v1121_v14 }
 0x425   :  { %12602 = vmatprep.mubr.msk.f32.mxu1 %vm16030_vm1, %v18924_v18 }
 0x427   :  { %2609 = vperm.xlu0 %15114, %v2338_v45   ;;  %2754 = vperm.xlu1 %15115, %v2344_v55   ;;  %v11655_v45 = vld [vmem:[%s18971_s8 + $0x58] sm:$0xff] }
 0x428   :  { %12603 = vmatmul.mubr.f32.gmra.mrb[38].mxu1 %v1122_v15  ;;  %v4455_v15 = vld [vmem:[%s18971_s8 + $0x10] sm:$0xff] }
 0x429   :  { %12605 = vmatprep.mubr.msk.f32.mxu1 %vm16030_vm1, %v18924_v18 }
 0x42b   :  { %2619 = vperm.xlu0 %15114, %v2340_v47   ;;  %2764 = vperm.xlu1 %15115, %v2346_v57  }
 0x42c   :  { %12606 = vmatmul.mubr.f32.gmra.mrb[40].mxu1 %v1123_v16  ;;  %v11651_v16 = vld [vmem:[%s18971_s8 + $0x38] sm:$0xff] }
 0x42d   :  { %12608 = vmatprep.mubr.msk.f32.mxu1 %vm16030_vm1, %v18924_v18 }
 0x42f   :  { %2749 = vperm.xlu0 %15114, %v2343_v51   ;;  %2895 = vperm.xlu1 %15115, %v2349_v59   ;;  %v9239_v59 = vld [vmem:[#allocation5 + $0x18] sm:$0xff] }
 0x430   :  { %12609 = vmatmul.mubr.f32.gmra.mrb[42].mxu1 %v1124_v19 }
 0x431   :  { %12611 = vmatprep.mubr.msk.f32.mxu1 %vm16030_vm1, %v18924_v18 }
 0x433   :  { %2759 = vperm.xlu0 %15114, %v2345_v54   ;;  %2905 = vperm.xlu1 %15115, %v2351_v61  }
 0x434   :  { %12612 = vmatmul.mubr.f32.gmra.mrb[44].mxu1 %v1125_v20 }
 0x435   :  { %12614 = vmatprep.mubr.msk.f32.mxu1 %vm16030_vm1, %v18924_v18 }
 0x437   :  { %2890 = vperm.xlu0 %15114, %v2348_v56   ;;  %3037 = vperm.xlu1 %15115, %v2354_v63  }
 0x438   :  { %12615 = vmatmul.mubr.f32.gmra.mrb[46].mxu1 %v1126_v21 }
 0x439   :  { %12617 = vmatprep.mubr.msk.f32.mxu1 %vm16030_vm1, %v18924_v18 }
 0x43b   :  { %2900 = vperm.xlu0 %15114, %v2350_v58   ;;  %3047 = vperm.xlu1 %15115, %v2356_v1  }
 0x43c   :  { %12618 = vmatmul.mubr.f32.gmra.mrb[48].mxu1 %v1127_v22 }
 0x43d   :  { %12620 = vmatprep.mubr.msk.f32.mxu1 %vm16030_vm1, %v18924_v18 }
 0x43f   :  { %3032 = vperm.xlu0 %15114, %v2353_v60   ;;  %4714 = vperm.xlu1 %15115, %v4453_v8   ;;  %v9244_v60 = vld [vmem:[#allocation5 + $0x30] sm:$0xff] }
 0x440   :  { %12621 = vmatmul.mubr.f32.gmra.mrb[50].mxu1 %v1128_v23 }
 0x441   :  { %12658 = vmatprep.mubr.msk.f32.mxu1 %vm16030_vm1, %v18924_v18 }
 0x443   :  { %3042 = vperm.xlu0 %15114, %v2355_v62   ;;  %4724 = vperm.xlu1 %15115, %v4455_v15  }
 0x447   :  { %4961 = vperm.xlu0 %15114, %v11650_v0   ;;  %4842 = vperm.xlu1 %15115, %v11648_v24  }
 0x44b   :  { %4719 = vperm.xlu0 %15114, %v4454_v2   ;;  %4847 = vperm.xlu1 %15115, %v11649_v31   ;;  %v9242_v2 = vld [vmem:[#allocation5 + $0x28] sm:$0xff] }
 0x44f   :  { %4837 = vperm.xlu0 %15114, %v11647_v9   ;;  %5085 = vperm.xlu1 %15115, %v11653_v38   ;;  %v9245_v9 = vld [vmem:[#allocation5 + $0x38] sm:$0xff] }
 0x453   :  { %4966 = vperm.xlu0 %15114, %v11651_v16   ;;  %5095 = vperm.xlu1 %15115, %v11655_v45  }
 0x457   :  { %4971 = vperm.xlu0 %15114, %v11652_v25   ;;  %9613 = vperm.xlu1 %15115, %v9236_v52  }
 0x45b   :  { %5090 = vperm.xlu0 %15114, %v11654_v32   ;;  %9728 = vperm.xlu1 %15115, %v9239_v59  }
 0x45f   :  { %9608 = vperm.xlu0 %15114, %v9235_v39   ;;  %9844 = vperm.xlu1 %15115, %v9242_v2  }
 0x463   :  { %9723 = vperm.xlu0 %15114, %v9238_v46   ;;  %9960 = vperm.xlu1 %15115, %v9245_v9  }
 0x467   :  { %9839 = vperm.xlu0 %15114, %v9241_v53  }
 0x46b   :  { %9955 = vperm.xlu0 %15114, %v9244_v60  }
 0x4cf   :  { %v16744_v3 = vpop.f32.mrb[16].mxu1  ;;  %v16746_v4 = vpop.f32.mrb[0].mxu0 }
 0x4d0   :  { %v1110_v5 = vmax.f32 %v16744_v3, %v16746_v4  ;;  %v12480_v6 = vpop.f32.mrb[17].mxu1  ;;  %v12539_v7 = vpop.f32.mrb[1].mxu0 }
 0x4d3   :  { %v16752_v10 = vpop.f32.mrb[18].mxu1  ;;  %v16754_v11 = vpop.f32.mrb[2].mxu0 }
 0x4d4   :  { %v1111_v12 = vmax.f32 %v16752_v10, %v16754_v11  ;;  %v12483_v13 = vpop.f32.mrb[19].mxu1  ;;  %v12542_v14 = vpop.f32.mrb[3].mxu0 }
 0x4d7   :  { %v16760_v19 = vpop.f32.mrb[20].mxu1  ;;  %v16762_v20 = vpop.f32.mrb[4].mxu0 }
 0x4d8   :  { %v1112_v21 = vmax.f32 %v16760_v19, %v16762_v20  ;;  %v12486_v22 = vpop.f32.mrb[21].mxu1  ;;  %v12545_v23 = vpop.f32.mrb[5].mxu0 }
 0x4db   :  { %v16768_v26 = vpop.f32.mrb[22].mxu1  ;;  %v16770_v27 = vpop.f32.mrb[6].mxu0 }
 0x4dc   :  { %v1113_v28 = vmax.f32 %v16768_v26, %v16770_v27  ;;  %v12489_v29 = vpop.f32.mrb[23].mxu1  ;;  %v12548_v30 = vpop.f32.mrb[7].mxu0 }
 0x4df   :  { %v16776_v33 = vpop.f32.mrb[24].mxu1  ;;  %v16778_v34 = vpop.f32.mrb[8].mxu0 }
 0x4e0   :  { %v1114_v35 = vmax.f32 %v16776_v33, %v16778_v34  ;;  %v12492_v36 = vpop.f32.mrb[25].mxu1  ;;  %v12551_v37 = vpop.f32.mrb[9].mxu0  ;;  %v16833_v33 = vld [vmem:[#allocation40] ss:$0 sm:$0xff] }
 0x4e1   :  { %v1645_v34 = vld [vmem:[#allocation49] sm:$0xff]  ;;  %v1579_v37 = vlaneseq }
 0x4e3   :  { %v16783_v40 = vpop.f32.mrb[26].mxu1  ;;  %v16785_v41 = vpop.f32.mrb[10].mxu0 }
 0x4e4   :  { %v1115_v42 = vmax.f32 %v16783_v40, %v16785_v41  ;;  %v12495_v43 = vpop.f32.mrb[27].mxu1  ;;  %v12554_v44 = vpop.f32.mrb[11].mxu0 }
 0x4e5   :  { %v16838_v43 = vshrl.u32 %v1579_v37, 7 }
 0x4e7   :  { %v976_v47 = vpop.f32.mrb[28].mxu1  ;;  %v1096_v48 = vpop.f32.mrb[12].mxu0  ;;  %vm1802_vm3 = vcmp.lt.s32.totalorder %v16838_v43, 7  ;;  %vm1581_vm4 = vcmp.lt.s32.totalorder %v16838_v43, 1  ;;  %vm2602_vm11 = vcmp.lt.s32.totalorder %v16838_v43, 2  ;;  %vm3025_vm12 = vcmp.lt.s32.totalorder %v16838_v43, 6 }
 0x4e8   :  { %v1116_v49 = vmax.f32 %v976_v47, %v1096_v48  ;;  %v12498_v50 = vpop.f32.mrb[29].mxu1  ;;  %v12557_v51 = vpop.f32.mrb[13].mxu0 }
 0x4eb   :  { %v981_v54 = vpop.f32.mrb[30].mxu1  ;;  %v1101_v55 = vpop.f32.mrb[14].mxu0 }
 0x4ec   :  { %v1117_v56 = vmax.f32 %v981_v54, %v1101_v55  ;;  %v12501_v57 = vpop.f32.mrb[31].mxu1  ;;  %v12560_v58 = vpop.f32.mrb[15].mxu0 }
 0x4ef   :  { %v986_v61 = vpop.f32.mrb[32].mxu1  ;;  %v1106_v62 = vpop.f32.mrb[16].mxu0 }
 0x4f0   :  { %v1118_v63 = vmax.f32 %v986_v61, %v1106_v62  ;;  %v12504_v0 = vpop.f32.mrb[33].mxu1  ;;  %v12563_v1 = vpop.f32.mrb[17].mxu0 }
 0x4f3   :  { %v1195_v6 = vpop.f32.mrb[34].mxu1 }
 0x4f4   :  { %v1239_v7 = vmax.f32 %v1110_v5, %v1195_v6  ;;  %v12598_v8 = vpop.f32.mrb[35].mxu1 }
 0x4f6   :  { %12628 = vmatmul.mubr.msk.f32.vlgmr.msra.gmra.mrb[18].mxu0 %vm1257_vm2, %v1239_v7 }
 0x4f7   :  { %v1200_v13 = vpop.f32.mrb[36].mxu1  ;;  %12630 = vmatprep.mubr.msk.f32.mxu0 %vm16030_vm1, %v18924_v18 }
 0x4f8   :  { %v1240_v14 = vmax.f32 %v1111_v12, %v1200_v13  ;;  %v12601_v15 = vpop.f32.mrb[37].mxu1 }
 0x4fa   :  { %12631 = vmatmul.mubr.msk.f32.gmra.mrb[20].mxu0 %vm1257_vm2, %v1240_v14 }
 0x4fb   :  { %v1205_v16 = vpop.f32.mrb[38].mxu1  ;;  %12633 = vmatprep.mubr.msk.f32.mxu0 %vm16030_vm1, %v18924_v18 }
 0x4fc   :  { %v1241_v3 = vmax.f32 %v1112_v21, %v1205_v16  ;;  %v12604_v4 = vpop.f32.mrb[39].mxu1 }
 0x4fe   :  { %12634 = vmatmul.mubr.msk.f32.gmra.mrb[22].mxu0 %vm1257_vm2, %v1241_v3 }
 0x4ff   :  { %v1210_v5 = vpop.f32.mrb[40].mxu1  ;;  %12636 = vmatprep.mubr.msk.f32.mxu0 %vm16030_vm1, %v18924_v18 }
 0x500   :  { %v1242_v10 = vmax.f32 %v1113_v28, %v1210_v5  ;;  %v12607_v11 = vpop.f32.mrb[41].mxu1 }
 0x502   :  { %12637 = vmatmul.mubr.msk.f32.gmra.mrb[24].mxu0 %vm1257_vm2, %v1242_v10 }
 0x503   :  { %v1215_v12 = vpop.f32.mrb[42].mxu1  ;;  %12639 = vmatprep.mubr.msk.f32.mxu0 %vm16030_vm1, %v18924_v18 }
 0x504   :  { %v1243_v19 = vmax.f32 %v1114_v35, %v1215_v12  ;;  %v12610_v20 = vpop.f32.mrb[43].mxu1  ;;  %v1646_v35 = vld [vmem:[#allocation49 + $0x8] sm:$0xff] }
 0x505   :  { %v13576_v40 = vpack.c.bf16 %v1646_v35, %v1645_v34 }
 0x506   :  { %12640 = vmatmul.mubr.msk.f32.gmra.mrb[26].mxu0 %vm1257_vm2, %v1243_v19 }
 0x507   :  { %v1220_v21 = vpop.f32.mrb[44].mxu1  ;;  %12642 = vmatprep.mubr.msk.f32.mxu0 %vm16030_vm1, %v18924_v18 }
 0x508   :  { %v1244_v22 = vmax.f32 %v1115_v42, %v1220_v21  ;;  %v12613_v23 = vpop.f32.mrb[45].mxu1 }
 0x50a   :  { %12643 = vmatmul.mubr.msk.f32.gmra.mrb[28].mxu0 %vm1257_vm2, %v1244_v22 }
 0x50b   :  { %v1225_v24 = vpop.f32.mrb[46].mxu1  ;;  %12645 = vmatprep.mubr.msk.f32.mxu0 %vm16030_vm1, %v18924_v18 }
 0x50c   :  { %v1245_v25 = vmax.f32 %v1116_v49, %v1225_v24  ;;  %v12616_v26 = vpop.f32.mrb[47].mxu1 }
 0x50e   :  { %12646 = vmatmul.mubr.msk.f32.gmra.mrb[30].mxu0 %vm1257_vm2, %v1245_v25 }
 0x50f   :  { %v1230_v27 = vpop.f32.mrb[48].mxu1  ;;  %12648 = vmatprep.mubr.msk.f32.mxu0 %vm16030_vm1, %v18924_v18 }
 0x510   :  { %v1246_v28 = vmax.f32 %v1117_v56, %v1230_v27  ;;  %v12619_v29 = vpop.f32.mrb[49].mxu1 }
 0x512   :  { %12649 = vmatmul.mubr.msk.f32.gmra.mrb[32].mxu0 %vm1257_vm2, %v1246_v28 }
 0x513   :  { %v1235_v30 = vpop.f32.mrb[50].mxu1  ;;  %12651 = vmatprep.mubr.msk.f32.mxu0 %vm16030_vm1, %v18924_v18 }
 0x514   :  { %v1247_v31 = vmax.f32 %v1118_v63, %v1235_v30  ;;  %v12622_v32 = vpop.f32.mrb[51].mxu1 }
 0x516   :  { %12652 = vmatmul.mubr.msk.f32.gmra.mrb[34].mxu0 %vm1257_vm2, %v1247_v31 }
 0x5c9   :  { %v1351_v36 = vpop.f32.mrb[18].mxu0 }
 0x5ca   :  { %v1352_v38 = vadd.f32 %v16833_v33, %v1351_v36  ;;  %v12629_v39 = vpop.f32.mrb[19].mxu0 }
 0x5cc   :  { %v16836_v41 = vmax.f32 %v1352_v38, 0.0 }
 0x5cd   :  { %v1356_v42 = vpop.f32.mrb[20].mxu0 }
 0x5ce   :  { %v1357_v44 = vadd.f32 %v16833_v33, %v1356_v42  ;;  %v12632_v45 = vpop.f32.mrb[21].mxu0  ;;  %12659 = vmatmul.mubr.msk.f32.vlgmr.msra.gmra.mrb[52].mxu1 %vm1257_vm2, %v16836_v41  ;;  %v1570_v47 = vrot.slane %v16836_v41, 7  ;;  %v1793_v49 = vrot.slane %v16836_v41, 1 }
 0x5cf   :  { %12661 = vmatprep.mubr.msk.f32.mxu1 %vm16030_vm1, %v18924_v18  ;;  %13577 = vmatpush3.bf16.msra.mxu1 %v13576_v40  ;;  %v1868_v45 = vld [vmem:[#allocation49 + $0x28] sm:$0xff] }
 0x5d0   :  { %v1396_v46 = vmax.f32 %v1357_v44, 0.0  ;;  %13578 = vmatprep.subr.bf16.mxu1 %v16029_v17  ;;  %v1867_v44 = vld [vmem:[#allocation49 + $0x20] sm:$0xff] }
 0x5d1   :  { %v1361_v48 = vpop.f32.mrb[22].mxu0 }
 0x5d2   :  { %v1571_v50 = vrot.slane %v1396_v46, 7  ;;  %v1794_v51 = vrot.slane %v1396_v46, 1  ;;  %v1362_v52 = vadd.f32 %v16833_v33, %v1361_v48  ;;  %v12635_v53 = vpop.f32.mrb[23].mxu0  ;;  %12662 = vmatmul.mubr.msk.f32.gmra.mrb[54].mxu1 %vm1257_vm2, %v1396_v46 }
 0x5d3   :  { %12664 = vmatprep.mubr.msk.f32.mxu1 %vm16030_vm1, %v18924_v18 }
 0x5d4   :  { %v16858_v54 = vsel %vm1802_vm3, %v1793_v49, %v1794_v51  ;;  %v1397_v55 = vmax.f32 %v1362_v52, 0.0  ;;  %v16864_v56 = vsel %vm1581_vm4, %v1570_v47, %v1571_v50 }
 0x5d5   :  { %v1366_v57 = vpop.f32.mrb[24].mxu0 }
 0x5d6   :  { %v1572_v58 = vrot.slane %v1397_v55, 7  ;;  %v1795_v59 = vrot.slane %v1397_v55, 1  ;;  %v1367_v60 = vadd.f32 %v16833_v33, %v1366_v57  ;;  %v12638_v61 = vpop.f32.mrb[25].mxu0  ;;  %12665 = vmatmul.mubr.msk.f32.gmra.mrb[56].mxu1 %vm1257_vm2, %v1397_v55 }
 0x5d7   :  { %12667 = vmatprep.mubr.msk.f32.mxu1 %vm16030_vm1, %v18924_v18  ;;  %v1604_v61 = vpop.permute.xlu1 %1603 }
 0x5d8   :  { %v1398_v62 = vmax.f32 %v1367_v60, 0.0  ;;  %v16872_v63 = vsel %vm1581_vm4, %v1571_v50, %v1572_v58  ;;  %v16876_v0 = vsel %vm1802_vm3, %v1794_v51, %v1795_v59  ;;  %v1594_v50 = vpop.permute.xlu0 %1593 }
 0x5d9   :  { %v1371_v1 = vpop.f32.mrb[26].mxu0  ;;  %v1638_v41 = vmul.f32 %v1604_v61, %v16872_v63 }
 0x5da   :  { %v1573_v2 = vrot.slane %v1398_v62, 7  ;;  %v1796_v6 = vrot.slane %v1398_v62, 1  ;;  %v1372_v7 = vadd.f32 %v16833_v33, %v1371_v1  ;;  %v12641_v8 = vpop.f32.mrb[27].mxu0  ;;  %12668 = vmatmul.mubr.msk.f32.gmra.mrb[58].mxu1 %vm1257_vm2, %v1398_v62 }
 0x5db   :  { %12670 = vmatprep.mubr.msk.f32.mxu1 %vm16030_vm1, %v18924_v18 }
 0x5dc   :  { %v1399_v9 = vmax.f32 %v1372_v7, 0.0  ;;  %v16884_v13 = vsel %vm1581_vm4, %v1572_v58, %v1573_v2  ;;  %v16888_v14 = vsel %vm1802_vm3, %v1795_v59, %v1796_v6  ;;  %v1599_v60 = vpop.permute.xlu0 %1598 }
 0x5dd   :  { %v1376_v15 = vpop.f32.mrb[28].mxu0 }
 0x5de   :  { %v1574_v16 = vrot.slane %v1399_v9, 7  ;;  %v1797_v3 = vrot.slane %v1399_v9, 1  ;;  %v1377_v4 = vadd.f32 %v16833_v33, %v1376_v15  ;;  %v12644_v5 = vpop.f32.mrb[29].mxu0  ;;  %12671 = vmatmul.mubr.msk.f32.gmra.mrb[60].mxu1 %vm1257_vm2, %v1399_v9 }
 0x5df   :  { %12673 = vmatprep.mubr.msk.f32.mxu1 %vm16030_vm1, %v18924_v18 }
 0x5e0   :  { %v1400_v10 = vmax.f32 %v1377_v4, 0.0  ;;  %v1586_v11 = vsel %vm1581_vm4, %v1573_v2, %v1574_v16  ;;  %v16898_v12 = vsel %vm1802_vm3, %v1796_v6, %v1797_v3  ;;  %v1614_v1 = vpop.permute.xlu0 %1613 }
 0x5e1   :  { %v1381_v19 = vpop.f32.mrb[30].mxu0 }
 0x5e2   :  { %v1575_v20 = vrot.slane %v1400_v10, 7  ;;  %v1798_v21 = vrot.slane %v1400_v10, 1  ;;  %v1382_v22 = vadd.f32 %v16833_v33, %v1381_v19  ;;  %v12647_v23 = vpop.f32.mrb[31].mxu0  ;;  %12674 = vmatmul.mubr.msk.f32.gmra.mrb[62].mxu1 %vm1257_vm2, %v1400_v10 }
 0x5e3   :  { %12676 = vmatprep.mubr.msk.f32.mxu1 %vm16030_vm1, %v18924_v18 }
 0x5e4   :  { %v1401_v24 = vmax.f32 %v1382_v22, 0.0  ;;  %v1585_v25 = vsel %vm1581_vm4, %v1574_v16, %v1575_v20  ;;  %v16908_v26 = vsel %vm1802_vm3, %v1797_v3, %v1798_v21  ;;  %v1624_v6 = vpop.permute.xlu0 %1623 }
 0x5e5   :  { %v1386_v27 = vpop.f32.mrb[32].mxu0 }
 0x5e6   :  { %v1576_v28 = vrot.slane %v1401_v24, 7  ;;  %v1799_v29 = vrot.slane %v1401_v24, 1  ;;  %v1387_v30 = vadd.f32 %v16833_v33, %v1386_v27  ;;  %v12650_v31 = vpop.f32.mrb[33].mxu0  ;;  %12677 = vmatmul.mubr.msk.f32.gmra.mrb[64].mxu1 %vm1257_vm2, %v1401_v24  ;;  %v2024_v27 = vld [vmem:[#allocation10] sm:$0xff] }
 0x5e7   :  { %12679 = vmatprep.mubr.msk.f32.mxu1 %vm16030_vm1, %v18924_v18  ;;  %12765 = vmatprep.mubr.msk.f32.mxu0 %vm2028_vm5, %v2024_v27 }
 0x5e8   :  { %v1402_v32 = vmax.f32 %v1387_v30, 0.0  ;;  %v1584_v34 = vsel %vm1581_vm4, %v1575_v20, %v1576_v28  ;;  %v16918_v35 = vsel %vm1802_vm3, %v1798_v21, %v1799_v29 }
 0x5e9   :  { %v1391_v36 = vpop.f32.mrb[34].mxu0  ;;  %v1642_v7 = vmul.f32 %v1624_v6, %v1584_v34 }
 0x5ea   :  { %v1577_v37 = vrot.slane %v1402_v32, 7  ;;  %v1800_v38 = vrot.slane %v1402_v32, 1  ;;  %v1392_v39 = vadd.f32 %v16833_v33, %v1391_v36  ;;  %v12653_v40 = vpop.f32.mrb[35].mxu0  ;;  %12680 = vmatmul.mubr.msk.f32.gmra.mrb[66].mxu1 %vm1257_vm2, %v1402_v32  ;;  %v13579_v33 = vpack.c.bf16 %v1868_v45, %v1867_v44 }
 0x5eb   :  { %12682 = vmatprep.mubr.msk.f32.mxu1 %vm16030_vm1, %v18924_v18 }
 0x5ec   :  { %v1403_v42 = vmax.f32 %v1392_v39, 0.0  ;;  %v1583_v46 = vsel %vm1581_vm4, %v1576_v28, %v1577_v37  ;;  %v16928_v48 = vsel %vm1802_vm3, %v1799_v29, %v1800_v38  ;;  %v11537_v28 = vld [vmem:[#allocation40 + $0x1] ss:$0 sm:$0xff] }
 0x5ee   :  { %v1578_v51 = vrot.slane %v1403_v42, 7  ;;  %v1801_v52 = vrot.slane %v1403_v42, 1  ;;  %12683 = vmatmul.mubr.msk.f32.gmra.mrb[68].mxu1 %vm1257_vm2, %v1403_v42 }
 0x5ef   :  { %12689 = vmatprep.mubr.msk.f32.mxu1 %vm16030_vm1, %v18924_v18 }
 0x5f0   :  { %v1590_v53 = vsel %vm1581_vm4, %v1578_v51, %v1570_v47  ;;  %v1582_v55 = vsel %vm1581_vm4, %v1577_v37, %v1578_v51  ;;  %v16941_v57 = vsel %vm1802_vm3, %v1800_v38, %v1801_v52  ;;  %v16947_v58 = vsel %vm1802_vm3, %v1801_v52, %v1793_v49  ;;  %v1609_v49 = vpop.permute.xlu1 %1608 }
 0x5f1   :  { %v1636_v59 = vmul.f32 %v1594_v50, %v1590_v53  ;;  %v1637_v47 = vmul.f32 %v1599_v60, %v16864_v56  ;;  %v1639_v62 = vmul.f32 %v1609_v49, %v16884_v13  ;;  %v1640_v56 = vmul.f32 %v1614_v1, %v1586_v11  ;;  %v1634_v13 = vpop.permute.xlu0 %1633 }
 0x5f2   :  { %v1644_v15 = vmul.f32 %v1634_v13, %v1582_v55 }
 0x5f3   :  { %12690 = vmatmul.mubr.msk.f32.vlgmr.msra.gmra.mrb[52].mxu1 %vm1257_vm2, %v1636_v59 }
 0x5f4   :  { %12692 = vmatprep.mubr.msk.f32.mxu1 %vm16030_vm1, %v18924_v18  ;;  %13580 = vmatpush3.bf16.msra.mxu1 %v13579_v33  ;;  %v1619_v2 = vpop.permute.xlu1 %1618 }
 0x5f5   :  { %v1641_v63 = vmul.f32 %v1619_v2, %v1585_v25  ;;  %v1820_v4 = vpop.permute.xlu0 %1819 }
 0x5f6   :  { %v1858_v5 = vmul.f32 %v1820_v4, %v16876_v0  ;;  %v2127_v4 = vld [vmem:[#allocation10 + $0x20] sm:$0xff] }
 0x5f7   :  { %12693 = vmatmul.mubr.msk.f32.gmra.mrb[54].mxu1 %vm1257_vm2, %v1637_v47 }
 0x5f8   :  { %12695 = vmatprep.mubr.msk.f32.mxu1 %vm16030_vm1, %v18924_v18  ;;  %v1629_v8 = vpop.permute.xlu1 %1628 }
 0x5f9   :  { %v1643_v9 = vmul.f32 %v1629_v8, %v1583_v46  ;;  %v1830_v19 = vpop.permute.xlu0 %1829 }
 0x5fb   :  { %12696 = vmatmul.mubr.msk.f32.gmra.mrb[56].mxu1 %vm1257_vm2, %v1638_v41 }
 0x5fc   :  { %12698 = vmatprep.mubr.msk.f32.mxu1 %vm16030_vm1, %v18924_v18  ;;  %v1815_v16 = vpop.permute.xlu1 %1814 }
 0x5fd   :  { %v1857_v3 = vmul.f32 %v1815_v16, %v16858_v54  ;;  %v1860_v54 = vmul.f32 %v1830_v19, %v16898_v12  ;;  %v1840_v21 = vpop.permute.xlu0 %1839  ;;  %v2026_v16 = vld [vmem:[#allocation10 + $0x10] sm:$0xff]  ;;  %v2233_v19 = vld [vmem:[#allocation10 + $0x40] sm:$0xff] }
 0x5ff   :  { %12699 = vmatmul.mubr.msk.f32.gmra.mrb[58].mxu1 %vm1257_vm2, %v1639_v62 }
 0x600   :  { %12701 = vmatprep.mubr.msk.f32.mxu1 %vm16030_vm1, %v18924_v18  ;;  %v1825_v10 = vpop.permute.xlu1 %1824 }
 0x601   :  { %v1859_v11 = vmul.f32 %v1825_v10, %v16888_v14  ;;  %v1862_v14 = vmul.f32 %v1840_v21, %v16918_v35  ;;  %v1850_v23 = vpop.permute.xlu0 %1849  ;;  %v2129_v10 = vld [vmem:[#allocation10 + $0x30] sm:$0xff] }
 0x602   :  { %v1864_v24 = vmul.f32 %v1850_v23, %v16941_v57  ;;  %v2358_v21 = vld [vmem:[#allocation17 + $0x8] sm:$0xff]  ;;  %v2359_v23 = vld [vmem:[#allocation17 + $0x10] sm:$0xff] }
 0x603   :  { %12702 = vmatmul.mubr.msk.f32.gmra.mrb[60].mxu1 %vm1257_vm2, %v1640_v56 }
 0x604   :  { %12704 = vmatprep.mubr.msk.f32.mxu1 %vm16030_vm1, %v18924_v18  ;;  %v1835_v20 = vpop.permute.xlu1 %1834 }
 0x605   :  { %v1861_v0 = vmul.f32 %v1835_v20, %v16908_v26  ;;  %v2235_v20 = vld [vmem:[#allocation10 + $0x50] sm:$0xff] }
 0x607   :  { %12705 = vmatmul.mubr.msk.f32.gmra.mrb[62].mxu1 %vm1257_vm2, %v1641_v63 }
 0x608   :  { %12707 = vmatprep.mubr.msk.f32.mxu1 %vm16030_vm1, %v18924_v18  ;;  %v1845_v22 = vpop.permute.xlu1 %1844 }
 0x609   :  { %v1863_v12 = vmul.f32 %v1845_v22, %v16928_v48  ;;  %v2357_v22 = vld [vmem:[#allocation17] sm:$0xff] }
 0x60b   :  { %12708 = vmatmul.mubr.msk.f32.gmra.mrb[64].mxu1 %vm1257_vm2, %v1642_v7 }
 0x60c   :  { %12710 = vmatprep.mubr.msk.f32.mxu1 %vm16030_vm1, %v18924_v18  ;;  %v1855_v25 = vpop.permute.xlu1 %1854 }
 0x60d   :  { %v1865_v26 = vmul.f32 %v1855_v25, %v16947_v58  ;;  %v2364_v25 = vld [vmem:[#allocation17 + $0x38] sm:$0xff] }
 0x60f   :  { %12711 = vmatmul.mubr.msk.f32.gmra.mrb[66].mxu1 %vm1257_vm2, %v1643_v9 }
 0x610   :  { %12713 = vmatprep.mubr.msk.f32.mxu1 %vm16030_vm1, %v18924_v18 }
 0x613   :  { %12714 = vmatmul.mubr.msk.f32.gmra.mrb[68].mxu1 %vm1257_vm2, %v1644_v15  ;;  %v2025_v15 = vld [vmem:[#allocation10 + $0x8] sm:$0xff] }
 0x614   :  { %12720 = vmatprep.mubr.msk.f32.mxu1 %vm16030_vm1, %v18924_v18 }
 0x617   :  { %12721 = vmatmul.mubr.msk.f32.vlgmr.msra.gmra.mrb[52].mxu1 %vm1257_vm2, %v1857_v3  ;;  %v2027_v3 = vld [vmem:[#allocation10 + $0x18] sm:$0xff] }
 0x618   :  { %12723 = vmatprep.mubr.msk.f32.mxu1 %vm16030_vm1, %v18924_v18 }
 0x61b   :  { %12724 = vmatmul.mubr.msk.f32.gmra.mrb[54].mxu1 %vm1257_vm2, %v1858_v5  ;;  %v2128_v5 = vld [vmem:[#allocation10 + $0x28] sm:$0xff] }
 0x61c   :  { %12726 = vmatprep.mubr.msk.f32.mxu1 %vm16030_vm1, %v18924_v18 }
 0x61f   :  { %12727 = vmatmul.mubr.msk.f32.gmra.mrb[56].mxu1 %vm1257_vm2, %v1859_v11  ;;  %v2130_v11 = vld [vmem:[#allocation10 + $0x38] sm:$0xff] }
 0x620   :  { %12729 = vmatprep.mubr.msk.f32.mxu1 %vm16030_vm1, %v18924_v18 }
 0x623   :  { %12730 = vmatmul.mubr.msk.f32.gmra.mrb[58].mxu1 %vm1257_vm2, %v1860_v54  ;;  %v2234_v54 = vld [vmem:[#allocation10 + $0x48] sm:$0xff] }
 0x624   :  { %12732 = vmatprep.mubr.msk.f32.mxu1 %vm16030_vm1, %v18924_v18 }
 0x627   :  { %12733 = vmatmul.mubr.msk.f32.gmra.mrb[60].mxu1 %vm1257_vm2, %v1861_v0  ;;  %v2236_v0 = vld [vmem:[#allocation10 + $0x58] sm:$0xff] }
 0x628   :  { %12735 = vmatprep.mubr.msk.f32.mxu1 %vm16030_vm1, %v18924_v18 }
 0x62b   :  { %12736 = vmatmul.mubr.msk.f32.gmra.mrb[62].mxu1 %vm1257_vm2, %v1862_v14  ;;  %v2360_v14 = vld [vmem:[#allocation17 + $0x18] sm:$0xff] }
 0x62c   :  { %12738 = vmatprep.mubr.msk.f32.mxu1 %vm16030_vm1, %v18924_v18 }
 0x62f   :  { %12739 = vmatmul.mubr.msk.f32.gmra.mrb[64].mxu1 %vm1257_vm2, %v1863_v12  ;;  %v13629_v12 = vpack.c.bf16 %v2360_v14, %v2358_v21 }
 0x630   :  { %12741 = vmatprep.mubr.msk.f32.mxu1 %vm16030_vm1, %v18924_v18 }
 0x633   :  { %12742 = vmatmul.mubr.msk.f32.gmra.mrb[66].mxu1 %vm1257_vm2, %v1864_v24  ;;  %v2362_v24 = vld [vmem:[#allocation17 + $0x28] sm:$0xff] }
 0x634   :  { %12744 = vmatprep.mubr.msk.f32.mxu1 %vm16030_vm1, %v18924_v18  ;;  %v13633_v27 = vpack.c.bf16 %v2364_v25, %v2362_v24 }
 0x637   :  { %12745 = vmatmul.mubr.msk.f32.gmra.mrb[68].mxu1 %vm1257_vm2, %v1865_v26  ;;  %v13631_v26 = vpack.c.bf16 %v2359_v23, %v2357_v22 }
 0x6ea   :  { %v1962_v29 = vpop.f32.mrb[52].mxu1 }
 0x6eb   :  { %v12722_v30 = vpop.f32.mrb[53].mxu1  ;;  %v14840_v31 = vadd.f32 %v11537_v28, %v1962_v29  ;;  %v2363_v29 = vld [vmem:[#allocation17 + $0x30] sm:$0xff] }
 0x6ed   :  { %v2015_v36 = vmax.f32 %v14840_v31, 0.0  ;;  %v2366_v31 = vld [vmem:[#allocation17 + $0x48] sm:$0xff] }
 0x6ee   :  { %v1967_v32 = vpop.f32.mrb[54].mxu1 }
 0x6ef   :  { %v14841_v34 = vadd.f32 %v11537_v28, %v1967_v32  ;;  %v12725_v35 = vpop.f32.mrb[55].mxu1  ;;  %v2368_v32 = vld [vmem:[#allocation17 + $0x58] sm:$0xff] }
 0x6f0   :  { %v2365_v35 = vld [vmem:[#allocation17 + $0x40] sm:$0xff] }
 0x6f1   :  { %v2016_v37 = vmax.f32 %v14841_v34, 0.0  ;;  %v13637_v34 = vpack.c.bf16 %v2368_v32, %v2366_v31 }
 0x6f2   :  { %v1972_v38 = vpop.f32.mrb[56].mxu1 }
 0x6f3   :  { %v13581_v39 = vpack.c.bf16 %v2016_v37, %v2015_v36  ;;  %v12728_v40 = vpop.f32.mrb[57].mxu1  ;;  %v14842_v42 = vadd.f32 %v11537_v28, %v1972_v38  ;;  %v2367_v36 = vld [vmem:[#allocation17 + $0x50] sm:$0xff] }
 0x6f4   :  { %v13639_v37 = vpack.c.bf16 %v2367_v36, %v2365_v35  ;;  %v3195_v38 = vld [vmem:[#allocation16] sm:$0xff] }
 0x6f5   :  { %13582 = vmatprep.subr.bf16.mxu0 %v13581_v39  ;;  %v2017_v48 = vmax.f32 %v14842_v42, 0.0  ;;  %v3197_v42 = vld [vmem:[#allocation16 + $0x10] sm:$0xff] }
 0x6f6   :  { %v1977_v44 = vpop.f32.mrb[58].mxu1  ;;  %13584 = vmatpush3.bf16.msra.mxu0 %v13581_v39 }
 0x6f7   :  { %v14843_v45 = vadd.f32 %v11537_v28, %v1977_v44  ;;  %v12731_v46 = vpop.f32.mrb[59].mxu1  ;;  %v3198_v44 = vld [vmem:[#allocation16 + $0x18] sm:$0xff] }
 0x6f8   :  { %v3199_v46 = vld [vmem:[#allocation16 + $0x20] sm:$0xff] }
 0x6f9   :  { %v2018_v50 = vmax.f32 %v14843_v45, 0.0  ;;  %v13695_v45 = vpack.c.bf16 %v3198_v44, %v3197_v42 }
 0x6fa   :  { %v1982_v51 = vpop.f32.mrb[60].mxu1 }
 0x6fb   :  { %v13585_v52 = vpack.c.bf16 %v2018_v50, %v2017_v48  ;;  %v12734_v33 = vpop.f32.mrb[61].mxu1  ;;  %v14844_v53 = vadd.f32 %v11537_v28, %v1982_v51  ;;  %v3200_v48 = vld [vmem:[#allocation16 + $0x28] sm:$0xff] }
 0x6fc   :  { %v13699_v50 = vpack.c.bf16 %v3200_v48, %v3199_v46 }
 0x6fd   :  { %13586 = vmatprep.subr.bf16.mxu0 %v13585_v52  ;;  %v2019_v59 = vmax.f32 %v14844_v53, 0.0 }
 0x6fe   :  { %v1987_v55 = vpop.f32.mrb[62].mxu1  ;;  %13588 = vmatpush3.bf16.msra.mxu0 %v13585_v52 }
 0x6ff   :  { %v14845_v57 = vadd.f32 %v11537_v28, %v1987_v55  ;;  %v12737_v58 = vpop.f32.mrb[63].mxu1  ;;  %v17026_v55 = vpop.permute.xlu0 %2609 }
 0x701   :  { %v2020_v60 = vmax.f32 %v14845_v57, 0.0  ;;  %v17028_v57 = vpop.permute.xlu1 %2614 }
 0x702   :  { %v1992_v47 = vpop.f32.mrb[64].mxu1 }
 0x703   :  { %v13589_v61 = vpack.c.bf16 %v2020_v60, %v2019_v59  ;;  %v12740_v41 = vpop.f32.mrb[65].mxu1  ;;  %v14846_v49 = vadd.f32 %v11537_v28, %v1992_v47 }
 0x705   :  { %13590 = vmatprep.subr.bf16.mxu0 %v13589_v61  ;;  %v2021_v2 = vmax.f32 %v14846_v49, 0.0  ;;  %v17032_v49 = vpop.permute.xlu1 %2624 }
 0x706   :  { %v1997_v62 = vpop.f32.mrb[66].mxu1  ;;  %13592 = vmatpush3.bf16.msra.mxu0 %v13589_v61 }
 0x707   :  { %v14847_v1 = vadd.f32 %v11537_v28, %v1997_v62  ;;  %v12743_v56 = vpop.f32.mrb[67].mxu1 }
 0x709   :  { %v2022_v63 = vmax.f32 %v14847_v1, 0.0 }
 0x70a   :  { %v2002_v6 = vpop.f32.mrb[68].mxu1 }
 0x70b   :  { %v13593_v7 = vpack.c.bf16 %v2022_v63, %v2021_v2  ;;  %v14848_v8 = vadd.f32 %v11537_v28, %v2002_v6  ;;  %v12746_v9 = vpop.f32.mrb[69].mxu1  ;;  %v2361_v28 = vld [vmem:[#allocation17 + $0x20] sm:$0xff]  ;;  %v17036_v63 = vpop.permute.xlu1 %2754 }
 0x70c   :  { %v13635_v30 = vpack.c.bf16 %v2363_v29, %v2361_v28 }
 0x70d   :  { %v2023_v13 = vmax.f32 %v14848_v8, 0.0  ;;  %13594 = vmatprep.subr.bf16.mxu0 %v13593_v7 }
 0x70e   :  { %13596 = vmatpush3.bf16.msra.mxu0 %v13593_v7 }
 0x70f   :  { %12763 = vmatprep.subr.mxu0 %v2023_v13 }
 0x712   :  { %12764 = vmatpush3.msra.mxu0 %v2023_v13 }
 0x713   :  { %13598 = vmatprep.subr.bf16.mxu0 %v13581_v39  ;;  %12766 = vmatmul.mubr.msk.f32.vlgmr.msra.gmra.mrb[36].mxu0 %vm2028_vm5, %v2025_v15 }
 0x714   :  { %13600 = vmatpush3.bf16.msra.mxu0 %v13581_v39  ;;  %12768 = vmatprep.mubr.msk.f32.mxu0 %vm2028_vm5, %v2026_v16 }
 0x715   :  { %13602 = vmatprep.subr.bf16.mxu0 %v13585_v52 }
 0x717   :  { %12769 = vmatmul.mubr.msk.f32.gmra.mrb[38].mxu0 %vm2028_vm5, %v2027_v3 }
 0x718   :  { %13604 = vmatpush3.bf16.msra.mxu0 %v13585_v52  ;;  %12789 = vmatprep.mubr.msk.f32.mxu0 %vm2028_vm5, %v2127_v4 }
 0x719   :  { %13606 = vmatprep.subr.bf16.mxu0 %v13589_v61 }
 0x71c   :  { %13608 = vmatpush3.bf16.msra.mxu0 %v13589_v61 }
 0x71d   :  { %13610 = vmatprep.subr.bf16.mxu0 %v13593_v7 }
 0x720   :  { %13612 = vmatpush3.bf16.msra.mxu0 %v13593_v7 }
 0x721   :  { %12787 = vmatprep.subr.mxu0 %v2023_v13 }
 0x724   :  { %12788 = vmatpush3.msra.mxu0 %v2023_v13 }
 0x725   :  { %12790 = vmatmul.mubr.msk.f32.vlgmr.msra.gmra.mrb[40].mxu0 %vm2028_vm5, %v2128_v5  ;;  %13614 = vmatprep.subr.bf16.mxu0 %v13581_v39 }
 0x726   :  { %13616 = vmatpush3.bf16.msra.mxu0 %v13581_v39  ;;  %12792 = vmatprep.mubr.msk.f32.mxu0 %vm2028_vm5, %v2129_v10  ;;  %v3196_v39 = vld [vmem:[#allocation16 + $0x8] sm:$0xff] }
 0x727   :  { %13618 = vmatprep.subr.bf16.mxu0 %v13585_v52  ;;  %v13691_v40 = vpack.c.bf16 %v3196_v39, %v3195_v38 }
 0x729   :  { %12793 = vmatmul.mubr.msk.f32.gmra.mrb[42].mxu0 %vm2028_vm5, %v2130_v11  ;;  %13692 = vmatprep.subr.bf16.mxu1 %v13691_v40 }
 0x72a   :  { %13620 = vmatpush3.bf16.msra.mxu0 %v13585_v52  ;;  %12813 = vmatprep.mubr.msk.f32.mxu0 %vm2028_vm5, %v2233_v19 }
 0x72b   :  { %13622 = vmatprep.subr.bf16.mxu0 %v13589_v61  ;;  %13694 = vmatpush3.bf16.msra.mxu1 %v13691_v40 }
 0x72c   :  { %13696 = vmatprep.subr.bf16.mxu1 %v13695_v45 }
 0x72e   :  { %13624 = vmatpush3.bf16.msra.mxu0 %v13589_v61  ;;  %v17030_v61 = vpop.permute.xlu0 %2619 }
 0x72f   :  { %13626 = vmatprep.subr.bf16.mxu0 %v13593_v7  ;;  %13698 = vmatpush3.bf16.msra.mxu1 %v13695_v45 }
 0x730   :  { %13700 = vmatprep.subr.bf16.mxu1 %v13699_v50 }
 0x732   :  { %13628 = vmatpush3.bf16.msra.mxu0 %v13593_v7  ;;  %v17034_v2 = vpop.permute.xlu0 %2749  ;;  %v17040_v7 = vpop.permute.xlu1 %2764 }
 0x733   :  { %12811 = vmatprep.subr.mxu0 %v2023_v13  ;;  %13702 = vmatpush3.bf16.msra.mxu1 %v13699_v50 }
 0x736   :  { %12812 = vmatpush3.msra.mxu0 %v2023_v13  ;;  %v17038_v6 = vpop.permute.xlu0 %2759  ;;  %v17045_v19 = vpop.permute.xlu1 %2895 }
 0x737   :  { %12814 = vmatmul.mubr.msk.f32.vlgmr.msra.gmra.mrb[44].mxu0 %vm2028_vm5, %v2234_v54  ;;  %13630 = vmatprep.subr.bf16.mxu0 %v13629_v12 }
 0x738   :  { %12816 = vmatprep.mubr.msk.f32.mxu0 %vm2028_vm5, %v2235_v20  ;;  %13632 = vmatpush1.bf16.msra.mxu0 %v13631_v26 }
 0x739   :  { %13634 = vmatprep.subr.bf16.mxu0 %v13633_v27 }
 0x73a   :  { %v17042_v4 = vpop.permute.xlu0 %2890  ;;  %v17069_v35 = vpop.permute.xlu1 %2905 }
 0x73b   :  { %12817 = vmatmul.mubr.msk.f32.gmra.mrb[46].mxu0 %vm2028_vm5, %v2236_v0  ;;  %vm5481_vm5 = vcmask 1041408  }
 0x73c   :  { %2458 = vmatprep.mubr.f32.mxu0 %v18924_v18  ;;  %13636 = vmatpush1.bf16.msra.mxu0 %v13635_v30 }
 0x73d   :  { %13638 = vmatprep.subr.bf16.mxu0 %v13637_v34 }
 0x73e   :  { %v17060_v29 = vpop.permute.xlu0 %2900 }
 0x740   :  { %13640 = vmatpush1.bf16.msra.mxu0 %v13639_v37 }
 0x7e6   :  { %v12767_v51 = vpop.f32.mrb[36].mxu0 }
 0x7e7   :  { %v2107_v52 = vpop.f32.mrb[37].mxu0 }
 0x7ea   :  { %v12770_v33 = vpop.f32.mrb[38].mxu0 }
 0x7eb   :  { %v2117_v53 = vpop.f32.mrb[39].mxu0 }
 0x7f8   :  { %v12791_v58 = vpop.f32.mrb[40].mxu0 }
 0x7f9   :  { %v2229_v59 = vmax.f32 %v12767_v51, %v12791_v58  ;;  %v2209_v60 = vpop.f32.mrb[41].mxu0  ;;  %v2489_v58 = vld [vmem:[#allocation14 + $0x48] sm:$0xff] }
 0x7fa   :  { %v2228_v47 = vmax.f32 %v2107_v52, %v2209_v60  ;;  %v2490_v60 = vld [vmem:[#allocation14 + $0x50] sm:$0xff] }
 0x7fc   :  { %v12794_v41 = vpop.f32.mrb[42].mxu0 }
 0x7fd   :  { %v2231_v62 = vmax.f32 %v12770_v33, %v12794_v41  ;;  %v2219_v1 = vpop.f32.mrb[43].mxu0 }
 0x7fe   :  { %v2230_v56 = vmax.f32 %v2117_v53, %v2219_v1  ;;  %v2488_v53 = vld [vmem:[#allocation14 + $0x40] sm:$0xff] }
 0x7ff   :  { %v2631_v1 = vld [vmem:[#allocation14] sm:$0xff] }
 0x80a   :  { %v12815_v8 = vpop.f32.mrb[44].mxu0 }
 0x80b   :  { %v2335_v9 = vmax.f32 %v2229_v59, %v12815_v8  ;;  %v2315_v13 = vpop.f32.mrb[45].mxu0  ;;  %v13641_v59 = vpack.c.bf16 %v2489_v58, %v2488_v53 }
 0x80c   :  { %v2334_v15 = vmax.f32 %v2228_v47, %v2315_v13  ;;  %v2491_v47 = vld [vmem:[#allocation14 + $0x58] sm:$0xf]  ;;  %v17099_v13 = vld [vmem:[#allocation40 + $0x3] sm:$0x3] }
 0x80d   :  { %v3164_v16 = vrot.slane %v2335_v9, 7  ;;  %v3176_v3 = vrot.slane %v2335_v9, 1  ;;  %13642 = vmatprep.subr.bf16.mxu0 %v13641_v59  ;;  %v13645_v41 = vpack.c.bf16 %v2491_v47, %v2490_v60 }
 0x80e   :  { %v3163_v5 = vrot.slane %v2334_v15, 7  ;;  %v3175_v10 = vrot.slane %v2334_v15, 1  ;;  %v12818_v11 = vpop.f32.mrb[46].mxu0  ;;  %11577 = vmatmul.mubr.msk.f32.vlgmr.msra.gmra.mrb[48].mxu0 %vm2381_vm6, %v2334_v15 }
 0x80f   :  { %v2337_v54 = vmax.f32 %v2231_v62, %v12818_v11  ;;  %v2325_v20 = vpop.f32.mrb[47].mxu0  ;;  %2464 = vmatprep.mubr.f32.mxu0 %v18924_v18  ;;  %13644 = vmatpush3.bf16.msra.mxu0 %v13641_v59 }
 0x810   :  { %v3169_v0 = vsel %vm1581_vm4, %v3163_v5, %v3164_v16  ;;  %v2336_v21 = vmax.f32 %v2230_v56, %v2325_v20  ;;  %v3181_v14 = vsel %vm1802_vm3, %v3175_v10, %v3176_v3  ;;  %13647 = vmatprep.subr.msk.bf16.mxu0 %vm17088_vm9, %v13645_v41  ;;  %v2632_v56 = vld [vmem:[#allocation14 + $0x8] sm:$0xff]  ;;  %v2633_v20 = vld [vmem:[#allocation14 + $0x10] sm:$0xff] }
 0x811   :  { %v3166_v22 = vrot.slane %v2337_v54, 7  ;;  %v3178_v12 = vrot.slane %v2337_v54, 1  ;;  %v3172_v25 = vmul.f32 %v3169_v0, %v17036_v63  ;;  %v3183_v27 = vmul.f32 %v3181_v14, %v17042_v4  ;;  %v2634_v0 = vld [vmem:[#allocation14 + $0x18] sm:$0xf] }
 0x812   :  { %v3165_v23 = vrot.slane %v2336_v21, 7  ;;  %v3177_v24 = vrot.slane %v2336_v21, 1  ;;  %11578 = vmatmul.mubr.msk.f32.gmra.mrb[50].mxu0 %vm2381_vm6, %v2335_v9  ;;  %v13651_v8 = vpack.c.bf16 %v2632_v56, %v2631_v1 }
 0x813   :  { %2470 = vmatprep.mubr.f32.mxu0 %v18924_v18  ;;  %v3170_v26 = vsel %vm1581_vm4, %v3166_v22, %v3163_v5  ;;  %v3182_v28 = vsel %vm1802_vm3, %v3178_v12, %v3175_v10  ;;  %13650 = vmatpush3.bf16.msk.msra.mxu0 %vm17088_vm9, %v13645_v41 }
 0x814   :  { %v3180_v30 = vsel %vm1802_vm3, %v3176_v3, %v3177_v24  ;;  %v3171_v31 = vmul.f32 %v3170_v26, %v17034_v2  ;;  %v3168_v32 = vsel %vm1581_vm4, %v3164_v16, %v3165_v23  ;;  %v3179_v34 = vsel %vm1802_vm3, %v3177_v24, %v3178_v12  ;;  %13652 = vmatprep.subr.bf16.mxu0 %v13651_v8  ;;  %v2773_v24 = vld [vmem:[#allocation14 + $0x28] sm:$0xff] }
 0x815   :  { %v3184_v36 = vmul.f32 %v3180_v30, %v17045_v19  ;;  %v3173_v37 = vmul.f32 %v3168_v32, %v17038_v6  ;;  %v3185_v38 = vmul.f32 %v3179_v34, %v17060_v29  ;;  %v3167_v39 = vsel %vm1581_vm4, %v3165_v23, %v3166_v22  ;;  %v2772_v23 = vld [vmem:[#allocation14 + $0x20] sm:$0xff] }
 0x816   :  { %11579 = vmatmul.mubr.msk.f32.gmra.mrb[52].mxu0 %vm2381_vm6, %v2336_v21  ;;  %v3187_v40 = vmax.f32 %v3171_v31, %v3183_v27  ;;  %v3174_v42 = vmul.f32 %v3167_v39, %v17040_v7  ;;  %v3186_v44 = vmul.f32 %v3182_v28, %v17069_v35  ;;  %v13655_v12 = vpack.c.bf16 %v2634_v0, %v2633_v20 }
 0x817   :  { %v3188_v45 = vmax.f32 %v3172_v25, %v3184_v36  ;;  %2476 = vmatprep.mubr.f32.mxu0 %v18924_v18  ;;  %v3189_v46 = vmax.f32 %v3173_v37, %v3185_v38  ;;  %v13661_v36 = vpack.c.bf16 %v2773_v24, %v2772_v23 }
 0x818   :  { %v3191_v48 = vmax.f32 %v2334_v15, %v3187_v40  ;;  %v3190_v50 = vmax.f32 %v3174_v42, %v3186_v44 }
 0x819   :  { %v3192_v51 = vmax.f32 %v2335_v9, %v3188_v45  ;;  %v3193_v52 = vmax.f32 %v2336_v21, %v3189_v46  ;;  %v17097_v9 = vsub.s32 1, %v16838_v43 }
 0x81a   :  { %11580 = vmatmul.mubr.msk.f32.gmra.mrb[54].mxu0 %vm2381_vm6, %v2337_v54  ;;  %12901 = vmatprep.mubr.msk.f32.mxu1 %vm2381_vm6, %v3191_v48  ;;  %v3194_v33 = vmax.f32 %v2337_v54, %v3190_v50 }
 0x81b   :  { %12902 = vmatmul.mubr.msk.f32.vlgmr.msra.gmra.mrb[70].mxu1 %vm2381_vm6, %v3192_v51  ;;  %v2378_v15 = vrot.slane %v17099_v13, %v17097_v9 }
 0x81c   :  { %12904 = vmatprep.mubr.msk.f32.mxu1 %vm2381_vm6, %v3193_v52 }
 0x81f   :  { %12905 = vmatmul.mubr.msk.f32.gmra.mrb[72].mxu1 %vm2381_vm6, %v3194_v33 }
 0x820   :  { %3411 = vmatprep.mubr.f32.mxu1 %v18924_v18 }
 0x8e1   :  { %v17103_v16 = vpop.f32.mrb[48].mxu0 }
 0x8e2   :  { %v2462_v3 = vpop.f32.mrb[49].mxu0 }
 0x8e3   :  { %v2463_v5 = vadd.f32 %v2462_v3, %v2378_v15 }
 0x8e5   :  { %v17105_v10 = vmax.f32 %v2463_v5, 0.0  ;;  %v17107_v11 = vpop.f32.mrb[50].mxu0 }
 0x8e6   :  { %v2468_v54 = vpop.f32.mrb[51].mxu0 }
 0x8e7   :  { %v2469_v21 = vadd.f32 %v2468_v54, %v2378_v15  ;;  %12827 = vmatprep.mubr.msk.f32.mxu0 %vm2492_vm10, %v17105_v10  ;;  %v2598_v26 = vrot.slane %v17105_v10, 6  ;;  %v2739_v27 = vrot.slane %v17105_v10, 7  ;;  %v2880_v28 = vrot.slane %v17105_v10, 1 }
 0x8e8   :  { %v3021_v48 = vrot.slane %v17105_v10, 2  ;;  %v2775_v10 = vld [vmem:[#allocation14 + $0x38] sm:$0xf] }
 0x8e9   :  { %v2484_v14 = vmax.f32 %v2469_v21, 0.0  ;;  %v17111_v22 = vpop.f32.mrb[52].mxu0 }
 0x8ea   :  { %v2474_v25 = vpop.f32.mrb[53].mxu0 }
 0x8eb   :  { %v2599_v30 = vrot.slane %v2484_v14, 6  ;;  %v2740_v31 = vrot.slane %v2484_v14, 7  ;;  %v2475_v32 = vadd.f32 %v2474_v25, %v2378_v15  ;;  %12828 = vmatmul.mubr.msk.f32.vlgmr.msra.gmra.mrb[56].mxu0 %vm2492_vm10, %v2484_v14  ;;  %v2881_v34 = vrot.slane %v2484_v14, 1 }
 0x8ec   :  { %13654 = vmatpush3.bf16.msra.mxu0 %v13651_v8  ;;  %v3022_v37 = vrot.slane %v2484_v14, 2  ;;  %v2774_v8 = vld [vmem:[#allocation14 + $0x30] sm:$0xff] }
 0x8ed   :  { %v2485_v38 = vmax.f32 %v2475_v32, 0.0  ;;  %v17119_v39 = vpop.f32.mrb[54].mxu0  ;;  %13657 = vmatprep.subr.msk.bf16.mxu0 %vm17088_vm9, %v13655_v12  ;;  %v2605_v40 = vsel %vm2602_vm11, %v2598_v26, %v2599_v30  ;;  %v2745_v42 = vsel %vm1581_vm4, %v2739_v27, %v2740_v31  ;;  %v17129_v44 = vsel %vm1802_vm3, %v2880_v28, %v2881_v34 }
 0x8ee   :  { %v2480_v45 = vpop.f32.mrb[55].mxu0  ;;  %v17131_v46 = vpop.f32.mrb[70].mxu1  ;;  %v17141_v59 = vsel %vm3025_vm12, %v3021_v48, %v3022_v37  ;;  %v2628_v25 = vmul.f32 %v17028_v57, %v2605_v40 }
 0x8ef   :  { %v2882_v50 = vrot.slane %v2485_v38, 1  ;;  %v3023_v51 = vrot.slane %v2485_v38, 2  ;;  %v2481_v52 = vadd.f32 %v2480_v45, %v2378_v15  ;;  %12830 = vmatprep.mubr.msk.f32.mxu0 %vm2492_vm10, %v2485_v38  ;;  %v17135_v33 = vpop.f32.mrb[71].mxu1  ;;  %v2600_v53 = vrot.slane %v2485_v38, 6 }
 0x8f0   :  { %13660 = vmatpush3.bf16.msk.msra.mxu0 %vm17088_vm9, %v13655_v12  ;;  %v2741_v58 = vrot.slane %v2485_v38, 7  ;;  %v2914_v38 = vld [vmem:[#allocation14 + $0x68] sm:$0xff] }
 0x8f1   :  { %v2486_v60 = vmax.f32 %v2481_v52, 0.0  ;;  %13662 = vmatprep.subr.bf16.mxu0 %v13661_v36  ;;  %v2604_v47 = vsel %vm2602_vm11, %v2599_v30, %v2600_v53  ;;  %v2885_v41 = vsel %vm1802_vm3, %v2881_v34, %v2882_v50  ;;  %v17149_v1 = vsel %vm3025_vm12, %v3022_v37, %v3023_v51  ;;  %v2913_v37 = vld [vmem:[#allocation14 + $0x60] sm:$0xff] }
 0x8f2   :  { %v17151_v56 = vpop.f32.mrb[72].mxu1  ;;  %v2744_v15 = vsel %vm1581_vm4, %v2740_v31, %v2741_v58  ;;  %v13665_v30 = vpack.c.bf16 %v2775_v10, %v2774_v8  ;;  %v2629_v34 = vmul.f32 %v17030_v61, %v2604_v47  ;;  %v3057_v8 = vld [vmem:[#allocation14 + $0x90] sm:$0xff] }
 0x8f3   :  { %12831 = vmatmul.mubr.msk.f32.gmra.mrb[58].mxu0 %vm2492_vm10, %v2486_v60  ;;  %v17156_v3 = vpop.f32.mrb[73].mxu1  ;;  %v2601_v5 = vrot.slane %v2486_v60, 6  ;;  %v2742_v54 = vrot.slane %v2486_v60, 7  ;;  %v2883_v20 = vrot.slane %v2486_v60, 1  ;;  %v3024_v0 = vrot.slane %v2486_v60, 2 }
 0x8f4   :  { %v2769_v52 = vmul.f32 %v17038_v6, %v2744_v15  ;;  %v2909_v15 = vmul.f32 %v17045_v19, %v2885_v41 }
 0x8f5   :  { %v2606_v21 = vsel %vm2602_vm11, %v2601_v5, %v2598_v26  ;;  %v2603_v14 = vsel %vm2602_vm11, %v2600_v53, %v2601_v5  ;;  %v2746_v12 = vsel %vm1581_vm4, %v2742_v54, %v2739_v27  ;;  %v2743_v23 = vsel %vm1581_vm4, %v2741_v58, %v2742_v54  ;;  %v3055_v53 = vld [vmem:[#allocation14 + $0x80] sm:$0xff]  ;;  %v3056_v58 = vld [vmem:[#allocation14 + $0x88] sm:$0xff]  ;;  %v3058_v5 = vld [vmem:[#allocation14 + $0x98] sm:$0xf] }
 0x8f6   :  { %v2627_v24 = vmul.f32 %v17026_v55, %v2606_v21  ;;  %v2884_v31 = vsel %vm1802_vm3, %v2882_v50, %v2883_v20  ;;  %v2887_v26 = vsel %vm1802_vm3, %v2883_v20, %v2880_v28  ;;  %v3026_v32 = vsel %vm3025_vm12, %v3023_v51, %v3024_v0  ;;  %v2916_v50 = vld [vmem:[#allocation14 + $0x78] sm:$0xf]  ;;  %v17203_v20 = vpop.permute.xlu0 %3032 }
 0x8f7   :  { %v3029_v27 = vsel %vm3025_vm12, %v3024_v0, %v3021_v48  ;;  %v2630_v40 = vmul.f32 %v17032_v49, %v2603_v14  ;;  %v13671_v28 = vpack.c.bf16 %v2914_v38, %v2913_v37  ;;  %v2767_v45 = vmul.f32 %v17034_v2, %v2746_v12  ;;  %v2915_v48 = vld [vmem:[#allocation14 + $0x70] sm:$0xff]  ;;  %v17210_v0 = vpop.permute.xlu1 %3037 }
 0x8f8   :  { %12841 = vmatprep.mubr.msk.f32.mxu0 %vm2492_vm10, %v2627_v24  ;;  %v2768_v51 = vmul.f32 %v17036_v63, %v2745_v42  ;;  %v2770_v60 = vmul.f32 %v17040_v7, %v2743_v23  ;;  %v13681_v47 = vpack.c.bf16 %v3056_v58, %v3055_v53  ;;  %v2908_v42 = vmul.f32 %v17042_v4, %v17129_v44  ;;  %v3307_v24 = vld [vmem:[#allocation31 + $0x8] sm:$0xff]  ;;  %v3310_v38 = vld [vmem:[#allocation31 + $0x20] sm:$0xff]  ;;  %v3321_v53 = vld [vmem:[#allocation31 + $0x78] sm:$0xff] }
 0x8f9   :  { %12842 = vmatmul.mubr.msk.f32.vlgmr.msra.gmra.mrb[60].mxu0 %vm2492_vm10, %v2628_v25  ;;  %v13685_v10 = vpack.c.bf16 %v3058_v5, %v3057_v8  ;;  %v2910_v54 = vmul.f32 %v17060_v29, %v2884_v31  ;;  %v2911_v44 = vmul.f32 %v17069_v35, %v2887_v26  ;;  %v3050_v41 = vmul.f32 %v17203_v20, %v17141_v59  ;;  %v3309_v25 = vld [vmem:[#allocation31 + $0x18] sm:$0xff]  ;;  %v3306_v31 = vld [vmem:[#allocation31] sm:$0xff]  ;;  %v3308_v26 = vld [vmem:[#allocation31 + $0x10] sm:$0xff] }
 0x8fa   :  { %12844 = vmatprep.mubr.msk.f32.mxu0 %vm2492_vm10, %v2629_v34  ;;  %13664 = vmatpush3.bf16.msra.mxu0 %v13661_v36  ;;  %v13675_v36 = vpack.c.bf16 %v2916_v50, %v2915_v48  ;;  %v17218_v21 = vpop.permute.xlu0 %3042  ;;  %v3051_v14 = vmul.f32 %v17210_v0, %v17149_v1  ;;  %v13705_v34 = vpack.c.bf16 %v3308_v26, %v3306_v31  ;;  %v3311_v1 = vld [vmem:[#allocation31 + $0x28] sm:$0xff]  ;;  %v3314_v50 = vld [vmem:[#allocation31 + $0x40] sm:$0xff]  ;;  %v17230_v8 = vsub.s32 0, %v16838_v43 }
 0x8fb   :  { %13667 = vmatprep.subr.msk.bf16.mxu0 %vm17088_vm9, %v13665_v30  ;;  %v3052_v12 = vmul.f32 %v17218_v21, %v3026_v32  ;;  %v17224_v23 = vpop.permute.xlu1 %3047  ;;  %v3313_v32 = vld [vmem:[#allocation31 + $0x38] sm:$0xff] }
 0x8fc   :  { %v3053_v59 = vmul.f32 %v17224_v23, %v3029_v27  ;;  %v13707_v37 = vpack.c.bf16 %v3313_v32, %v3311_v1  ;;  %v3317_v27 = vld [vmem:[#allocation31 + $0x58] sm:$0xff]  ;;  %v2374_v5 = vrot.slane %v17099_v13, %v17230_v8 }
 0x8fd   :  { %12845 = vmatmul.mubr.msk.f32.gmra.mrb[62].mxu0 %vm2492_vm10, %v2630_v40  ;;  %v3312_v40 = vld [vmem:[#allocation31 + $0x30] sm:$0xff] }
 0x8fe   :  { %13670 = vmatpush3.bf16.msk.msra.mxu0 %vm17088_vm9, %v13665_v30  ;;  %12855 = vmatprep.mubr.msk.f32.mxu0 %vm2492_vm10, %v2767_v45  ;;  %v13703_v30 = vpack.c.bf16 %v3309_v25, %v3307_v24  ;;  %v3315_v45 = vld [vmem:[#allocation31 + $0x48] sm:$0xff] }
 0x8ff   :  { %13672 = vmatprep.subr.bf16.mxu0 %v13671_v28  ;;  %v13711_v48 = vpack.c.bf16 %v3317_v27, %v3315_v45 }
 0x900   :  { %13704 = vmatprep.subr.bf16.mxu1 %v13703_v30 }
 0x901   :  { %12856 = vmatmul.mubr.msk.f32.vlgmr.msra.gmra.mrb[64].mxu0 %vm2492_vm10, %v2768_v51  ;;  %13706 = vmatpush1.bf16.msra.mxu1 %v13705_v34  ;;  %v3316_v51 = vld [vmem:[#allocation31 + $0x50] sm:$0xff] }
 0x902   :  { %12858 = vmatprep.mubr.msk.f32.mxu0 %vm2492_vm10, %v2769_v52  ;;  %13674 = vmatpush3.bf16.msra.mxu0 %v13671_v28  ;;  %v13709_v28 = vpack.c.bf16 %v3312_v40, %v3310_v38  ;;  %v3319_v52 = vld [vmem:[#allocation31 + $0x68] sm:$0xff] }
 0x903   :  { %13677 = vmatprep.subr.msk.bf16.mxu0 %vm17088_vm9, %v13675_v36  ;;  %13708 = vmatprep.subr.bf16.mxu1 %v13707_v37  ;;  %v13715_v58 = vpack.c.bf16 %v3321_v53, %v3319_v52 }
 0x905   :  { %12859 = vmatmul.mubr.msk.f32.gmra.mrb[66].mxu0 %vm2492_vm10, %v2770_v60  ;;  %13710 = vmatpush1.bf16.msra.mxu1 %v13709_v28  ;;  %v3318_v60 = vld [vmem:[#allocation31 + $0x60] sm:$0xff] }
 0x906   :  { %13680 = vmatpush3.bf16.msk.msra.mxu0 %vm17088_vm9, %v13675_v36  ;;  %12869 = vmatprep.mubr.msk.f32.mxu0 %vm2492_vm10, %v2908_v42  ;;  %v13713_v36 = vpack.c.bf16 %v3316_v51, %v3314_v50 }
 0x907   :  { %13682 = vmatprep.subr.bf16.mxu0 %v13681_v47  ;;  %13712 = vmatprep.subr.bf16.mxu1 %v13711_v48 }
 0x909   :  { %12870 = vmatmul.mubr.msk.f32.vlgmr.msra.gmra.mrb[68].mxu0 %vm2492_vm10, %v2909_v15  ;;  %13714 = vmatpush1.bf16.msra.mxu1 %v13713_v36  ;;  %v2467_v15 = vadd.f32 %v17107_v11, %v2374_v5 }
 0x90a   :  { %12872 = vmatprep.mubr.msk.f32.mxu0 %vm2492_vm10, %v2910_v54  ;;  %13684 = vmatpush3.bf16.msra.mxu0 %v13681_v47  ;;  %v3320_v47 = vld [vmem:[#allocation31 + $0x70] sm:$0xff] }
 0x90b   :  { %13687 = vmatprep.subr.msk.bf16.mxu0 %vm17088_vm9, %v13685_v10  ;;  %v13717_v42 = vpack.c.bf16 %v3320_v47, %v3318_v60  ;;  %13716 = vmatprep.subr.bf16.mxu1 %v13715_v58 }
 0x90d   :  { %12873 = vmatmul.mubr.msk.f32.gmra.mrb[70].mxu0 %vm2492_vm10, %v2911_v44  ;;  %13718 = vmatpush1.bf16.msra.mxu1 %v13717_v42 }
 0x90e   :  { %13690 = vmatpush3.bf16.msk.msra.mxu0 %vm17088_vm9, %v13685_v10  ;;  %12883 = vmatprep.mubr.msk.f32.mxu0 %vm2492_vm10, %v3050_v41  ;;  %v2461_v10 = vadd.f32 %v17103_v16, %v2374_v5 }
 0x911   :  { %12884 = vmatmul.mubr.msk.f32.vlgmr.msra.gmra.mrb[72].mxu0 %vm2492_vm10, %v3051_v14 }
 0x912   :  { %12886 = vmatprep.mubr.msk.f32.mxu0 %vm2492_vm10, %v3052_v12  ;;  %v2479_v12 = vadd.f32 %v17119_v39, %v2374_v5 }
 0x915   :  { %12887 = vmatmul.mubr.msk.f32.gmra.mrb[74].mxu0 %vm2492_vm10, %v3053_v59  ;;  %v2473_v59 = vadd.f32 %v17111_v22, %v2374_v5 }
 0x9be   :  { %v12829_v54 = vpop.f32.mrb[56].mxu0 }
 0x9bf   :  { %v2595_v44 = vadd.f32 %v12829_v54, %v2467_v15  ;;  %v2575_v41 = vpop.f32.mrb[57].mxu0 }
 0x9c0   :  { %v2594_v14 = vadd.f32 %v2575_v41, %v2461_v10 }
 0x9c6   :  { %v12832_v24 = vpop.f32.mrb[58].mxu0 }
 0x9c7   :  { %v2597_v25 = vadd.f32 %v12832_v24, %v2479_v12  ;;  %v2585_v30 = vpop.f32.mrb[59].mxu0 }
 0x9c8   :  { %v2596_v31 = vadd.f32 %v2585_v30, %v2473_v59 }
 0x9cc   :  { %v12843_v26 = vpop.f32.mrb[60].mxu0 }
 0x9cd   :  { %v2736_v34 = vadd.f32 %v12843_v26, %v2595_v44  ;;  %v2716_v1 = vpop.f32.mrb[61].mxu0 }
 0x9ce   :  { %v2735_v13 = vadd.f32 %v2716_v1, %v2594_v14 }
 0x9d0   :  { %v12846_v32 = vpop.f32.mrb[62].mxu0 }
 0x9d1   :  { %v2738_v11 = vadd.f32 %v12846_v32, %v2597_v25  ;;  %v2726_v37 = vpop.f32.mrb[63].mxu0 }
 0x9d2   :  { %v2737_v16 = vadd.f32 %v2726_v37, %v2596_v31 }
 0x9d4   :  { %v12857_v38 = vpop.f32.mrb[64].mxu0 }
 0x9d5   :  { %v2877_v40 = vadd.f32 %v12857_v38, %v2736_v34  ;;  %v2857_v28 = vpop.f32.mrb[65].mxu0 }
 0x9d6   :  { %v2876_v45 = vadd.f32 %v2857_v28, %v2735_v13 }
 0x9d8   :  { %v12860_v27 = vpop.f32.mrb[66].mxu0 }
 0x9d9   :  { %v2879_v39 = vadd.f32 %v12860_v27, %v2738_v11  ;;  %v2867_v48 = vpop.f32.mrb[67].mxu0 }
 0x9da   :  { %v2878_v22 = vadd.f32 %v2867_v48, %v2737_v16 }
 0x9dc   :  { %v12871_v50 = vpop.f32.mrb[68].mxu0 }
 0x9dd   :  { %v3018_v51 = vadd.f32 %v12871_v50, %v2877_v40  ;;  %v2998_v36 = vpop.f32.mrb[69].mxu0 }
 0x9de   :  { %v3017_v52 = vadd.f32 %v2998_v36, %v2876_v45 }
 0x9e0   :  { %v12874_v53 = vpop.f32.mrb[70].mxu0 }
 0x9e1   :  { %v3020_v58 = vadd.f32 %v12874_v53, %v2879_v39  ;;  %v3008_v60 = vpop.f32.mrb[71].mxu0 }
 0x9e2   :  { %v3019_v47 = vadd.f32 %v3008_v60, %v2878_v22 }
 0x9e4   :  { %v12885_v42 = vpop.f32.mrb[72].mxu0 }
 0x9e5   :  { %v3160_v5 = vadd.f32 %v12885_v42, %v3018_v51  ;;  %v3140_v15 = vpop.f32.mrb[73].mxu0 }
 0x9e6   :  { %v3159_v10 = vadd.f32 %v3140_v15, %v3017_v52 }
 0x9e7   :  { %v3299_v54 = vadd.f32 %v17131_v46, %v3160_v5 }
 0x9e8   :  { %v3298_v44 = vadd.f32 %v17135_v33, %v3159_v10  ;;  %v12888_v41 = vpop.f32.mrb[74].mxu0 }
 0x9e9   :  { %v3303_v14 = vmax.f32 %v3299_v54, 0.0  ;;  %v3162_v12 = vadd.f32 %v12888_v41, %v3020_v58  ;;  %v3150_v59 = vpop.f32.mrb[75].mxu0  ;;  %v3441_v41 = vld [vmem:[#allocation28 + $0x50] sm:$0xff] }
 0x9ea   :  { %v3302_v24 = vmax.f32 %v3298_v44, 0.0  ;;  %v3161_v25 = vadd.f32 %v3150_v59, %v3019_v47 }
 0x9eb   :  { %v4024_v30 = vrot.slane %v3303_v14, 7  ;;  %v4036_v31 = vrot.slane %v3303_v14, 1  ;;  %v3301_v26 = vadd.f32 %v17151_v56, %v3162_v12  ;;  %v3442_v12 = vld [vmem:[#allocation28 + $0x58] sm:$0xff] }
 0x9ec   :  { %v4023_v34 = vrot.slane %v3302_v24, 7  ;;  %v4035_v1 = vrot.slane %v3302_v24, 1  ;;  %v3300_v13 = vadd.f32 %v17156_v3, %v3161_v25  ;;  %11610 = vmatmul.mubr.msk.f32.vlgmr.msra.gmra.mrb[74].mxu1 %vm3334_vm13, %v3302_v24  ;;  %v13719_v59 = vpack.c.bf16 %v3442_v12, %v3441_v41  ;;  %v3443_v25 = vld [vmem:[#allocation28 + $0x60] sm:$0xff] }
 0x9ed   :  { %v3305_v46 = vmax.f32 %v3301_v26, 0.0  ;;  %3417 = vmatprep.mubr.f32.mxu1 %v18924_v18  ;;  %v3561_v26 = vld [vmem:[#allocation28 + $0x8] sm:$0xff] }
 0x9ee   :  { %v4029_v33 = vsel %vm1581_vm4, %v4023_v34, %v4024_v30  ;;  %v3304_v32 = vmax.f32 %v3300_v13, 0.0  ;;  %v4041_v11 = vsel %vm1802_vm3, %v4035_v1, %v4036_v31  ;;  %13720 = vmatprep.subr.bf16.mxu1 %v13719_v59  ;;  %v3680_v13 = vld [vmem:[#allocation28 + $0x30] sm:$0xff] }
 0x9ef   :  { %v4026_v37 = vrot.slane %v3305_v46, 7  ;;  %v4038_v16 = vrot.slane %v3305_v46, 1  ;;  %v4032_v3 = vmul.f32 %v4029_v33, %v17036_v63  ;;  %v4043_v28 = vmul.f32 %v4041_v11, %v17042_v4  ;;  %13722 = vmatpush3.bf16.msra.mxu1 %v13719_v59  ;;  %v3681_v33 = vld [vmem:[#allocation28 + $0x38] sm:$0xff] }
 0x9f0   :  { %v4025_v38 = vrot.slane %v3304_v32, 7  ;;  %v4037_v56 = vrot.slane %v3304_v32, 1  ;;  %11611 = vmatmul.mubr.msk.f32.gmra.mrb[76].mxu1 %vm3334_vm13, %v3303_v14 }
 0x9f1   :  { %3423 = vmatprep.mubr.f32.mxu1 %v18924_v18  ;;  %v4030_v40 = vsel %vm1581_vm4, %v4026_v37, %v4023_v34  ;;  %v4042_v45 = vsel %vm1802_vm3, %v4038_v16, %v4035_v1  ;;  %v3679_v34 = vld [vmem:[#allocation28 + $0x28] sm:$0xff] }
 0x9f2   :  { %v4040_v27 = vsel %vm1802_vm3, %v4036_v31, %v4037_v56  ;;  %v4031_v39 = vmul.f32 %v4030_v40, %v17034_v2  ;;  %v4028_v48 = vsel %vm1581_vm4, %v4024_v30, %v4025_v38  ;;  %v4039_v22 = vsel %vm1802_vm3, %v4037_v56, %v4038_v16  ;;  %v3444_v30 = vld [vmem:[#allocation28 + $0x68] sm:$0xff]  ;;  %v3917_v16 = vld [vmem:[#allocation28 + $0xa0] sm:$0xff] }
 0x9f3   :  { %v4044_v50 = vmul.f32 %v4040_v27, %v17045_v19  ;;  %v4033_v51 = vmul.f32 %v4028_v48, %v17038_v6  ;;  %v4045_v36 = vmul.f32 %v4039_v22, %v17060_v29  ;;  %v4027_v52 = vsel %vm1581_vm4, %v4025_v38, %v4026_v37  ;;  %v3683_v37 = vld [vmem:[#allocation28 + $0x48] sm:$0xff] }
 0x9f4   :  { %11612 = vmatmul.mubr.msk.f32.gmra.mrb[78].mxu1 %vm3334_vm13, %v3304_v32  ;;  %v4047_v53 = vmax.f32 %v4031_v39, %v4043_v28  ;;  %v4034_v58 = vmul.f32 %v4027_v52, %v17040_v7  ;;  %v4046_v60 = vmul.f32 %v4042_v45, %v17069_v35  ;;  %v13723_v31 = vpack.c.bf16 %v3444_v30, %v3443_v25  ;;  %v3918_v38 = vld [vmem:[#allocation28 + $0xa8] sm:$0xff] }
 0x9f5   :  { %v4048_v47 = vmax.f32 %v4032_v3, %v4044_v50  ;;  %3429 = vmatprep.mubr.f32.mxu1 %v18924_v18  ;;  %v4049_v42 = vmax.f32 %v4033_v51, %v4045_v36  ;;  %v17281_v56 = vpack.c.bf16 %v3918_v38, %v3917_v16  ;;  %v17284_v3 = vld [vmem:[#allocation40 + $0x5] sm:$0x3]  ;;  %v3562_v50 = vld [vmem:[#allocation28 + $0x10] sm:$0xff]  ;;  %v3563_v51 = vld [vmem:[#allocation28 + $0x18] sm:$0xff] }
 0x9f6   :  { %v17272_v5 = vmax.f32 %v3302_v24, %v4047_v53  ;;  %v4050_v15 = vmax.f32 %v4034_v58, %v4046_v60  ;;  %13724 = vmatprep.subr.bf16.mxu1 %v13723_v31  ;;  %v3445_v24 = vld [vmem:[#allocation28 + $0x70] sm:$0xff]  ;;  %v3331_v40 = vrot.slane %v17284_v3, %v17097_v9  ;;  %v13731_v58 = vpack.c.bf16 %v3563_v51, %v3562_v50 }
 0x9f7   :  { %v17274_v10 = vmax.f32 %v3303_v14, %v4048_v47  ;;  %v17276_v54 = vmax.f32 %v3304_v32, %v4049_v42  ;;  %13726 = vmatpush3.bf16.msra.mxu1 %v13723_v31  ;;  %v3560_v14 = vld [vmem:[#allocation28] sm:$0xff] }
 0x9f8   :  { %11613 = vmatmul.mubr.msk.f32.gmra.mrb[80].mxu1 %vm3334_vm13, %v3305_v46  ;;  %v17279_v44 = vmax.f32 %v3305_v46, %v4050_v15  ;;  %12915 = vmatprep.subr.mxu1 %v3445_v24  ;;  %v13727_v1 = vpack.c.bf16 %v3561_v26, %v3560_v14  ;;  %v13735_v46 = vpack.c.bf16 %v3680_v13, %v3679_v34  ;;  %v3682_v32 = vld [vmem:[#allocation28 + $0x40] sm:$0xff]  ;;  %v3798_v34 = vld [vmem:[#allocation28 + $0x78] sm:$0xff] }
 0x9f9   :  { %v13739_v11 = vpack.c.bf16 %v3682_v32, %v3681_v33  ;;  %v3799_v13 = vld [vmem:[#allocation28 + $0x80] sm:$0xff] }
 0x9fa   :  { %13736 = vmatprep.subr.bf16.mxu0 %v13735_v46  ;;  %v3564_v32 = vld [vmem:[#allocation28 + $0x20] sm:$0xff] }
 0x9fb   :  { %12916 = vmatpush3.msra.mxu1 %v3445_v24  ;;  %13738 = vmatpush3.bf16.msra.mxu0 %v13735_v46 }
 0x9fc   :  { %13728 = vmatprep.subr.bf16.mxu1 %v13727_v1  ;;  %13740 = vmatprep.subr.bf16.mxu0 %v13739_v11 }
 0x9ff   :  { %13742 = vmatpush3.bf16.msra.mxu0 %v13739_v11 }
 0xa00   :  { %12947 = vmatprep.subr.mxu0 %v3683_v37 }
 0xa03   :  { %12948 = vmatpush3.msra.mxu0 %v3683_v37 }
 0xa04   :  { %13752 = vmatprep.subr.bf16.mxu0 %v17281_v56 }
 0xabf   :  { %v17288_v28 = vpop.f32.mrb[74].mxu1 }
 0xac0   :  { %v3415_v45 = vpop.f32.mrb[75].mxu1 }
 0xac1   :  { %v3416_v27 = vadd.f32 %v3415_v45, %v3331_v40  ;;  %v13743_v45 = vpack.c.bf16 %v3799_v13, %v3798_v34  ;;  %v3801_v34 = vld [vmem:[#allocation28 + $0x90] sm:$0xff]  ;;  %v3920_v13 = vld [vmem:[#allocation28 + $0xb8] sm:$0xff] }
 0xac3   :  { %v17290_v39 = vmax.f32 %v3416_v27, 0.0  ;;  %v17292_v48 = vpop.f32.mrb[76].mxu1 }
 0xac4   :  { %v3421_v22 = vpop.f32.mrb[77].mxu1 }
 0xac5   :  { %v3422_v36 = vadd.f32 %v3421_v22, %v3331_v40  ;;  %12917 = vmatprep.mubr.msk.f32.mxu1 %vm3446_vm14, %v17290_v39  ;;  %v3548_v47 = vrot.slane %v17290_v39, 6  ;;  %v3666_v42 = vrot.slane %v17290_v39, 7  ;;  %v3785_v15 = vrot.slane %v17290_v39, 1 }
 0xac7   :  { %v3437_v52 = vmax.f32 %v3422_v36, 0.0  ;;  %v17296_v53 = vpop.f32.mrb[78].mxu1 }
 0xac8   :  { %v3427_v60 = vpop.f32.mrb[79].mxu1 }
 0xac9   :  { %v3549_v41 = vrot.slane %v3437_v52, 6  ;;  %v3667_v12 = vrot.slane %v3437_v52, 7  ;;  %v3428_v59 = vadd.f32 %v3427_v60, %v3331_v40  ;;  %12918 = vmatmul.mubr.msk.f32.vlgmr.msra.gmra.mrb[82].mxu1 %vm3446_vm14, %v3437_v52  ;;  %v3786_v25 = vrot.slane %v3437_v52, 1  ;;  %v3800_v60 = vld [vmem:[#allocation28 + $0x88] sm:$0xff] }
 0xaca   :  { %13730 = vmatpush3.bf16.msra.mxu1 %v13727_v1  ;;  %v3905_v30 = vrot.slane %v3437_v52, 2  ;;  %v3904_v1 = vrot.slane %v17290_v39, 2 }
 0xacb   :  { %v3438_v31 = vmax.f32 %v3428_v59, 0.0  ;;  %v17302_v24 = vpop.f32.mrb[80].mxu1  ;;  %13732 = vmatprep.subr.bf16.mxu1 %v13731_v58  ;;  %v3554_v14 = vsel %vm2602_vm11, %v3548_v47, %v3549_v41  ;;  %v3672_v26 = vsel %vm1581_vm4, %v3666_v42, %v3667_v12  ;;  %v3791_v46 = vsel %vm1802_vm3, %v3785_v15, %v3786_v25 }
 0xacc   :  { %v3433_v33 = vpop.f32.mrb[81].mxu1  ;;  %v3910_v22 = vsel %vm3025_vm12, %v3904_v1, %v3905_v30 }
 0xacd   :  { %v3787_v11 = vrot.slane %v3438_v31, 1  ;;  %v3906_v37 = vrot.slane %v3438_v31, 2  ;;  %v3434_v16 = vadd.f32 %v3433_v33, %v3331_v40  ;;  %12920 = vmatprep.mubr.msk.f32.mxu1 %vm3446_vm14, %v3438_v31  ;;  %v3550_v38 = vrot.slane %v3438_v31, 6 }
 0xace   :  { %13734 = vmatpush3.bf16.msra.mxu1 %v13731_v58  ;;  %v3668_v27 = vrot.slane %v3438_v31, 7 }
 0xacf   :  { %v3439_v50 = vmax.f32 %v3434_v16, 0.0  ;;  %12931 = vmatprep.subr.mxu1 %v3564_v32  ;;  %v3553_v51 = vsel %vm2602_vm11, %v3549_v41, %v3550_v38  ;;  %v3790_v39 = vsel %vm1802_vm3, %v3786_v25, %v3787_v11  ;;  %v3909_v40 = vsel %vm3025_vm12, %v3905_v30, %v3906_v37  ;;  %v3919_v30 = vld [vmem:[#allocation28 + $0xb0] sm:$0xff] }
 0xad0   :  { %v3671_v36 = vsel %vm1581_vm4, %v3667_v12, %v3668_v27 }
 0xad1   :  { %12921 = vmatmul.mubr.msk.f32.gmra.mrb[84].mxu1 %vm3446_vm14, %v3439_v50  ;;  %v3551_v52 = vrot.slane %v3439_v50, 6  ;;  %v3669_v58 = vrot.slane %v3439_v50, 7  ;;  %v3788_v59 = vrot.slane %v3439_v50, 1  ;;  %v3907_v31 = vrot.slane %v3439_v50, 2 }
 0xad2   :  { %12932 = vmatpush3.msra.mxu1 %v3564_v32  ;;  %v3557_v50 = vmul.f32 %v3554_v14, %v17028_v57  ;;  %v13755_v57 = vpack.c.bf16 %v3920_v13, %v3919_v30 }
 0xad3   :  { %v3555_v41 = vsel %vm2602_vm11, %v3551_v52, %v3548_v47  ;;  %v3673_v25 = vsel %vm1581_vm4, %v3669_v58, %v3666_v42  ;;  %13744 = vmatprep.subr.bf16.mxu1 %v13743_v45  ;;  %v3552_v12 = vsel %vm2602_vm11, %v3550_v38, %v3551_v52  ;;  %v3670_v33 = vsel %vm1581_vm4, %v3668_v27, %v3669_v58 }
 0xad4   :  { %v3556_v32 = vmul.f32 %v3555_v41, %v17026_v55  ;;  %v3674_v16 = vmul.f32 %v3673_v25, %v17034_v2  ;;  %v3675_v47 = vmul.f32 %v3672_v26, %v17036_v63  ;;  %v3789_v42 = vsel %vm1802_vm3, %v3787_v11, %v3788_v59  ;;  %v3802_v26 = vld [vmem:[#allocation28 + $0x98] sm:$0xff]  ;;  %v4056_v11 = vld [vmem:[#allocation29 + $0x8] sm:$0xff] }
 0xad5   :  { %v3908_v18 = vsel %vm3025_vm12, %v3906_v37, %v3907_v31  ;;  %v3792_v38 = vsel %vm1802_vm3, %v3788_v59, %v3785_v15  ;;  %v3911_v27 = vsel %vm3025_vm12, %v3907_v31, %v3904_v1  ;;  %v13747_v55 = vpack.c.bf16 %v3801_v34, %v3800_v60  ;;  %v4055_v1 = vld [vmem:[#allocation29] sm:$0xff] }
 0xad6   :  { %12933 = vmatprep.mubr.msk.f32.mxu1 %vm3446_vm14, %v3556_v32  ;;  %12949 = vmatprep.mubr.msk.f32.mxu0 %vm3446_vm14, %v3674_v16  ;;  %v3558_v2 = vmul.f32 %v3553_v51, %v17030_v61  ;;  %v3676_v63 = vmul.f32 %v3671_v36, %v17038_v6  ;;  %v3559_v15 = vmul.f32 %v3552_v12, %v17032_v49  ;;  %v4057_v49 = vld [vmem:[#allocation29 + $0x10] sm:$0xff]  ;;  %v4059_v51 = vld [vmem:[#allocation29 + $0x20] sm:$0xff]  ;;  %v4060_v36 = vld [vmem:[#allocation29 + $0x28] sm:$0xff] }
 0xad7   :  { %12934 = vmatmul.mubr.msk.f32.vlgmr.msra.gmra.mrb[86].mxu1 %vm3446_vm14, %v3557_v50  ;;  %12950 = vmatmul.mubr.msk.f32.vlgmr.msra.gmra.mrb[76].mxu0 %vm3446_vm14, %v3675_v47  ;;  %v3677_v14 = vmul.f32 %v3670_v33, %v17040_v7  ;;  %v3793_v61 = vmul.f32 %v3791_v46, %v17042_v4  ;;  %v3912_v6 = vmul.f32 %v3910_v22, %v17203_v20  ;;  %v4058_v7 = vld [vmem:[#allocation29 + $0x18] sm:$0xff] }
 0xad8   :  { %13746 = vmatpush3.bf16.msra.mxu1 %v13743_v45  ;;  %13754 = vmatpush3.bf16.msra.mxu0 %v17281_v56  ;;  %v3921_v56 = vld [vmem:[#allocation28 + $0xc0] sm:$0xff]  ;;  %v13759_v37 = vpack.c.bf16 %v4056_v11, %v4055_v1  ;;  %v3794_v45 = vmul.f32 %v3790_v39, %v17045_v19  ;;  %v3913_v4 = vmul.f32 %v3909_v40, %v17210_v0  ;;  %v18974_v39 = vmov 0.0  }
 0xad9   :  { %12936 = vmatprep.mubr.msk.f32.mxu1 %vm3446_vm14, %v3558_v2  ;;  %12952 = vmatprep.mubr.msk.f32.mxu0 %vm3446_vm14, %v3676_v63  ;;  %v3795_v20 = vmul.f32 %v3789_v42, %v17060_v29  ;;  %v13763_v46 = vpack.c.bf16 %v4058_v7, %v4057_v49  ;;  %v3914_v22 = vmul.f32 %v3908_v18, %v17218_v21  ;;  %v4061_v18 = vld [vmem:[#allocation29 + $0x30] sm:$0xff]  ;;  %v4062_v21 = vld [vmem:[#allocation29 + $0x38] sm:$0xff] }
 0xada   :  { %13748 = vmatprep.subr.bf16.mxu1 %v13747_v55  ;;  %13756 = vmatprep.subr.bf16.mxu0 %v13755_v57  ;;  %v3796_v19 = vmul.f32 %v3792_v38, %v17069_v35  ;;  %v3915_v0 = vmul.f32 %v3911_v27, %v17224_v23  ;;  %v13767_v29 = vpack.c.bf16 %v4060_v36, %v4059_v51 }
 0xadb   :  { %12937 = vmatmul.mubr.msk.f32.gmra.mrb[88].mxu1 %vm3446_vm14, %v3559_v15  ;;  %12953 = vmatmul.mubr.msk.f32.gmra.mrb[78].mxu0 %vm3446_vm14, %v3677_v14  ;;  %v13771_v35 = vpack.c.bf16 %v4062_v21, %v4061_v18  ;;  %v3327_v23 = vrot.slane %v17284_v3, %v17230_v8 }
 0xadc   :  { %13750 = vmatpush3.bf16.msra.mxu1 %v13747_v55  ;;  %13758 = vmatpush3.bf16.msra.mxu0 %v13755_v57 }
 0xadd   :  { %12965 = vmatprep.mubr.msk.f32.mxu1 %vm3446_vm14, %v3793_v61  ;;  %12981 = vmatprep.mubr.msk.f32.mxu0 %vm3446_vm14, %v3912_v6  ;;  %v3414_v40 = vadd.f32 %v17288_v28, %v3327_v23  ;;  %v3432_v59 = vadd.f32 %v17302_v24, %v3327_v23 }
 0xade   :  { %12963 = vmatprep.subr.mxu1 %v3802_v26  ;;  %12979 = vmatprep.subr.mxu0 %v3921_v56 }
 0xae0   :  { %12964 = vmatpush3.msra.mxu1 %v3802_v26  ;;  %12980 = vmatpush3.msra.mxu0 %v3921_v56 }
 0xae1   :  { %12966 = vmatmul.mubr.msk.f32.vlgmr.msra.gmra.mrb[90].mxu1 %vm3446_vm14, %v3794_v45  ;;  %12982 = vmatmul.mubr.msk.f32.vlgmr.msra.gmra.mrb[80].mxu0 %vm3446_vm14, %v3913_v4 }
 0xae2   :  { %13760 = vmatprep.subr.bf16.mxu1 %v13759_v37  ;;  %12968 = vmatprep.mubr.msk.f32.mxu1 %vm3446_vm14, %v3795_v20 }
 0xae3   :  { %12984 = vmatprep.mubr.msk.f32.mxu0 %vm3446_vm14, %v3914_v22  ;;  %13762 = vmatpush3.bf16.msra.mxu1 %v13759_v37 }
 0xae4   :  { %13764 = vmatprep.subr.bf16.mxu1 %v13763_v46  ;;  %13775 = vmatprep.subr.bf16.mxu0 %v16029_v17 }
 0xae5   :  { %12969 = vmatmul.mubr.msk.f32.gmra.mrb[92].mxu1 %vm3446_vm14, %v3796_v19  ;;  %12985 = vmatmul.mubr.msk.f32.gmra.mrb[82].mxu0 %vm3446_vm14, %v3915_v0  ;;  %vm6269_vm14 = vcmask 310272  }
 0xae6   :  { %13003 = vmatprep.mubr.msk.f32.mxu1 %vm3334_vm13, %v17272_v5  ;;  %13017 = vmatprep.mubr.msk.f32.mxu0 %vm16030_vm1, %v18974_v39  ;;  %v3420_v5 = vadd.f32 %v17292_v48, %v3327_v23 }
 0xae7   :  { %13766 = vmatpush3.bf16.msra.mxu1 %v13763_v46 }
 0xae8   :  { %13768 = vmatprep.subr.bf16.mxu1 %v13767_v29 }
 0xaeb   :  { %13770 = vmatpush3.bf16.msra.mxu1 %v13767_v29 }
 0xaec   :  { %13772 = vmatprep.subr.bf16.mxu1 %v13771_v35 }
 0xaef   :  { %13774 = vmatpush3.bf16.msra.mxu1 %v13771_v35 }
 0xaf0   :  { %13787 = vmatprep.subr.bf16.mxu1 %v16029_v17 }
 0xaf2   :  { %13004 = vmatmul.mubr.msk.f32.vlgmr.msra.gmra.mrb[94].mxu1 %vm3334_vm13, %v17274_v10 }
 0xaf3   :  { %13006 = vmatprep.mubr.msk.f32.mxu1 %vm3334_vm13, %v17276_v54  ;;  %v3426_v54 = vadd.f32 %v17296_v53, %v3327_v23 }
 0xaf6   :  { %13007 = vmatmul.mubr.msk.f32.gmra.mrb[96].mxu1 %vm3334_vm13, %v17279_v44  ;;  %vm6279_vm13 = vcmask 1045504  }
 0xaf7   :  { %13051 = vmatprep.mubr.msk.f32.mxu1 %vm16030_vm1, %v18974_v39 }
 0xb9c   :  { %v12919_v52 = vpop.f32.mrb[82].mxu1 }
 0xb9d   :  { %v3545_v58 = vadd.f32 %v12919_v52, %v3420_v5  ;;  %v3525_v60 = vpop.f32.mrb[83].mxu1  ;;  %v4168_v5 = vld [vmem:[#allocation11] sm:$0xff]  ;;  %v4469_v52 = vld [vmem:[#allocation22 + $0x8] sm:$0xff] }
 0xb9e   :  { %v3544_v10 = vadd.f32 %v3525_v60, %v3414_v40  ;;  %v4358_v40 = vld [vmem:[#allocation11 + $0x30] sm:$0xff]  ;;  %v4169_v60 = vld [vmem:[#allocation11 + $0x8] sm:$0xff] }
 0xba4   :  { %v12922_v31 = vpop.f32.mrb[84].mxu1 }
 0xba5   :  { %v3547_v44 = vadd.f32 %v12922_v31, %v3432_v59  ;;  %v3535_v41 = vpop.f32.mrb[85].mxu1  ;;  %v4360_v31 = vld [vmem:[#allocation11 + $0x40] sm:$0xff] }
 0xba6   :  { %v3546_v25 = vadd.f32 %v3535_v41, %v3426_v54  ;;  %v4170_v54 = vld [vmem:[#allocation11 + $0x10] sm:$0xff] }
 0xba7   :  { %v4470_v41 = vld [vmem:[#allocation22 + $0x10] sm:$0xff] }
 0xbaa   :  { %v12935_v34 = vpop.f32.mrb[86].mxu1  ;;  %v12951_v30 = vpop.f32.mrb[76].mxu0 }
 0xbab   :  { %v3663_v13 = vadd.f32 %v12935_v34, %v3545_v58  ;;  %v3643_v3 = vpop.f32.mrb[87].mxu1  ;;  %v3762_v12 = vpop.f32.mrb[77].mxu0  ;;  %v4471_v58 = vld [vmem:[#allocation22 + $0x18] sm:$0xff] }
 0xbac   :  { %v3662_v48 = vadd.f32 %v3643_v3, %v3544_v10  ;;  %v4359_v10 = vld [vmem:[#allocation11 + $0x38] sm:$0xff]  ;;  %v13793_v59 = vpack.c.bf16 %v4471_v58, %v4469_v52 }
 0xbad   :  { %v3782_v33 = vadd.f32 %v12951_v30, %v3663_v13  ;;  %v4475_v34 = vld [vmem:[#allocation22 + $0x38] sm:$0xff] }
 0xbae   :  { %v3781_v28 = vadd.f32 %v3762_v12, %v3662_v48  ;;  %v12938_v32 = vpop.f32.mrb[88].mxu1  ;;  %v12954_v16 = vpop.f32.mrb[78].mxu0  ;;  %v4262_v30 = vld [vmem:[#allocation11 + $0x18] sm:$0xff]  ;;  %v4472_v12 = vld [vmem:[#allocation22 + $0x20] sm:$0xff]  ;;  %v4474_v48 = vld [vmem:[#allocation22 + $0x30] sm:$0xff] }
 0xbaf   :  { %v3665_v50 = vadd.f32 %v12938_v32, %v3547_v44  ;;  %v3653_v47 = vpop.f32.mrb[89].mxu1  ;;  %v3772_v42 = vpop.f32.mrb[79].mxu0  ;;  %v4468_v44 = vld [vmem:[#allocation22] sm:$0xff] }
 0xbb0   :  { %v3664_v24 = vadd.f32 %v3653_v47, %v3546_v25  ;;  %v4473_v25 = vld [vmem:[#allocation22 + $0x28] sm:$0xff]  ;;  %v13795_v13 = vpack.c.bf16 %v4470_v41, %v4468_v44  ;;  %v4263_v32 = vld [vmem:[#allocation11 + $0x20] sm:$0xff] }
 0xbb1   :  { %v3784_v38 = vadd.f32 %v12954_v16, %v3665_v50  ;;  %v13797_v3 = vpack.c.bf16 %v4475_v34, %v4473_v25  ;;  %v13799_v16 = vpack.c.bf16 %v4474_v48, %v4472_v12  ;;  %v4476_v47 = vld [vmem:[#allocation22 + $0x40] sm:$0xff] }
 0xbb2   :  { %v3783_v53 = vadd.f32 %v3772_v42, %v3664_v24  ;;  %v4478_v42 = vld [vmem:[#allocation22 + $0x50] sm:$0xff]  ;;  %v4481_v24 = vld [vmem:[#allocation22 + $0x68] sm:$0xff] }
 0xbb4   :  { %v12967_v27 = vpop.f32.mrb[90].mxu1  ;;  %v12983_v55 = vpop.f32.mrb[80].mxu0 }
 0xbb5   :  { %v3901_v57 = vadd.f32 %v12967_v27, %v3782_v33  ;;  %v3881_v2 = vpop.f32.mrb[91].mxu1  ;;  %v4000_v63 = vpop.f32.mrb[81].mxu0  ;;  %v4477_v33 = vld [vmem:[#allocation22 + $0x48] sm:$0xff]  ;;  %v13803_v27 = vpack.c.bf16 %v4478_v42, %v4476_v47 }
 0xbb6   :  { %v3900_v15 = vadd.f32 %v3881_v2, %v3781_v28  ;;  %v4479_v28 = vld [vmem:[#allocation22 + $0x58] sm:$0xff]  ;;  %v4482_v2 = vld [vmem:[#allocation22 + $0x70] sm:$0xff] }
 0xbb7   :  { %v4020_v14 = vadd.f32 %v12983_v55, %v3901_v57  ;;  %v13801_v50 = vpack.c.bf16 %v4479_v28, %v4477_v33  ;;  %v4480_v57 = vld [vmem:[#allocation22 + $0x60] sm:$0xff] }
 0xbb8   :  { %v4019_v26 = vadd.f32 %v4000_v63, %v3900_v15  ;;  %v12970_v61 = vpop.f32.mrb[92].mxu1  ;;  %v12986_v6 = vpop.f32.mrb[82].mxu0  ;;  %v13807_v63 = vpack.c.bf16 %v4482_v2, %v4480_v57  ;;  %v4485_v15 = vld [vmem:[#allocation22 + $0x88] sm:$0xff] }
 0xbb9   :  { %v3903_v56 = vadd.f32 %v12970_v61, %v3784_v38  ;;  %v3891_v1 = vpop.f32.mrb[93].mxu1  ;;  %v4010_v11 = vpop.f32.mrb[83].mxu0  ;;  %v4483_v38 = vld [vmem:[#allocation22 + $0x78] sm:$0xff]  ;;  %v4484_v61 = vld [vmem:[#allocation22 + $0x80] sm:$0xff] }
 0xbba   :  { %v3902_v49 = vadd.f32 %v3891_v1, %v3783_v53  ;;  %v4264_v53 = vld [vmem:[#allocation11 + $0x28] sm:$0xff]  ;;  %v13805_v55 = vpack.c.bf16 %v4483_v38, %v4481_v24 }
 0xbbb   :  { %v4022_v7 = vadd.f32 %v12986_v6, %v3903_v56  ;;  %v4486_v6 = vld [vmem:[#allocation22 + $0x90] sm:$0xff]  ;;  %v4489_v1 = vld [vmem:[#allocation22 + $0xa8] sm:$0xff] }
 0xbbc   :  { %v4021_v37 = vadd.f32 %v4010_v11, %v3902_v49  ;;  %v13811_v56 = vpack.c.bf16 %v4486_v6, %v4484_v61  ;;  %v4491_v11 = vld [vmem:[#allocation22 + $0xb8] sm:$0xff] }
 0xbbd   :  { %v13813_v49 = vpack.c.bf16 %v4491_v11, %v4489_v1 }
 0xbc5   :  { %v13005_v45 = vpop.f32.mrb[94].mxu1 }
 0xbc6   :  { %v4161_v4 = vadd.f32 %v13005_v45, %v4020_v14  ;;  %v4141_v20 = vpop.f32.mrb[95].mxu1  ;;  %v4487_v14 = vld [vmem:[#allocation22 + $0x98] sm:$0xff] }
 0xbc7   :  { %v4160_v46 = vadd.f32 %v4141_v20, %v4019_v26  ;;  %v13809_v26 = vpack.c.bf16 %v4487_v14, %v4485_v15  ;;  %v4495_v20 = vld [vmem:[#allocation22 + $0xd8] sm:$0xff] }
 0xbc8   :  { %v4165_v22 = vmax.f32 %v4161_v4, 0.0  ;;  %v4493_v4 = vld [vmem:[#allocation22 + $0xc8] sm:$0xff] }
 0xbc9   :  { %v4164_v51 = vmax.f32 %v4160_v46, 0.0  ;;  %v13008_v36 = vpop.f32.mrb[96].mxu1  ;;  %v13817_v46 = vpack.c.bf16 %v4495_v20, %v4493_v4 }
 0xbca   :  { %v4163_v19 = vadd.f32 %v13008_v36, %v4022_v7  ;;  %v4151_v0 = vpop.f32.mrb[97].mxu1  ;;  %v4488_v7 = vld [vmem:[#allocation22 + $0xa0] sm:$0xff] }
 0xbcb   :  { %v13776_v29 = vpack.c.bf16 %v4165_v22, %v4164_v51  ;;  %v4162_v18 = vadd.f32 %v4151_v0, %v4021_v37  ;;  %v4490_v37 = vld [vmem:[#allocation22 + $0xb0] sm:$0xff]  ;;  %v4492_v22 = vld [vmem:[#allocation22 + $0xc0] sm:$0xff] }
 0xbcc   :  { %v4167_v21 = vmax.f32 %v4163_v19, 0.0  ;;  %v13815_v45 = vpack.c.bf16 %v4490_v37, %v4488_v7  ;;  %v4494_v51 = vld [vmem:[#allocation22 + $0xd0] sm:$0xff]  ;;  %v4497_v19 = vld [vmem:[#allocation22 + $0xe8] sm:$0xff]  ;;  %v4496_v0 = vld [vmem:[#allocation22 + $0xe0] sm:$0xff] }
 0xbcd   :  { %v4166_v35 = vmax.f32 %v4162_v18, 0.0  ;;  %13777 = vmatpush3.bf16.msra.mxu0 %v13776_v29  ;;  %13789 = vmatpush3.bf16.msra.mxu1 %v13776_v29  ;;  %v13819_v36 = vpack.c.bf16 %v4494_v51, %v4492_v22  ;;  %v4608_v18 = vld [vmem:[#allocation19 + $0x48] sm:$0xff] }
 0xbce   :  { %13778 = vmatprep.subr.bf16.mxu0 %v16029_v17  ;;  %13790 = vmatprep.subr.bf16.mxu1 %v16029_v17 }
 0xbcf   :  { %v13779_v23 = vpack.c.bf16 %v4167_v21, %v4166_v35  ;;  %v17425_v35 = vpop.permute.xlu0 %4961 }
 0xbd1   :  { %13780 = vmatpush3.bf16.msra.mxu0 %v13779_v23  ;;  %13792 = vmatpush3.bf16.msra.mxu1 %v13779_v23 }
 0xbd2   :  { %13781 = vmatprep.subr.bf16.mxu0 %v16029_v17  ;;  %13821 = vmatprep.subr.bf16.mxu1 %v16029_v17 }
 0xbd4   :  { %13018 = vmatmul.mubr.msk.f32.vlgmr.msra.gmra.mrb[84].mxu0 %vm4171_vm15, %v4168_v5  ;;  %13052 = vmatmul.mubr.msk.f32.vlgmr.msra.gmra.mrb[98].mxu1 %vm4171_vm15, %v4358_v40 }
 0xbd5   :  { %13783 = vmatpush3.bf16.msra.mxu0 %v13776_v29  ;;  %13020 = vmatprep.mubr.msk.f32.mxu0 %vm16030_vm1, %v18974_v39  ;;  %v4607_v29 = vld [vmem:[#allocation19 + $0x40] sm:$0xff] }
 0xbd6   :  { %13784 = vmatprep.subr.bf16.mxu0 %v16029_v17  ;;  %13054 = vmatprep.mubr.msk.f32.mxu1 %vm16030_vm1, %v18974_v39  ;;  %v13822_v21 = vpack.c.bf16 %v4608_v18, %v4607_v29 }
 0xbd8   :  { %13021 = vmatmul.mubr.msk.f32.gmra.mrb[86].mxu0 %vm4171_vm15, %v4169_v60  ;;  %13055 = vmatmul.mubr.msk.f32.gmra.mrb[100].mxu1 %vm4171_vm15, %v4359_v10 }
 0xbd9   :  { %13786 = vmatpush3.bf16.msra.mxu0 %v13779_v23  ;;  %13023 = vmatprep.mubr.msk.f32.mxu0 %vm16030_vm1, %v18974_v39 }
 0xbda   :  { %13057 = vmatprep.mubr.msk.f32.mxu1 %vm16030_vm1, %v18974_v39  ;;  %13794 = vmatprep.subr.bf16.mxu0 %v13793_v59 }
 0xbdb   :  { %13823 = vmatpush3.bf16.msra.mxu1 %v13822_v21  ;;  %v4609_v21 = vld [vmem:[#allocation19 + $0x50] sm:$0xff] }
 0xbdc   :  { %13024 = vmatmul.mubr.msk.f32.gmra.mrb[88].mxu0 %vm4171_vm15, %v4170_v54  ;;  %13058 = vmatmul.mubr.msk.f32.gmra.mrb[102].mxu1 %vm4171_vm15, %v4360_v31  ;;  %v17427_v54 = vpop.permute.xlu0 %4719  ;;  %v17429_v31 = vpop.permute.xlu1 %4714 }
 0xbdd   :  { %13034 = vmatprep.mubr.msk.f32.mxu0 %vm16030_vm1, %v18974_v39  ;;  %13068 = vmatprep.mubr.msk.f32.mxu1 %vm16030_vm1, %v18974_v39 }
 0xbde   :  { %13824 = vmatprep.subr.bf16.mxu1 %v16029_v17 }
 0xbe0   :  { %13035 = vmatmul.mubr.msk.f32.vlgmr.msra.gmra.mrb[90].mxu0 %vm4171_vm15, %v4262_v30  ;;  %v17431_v12 = vpop.permute.xlu0 %4837  ;;  %v17433_v48 = vpop.permute.xlu1 %4724 }
 0xbe1   :  { %13037 = vmatprep.mubr.msk.f32.mxu0 %vm16030_vm1, %v18974_v39  ;;  %13796 = vmatpush1.bf16.msra.mxu0 %v13795_v13 }
 0xbe2   :  { %13798 = vmatprep.subr.bf16.mxu0 %v13797_v3 }
 0xbe4   :  { %13038 = vmatmul.mubr.msk.f32.gmra.mrb[92].mxu0 %vm4171_vm15, %v4263_v32  ;;  %v17437_v47 = vpop.permute.xlu0 %4966  ;;  %v17439_v38 = vpop.permute.xlu1 %4842 }
 0xbe5   :  { %13040 = vmatprep.mubr.msk.f32.mxu0 %vm16030_vm1, %v18974_v39  ;;  %13800 = vmatpush1.bf16.msra.mxu0 %v13799_v16 }
 0xbe6   :  { %13802 = vmatprep.subr.bf16.mxu0 %v13801_v50 }
 0xbe8   :  { %13041 = vmatmul.mubr.msk.f32.gmra.mrb[94].mxu0 %vm4171_vm15, %v4264_v53  ;;  %v17452_v1 = vpop.permute.xlu0 %4971  ;;  %v17454_v11 = vpop.permute.xlu1 %4847  ;;  %vm8002_vm15 = vcmask 31744  }
 0xbe9   :  { %13804 = vmatpush1.bf16.msra.mxu0 %v13803_v27  ;;  %4584 = vmatprep.mubr.f32.mxu0 %v18974_v39 }
 0xbea   :  { %13806 = vmatprep.subr.bf16.mxu0 %v13805_v55 }
 0xbed   :  { %13808 = vmatpush1.bf16.msra.mxu0 %v13807_v63 }
 0xbee   :  { %13810 = vmatprep.subr.bf16.mxu0 %v13809_v26 }
 0xbf1   :  { %13812 = vmatpush1.bf16.msra.mxu0 %v13811_v56 }
 0xbf2   :  { %13814 = vmatprep.subr.bf16.mxu0 %v13813_v49 }
 0xbf5   :  { %13816 = vmatpush1.bf16.msra.mxu0 %v13815_v45 }
 0xbf6   :  { %13818 = vmatprep.subr.bf16.mxu0 %v13817_v46 }
 0xbf9   :  { %13820 = vmatpush1.bf16.msra.mxu0 %v13819_v36 }
 0xbfa   :  { %4548 = vmatprep.subr.mxu0 %v4497_v19 }
 0xbfd   :  { %4549 = vmatpush1.msra.mxu0 %v4496_v0 }
 0xbfe   :  { %13842 = vmatprep.subr.bf16.mxu0 %v16029_v17 }
 0xca7   :  { %v4247_v23 = vpop.f32.mrb[84].mxu0  ;;  %v4436_v5 = vpop.f32.mrb[98].mxu1 }
 0xca8   :  { %v13019_v40 = vpop.f32.mrb[85].mxu0  ;;  %v13053_v52 = vpop.f32.mrb[99].mxu1 }
 0xca9   :  { %v4978_v40 = vld [vmem:[#allocation19 + $0x60] sm:$0xff]  ;;  %v4979_v52 = vld [vmem:[#allocation19 + $0x68] sm:$0xff] }
 0xcab   :  { %v4252_v58 = vpop.f32.mrb[86].mxu0  ;;  %v4441_v60 = vpop.f32.mrb[100].mxu1 }
 0xcac   :  { %v13022_v10 = vpop.f32.mrb[87].mxu0  ;;  %v13056_v59 = vpop.f32.mrb[101].mxu1 }
 0xcad   :  { %v4981_v10 = vld [vmem:[#allocation19 + $0x78] sm:$0xf] }
 0xcaf   :  { %v4257_v44 = vpop.f32.mrb[88].mxu0  ;;  %v4446_v41 = vpop.f32.mrb[102].mxu1 }
 0xcb0   :  { %v13025_v25 = vpop.f32.mrb[89].mxu0  ;;  %v13059_v34 = vpop.f32.mrb[103].mxu1 }
 0xcb1   :  { %v4730_v34 = vld [vmem:[#allocation19] sm:$0xff] }
 0xcb3   :  { %v4340_v30 = vpop.f32.mrb[90].mxu0 }
 0xcb4   :  { %v4354_v13 = vmax.f32 %v4247_v23, %v4340_v30  ;;  %v13036_v3 = vpop.f32.mrb[91].mxu0  ;;  %v4610_v23 = vld [vmem:[#allocation19 + $0x58] sm:$0xf]  ;;  %v4731_v30 = vld [vmem:[#allocation19 + $0x8] sm:$0xff] }
 0xcb6   :  { %v4450_v33 = vmax.f32 %v4354_v13, %v4436_v5  ;;  %v13825_v5 = vpack.c.bf16 %v4610_v23, %v4609_v21 }
 0xcb7   :  { %v4345_v28 = vpop.f32.mrb[92].mxu0 }
 0xcb8   :  { %v4355_v32 = vmax.f32 %v4252_v58, %v4345_v28  ;;  %v13039_v16 = vpop.f32.mrb[93].mxu0  ;;  %11656 = vmatmul.mubr.msk.f32.vlgmr.msra.gmra.mrb[96].mxu0 %vm4510_vm0, %v4450_v33  ;;  %v5201_v42 = vrot.slane %v4450_v33, 7  ;;  %v5210_v53 = vrot.slane %v4450_v33, 1  ;;  %13827 = vmatpush3.bf16.msk.msra.mxu1 %vm17088_vm9, %v13825_v5  ;;  %v13843_v58 = vpack.c.bf16 %v4979_v52, %v4978_v40 }
 0xcb9   :  { %4590 = vmatprep.mubr.f32.mxu0 %v18974_v39  ;;  %13828 = vmatprep.subr.bf16.mxu1 %v16029_v17 }
 0xcba   :  { %v4451_v50 = vmax.f32 %v4355_v32, %v4441_v60  ;;  %13844 = vmatpush3.bf16.msra.mxu0 %v13843_v58  ;;  %v4980_v60 = vld [vmem:[#allocation19 + $0x70] sm:$0xff]  ;;  %v4854_v58 = vld [vmem:[#allocation19 + $0x20] sm:$0xff] }
 0xcbb   :  { %v4350_v24 = vpop.f32.mrb[94].mxu0  ;;  %13845 = vmatprep.subr.bf16.mxu0 %v16029_v17  ;;  %v13846_v59 = vpack.c.bf16 %v4981_v10, %v4980_v60  ;;  %v4855_v60 = vld [vmem:[#allocation19 + $0x28] sm:$0xff] }
 0xcbc   :  { %v5202_v27 = vrot.slane %v4451_v50, 7  ;;  %v5211_v55 = vrot.slane %v4451_v50, 1  ;;  %v4356_v57 = vmax.f32 %v4257_v44, %v4350_v24  ;;  %v13042_v2 = vpop.f32.mrb[95].mxu0  ;;  %11657 = vmatmul.mubr.msk.f32.gmra.mrb[98].mxu0 %vm4510_vm0, %v4451_v50  ;;  %v17481_v44 = vld [vmem:[#allocation40 + $0x7] sm:$0x3] }
 0xcbd   :  { %4596 = vmatprep.mubr.f32.mxu0 %v18974_v39 }
 0xcbe   :  { %v5214_v63 = vsel %vm1802_vm3, %v5210_v53, %v5211_v55  ;;  %v4452_v15 = vmax.f32 %v4356_v57, %v4446_v41  ;;  %v5205_v14 = vsel %vm1581_vm4, %v5201_v42, %v5202_v27  ;;  %13848 = vmatpush3.bf16.msk.msra.mxu0 %vm17088_vm9, %v13846_v59  ;;  %v4507_v41 = vrot.slane %v17481_v44, %v17097_v9 }
 0xcbf   :  { %v5216_v6 = vmul.f32 %v5214_v63, %v17425_v35  ;;  %v5208_v56 = vmul.f32 %v5205_v14, %v17439_v38  ;;  %13856 = vmatprep.subr.bf16.mxu0 %v16029_v17  ;;  %v5225_v63 = vld [vmem:[#allocation20] sm:$0xff] }
 0xcc0   :  { %v5203_v26 = vrot.slane %v4452_v15, 7  ;;  %v5212_v61 = vrot.slane %v4452_v15, 1  ;;  %11658 = vmatmul.mubr.msk.f32.gmra.mrb[100].mxu0 %vm4510_vm0, %v4452_v15 }
 0xcc1   :  { %13119 = vmatprep.mubr.msk.f32.mxu0 %vm16030_vm1, %v18974_v39 }
 0xcc2   :  { %v5206_v49 = vsel %vm1581_vm4, %v5203_v26, %v5201_v42  ;;  %v5213_v7 = vsel %vm1802_vm3, %v5211_v55, %v5212_v61  ;;  %v5204_v37 = vsel %vm1581_vm4, %v5202_v27, %v5203_v26  ;;  %v5215_v45 = vsel %vm1802_vm3, %v5212_v61, %v5210_v53  ;;  %v4733_v42 = vld [vmem:[#allocation19 + $0x18] sm:$0xf] }
 0xcc3   :  { %v5207_v4 = vmul.f32 %v5206_v49, %v17431_v12  ;;  %v5217_v20 = vmul.f32 %v5213_v7, %v17437_v47  ;;  %v5209_v46 = vmul.f32 %v5204_v37, %v17454_v11  ;;  %v5218_v22 = vmul.f32 %v5215_v45, %v17452_v1 }
 0xcc5   :  { %v5219_v51 = vmax.f32 %v5207_v4, %v5216_v6  ;;  %v5220_v36 = vmax.f32 %v5208_v56, %v5217_v20  ;;  %v5221_v19 = vmax.f32 %v5209_v46, %v5218_v22  ;;  %v5227_v20 = vld [vmem:[#allocation20 + $0x10] sm:$0xff]  ;;  %v5228_v46 = vld [vmem:[#allocation20 + $0x18] sm:$0xff] }
 0xcc6   :  { %v13860_v52 = vpack.c.bf16 %v5228_v46, %v5227_v20 }
 0xcc7   :  { %v17468_v0 = vmax.f32 %v4450_v33, %v5219_v51  ;;  %v17470_v29 = vmax.f32 %v4451_v50, %v5220_v36  ;;  %v17472_v18 = vmax.f32 %v4452_v15, %v5221_v19  ;;  %v13829_v33 = vpack.c.bf16 %v4731_v30, %v4730_v34  ;;  %v4732_v50 = vld [vmem:[#allocation19 + $0x10] sm:$0xff]  ;;  %v5226_v15 = vld [vmem:[#allocation20 + $0x8] sm:$0xff] }
 0xcc8   :  { %v13832_v27 = vpack.c.bf16 %v4733_v42, %v4732_v50  ;;  %v13857_v4 = vpack.c.bf16 %v5226_v15, %v5225_v63 }
 0xd8b   :  { %v17485_v25 = vpop.f32.mrb[96].mxu0 }
 0xd8c   :  { %v4588_v13 = vpop.f32.mrb[97].mxu0 }
 0xd8d   :  { %v4589_v3 = vadd.f32 %v4588_v13, %v4507_v41 }
 0xd8f   :  { %v17487_v28 = vmax.f32 %v4589_v3, 0.0  ;;  %v17489_v32 = vpop.f32.mrb[98].mxu0 }
 0xd90   :  { %v4594_v16 = vpop.f32.mrb[99].mxu0 }
 0xd91   :  { %13069 = vmatmul.mubr.msk.f32.vlgmr.msra.gmra.mrb[104].mxu1 %vm2492_vm10, %v17487_v28  ;;  %v4595_v24 = vadd.f32 %v4594_v16, %v4507_v41  ;;  %v4706_v55 = vrot.slane %v17487_v28, 6  ;;  %v4829_v14 = vrot.slane %v17487_v28, 7  ;;  %v4953_v26 = vrot.slane %v17487_v28, 1 }
 0xd92   :  { %13071 = vmatprep.mubr.msk.f32.mxu1 %vm16030_vm1, %v18974_v39  ;;  %13830 = vmatpush3.bf16.msra.mxu1 %v13829_v33  ;;  %v5077_v61 = vrot.slane %v17487_v28, 2  ;;  %v5229_v33 = vld [vmem:[#allocation20 + $0x20] sm:$0xff]  ;;  %v5230_v28 = vld [vmem:[#allocation20 + $0x28] sm:$0xff]  ;;  %v13836_v16 = vpack.c.bf16 %v4855_v60, %v4854_v58 }
 0xd93   :  { %v17495_v53 = vpop.f32.mrb[100].mxu0  ;;  %13831 = vmatprep.subr.bf16.mxu1 %v16029_v17  ;;  %v4604_v57 = vmax.f32 %v4595_v24, 0.0  ;;  %v4856_v24 = vld [vmem:[#allocation19 + $0x30] sm:$0xff]  ;;  %v13863_v63 = vpack.c.bf16 %v5230_v28, %v5229_v33  ;;  %v5237_v58 = vld [vmem:[#allocation20 + $0x60] sm:$0xff]  ;;  %v5238_v60 = vld [vmem:[#allocation20 + $0x68] sm:$0xff] }
 0xd94   :  { %v4600_v2 = vpop.f32.mrb[101].mxu0  ;;  %v5338_v33 = vld [vmem:[#allocation35 + $0x18] sm:$0xff] }
 0xd95   :  { %v4601_v6 = vadd.f32 %v4600_v2, %v4507_v41  ;;  %v4954_v56 = vrot.slane %v4604_v57, 1  ;;  %v5078_v49 = vrot.slane %v4604_v57, 2  ;;  %13072 = vmatmul.mubr.msk.f32.gmra.mrb[106].mxu1 %vm2492_vm10, %v4604_v57  ;;  %v4707_v7 = vrot.slane %v4604_v57, 6 }
 0xd96   :  { %v4830_v37 = vrot.slane %v4604_v57, 7  ;;  %13074 = vmatprep.mubr.msk.f32.mxu1 %vm16030_vm1, %v18974_v39  ;;  %13834 = vmatpush3.bf16.msk.msra.mxu1 %vm17088_vm9, %v13832_v27  ;;  %v4857_v27 = vld [vmem:[#allocation19 + $0x38] sm:$0xf] }
 0xd97   :  { %v4605_v45 = vmax.f32 %v4601_v6, 0.0  ;;  %v4957_v22 = vsel %vm1802_vm3, %v4953_v26, %v4954_v56  ;;  %v17511_v51 = vsel %vm3025_vm12, %v5077_v61, %v5078_v49  ;;  %v4710_v36 = vsel %vm2602_vm11, %v4706_v55, %v4707_v7  ;;  %13835 = vmatprep.subr.bf16.mxu1 %v16029_v17 }
 0xd98   :  { %v17518_v19 = vsel %vm1581_vm4, %v4829_v14, %v4830_v37  ;;  %v4974_v5 = vmul.f32 %v17425_v35, %v4957_v22  ;;  %v4728_v2 = vmul.f32 %v17427_v54, %v4710_v36  ;;  %v5104_v22 = vld [vmem:[#allocation19 + $0x90] sm:$0xff]  ;;  %v5105_v36 = vld [vmem:[#allocation19 + $0x98] sm:$0xf] }
 0xd99   :  { %v4708_v21 = vrot.slane %v4605_v45, 6  ;;  %v4831_v23 = vrot.slane %v4605_v45, 7  ;;  %v4955_v40 = vrot.slane %v4605_v45, 1  ;;  %13075 = vmatmul.mubr.msk.f32.gmra.mrb[108].mxu1 %vm2492_vm10, %v4605_v45  ;;  %v5079_v10 = vrot.slane %v4605_v45, 2  ;;  %v5234_v45 = vld [vmem:[#allocation20 + $0x48] sm:$0xff] }
 0xd9a   :  { %13120 = vmatmul.mubr.msk.f32.vlgmr.msra.gmra.mrb[102].mxu0 %vm2492_vm10, %v4974_v5  ;;  %13085 = vmatprep.mubr.msk.f32.mxu1 %vm16030_vm1, %v18974_v39  ;;  %v13853_v5 = vpack.c.bf16 %v5105_v36, %v5104_v22  ;;  %v5351_v22 = vld [vmem:[#allocation35 + $0x80] sm:$0xff]  ;;  %v5353_v36 = vld [vmem:[#allocation35 + $0x90] sm:$0xff] }
 0xd9b   :  { %v4711_v59 = vsel %vm2602_vm11, %v4708_v21, %v4706_v55  ;;  %v4834_v41 = vsel %vm1581_vm4, %v4831_v23, %v4829_v14  ;;  %v4956_v34 = vsel %vm1802_vm3, %v4954_v56, %v4955_v40  ;;  %13858 = vmatpush3.bf16.msra.mxu0 %v13857_v4  ;;  %13122 = vmatprep.mubr.msk.f32.mxu0 %vm16030_vm1, %v18974_v39  ;;  %v5231_v14 = vld [vmem:[#allocation20 + $0x30] sm:$0xff] }
 0xd9c   :  { %v4727_v30 = vmul.f32 %v17429_v31, %v4711_v59  ;;  %v4975_v13 = vmul.f32 %v17437_v47, %v4956_v34  ;;  %v4958_v3 = vsel %vm1802_vm3, %v4955_v40, %v4953_v26  ;;  %13859 = vmatprep.subr.bf16.mxu0 %v16029_v17  ;;  %v4709_v50 = vsel %vm2602_vm11, %v4707_v7, %v4708_v21  ;;  %v5232_v26 = vld [vmem:[#allocation20 + $0x38] sm:$0xff]  ;;  %v5103_v7 = vld [vmem:[#allocation19 + $0x88] sm:$0xff]  ;;  %v5235_v21 = vld [vmem:[#allocation20 + $0x50] sm:$0xff] }
 0xd9d   :  { %v4832_v42 = vsel %vm1581_vm4, %v4830_v37, %v4831_v23  ;;  %v17545_v55 = vsel %vm3025_vm12, %v5078_v49, %v5079_v10  ;;  %v17549_v57 = vsel %vm3025_vm12, %v5079_v10, %v5077_v61  ;;  %v4976_v15 = vmul.f32 %v17452_v1, %v4958_v3  ;;  %v5102_v49 = vld [vmem:[#allocation19 + $0x80] sm:$0xff]  ;;  %v5236_v23 = vld [vmem:[#allocation20 + $0x58] sm:$0xff]  ;;  %v5239_v34 = vld [vmem:[#allocation20 + $0x70] sm:$0xff] }
 0xd9e   :  { %13086 = vmatmul.mubr.msk.f32.vlgmr.msra.gmra.mrb[110].mxu1 %vm2492_vm10, %v4727_v30  ;;  %13123 = vmatmul.mubr.msk.f32.gmra.mrb[104].mxu0 %vm2492_vm10, %v4975_v13  ;;  %v13839_v61 = vpack.c.bf16 %v4857_v27, %v4856_v24  ;;  %v4729_v6 = vmul.f32 %v17433_v48, %v4709_v50  ;;  %v13866_v56 = vpack.c.bf16 %v5232_v26, %v5231_v14  ;;  %v5233_v37 = vld [vmem:[#allocation20 + $0x40] sm:$0xff]  ;;  %v17599_v30 = vpop.permute.xlu0 %5090  ;;  %v5337_v50 = vld [vmem:[#allocation35 + $0x10] sm:$0xff]  ;;  %v5343_v14 = vld [vmem:[#allocation35 + $0x40] sm:$0xff] }
 0xd9f   :  { %13088 = vmatprep.mubr.msk.f32.mxu1 %vm16030_vm1, %v18974_v39  ;;  %13861 = vmatpush3.bf16.msra.mxu0 %v13860_v52  ;;  %v13850_v4 = vpack.c.bf16 %v5103_v7, %v5102_v49  ;;  %v4850_v20 = vmul.f32 %v17431_v12, %v4834_v41  ;;  %v13869_v46 = vpack.c.bf16 %v5234_v45, %v5233_v37  ;;  %v5342_v24 = vld [vmem:[#allocation35 + $0x38] sm:$0xff]  ;;  %v5345_v26 = vld [vmem:[#allocation35 + $0x50] sm:$0xff]  ;;  %v5347_v7 = vld [vmem:[#allocation35 + $0x60] sm:$0xff] }
 0xda0   :  { %13125 = vmatprep.mubr.msk.f32.mxu0 %vm16030_vm1, %v18974_v39  ;;  %13862 = vmatprep.subr.bf16.mxu0 %v16029_v17  ;;  %v4851_v40 = vmul.f32 %v17439_v38, %v17518_v19  ;;  %v13872_v52 = vpack.c.bf16 %v5236_v23, %v5235_v21  ;;  %v4852_v10 = vmul.f32 %v17454_v11, %v4832_v42  ;;  %v17591_v19 = vpop.permute.xlu1 %5085  ;;  %v5340_v42 = vld [vmem:[#allocation35 + $0x28] sm:$0xff]  ;;  %v5349_v37 = vld [vmem:[#allocation35 + $0x70] sm:$0xff] }
 0xda1   :  { %13837 = vmatpush3.bf16.msra.mxu1 %v13836_v16  ;;  %v13875_v59 = vpack.c.bf16 %v5238_v60, %v5237_v58  ;;  %v5098_v41 = vmul.f32 %v17591_v19, %v17511_v51  ;;  %v5099_v13 = vmul.f32 %v17599_v30, %v17545_v55  ;;  %v5335_v16 = vld [vmem:[#allocation35] sm:$0xff]  ;;  %v13881_v27 = vpack.c.bf16 %v5342_v24, %v5340_v42  ;;  %v5356_v23 = vld [vmem:[#allocation35 + $0xa8] sm:$0xff]  ;;  %v5357_v58 = vld [vmem:[#allocation35 + $0xb0] sm:$0xff] }
 0xda2   :  { %13089 = vmatmul.mubr.msk.f32.gmra.mrb[112].mxu1 %vm2492_vm10, %v4728_v2  ;;  %13838 = vmatprep.subr.bf16.mxu1 %v16029_v17  ;;  %v5339_v55 = vld [vmem:[#allocation35 + $0x20] sm:$0xff]  ;;  %v13891_v45 = vpack.c.bf16 %v5349_v37, %v5347_v7  ;;  %v13895_v21 = vpack.c.bf16 %v5353_v36, %v5351_v22  ;;  %v5466_v42 = vld [vmem:[#allocation32 + $0x50] sm:$0xff]  ;;  %v5467_v24 = vld [vmem:[#allocation32 + $0x58] sm:$0xff] }
 0xda3   :  { %13126 = vmatmul.mubr.msk.f32.gmra.mrb[106].mxu0 %vm2492_vm10, %v4976_v15  ;;  %13091 = vmatprep.mubr.msk.f32.mxu1 %vm16030_vm1, %v18974_v39 }
 0xda4   :  { %13864 = vmatpush3.bf16.msra.mxu0 %v13863_v63  ;;  %13175 = vmatprep.mubr.msk.f32.mxu0 %vm16030_vm1, %v18974_v39  ;;  %v17611_v51 = vpop.permute.xlu1 %5095  ;;  %v5344_v63 = vld [vmem:[#allocation35 + $0x48] sm:$0xff] }
 0xda5   :  { %13865 = vmatprep.subr.bf16.mxu0 %v16029_v17  ;;  %13841 = vmatpush3.bf16.msk.msra.mxu1 %vm17088_vm9, %v13839_v61  ;;  %v5100_v3 = vmul.f32 %v17611_v51, %v17549_v57  ;;  %v5341_v57 = vld [vmem:[#allocation35 + $0x30] sm:$0xff]  ;;  %v13887_v61 = vpack.c.bf16 %v5345_v26, %v5343_v14 }
 0xda6   :  { %13092 = vmatmul.mubr.msk.f32.gmra.mrb[114].mxu1 %vm2492_vm10, %v4729_v6  ;;  %13849 = vmatprep.subr.bf16.mxu1 %v16029_v17  ;;  %v13883_v2 = vpack.c.bf16 %v5341_v57, %v5339_v55  ;;  %v5348_v6 = vld [vmem:[#allocation35 + $0x68] sm:$0xff]  ;;  %v4503_v55 = vrot.slane %v17481_v44, %v17230_v8 }
 0xda7   :  { %13102 = vmatprep.mubr.msk.f32.mxu1 %vm16030_vm1, %v18974_v39 }
 0xda8   :  { %13867 = vmatpush3.bf16.msra.mxu0 %v13866_v56  ;;  %v5350_v56 = vld [vmem:[#allocation35 + $0x78] sm:$0xff]  ;;  %v4587_v57 = vadd.f32 %v17485_v25, %v4503_v55 }
 0xda9   :  { %13868 = vmatprep.subr.bf16.mxu0 %v16029_v17  ;;  %v13889_v49 = vpack.c.bf16 %v5350_v56, %v5348_v6  ;;  %v4599_v6 = vadd.f32 %v17495_v53, %v4503_v55 }
 0xdaa   :  { %13103 = vmatmul.mubr.msk.f32.vlgmr.msra.gmra.mrb[116].mxu1 %vm2492_vm10, %v4850_v20  ;;  %v5354_v20 = vld [vmem:[#allocation35 + $0x98] sm:$0xff] }
 0xdab   :  { %13105 = vmatprep.mubr.msk.f32.mxu1 %vm16030_vm1, %v18974_v39  ;;  %13851 = vmatpush3.bf16.msra.mxu1 %v13850_v4  ;;  %v5352_v4 = vld [vmem:[#allocation35 + $0x88] sm:$0xff] }
 0xdac   :  { %13870 = vmatpush3.bf16.msra.mxu0 %v13869_v46  ;;  %13852 = vmatprep.subr.bf16.mxu1 %v16029_v17  ;;  %v13893_v46 = vpack.c.bf16 %v5354_v20, %v5352_v4 }
 0xdad   :  { %13871 = vmatprep.subr.bf16.mxu0 %v16029_v17 }
 0xdae   :  { %13106 = vmatmul.mubr.msk.f32.gmra.mrb[118].mxu1 %vm2492_vm10, %v4851_v40 }
 0xdaf   :  { %13108 = vmatprep.mubr.msk.f32.mxu1 %vm16030_vm1, %v18974_v39  ;;  %13855 = vmatpush3.bf16.msk.msra.mxu1 %vm17088_vm9, %v13853_v5  ;;  %v5358_v5 = vld [vmem:[#allocation35 + $0xb8] sm:$0xff] }
 0xdb0   :  { %13873 = vmatpush3.bf16.msra.mxu0 %v13872_v52  ;;  %v13897_v40 = vpack.c.bf16 %v5358_v5, %v5356_v23  ;;  %v5355_v52 = vld [vmem:[#allocation35 + $0xa0] sm:$0xff] }
 0xdb1   :  { %13874 = vmatprep.subr.bf16.mxu0 %v16029_v17  ;;  %v13899_v60 = vpack.c.bf16 %v5357_v58, %v5355_v52 }
 0xdb2   :  { %13109 = vmatmul.mubr.msk.f32.gmra.mrb[120].mxu1 %vm2492_vm10, %v4852_v10  ;;  %v5360_v10 = vld [vmem:[#allocation35 + $0xc8] sm:$0xff] }
 0xdb3   :  { %13136 = vmatprep.mubr.msk.f32.mxu1 %vm16030_vm1, %v18974_v39 }
 0xdb4   :  { %13876 = vmatpush3.bf16.msra.mxu0 %v13875_v59  ;;  %v5362_v59 = vld [vmem:[#allocation35 + $0xd8] sm:$0xff] }
 0xdb5   :  { %13173 = vmatprep.subr.mxu0 %v18974_v39 }
 0xdb6   :  { %13137 = vmatmul.mubr.msk.f32.vlgmr.msra.gmra.mrb[122].mxu1 %vm2492_vm10, %v5098_v41  ;;  %v13901_v41 = vpack.c.bf16 %v5362_v59, %v5360_v10 }
 0xdb7   :  { %13139 = vmatprep.mubr.msk.f32.mxu1 %vm16030_vm1, %v18974_v39 }
 0xdb8   :  { %13174 = vmatpush3.msra.mxu0 %v5239_v34  ;;  %v5359_v34 = vld [vmem:[#allocation35 + $0xc0] sm:$0xff] }
 0xdb9   :  { %13176 = vmatmul.mubr.msk.f32.vlgmr.msra.gmra.mrb[108].mxu0 %vm4510_vm0, %v17468_v0  ;;  %13909 = vmatprep.subr.bf16.mxu0 %v16029_v17  ;;  %v5336_v0 = vld [vmem:[#allocation35 + $0x8] sm:$0xff] }
 0xdba   :  { %13140 = vmatmul.mubr.msk.f32.gmra.mrb[124].mxu1 %vm2492_vm10, %v5099_v13  ;;  %13178 = vmatprep.mubr.msk.f32.mxu0 %vm16030_vm1, %v18974_v39  ;;  %v13877_v28 = vpack.c.bf16 %v5338_v33, %v5336_v0  ;;  %v5361_v13 = vld [vmem:[#allocation35 + $0xd0] sm:$0xff]  ;;  %v5364_v0 = vld [vmem:[#allocation35 + $0xe8] sm:$0xff]  ;;  %v5366_v33 = vld [vmem:[#allocation35 + $0xf8] sm:$0xff] }
 0xdbb   :  { %13142 = vmatprep.mubr.msk.f32.mxu1 %vm16030_vm1, %v18974_v39 }
 0xdbc   :  { %13878 = vmatprep.subr.bf16.mxu1 %v13877_v28  ;;  %v13905_v28 = vpack.c.bf16 %v5366_v33, %v5364_v0 }
 0xdbd   :  { %13179 = vmatmul.mubr.msk.f32.gmra.mrb[110].mxu0 %vm4510_vm0, %v17470_v29  ;;  %v13879_v29 = vpack.c.bf16 %v5337_v50, %v5335_v16  ;;  %v5363_v16 = vld [vmem:[#allocation35 + $0xe0] sm:$0xff]  ;;  %v5365_v50 = vld [vmem:[#allocation35 + $0xf0] sm:$0xff] }
 0xdbe   :  { %13143 = vmatmul.mubr.msk.f32.gmra.mrb[126].mxu1 %vm2492_vm10, %v5100_v3  ;;  %13181 = vmatprep.mubr.msk.f32.mxu0 %vm16030_vm1, %v18974_v39  ;;  %v13903_v3 = vpack.c.bf16 %v5361_v13, %v5359_v34  ;;  %vm5471_vm10 = vcmask 277504  }
 0xdbf   :  { %5443 = vmatprep.mubr.f32.mxu1 %v18974_v39  ;;  %13880 = vmatpush1.bf16.msra.mxu1 %v13879_v29  ;;  %v13907_v29 = vpack.c.bf16 %v5365_v50, %v5363_v16 }
 0xdc0   :  { %13882 = vmatprep.subr.bf16.mxu1 %v13881_v27  ;;  %v13910_v27 = vpack.c.bf16 %v5467_v24, %v5466_v42 }
 0xdc1   :  { %13182 = vmatmul.mubr.msk.f32.gmra.mrb[112].mxu0 %vm4510_vm0, %v17472_v18  ;;  %v5346_v18 = vld [vmem:[#allocation35 + $0x58] sm:$0xff]  ;;  %vm9341_vm0 = vcmask 654336  }
 0xdc2   :  { %13194 = vmatprep.mubr.msk.f32.mxu0 %vm16030_vm1, %v18974_v39  ;;  %v13885_v15 = vpack.c.bf16 %v5346_v18, %v5344_v63  ;;  %13911 = vmatpush3.bf16.msra.mxu0 %v13910_v27 }
 0xdc3   :  { %13884 = vmatpush1.bf16.msra.mxu1 %v13883_v2  ;;  %13912 = vmatprep.subr.bf16.mxu0 %v16029_v17 }
 0xdc4   :  { %13886 = vmatprep.subr.bf16.mxu1 %v13885_v15  ;;  %v4593_v15 = vadd.f32 %v17489_v32, %v4503_v55 }
 0xdc7   :  { %13888 = vmatpush1.bf16.msra.mxu1 %v13887_v61 }
 0xdc8   :  { %13890 = vmatprep.subr.bf16.mxu1 %v13889_v49 }
 0xdcb   :  { %13892 = vmatpush1.bf16.msra.mxu1 %v13891_v45 }
 0xdcc   :  { %13894 = vmatprep.subr.bf16.mxu1 %v13893_v46 }
 0xdcf   :  { %13896 = vmatpush1.bf16.msra.mxu1 %v13895_v21 }
 0xdd0   :  { %13898 = vmatprep.subr.bf16.mxu1 %v13897_v40 }
 0xdd3   :  { %13900 = vmatpush1.bf16.msra.mxu1 %v13899_v60 }
 0xdd4   :  { %13902 = vmatprep.subr.bf16.mxu1 %v13901_v41 }
 0xdd7   :  { %13904 = vmatpush1.bf16.msra.mxu1 %v13903_v3 }
 0xdd8   :  { %13906 = vmatprep.subr.bf16.mxu1 %v13905_v28 }
 0xddb   :  { %13908 = vmatpush1.bf16.msra.mxu1 %v13907_v29 }
 0xddc   :  { %13915 = vmatprep.subr.bf16.mxu1 %v16029_v17 }
 0xe64   :  { %v4689_v2 = vpop.f32.mrb[104].mxu1 }
 0xe65   :  { %v4703_v63 = vadd.f32 %v4689_v2, %v4587_v57  ;;  %v13070_v18 = vpop.f32.mrb[105].mxu1 }
 0xe68   :  { %v4694_v14 = vpop.f32.mrb[106].mxu1 }
 0xe69   :  { %v4704_v26 = vadd.f32 %v4694_v14, %v4593_v15  ;;  %v13073_v61 = vpop.f32.mrb[107].mxu1 }
 0xe6c   :  { %v4699_v56 = vpop.f32.mrb[108].mxu1 }
 0xe6d   :  { %v4705_v49 = vadd.f32 %v4699_v56, %v4599_v6  ;;  %v13076_v7 = vpop.f32.mrb[109].mxu1  ;;  %v5060_v37 = vpop.f32.mrb[102].mxu0 }
 0xe6e   :  { %v13121_v45 = vpop.f32.mrb[103].mxu0 }
 0xe71   :  { %v4812_v4 = vpop.f32.mrb[110].mxu1  ;;  %v5065_v44 = vpop.f32.mrb[104].mxu0 }
 0xe72   :  { %v4826_v20 = vadd.f32 %v4812_v4, %v4703_v63  ;;  %v13087_v46 = vpop.f32.mrb[111].mxu1  ;;  %v13124_v25 = vpop.f32.mrb[105].mxu0 }
 0xe75   :  { %v4817_v22 = vpop.f32.mrb[112].mxu1 }
 0xe76   :  { %v4827_v36 = vadd.f32 %v4817_v22, %v4704_v26  ;;  %v5070_v21 = vpop.f32.mrb[106].mxu0  ;;  %v13090_v23 = vpop.f32.mrb[113].mxu1 }
 0xe77   :  { %v13127_v32 = vpop.f32.mrb[107].mxu0 }
 0xe79   :  { %v4822_v5 = vpop.f32.mrb[114].mxu1 }
 0xe7a   :  { %v4828_v40 = vadd.f32 %v4822_v5, %v4705_v49  ;;  %v13093_v52 = vpop.f32.mrb[115].mxu1 }
 0xe7d   :  { %v4936_v58 = vpop.f32.mrb[116].mxu1 }
 0xe7e   :  { %v4950_v53 = vadd.f32 %v4936_v58, %v4826_v20  ;;  %v13104_v60 = vpop.f32.mrb[117].mxu1 }
 0xe80   :  { %v5074_v10 = vadd.f32 %v5060_v37, %v4950_v53 }
 0xe81   :  { %v4941_v59 = vpop.f32.mrb[118].mxu1 }
 0xe82   :  { %v4951_v41 = vadd.f32 %v4941_v59, %v4827_v36  ;;  %v13107_v34 = vpop.f32.mrb[119].mxu1 }
 0xe84   :  { %v5075_v13 = vadd.f32 %v5065_v44, %v4951_v41 }
 0xe85   :  { %v4946_v3 = vpop.f32.mrb[120].mxu1 }
 0xe86   :  { %v4952_v0 = vadd.f32 %v4946_v3, %v4828_v40  ;;  %v13110_v33 = vpop.f32.mrb[121].mxu1 }
 0xe88   :  { %v5076_v28 = vadd.f32 %v5070_v21, %v4952_v0 }
 0xe89   :  { %v5184_v16 = vpop.f32.mrb[122].mxu1 }
 0xe8a   :  { %v5198_v50 = vadd.f32 %v5184_v16, %v5074_v10  ;;  %v13138_v29 = vpop.f32.mrb[123].mxu1  ;;  %v5469_v16 = vld [vmem:[#allocation32 + $0x68] sm:$0xff] }
 0xe8b   :  { %v5470_v29 = vld [vmem:[#allocation32 + $0x70] sm:$0x3] }
 0xe8c   :  { %v5315_v42 = vpop.f32.mrb[108].mxu0 }
 0xe8d   :  { %v5329_v24 = vadd.f32 %v5315_v42, %v5198_v50  ;;  %v13177_v27 = vpop.f32.mrb[109].mxu0  ;;  %v5189_v55 = vpop.f32.mrb[124].mxu1  ;;  %v5577_v42 = vld [vmem:[#allocation32] sm:$0xff] }
 0xe8e   :  { %v5199_v57 = vadd.f32 %v5189_v55, %v5075_v13  ;;  %v13141_v2 = vpop.f32.mrb[125].mxu1  ;;  %v5579_v55 = vld [vmem:[#allocation32 + $0x10] sm:$0xff] }
 0xe8f   :  { %v5332_v63 = vmax.f32 %v5329_v24, 0.0  ;;  %v5578_v24 = vld [vmem:[#allocation32 + $0x8] sm:$0xff] }
 0xe90   :  { %v5320_v18 = vpop.f32.mrb[110].mxu0  ;;  %v13916_v27 = vpack.c.bf16 %v5578_v24, %v5577_v42  ;;  %v5907_v24 = vld [vmem:[#allocation32 + $0xa0] sm:$0xff] }
 0xe91   :  { %v5330_v15 = vadd.f32 %v5320_v18, %v5199_v57  ;;  %v13180_v14 = vpop.f32.mrb[111].mxu0  ;;  %5444 = vmatmul.mubr.f32.vlgmr.msra.gmra.mrb[128].mxu1 %v5332_v63  ;;  %v5194_v26 = vpop.f32.mrb[126].mxu1  ;;  %v6007_v49 = vrot.slane %v5332_v63, 7  ;;  %v6016_v37 = vrot.slane %v5332_v63, 1  ;;  %v5580_v57 = vld [vmem:[#allocation32 + $0x18] sm:$0xff] }
 0xe92   :  { %v5200_v61 = vadd.f32 %v5194_v26, %v5076_v28  ;;  %v13144_v6 = vpop.f32.mrb[127].mxu1  ;;  %5449 = vmatprep.mubr.f32.mxu1 %v18974_v39  ;;  %v5468_v28 = vld [vmem:[#allocation32 + $0x60] sm:$0xff]  ;;  %13917 = vmatpush3.bf16.msra.mxu1 %v13916_v27  ;;  %v13919_v2 = vpack.c.bf16 %v5580_v57, %v5579_v55  ;;  %v5687_v26 = vld [vmem:[#allocation32 + $0x28] sm:$0xff] }
 0xe93   :  { %v5333_v56 = vmax.f32 %v5330_v15, 0.0  ;;  %v13913_v50 = vpack.c.bf16 %v5469_v16, %v5468_v28  ;;  %13918 = vmatprep.subr.bf16.mxu1 %v16029_v17  ;;  %v17669_v18 = vld [vmem:[#allocation40 + $0x9] sm:$0x3]  ;;  %v5691_v28 = vld [vmem:[#allocation32 + $0x48] sm:$0x3] }
 0xe94   :  { %v5325_v7 = vpop.f32.mrb[112].mxu0  ;;  %v5376_v15 = vrot.slane %v17669_v18, %v17097_v9  ;;  %v5908_v27 = vld [vmem:[#allocation32 + $0xa8] sm:$0xff] }
 0xe95   :  { %v6008_v45 = vrot.slane %v5333_v56, 7  ;;  %v6017_v4 = vrot.slane %v5333_v56, 1  ;;  %v5331_v20 = vadd.f32 %v5325_v7, %v5200_v61  ;;  %v13183_v44 = vpop.f32.mrb[113].mxu0  ;;  %5450 = vmatmul.mubr.f32.gmra.mrb[130].mxu1 %v5333_v56  ;;  %13914 = vmatpush3.bf16.msra.mxu0 %v13913_v50  ;;  %v5688_v61 = vld [vmem:[#allocation32 + $0x30] sm:$0xff] }
 0xe96   :  { %5455 = vmatprep.mubr.f32.mxu1 %v18974_v39  ;;  %13192 = vmatprep.subr.mxu0 %v18974_v39 }
 0xe97   :  { %v6020_v46 = vsel %vm1802_vm3, %v6016_v37, %v6017_v4  ;;  %v5334_v25 = vmax.f32 %v5331_v20, 0.0  ;;  %v6011_v22 = vsel %vm1581_vm4, %v6007_v49, %v6008_v45  ;;  %13920 = vmatpush3.bf16.msra.mxu1 %v13919_v2  ;;  %v5690_v20 = vld [vmem:[#allocation32 + $0x40] sm:$0xff] }
 0xe98   :  { %v6022_v23 = vmul.f32 %v6020_v46, %v17425_v35  ;;  %v6014_v32 = vmul.f32 %v6011_v22, %v17439_v38  ;;  %13211 = vmatprep.subr.mxu1 %v18974_v39 }
 0xe99   :  { %v6009_v36 = vrot.slane %v5334_v25, 7  ;;  %v6018_v21 = vrot.slane %v5334_v25, 1  ;;  %5456 = vmatmul.mubr.f32.gmra.mrb[132].mxu1 %v5334_v25  ;;  %13193 = vmatpush3.msk.msra.mxu0 %vm5481_vm5, %v5470_v29 }
 0xe9a   :  { %13213 = vmatprep.mubr.msk.f32.mxu1 %vm16030_vm1, %v18974_v39  ;;  %13921 = vmatprep.subr.bf16.mxu0 %v16029_v17 }
 0xe9b   :  { %v6012_v5 = vsel %vm1581_vm4, %v6009_v36, %v6007_v49  ;;  %v6019_v40 = vsel %vm1802_vm3, %v6017_v4, %v6018_v21  ;;  %v6010_v52 = vsel %vm1581_vm4, %v6008_v45, %v6009_v36  ;;  %v6021_v58 = vsel %vm1802_vm3, %v6018_v21, %v6016_v37  ;;  %v5689_v4 = vld [vmem:[#allocation32 + $0x38] sm:$0xff] }
 0xe9c   :  { %v6013_v53 = vmul.f32 %v6012_v5, %v17431_v12  ;;  %v6023_v60 = vmul.f32 %v6019_v40, %v17437_v47  ;;  %v6015_v10 = vmul.f32 %v6010_v52, %v17454_v11  ;;  %v6024_v59 = vmul.f32 %v6021_v58, %v17452_v1 }
 0xe9d   :  { %v13922_v49 = vpack.c.bf16 %v5688_v61, %v5687_v26 }
 0xe9e   :  { %v6025_v41 = vmax.f32 %v6013_v53, %v6022_v23  ;;  %v6026_v34 = vmax.f32 %v6014_v32, %v6023_v60  ;;  %v6027_v13 = vmax.f32 %v6015_v10, %v6024_v59  ;;  %v5797_v59 = vld [vmem:[#allocation32 + $0x78] sm:$0xff] }
 0xea0   :  { %v17656_v3 = vmax.f32 %v5332_v63, %v6025_v41  ;;  %v17658_v0 = vmax.f32 %v5333_v56, %v6026_v34  ;;  %v17660_v33 = vmax.f32 %v5334_v25, %v6027_v13  ;;  %v5581_v63 = vld [vmem:[#allocation32 + $0x20] sm:$0x3]  ;;  %v13925_v25 = vpack.c.bf16 %v5690_v20, %v5689_v4  ;;  %v5909_v4 = vld [vmem:[#allocation32 + $0xb0] sm:$0xff]  ;;  %v5910_v20 = vld [vmem:[#allocation32 + $0xb8] sm:$0xff] }
 0xea1   :  { %13212 = vmatpush3.msk.msra.mxu1 %vm5481_vm5, %v5581_v63  ;;  %v5798_v41 = vld [vmem:[#allocation32 + $0x80] sm:$0xff] }
 0xea2   :  { %13927 = vmatprep.subr.bf16.mxu1 %v16029_v17  ;;  %v13928_v55 = vpack.c.bf16 %v5798_v41, %v5797_v59 }
 0xf64   :  { %v17673_v14 = vpop.f32.mrb[128].mxu1 }
 0xf65   :  { %v5447_v6 = vpop.f32.mrb[129].mxu1 }
 0xf66   :  { %v5448_v56 = vadd.f32 %v5447_v6, %v5376_v15 }
 0xf68   :  { %v17675_v7 = vmax.f32 %v5448_v56, 0.0  ;;  %v17677_v37 = vpop.f32.mrb[130].mxu1  ;;  %v13934_v56 = vpack.c.bf16 %v5908_v27, %v5907_v24  ;;  %v6036_v24 = vld [vmem:[#allocation34 + $0x28] sm:$0xff] }
 0xf69   :  { %v5453_v45 = vpop.f32.mrb[131].mxu1 }
 0xf6a   :  { %13195 = vmatmul.mubr.msk.f32.vlgmr.msra.gmra.mrb[114].mxu0 %vm5471_vm10, %v17675_v7  ;;  %v5454_v44 = vadd.f32 %v5453_v45, %v5376_v15  ;;  %v5568_v22 = vrot.slane %v17675_v7, 6  ;;  %v5677_v23 = vrot.slane %v17675_v7, 7  ;;  %v5787_v32 = vrot.slane %v17675_v7, 1 }
 0xf6b   :  { %13197 = vmatprep.mubr.msk.f32.mxu0 %vm16030_vm1, %v18974_v39  ;;  %13923 = vmatpush3.bf16.msra.mxu0 %v13922_v49  ;;  %v5897_v5 = vrot.slane %v17675_v7, 2  ;;  %v5799_v49 = vld [vmem:[#allocation32 + $0x88] sm:$0xff]  ;;  %v5800_v7 = vld [vmem:[#allocation32 + $0x90] sm:$0xff] }
 0xf6c   :  { %v17683_v46 = vpop.f32.mrb[132].mxu1  ;;  %13924 = vmatprep.subr.bf16.mxu0 %v16029_v17  ;;  %v5463_v36 = vmax.f32 %v5454_v44, 0.0 }
 0xf6d   :  { %v5459_v21 = vpop.f32.mrb[133].mxu1 }
 0xf6e   :  { %v5460_v40 = vadd.f32 %v5459_v21, %v5376_v15  ;;  %v5788_v52 = vrot.slane %v5463_v36, 1  ;;  %v5898_v58 = vrot.slane %v5463_v36, 2  ;;  %13198 = vmatmul.mubr.msk.f32.gmra.mrb[116].mxu0 %vm5471_vm10, %v5463_v36  ;;  %v5569_v53 = vrot.slane %v5463_v36, 6 }
 0xf6f   :  { %v5678_v60 = vrot.slane %v5463_v36, 7  ;;  %13200 = vmatprep.mubr.msk.f32.mxu0 %vm16030_vm1, %v18974_v39  ;;  %13926 = vmatpush3.bf16.msra.mxu0 %v13925_v25  ;;  %v13931_v36 = vpack.c.bf16 %v5800_v7, %v5799_v49  ;;  %v6042_v49 = vld [vmem:[#allocation34 + $0x58] sm:$0xff] }
 0xf70   :  { %v5464_v10 = vmax.f32 %v5460_v40, 0.0  ;;  %v17695_v34 = vsel %vm1802_vm3, %v5787_v32, %v5788_v52  ;;  %v17699_v13 = vsel %vm3025_vm12, %v5897_v5, %v5898_v58  ;;  %13230 = vmatprep.subr.mxu0 %v18974_v39  ;;  %v5572_v16 = vsel %vm2602_vm11, %v5568_v22, %v5569_v53 }
 0xf71   :  { %v5681_v50 = vsel %vm1581_vm4, %v5677_v23, %v5678_v60  ;;  %v13937_v40 = vpack.c.bf16 %v5910_v20, %v5909_v4  ;;  %v5793_v41 = vmul.f32 %v17695_v34, %v17425_v35  ;;  %v6044_v4 = vld [vmem:[#allocation34 + $0x68] sm:$0xff] }
 0xf72   :  { %v5570_v29 = vrot.slane %v5464_v10, 6  ;;  %v5679_v42 = vrot.slane %v5464_v10, 7  ;;  %13201 = vmatmul.mubr.msk.f32.gmra.mrb[118].mxu0 %vm5471_vm10, %v5464_v10  ;;  %v5789_v57 = vrot.slane %v5464_v10, 1  ;;  %v5899_v2 = vrot.slane %v5464_v10, 2  ;;  %v5911_v10 = vld [vmem:[#allocation32 + $0xc0] sm:$0x3] }
 0xf73   :  { %13231 = vmatpush3.msk.msra.mxu0 %vm5481_vm5, %v5691_v28  ;;  %13232 = vmatprep.mubr.msk.f32.mxu0 %vm16030_vm1, %v18974_v39  ;;  %v5903_v28 = vmul.f32 %v17699_v13, %v17591_v19 }
 0xf74   :  { %v5573_v63 = vsel %vm2602_vm11, %v5570_v29, %v5568_v22  ;;  %v5682_v15 = vsel %vm1581_vm4, %v5679_v42, %v5677_v23  ;;  %v5571_v26 = vsel %vm2602_vm11, %v5569_v53, %v5570_v29  ;;  %13933 = vmatprep.subr.bf16.mxu0 %v16029_v17  ;;  %v5680_v45 = vsel %vm1581_vm4, %v5678_v60, %v5679_v42  ;;  %v6031_v53 = vld [vmem:[#allocation34] sm:$0xff]  ;;  %v6032_v60 = vld [vmem:[#allocation34 + $0x8] sm:$0xff] }
 0xf75   :  { %v5574_v61 = vmul.f32 %v5573_v63, %v17429_v31  ;;  %v5683_v6 = vmul.f32 %v5682_v15, %v17431_v12  ;;  %v5790_v44 = vsel %vm1802_vm3, %v5788_v52, %v5789_v57  ;;  %v5900_v25 = vsel %vm3025_vm12, %v5898_v58, %v5899_v2  ;;  %v5801_v58 = vld [vmem:[#allocation32 + $0x98] sm:$0x3]  ;;  %v6035_v42 = vld [vmem:[#allocation34 + $0x20] sm:$0xff]  ;;  %v6038_v63 = vld [vmem:[#allocation34 + $0x38] sm:$0xff] }
 0xf76   :  { %v5792_v22 = vsel %vm1802_vm3, %v5789_v57, %v5787_v32  ;;  %v5902_v21 = vsel %vm3025_vm12, %v5899_v2, %v5897_v5  ;;  %v5575_v23 = vmul.f32 %v5572_v16, %v17427_v54  ;;  %v5684_v32 = vmul.f32 %v5681_v50, %v17439_v38  ;;  %v6033_v16 = vld [vmem:[#allocation34 + $0x10] sm:$0xff]  ;;  %v6034_v50 = vld [vmem:[#allocation34 + $0x18] sm:$0xff] }
 0xf77   :  { %13214 = vmatmul.mubr.msk.f32.vlgmr.msra.gmra.mrb[134].mxu1 %vm5471_vm10, %v5574_v61  ;;  %13233 = vmatmul.mubr.msk.f32.vlgmr.msra.gmra.mrb[120].mxu0 %vm5471_vm10, %v5683_v6  ;;  %v5576_v5 = vmul.f32 %v5571_v26, %v17433_v48  ;;  %v5685_v52 = vmul.f32 %v5680_v45, %v17454_v11  ;;  %v13940_v59 = vpack.c.bf16 %v6032_v60, %v6031_v53  ;;  %v6037_v2 = vld [vmem:[#allocation34 + $0x30] sm:$0xff]  ;;  %v6039_v26 = vld [vmem:[#allocation34 + $0x40] sm:$0xff]  ;;  %v6040_v61 = vld [vmem:[#allocation34 + $0x48] sm:$0xff] }
 0xf78   :  { %13929 = vmatpush3.bf16.msra.mxu1 %v13928_v55  ;;  %13216 = vmatprep.mubr.msk.f32.mxu1 %vm16030_vm1, %v18974_v39  ;;  %v13943_v29 = vpack.c.bf16 %v6034_v50, %v6033_v16  ;;  %v5794_v34 = vmul.f32 %v5790_v44, %v17437_v47  ;;  %v5904_v13 = vmul.f32 %v5900_v25, %v17599_v30  ;;  %v6043_v45 = vld [vmem:[#allocation34 + $0x60] sm:$0xff]  ;;  %v6045_v44 = vld [vmem:[#allocation34 + $0x70] sm:$0xff]  ;;  %v6046_v25 = vld [vmem:[#allocation34 + $0x78] sm:$0xff] }
 0xf79   :  { %13235 = vmatprep.mubr.msk.f32.mxu0 %vm16030_vm1, %v18974_v39  ;;  %13935 = vmatpush3.bf16.msra.mxu0 %v13934_v56  ;;  %v13946_v27 = vpack.c.bf16 %v6036_v24, %v6035_v42  ;;  %v5795_v55 = vmul.f32 %v5792_v22, %v17452_v1  ;;  %v5905_v57 = vmul.f32 %v5902_v21, %v17611_v51  ;;  %v6041_v56 = vld [vmem:[#allocation34 + $0x50] sm:$0xff]  ;;  %v6139_v53 = vld [vmem:[#allocation44 + $0x30] sm:$0xff]  ;;  %v6146_v16 = vld [vmem:[#allocation44 + $0x68] sm:$0xff] }
 0xf7a   :  { %13930 = vmatprep.subr.bf16.mxu1 %v16029_v17  ;;  %13936 = vmatprep.subr.bf16.mxu0 %v16029_v17  ;;  %v13949_v15 = vpack.c.bf16 %v6038_v63, %v6037_v2  ;;  %v13952_v6 = vpack.c.bf16 %v6040_v61, %v6039_v26  ;;  %v13955_v7 = vpack.c.bf16 %v6042_v49, %v6041_v56  ;;  %v6136_v21 = vld [vmem:[#allocation44 + $0x18] sm:$0xff]  ;;  %v6147_v42 = vld [vmem:[#allocation44 + $0x70] sm:$0xff]  ;;  %v6150_v24 = vld [vmem:[#allocation44 + $0x88] sm:$0xff] }
 0xf7b   :  { %13217 = vmatmul.mubr.msk.f32.gmra.mrb[136].mxu1 %vm5471_vm10, %v5575_v23  ;;  %13236 = vmatmul.mubr.msk.f32.gmra.mrb[122].mxu0 %vm5471_vm10, %v5684_v32  ;;  %v13958_v20 = vpack.c.bf16 %v6044_v4, %v6043_v45  ;;  %v13961_v22 = vpack.c.bf16 %v6046_v25, %v6045_v44  ;;  %v6133_v32 = vld [vmem:[#allocation44] sm:$0xff]  ;;  %v6148_v50 = vld [vmem:[#allocation44 + $0x78] sm:$0xff]  ;;  %v6151_v63 = vld [vmem:[#allocation44 + $0x90] sm:$0xff] }
 0xf7c   :  { %13932 = vmatpush3.bf16.msra.mxu1 %v13931_v36  ;;  %13219 = vmatprep.mubr.msk.f32.mxu1 %vm16030_vm1, %v18974_v39  ;;  %v6134_v36 = vld [vmem:[#allocation44 + $0x8] sm:$0xff]  ;;  %v6149_v2 = vld [vmem:[#allocation44 + $0x80] sm:$0xff]  ;;  %v6156_v26 = vld [vmem:[#allocation44 + $0xb8] sm:$0xff] }
 0xf7d   :  { %13238 = vmatprep.mubr.msk.f32.mxu0 %vm16030_vm1, %v18974_v39  ;;  %13938 = vmatpush3.bf16.msra.mxu0 %v13937_v40  ;;  %v13963_v23 = vpack.c.bf16 %v6136_v21, %v6134_v36  ;;  %v6135_v40 = vld [vmem:[#allocation44 + $0x10] sm:$0xff]  ;;  %v13981_v61 = vpack.c.bf16 %v6151_v63, %v6149_v2  ;;  %v6153_v56 = vld [vmem:[#allocation44 + $0xa0] sm:$0xff]  ;;  %v6160_v45 = vld [vmem:[#allocation44 + $0xd8] sm:$0xff] }
 0xf7e   :  { %13249 = vmatprep.subr.mxu1 %v18974_v39  ;;  %13268 = vmatprep.subr.mxu0 %v18974_v39  ;;  %v6155_v49 = vld [vmem:[#allocation44 + $0xb0] sm:$0xff]  ;;  %v6157_v44 = vld [vmem:[#allocation44 + $0xc0] sm:$0xff]  ;;  %v6162_v36 = vld [vmem:[#allocation44 + $0xe8] sm:$0xff] }
 0xf7f   :  { %13220 = vmatmul.mubr.msk.f32.gmra.mrb[138].mxu1 %vm5471_vm10, %v5576_v5  ;;  %13239 = vmatmul.mubr.msk.f32.gmra.mrb[124].mxu0 %vm5471_vm10, %v5685_v52  ;;  %v13965_v5 = vpack.c.bf16 %v6135_v40, %v6133_v32  ;;  %v6140_v52 = vld [vmem:[#allocation44 + $0x38] sm:$0xff]  ;;  %v13985_v4 = vpack.c.bf16 %v6155_v49, %v6153_v56  ;;  %v6159_v25 = vld [vmem:[#allocation44 + $0xd0] sm:$0xff]  ;;  %v6161_v32 = vld [vmem:[#allocation44 + $0xe0] sm:$0xff] }
 0xf80   :  { %13250 = vmatpush3.msk.msra.mxu1 %vm5481_vm5, %v5801_v58  ;;  %13251 = vmatprep.mubr.msk.f32.mxu1 %vm16030_vm1, %v18974_v39  ;;  %v6164_v21 = vld [vmem:[#allocation44 + $0xf8] sm:$0xff]  ;;  %v6163_v40 = vld [vmem:[#allocation44 + $0xf0] sm:$0xff] }
 0xf81   :  { %13269 = vmatpush3.msk.msra.mxu0 %vm5481_vm5, %v5911_v10  ;;  %13270 = vmatprep.mubr.msk.f32.mxu0 %vm16030_vm1, %v18974_v39  ;;  %v6142_v10 = vld [vmem:[#allocation44 + $0x48] sm:$0xff] }
 0xf82   :  { %13939 = vmatprep.subr.bf16.mxu1 %v16029_v17  ;;  %13964 = vmatprep.subr.bf16.mxu0 %v13963_v23  ;;  %v13991_v23 = vpack.c.bf16 %v6164_v21, %v6162_v36 }
 0xf83   :  { %13252 = vmatmul.mubr.msk.f32.vlgmr.msra.gmra.mrb[140].mxu1 %vm5471_vm10, %v5793_v41  ;;  %13271 = vmatmul.mubr.msk.f32.vlgmr.msra.gmra.mrb[126].mxu0 %vm5471_vm10, %v5903_v28  ;;  %v6143_v28 = vld [vmem:[#allocation44 + $0x50] sm:$0xff] }
 0xf84   :  { %13941 = vmatpush3.bf16.msra.mxu1 %v13940_v59  ;;  %13254 = vmatprep.mubr.msk.f32.mxu1 %vm16030_vm1, %v18974_v39  ;;  %v6144_v59 = vld [vmem:[#allocation44 + $0x58] sm:$0xff] }
 0xf85   :  { %13273 = vmatprep.mubr.msk.f32.mxu0 %vm16030_vm1, %v18974_v39  ;;  %13942 = vmatprep.subr.bf16.mxu1 %v16029_v17  ;;  %v13971_v41 = vpack.c.bf16 %v6144_v59, %v6142_v10 }
 0xf86   :  { %13966 = vmatpush1.bf16.msra.mxu0 %v13965_v5  ;;  %v13993_v5 = vpack.c.bf16 %v6163_v40, %v6161_v32 }
 0xf87   :  { %13255 = vmatmul.mubr.msk.f32.gmra.mrb[142].mxu1 %vm5471_vm10, %v5794_v34  ;;  %13274 = vmatmul.mubr.msk.f32.gmra.mrb[128].mxu0 %vm5471_vm10, %v5904_v13  ;;  %v13975_v34 = vpack.c.bf16 %v6148_v50, %v6146_v16  ;;  %v6145_v13 = vld [vmem:[#allocation44 + $0x60] sm:$0xff] }
 0xf88   :  { %13944 = vmatpush3.bf16.msra.mxu1 %v13943_v29  ;;  %13257 = vmatprep.mubr.msk.f32.mxu1 %vm16030_vm1, %v18974_v39 }
 0xf89   :  { %13276 = vmatprep.mubr.msk.f32.mxu0 %vm16030_vm1, %v18974_v39  ;;  %13945 = vmatprep.subr.bf16.mxu1 %v16029_v17 }
 0xf8b   :  { %13258 = vmatmul.mubr.msk.f32.gmra.mrb[144].mxu1 %vm5471_vm10, %v5795_v55  ;;  %13277 = vmatmul.mubr.msk.f32.gmra.mrb[130].mxu0 %vm5471_vm10, %v5905_v57  ;;  %v13977_v55 = vpack.c.bf16 %v6147_v42, %v6145_v13 }
 0xf8c   :  { %13947 = vmatpush3.bf16.msra.mxu1 %v13946_v27  ;;  %13311 = vmatprep.mubr.msk.f32.mxu1 %vm16030_vm1, %v18974_v39  ;;  %v6152_v27 = vld [vmem:[#allocation44 + $0x98] sm:$0xff] }
 0xf8d   :  { %13948 = vmatprep.subr.bf16.mxu1 %v16029_v17  ;;  %6241 = vmatprep.mubr.f32.mxu0 %v18974_v39  ;;  %v13979_v57 = vpack.c.bf16 %v6152_v27, %v6150_v24 }
 0xf90   :  { %13950 = vmatpush3.bf16.msra.mxu1 %v13949_v15  ;;  %v6154_v15 = vld [vmem:[#allocation44 + $0xa8] sm:$0xff] }
 0xf91   :  { %13951 = vmatprep.subr.bf16.mxu1 %v16029_v17 }
 0xf94   :  { %13953 = vmatpush3.bf16.msra.mxu1 %v13952_v6  ;;  %v13983_v6 = vpack.c.bf16 %v6156_v26, %v6154_v15 }
 0xf95   :  { %13954 = vmatprep.subr.bf16.mxu1 %v16029_v17 }
 0xf98   :  { %13956 = vmatpush3.bf16.msra.mxu1 %v13955_v7  ;;  %v6158_v7 = vld [vmem:[#allocation44 + $0xc8] sm:$0xff] }
 0xf99   :  { %13957 = vmatprep.subr.bf16.mxu1 %v16029_v17 }
 0xf9c   :  { %13959 = vmatpush3.bf16.msra.mxu1 %v13958_v20  ;;  %v13987_v20 = vpack.c.bf16 %v6160_v45, %v6158_v7 }
 0xf9d   :  { %13960 = vmatprep.subr.bf16.mxu1 %v16029_v17 }
 0xfa0   :  { %13962 = vmatpush3.bf16.msra.mxu1 %v13961_v22  ;;  %v13989_v22 = vpack.c.bf16 %v6159_v25, %v6157_v44 }
 0xfa1   :  { %13995 = vmatprep.subr.bf16.mxu1 %v16029_v17 }
 0xfa3   :  { %13312 = vmatmul.mubr.f32.vlgmr.msra.gmra.mrb[146].mxu1 %v17656_v3  ;;  %v6138_v3 = vld [vmem:[#allocation44 + $0x28] sm:$0xff] }
 0xfa4   :  { %13314 = vmatprep.mubr.msk.f32.mxu1 %vm16030_vm1, %v18974_v39  ;;  %v13967_v58 = vpack.c.bf16 %v6140_v52, %v6138_v3  ;;  %v6264_v3 = vld [vmem:[#allocation41 + $0x50] sm:$0xff]  ;;  %v6265_v52 = vld [vmem:[#allocation41 + $0x58] sm:$0xff] }
 0xfa6   :  { %13968 = vmatprep.subr.bf16.mxu0 %v13967_v58  ;;  %v13996_v58 = vpack.c.bf16 %v6265_v52, %v6264_v3 }
 0xfa7   :  { %13315 = vmatmul.mubr.f32.gmra.mrb[148].mxu1 %v17658_v0  ;;  %v6137_v0 = vld [vmem:[#allocation44 + $0x20] sm:$0xff] }
 0xfa8   :  { %13317 = vmatprep.mubr.msk.f32.mxu1 %vm16030_vm1, %v18974_v39  ;;  %v13969_v60 = vpack.c.bf16 %v6139_v53, %v6137_v0  ;;  %13997 = vmatpush3.bf16.msra.mxu1 %v13996_v58  ;;  %v5372_v0 = vrot.slane %v17669_v18, %v17230_v8 }
 0xfa9   :  { %13998 = vmatprep.subr.bf16.mxu1 %v16029_v17 }
 0xfaa   :  { %13970 = vmatpush1.bf16.msra.mxu0 %v13969_v60  ;;  %v5446_v53 = vadd.f32 %v17673_v14, %v5372_v0  ;;  %v5458_v50 = vadd.f32 %v17683_v46, %v5372_v0 }
 0xfab   :  { %13318 = vmatmul.mubr.f32.gmra.mrb[150].mxu1 %v17660_v33  ;;  %v6141_v33 = vld [vmem:[#allocation44 + $0x40] sm:$0xff]  ;;  %13972 = vmatprep.subr.bf16.mxu0 %v13971_v41 }
 0xfac   :  { %13330 = vmatprep.mubr.msk.f32.mxu1 %vm16030_vm1, %v18974_v39  ;;  %v13973_v29 = vpack.c.bf16 %v6143_v28, %v6141_v33  ;;  %v5452_v33 = vadd.f32 %v17677_v37, %v5372_v0 }
 0xfae   :  { %13974 = vmatpush1.bf16.msra.mxu0 %v13973_v29 }
 0xfaf   :  { %13976 = vmatprep.subr.bf16.mxu0 %v13975_v34 }
 0xfb2   :  { %13978 = vmatpush1.bf16.msra.mxu0 %v13977_v55 }
 0xfb3   :  { %13980 = vmatprep.subr.bf16.mxu0 %v13979_v57 }
 0xfb6   :  { %13982 = vmatpush1.bf16.msra.mxu0 %v13981_v61 }
 0xfb7   :  { %13984 = vmatprep.subr.bf16.mxu0 %v13983_v6 }
 0xfba   :  { %13986 = vmatpush1.bf16.msra.mxu0 %v13985_v4 }
 0xfbb   :  { %13988 = vmatprep.subr.bf16.mxu0 %v13987_v20 }
 0xfbe   :  { %13990 = vmatpush1.bf16.msra.mxu0 %v13989_v22 }
 0xfbf   :  { %13992 = vmatprep.subr.bf16.mxu0 %v13991_v23 }
 0xfc2   :  { %13994 = vmatpush1.bf16.msra.mxu0 %v13993_v5 }
 0xfc3   :  { %14001 = vmatprep.subr.bf16.mxu0 %v16029_v17 }
0x103d   :  { %v5551_v60 = vpop.f32.mrb[114].mxu0 }
0x103e   :  { %v5565_v10 = vadd.f32 %v5551_v60, %v5446_v53  ;;  %v13196_v59 = vpop.f32.mrb[115].mxu0 }
0x1041   :  { %v5556_v41 = vpop.f32.mrb[116].mxu0 }
0x1042   :  { %v5566_v28 = vadd.f32 %v5556_v41, %v5452_v33  ;;  %v13199_v16 = vpop.f32.mrb[117].mxu0 }
0x1045   :  { %v5561_v29 = vpop.f32.mrb[118].mxu0 }
0x1046   :  { %v5567_v34 = vadd.f32 %v5561_v29, %v5458_v50  ;;  %v13202_v13 = vpop.f32.mrb[119].mxu0 }
0x104a   :  { %v5660_v42 = vpop.f32.mrb[134].mxu1  ;;  %v5770_v24 = vpop.f32.mrb[120].mxu0 }
0x104b   :  { %v5674_v27 = vadd.f32 %v5660_v42, %v5565_v10  ;;  %v13215_v55 = vpop.f32.mrb[135].mxu1  ;;  %v13234_v18 = vpop.f32.mrb[121].mxu0 }
0x104d   :  { %v5784_v57 = vadd.f32 %v5770_v24, %v5674_v27 }
0x104e   :  { %v5665_v14 = vpop.f32.mrb[136].mxu1  ;;  %v5775_v2 = vpop.f32.mrb[122].mxu0 }
0x104f   :  { %v5675_v63 = vadd.f32 %v5665_v14, %v5566_v28  ;;  %v13218_v15 = vpop.f32.mrb[137].mxu1  ;;  %v13237_v26 = vpop.f32.mrb[123].mxu0 }
0x1051   :  { %v5785_v37 = vadd.f32 %v5775_v2, %v5675_v63 }
0x1052   :  { %v5670_v61 = vpop.f32.mrb[138].mxu1  ;;  %v5780_v6 = vpop.f32.mrb[124].mxu0 }
0x1053   :  { %v5676_v56 = vadd.f32 %v5670_v61, %v5567_v34  ;;  %v13221_v49 = vpop.f32.mrb[139].mxu1  ;;  %v13240_v46 = vpop.f32.mrb[125].mxu0 }
0x1055   :  { %v5786_v7 = vadd.f32 %v5780_v6, %v5676_v56 }
0x1056   :  { %v5880_v45 = vpop.f32.mrb[140].mxu1  ;;  %v5990_v4 = vpop.f32.mrb[126].mxu0 }
0x1057   :  { %v5894_v20 = vadd.f32 %v5880_v45, %v5784_v57  ;;  %v13253_v44 = vpop.f32.mrb[141].mxu1  ;;  %v13272_v25 = vpop.f32.mrb[127].mxu0 }
0x1059   :  { %v6004_v22 = vadd.f32 %v5990_v4, %v5894_v20 }
0x105a   :  { %v5885_v36 = vpop.f32.mrb[142].mxu1  ;;  %v5995_v21 = vpop.f32.mrb[128].mxu0 }
0x105b   :  { %v5895_v23 = vadd.f32 %v5885_v36, %v5785_v37  ;;  %v13256_v32 = vpop.f32.mrb[143].mxu1  ;;  %v13275_v40 = vpop.f32.mrb[129].mxu0 }
0x105c   :  { %v6267_v32 = vld [vmem:[#allocation41 + $0x68] sm:$0xff] }
0x105d   :  { %v6005_v5 = vadd.f32 %v5995_v21, %v5895_v23  ;;  %v6266_v23 = vld [vmem:[#allocation41 + $0x60] sm:$0xff] }
0x105e   :  { %v5890_v3 = vpop.f32.mrb[144].mxu1  ;;  %v6000_v52 = vpop.f32.mrb[130].mxu0  ;;  %v13999_v40 = vpack.c.bf16 %v6267_v32, %v6266_v23  ;;  %v6489_v23 = vld [vmem:[#allocation41 + $0x48] sm:$0x3f] }
0x105f   :  { %v5896_v58 = vadd.f32 %v5890_v3, %v5786_v7  ;;  %v13259_v0 = vpop.f32.mrb[145].mxu1  ;;  %v13278_v53 = vpop.f32.mrb[131].mxu0  ;;  %v6375_v3 = vld [vmem:[#allocation41] sm:$0xff] }
0x1060   :  { %14000 = vmatpush3.bf16.msra.mxu1 %v13999_v40  ;;  %v6377_v0 = vld [vmem:[#allocation41 + $0x10] sm:$0xff]  ;;  %v6378_v53 = vld [vmem:[#allocation41 + $0x18] sm:$0xff] }
0x1061   :  { %v6006_v60 = vadd.f32 %v6000_v52, %v5896_v58  ;;  %13328 = vmatprep.subr.mxu1 %v18974_v39  ;;  %v6376_v52 = vld [vmem:[#allocation41 + $0x8] sm:$0xff] }
0x1062   :  { %v14002_v58 = vpack.c.bf16 %v6376_v52, %v6375_v3  ;;  %v6705_v52 = vld [vmem:[#allocation41 + $0xa0] sm:$0xff] }
0x1076   :  { %v6113_v10 = vpop.f32.mrb[146].mxu1 }
0x1077   :  { %v6127_v59 = vadd.f32 %v6113_v10, %v6004_v22  ;;  %v13313_v33 = vpop.f32.mrb[147].mxu1  ;;  %v6379_v10 = vld [vmem:[#allocation41 + $0x20] sm:$0x3f] }
0x1079   :  { %v6130_v41 = vmax.f32 %v6127_v59, 0.0  ;;  %v17842_v59 = vld [vmem:[#allocation40 + $0xb] sm:$0x3] }
0x107a   :  { %v6118_v28 = vpop.f32.mrb[148].mxu1  ;;  %v6174_v33 = vrot.slane %v17842_v59, %v17097_v9 }
0x107b   :  { %v6128_v16 = vadd.f32 %v6118_v28, %v6005_v5  ;;  %v13316_v50 = vpop.f32.mrb[149].mxu1  ;;  %6242 = vmatmul.mubr.f32.vlgmr.msra.gmra.mrb[132].mxu0 %v6130_v41  ;;  %v6805_v34 = vrot.slane %v6130_v41, 7  ;;  %v6814_v42 = vrot.slane %v6130_v41, 1  ;;  %v6268_v5 = vld [vmem:[#allocation41 + $0x70] sm:$0x3f]  ;;  %v6485_v28 = vld [vmem:[#allocation41 + $0x28] sm:$0xff] }
0x107c   :  { %6247 = vmatprep.mubr.f32.mxu0 %v18974_v39  ;;  %13329 = vmatpush3.msk.msra.mxu1 %vm6279_vm13, %v6268_v5 }
0x107d   :  { %v6131_v29 = vmax.f32 %v6128_v16, 0.0  ;;  %14007 = vmatprep.subr.bf16.mxu1 %v16029_v17  ;;  %14003 = vmatpush3.bf16.msra.mxu0 %v14002_v58  ;;  %v6486_v16 = vld [vmem:[#allocation41 + $0x30] sm:$0xff]  ;;  %v6706_v58 = vld [vmem:[#allocation41 + $0xa8] sm:$0xff] }
0x107e   :  { %v6123_v13 = vpop.f32.mrb[150].mxu1  ;;  %14004 = vmatprep.subr.bf16.mxu0 %v16029_v17 }
0x107f   :  { %v6806_v24 = vrot.slane %v6131_v29, 7  ;;  %v6815_v27 = vrot.slane %v6131_v29, 1  ;;  %v6129_v55 = vadd.f32 %v6123_v13, %v6006_v60  ;;  %v13319_v18 = vpop.f32.mrb[151].mxu1  ;;  %6248 = vmatmul.mubr.f32.gmra.mrb[134].mxu0 %v6131_v29  ;;  %v14005_v60 = vpack.c.bf16 %v6378_v53, %v6377_v0 }
0x1080   :  { %6253 = vmatprep.mubr.f32.mxu0 %v18974_v39 }
0x1081   :  { %v6818_v57 = vsel %vm1802_vm3, %v6814_v42, %v6815_v27  ;;  %v6132_v14 = vmax.f32 %v6129_v55, 0.0  ;;  %v6809_v2 = vsel %vm1581_vm4, %v6805_v34, %v6806_v24  ;;  %14006 = vmatpush3.bf16.msra.mxu0 %v14005_v60  ;;  %v6488_v55 = vld [vmem:[#allocation41 + $0x40] sm:$0xff] }
0x1082   :  { %v6820_v26 = vmul.f32 %v6818_v57, %v17425_v35  ;;  %v6812_v37 = vmul.f32 %v6809_v2, %v17439_v38  ;;  %13347 = vmatprep.subr.mxu0 %v18974_v39 }
0x1083   :  { %v6807_v63 = vrot.slane %v6132_v14, 7  ;;  %v6816_v15 = vrot.slane %v6132_v14, 1  ;;  %6254 = vmatmul.mubr.f32.gmra.mrb[136].mxu0 %v6132_v14 }
0x1084   :  { %13349 = vmatprep.mubr.msk.f32.mxu0 %vm16030_vm1, %v18974_v39 }
0x1085   :  { %v6810_v61 = vsel %vm1581_vm4, %v6807_v63, %v6805_v34  ;;  %v6817_v6 = vsel %vm1802_vm3, %v6815_v27, %v6816_v15  ;;  %v6808_v56 = vsel %vm1581_vm4, %v6806_v24, %v6807_v63  ;;  %v6819_v49 = vsel %vm1802_vm3, %v6816_v15, %v6814_v42  ;;  %13348 = vmatpush3.msk.msra.mxu0 %vm6279_vm13, %v6379_v10  ;;  %v6487_v27 = vld [vmem:[#allocation41 + $0x38] sm:$0xff] }
0x1086   :  { %v6811_v46 = vmul.f32 %v6810_v61, %v17431_v12  ;;  %v6821_v7 = vmul.f32 %v6817_v6, %v17437_v47  ;;  %v6813_v45 = vmul.f32 %v6808_v56, %v17454_v11  ;;  %v6822_v4 = vmul.f32 %v6819_v49, %v17452_v1  ;;  %14013 = vmatprep.subr.bf16.mxu0 %v16029_v17 }
0x1087   :  { %v14008_v34 = vpack.c.bf16 %v6486_v16, %v6485_v28 }
0x1088   :  { %v6823_v20 = vmax.f32 %v6811_v46, %v6820_v26  ;;  %v6824_v44 = vmax.f32 %v6812_v37, %v6821_v7  ;;  %v6825_v25 = vmax.f32 %v6813_v45, %v6822_v4  ;;  %v6595_v4 = vld [vmem:[#allocation41 + $0x78] sm:$0xff] }
0x108a   :  { %v17829_v22 = vmax.f32 %v6130_v41, %v6823_v20  ;;  %v17831_v36 = vmax.f32 %v6131_v29, %v6824_v44  ;;  %v17833_v21 = vmax.f32 %v6132_v14, %v6825_v25  ;;  %v14011_v14 = vpack.c.bf16 %v6488_v55, %v6487_v27  ;;  %v6596_v20 = vld [vmem:[#allocation41 + $0x80] sm:$0xff]  ;;  %v6707_v27 = vld [vmem:[#allocation41 + $0xb0] sm:$0xff]  ;;  %v6708_v55 = vld [vmem:[#allocation41 + $0xb8] sm:$0xff] }
0x108b   :  { %v14014_v0 = vpack.c.bf16 %v6596_v20, %v6595_v4 }
0x114e   :  { %v17846_v41 = vpop.f32.mrb[132].mxu0 }
0x114f   :  { %v6245_v50 = vpop.f32.mrb[133].mxu0 }
0x1150   :  { %v6246_v29 = vadd.f32 %v6245_v50, %v6174_v33 }
0x1152   :  { %v17848_v13 = vmax.f32 %v6246_v29, 0.0  ;;  %v17850_v42 = vpop.f32.mrb[134].mxu0  ;;  %v14020_v29 = vpack.c.bf16 %v6706_v58, %v6705_v52  ;;  %v6834_v52 = vld [vmem:[#allocation43 + $0x28] sm:$0xff] }
0x1153   :  { %v6251_v24 = vpop.f32.mrb[135].mxu0 }
0x1154   :  { %13331 = vmatmul.mubr.msk.f32.vlgmr.msra.gmra.mrb[152].mxu1 %vm6269_vm14, %v17848_v13  ;;  %v6252_v18 = vadd.f32 %v6251_v24, %v6174_v33  ;;  %v6366_v2 = vrot.slane %v17848_v13, 6  ;;  %v6475_v26 = vrot.slane %v17848_v13, 7  ;;  %v6585_v37 = vrot.slane %v17848_v13, 1 }
0x1155   :  { %13333 = vmatprep.mubr.msk.f32.mxu1 %vm16030_vm1, %v18974_v39  ;;  %14009 = vmatpush3.bf16.msra.mxu1 %v14008_v34  ;;  %v6695_v61 = vrot.slane %v17848_v13, 2  ;;  %v6597_v34 = vld [vmem:[#allocation41 + $0x88] sm:$0xff]  ;;  %v6598_v13 = vld [vmem:[#allocation41 + $0x90] sm:$0xff] }
0x1156   :  { %v17856_v57 = vpop.f32.mrb[136].mxu0  ;;  %14010 = vmatprep.subr.bf16.mxu1 %v16029_v17  ;;  %v6261_v63 = vmax.f32 %v6252_v18, 0.0 }
0x1157   :  { %v6257_v15 = vpop.f32.mrb[137].mxu0 }
0x1158   :  { %v6258_v6 = vadd.f32 %v6257_v15, %v6174_v33  ;;  %v6586_v56 = vrot.slane %v6261_v63, 1  ;;  %v6696_v49 = vrot.slane %v6261_v63, 2  ;;  %13334 = vmatmul.mubr.msk.f32.gmra.mrb[154].mxu1 %vm6269_vm14, %v6261_v63  ;;  %v6367_v46 = vrot.slane %v6261_v63, 6 }
0x1159   :  { %v6476_v7 = vrot.slane %v6261_v63, 7  ;;  %13336 = vmatprep.mubr.msk.f32.mxu1 %vm16030_vm1, %v18974_v39  ;;  %14012 = vmatpush3.bf16.msra.mxu1 %v14011_v14  ;;  %v14017_v63 = vpack.c.bf16 %v6598_v13, %v6597_v34  ;;  %v6840_v34 = vld [vmem:[#allocation43 + $0x58] sm:$0xff] }
0x115a   :  { %v6262_v45 = vmax.f32 %v6258_v6, 0.0  ;;  %v17868_v44 = vsel %vm1802_vm3, %v6585_v37, %v6586_v56  ;;  %v17872_v25 = vsel %vm3025_vm12, %v6695_v61, %v6696_v49  ;;  %13366 = vmatprep.subr.mxu1 %v18974_v39  ;;  %v6370_v32 = vsel %vm2602_vm11, %v6366_v2, %v6367_v46 }
0x115b   :  { %v6479_v40 = vsel %vm1581_vm4, %v6475_v26, %v6476_v7  ;;  %v14023_v6 = vpack.c.bf16 %v6708_v55, %v6707_v27  ;;  %v6591_v20 = vmul.f32 %v17868_v44, %v17425_v35  ;;  %v6842_v27 = vld [vmem:[#allocation43 + $0x68] sm:$0xff] }
0x115c   :  { %v6368_v5 = vrot.slane %v6262_v45, 6  ;;  %v6477_v3 = vrot.slane %v6262_v45, 7  ;;  %13337 = vmatmul.mubr.msk.f32.gmra.mrb[156].mxu1 %vm6269_vm14, %v6262_v45  ;;  %v6587_v53 = vrot.slane %v6262_v45, 1  ;;  %v6697_v60 = vrot.slane %v6262_v45, 2  ;;  %v6709_v45 = vld [vmem:[#allocation41 + $0xc0] sm:$0x3f] }
0x115d   :  { %13367 = vmatpush3.msk.msra.mxu1 %vm6279_vm13, %v6489_v23  ;;  %13368 = vmatprep.mubr.msk.f32.mxu1 %vm16030_vm1, %v18974_v39  ;;  %v6701_v23 = vmul.f32 %v17872_v25, %v17591_v19 }
0x115e   :  { %v6371_v10 = vsel %vm2602_vm11, %v6368_v5, %v6366_v2  ;;  %v6480_v33 = vsel %vm1581_vm4, %v6477_v3, %v6475_v26  ;;  %v6369_v28 = vsel %vm2602_vm11, %v6367_v46, %v6368_v5  ;;  %14019 = vmatprep.subr.bf16.mxu1 %v16029_v17  ;;  %v6478_v24 = vsel %vm1581_vm4, %v6476_v7, %v6477_v3  ;;  %v6829_v46 = vld [vmem:[#allocation43] sm:$0xff]  ;;  %v6830_v7 = vld [vmem:[#allocation43 + $0x8] sm:$0xff] }
0x115f   :  { %v6372_v16 = vmul.f32 %v6371_v10, %v17429_v31  ;;  %v6481_v50 = vmul.f32 %v6480_v33, %v17431_v12  ;;  %v6588_v18 = vsel %vm1802_vm3, %v6586_v56, %v6587_v53  ;;  %v6698_v14 = vsel %vm3025_vm12, %v6696_v49, %v6697_v60  ;;  %v6599_v49 = vld [vmem:[#allocation41 + $0x98] sm:$0x3f]  ;;  %v6833_v3 = vld [vmem:[#allocation43 + $0x20] sm:$0xff]  ;;  %v6836_v10 = vld [vmem:[#allocation43 + $0x38] sm:$0xff] }
0x1160   :  { %v6590_v2 = vsel %vm1802_vm3, %v6587_v53, %v6585_v37  ;;  %v6700_v15 = vsel %vm3025_vm12, %v6697_v60, %v6695_v61  ;;  %v6373_v26 = vmul.f32 %v6370_v32, %v17427_v54  ;;  %v6482_v37 = vmul.f32 %v6479_v40, %v17439_v38  ;;  %v6831_v32 = vld [vmem:[#allocation43 + $0x10] sm:$0xff]  ;;  %v6832_v40 = vld [vmem:[#allocation43 + $0x18] sm:$0xff] }
0x1161   :  { %13350 = vmatmul.mubr.msk.f32.vlgmr.msra.gmra.mrb[138].mxu0 %vm6269_vm14, %v6372_v16  ;;  %13369 = vmatmul.mubr.msk.f32.vlgmr.msra.gmra.mrb[158].mxu1 %vm6269_vm14, %v6481_v50  ;;  %v6374_v61 = vmul.f32 %v6369_v28, %v17433_v48  ;;  %v6483_v56 = vmul.f32 %v6478_v24, %v17454_v11  ;;  %v14026_v4 = vpack.c.bf16 %v6830_v7, %v6829_v46  ;;  %v6835_v60 = vld [vmem:[#allocation43 + $0x30] sm:$0xff]  ;;  %v6837_v28 = vld [vmem:[#allocation43 + $0x40] sm:$0xff]  ;;  %v6838_v16 = vld [vmem:[#allocation43 + $0x48] sm:$0xff] }
0x1162   :  { %14015 = vmatpush3.bf16.msra.mxu0 %v14014_v0  ;;  %13352 = vmatprep.mubr.msk.f32.mxu0 %vm16030_vm1, %v18974_v39  ;;  %v14029_v5 = vpack.c.bf16 %v6832_v40, %v6831_v32  ;;  %v6592_v44 = vmul.f32 %v6588_v18, %v17437_v47  ;;  %v6702_v25 = vmul.f32 %v6698_v14, %v17599_v30  ;;  %v6841_v24 = vld [vmem:[#allocation43 + $0x60] sm:$0xff]  ;;  %v6843_v18 = vld [vmem:[#allocation43 + $0x70] sm:$0xff]  ;;  %v6844_v14 = vld [vmem:[#allocation43 + $0x78] sm:$0xff] }
0x1163   :  { %13371 = vmatprep.mubr.msk.f32.mxu1 %vm16030_vm1, %v18974_v39  ;;  %14021 = vmatpush3.bf16.msra.mxu1 %v14020_v29  ;;  %v14032_v58 = vpack.c.bf16 %v6834_v52, %v6833_v3  ;;  %v6593_v0 = vmul.f32 %v6590_v2, %v17452_v1  ;;  %v6703_v53 = vmul.f32 %v6700_v15, %v17611_v51  ;;  %v6839_v29 = vld [vmem:[#allocation43 + $0x50] sm:$0xff]  ;;  %v6935_v15 = vld [vmem:[#allocation52 + $0x20] sm:$0xff]  ;;  %v6941_v46 = vld [vmem:[#allocation52 + $0x50] sm:$0xff] }
0x1164   :  { %14016 = vmatprep.subr.bf16.mxu0 %v16029_v17  ;;  %14022 = vmatprep.subr.bf16.mxu1 %v16029_v17  ;;  %v14035_v33 = vpack.c.bf16 %v6836_v10, %v6835_v60  ;;  %v14038_v50 = vpack.c.bf16 %v6838_v16, %v6837_v28  ;;  %v14041_v13 = vpack.c.bf16 %v6840_v34, %v6839_v29  ;;  %v6944_v32 = vld [vmem:[#allocation52 + $0x68] sm:$0xff]  ;;  %v6947_v40 = vld [vmem:[#allocation52 + $0x80] sm:$0xff]  ;;  %v6946_v3 = vld [vmem:[#allocation52 + $0x78] sm:$0xff] }
0x1165   :  { %13353 = vmatmul.mubr.msk.f32.gmra.mrb[140].mxu0 %vm6269_vm14, %v6373_v26  ;;  %13372 = vmatmul.mubr.msk.f32.gmra.mrb[160].mxu1 %vm6269_vm14, %v6482_v37  ;;  %v14044_v55 = vpack.c.bf16 %v6842_v27, %v6841_v24  ;;  %v14047_v2 = vpack.c.bf16 %v6844_v14, %v6843_v18  ;;  %v6931_v37 = vld [vmem:[#allocation52] sm:$0xff]  ;;  %v6945_v52 = vld [vmem:[#allocation52 + $0x70] sm:$0xff]  ;;  %v6952_v16 = vld [vmem:[#allocation52 + $0xa8] sm:$0xff] }
0x1166   :  { %14018 = vmatpush3.bf16.msra.mxu0 %v14017_v63  ;;  %13355 = vmatprep.mubr.msk.f32.mxu0 %vm16030_vm1, %v18974_v39  ;;  %v6932_v63 = vld [vmem:[#allocation52 + $0x8] sm:$0xff]  ;;  %v6953_v60 = vld [vmem:[#allocation52 + $0xb0] sm:$0xff]  ;;  %v6954_v29 = vld [vmem:[#allocation52 + $0xb8] sm:$0xff] }
0x1167   :  { %13374 = vmatprep.mubr.msk.f32.mxu1 %vm16030_vm1, %v18974_v39  ;;  %14024 = vmatpush3.bf16.msra.mxu1 %v14023_v6  ;;  %v14049_v26 = vpack.c.bf16 %v6935_v15, %v6932_v63  ;;  %v6934_v6 = vld [vmem:[#allocation52 + $0x18] sm:$0xff]  ;;  %v6949_v28 = vld [vmem:[#allocation52 + $0x90] sm:$0xff]  ;;  %v6956_v34 = vld [vmem:[#allocation52 + $0xc8] sm:$0xff] }
0x1168   :  { %13385 = vmatprep.subr.mxu0 %v18974_v39  ;;  %13404 = vmatprep.subr.mxu1 %v18974_v39  ;;  %v14063_v24 = vpack.c.bf16 %v6952_v16, %v6949_v28  ;;  %v6955_v18 = vld [vmem:[#allocation52 + $0xc0] sm:$0xff]  ;;  %v6958_v14 = vld [vmem:[#allocation52 + $0xd8] sm:$0xff]  ;;  %v6960_v63 = vld [vmem:[#allocation52 + $0xe8] sm:$0xff] }
0x1169   :  { %13356 = vmatmul.mubr.msk.f32.gmra.mrb[142].mxu0 %vm6269_vm14, %v6374_v61  ;;  %13375 = vmatmul.mubr.msk.f32.gmra.mrb[162].mxu1 %vm6269_vm14, %v6483_v56  ;;  %v6933_v61 = vld [vmem:[#allocation52 + $0x10] sm:$0xff]  ;;  %v6936_v56 = vld [vmem:[#allocation52 + $0x28] sm:$0xff]  ;;  %v6962_v15 = vld [vmem:[#allocation52 + $0xf8] sm:$0xff] }
0x116a   :  { %13386 = vmatpush3.msk.msra.mxu0 %vm6279_vm13, %v6599_v49  ;;  %13387 = vmatprep.mubr.msk.f32.mxu0 %vm16030_vm1, %v18974_v39  ;;  %v14082_v49 = vpack.c.bf16 %v6936_v56, %v6933_v61  ;;  %v6964_v56 = vld [vmem:[#allocation52 + $0x108] sm:$0xff]  ;;  %v7166_v16 = vld [vmem:[#allocation50 + $0xd8] sm:$0xff] }
0x116b   :  { %13405 = vmatpush3.msk.msra.mxu1 %vm6279_vm13, %v6709_v45  ;;  %13406 = vmatprep.mubr.msk.f32.mxu1 %vm16030_vm1, %v18974_v39  ;;  %v6937_v45 = vld [vmem:[#allocation52 + $0x30] sm:$0xff]  ;;  %v7164_v28 = vld [vmem:[#allocation50 + $0xc8] sm:$0xff] }
0x116c   :  { %14025 = vmatprep.subr.bf16.mxu0 %v16029_v17  ;;  %14050 = vmatprep.subr.bf16.mxu1 %v14049_v26  ;;  %v6965_v26 = vld [vmem:[#allocation52 + $0x110] sm:$0xff] }
0x116d   :  { %13388 = vmatmul.mubr.msk.f32.vlgmr.msra.gmra.mrb[144].mxu0 %vm6269_vm14, %v6591_v20  ;;  %13407 = vmatmul.mubr.msk.f32.vlgmr.msra.gmra.mrb[164].mxu1 %vm6269_vm14, %v6701_v23  ;;  %v6942_v23 = vld [vmem:[#allocation52 + $0x58] sm:$0xff]  ;;  %v14069_v61 = vpack.c.bf16 %v6965_v26, %v6962_v15 }
0x116e   :  { %14027 = vmatpush3.bf16.msra.mxu0 %v14026_v4  ;;  %13390 = vmatprep.mubr.msk.f32.mxu0 %vm16030_vm1, %v18974_v39  ;;  %v6939_v4 = vld [vmem:[#allocation52 + $0x40] sm:$0xff] }
0x116f   :  { %13409 = vmatprep.mubr.msk.f32.mxu1 %vm16030_vm1, %v18974_v39  ;;  %14028 = vmatprep.subr.bf16.mxu0 %v16029_v17 }
0x1171   :  { %13391 = vmatmul.mubr.msk.f32.gmra.mrb[146].mxu0 %vm6269_vm14, %v6592_v44  ;;  %13410 = vmatmul.mubr.msk.f32.gmra.mrb[166].mxu1 %vm6269_vm14, %v6702_v25  ;;  %v14057_v44 = vpack.c.bf16 %v6947_v40, %v6944_v32  ;;  %v6943_v25 = vld [vmem:[#allocation52 + $0x60] sm:$0xff]  ;;  %v6969_v32 = vld [vmem:[#allocation52 + $0x130] sm:$0xff]  ;;  %v6972_v40 = vld [vmem:[#allocation52 + $0x148] sm:$0xff] }
0x1172   :  { %14030 = vmatpush3.bf16.msra.mxu0 %v14029_v5  ;;  %13393 = vmatprep.mubr.msk.f32.mxu0 %vm16030_vm1, %v18974_v39  ;;  %v14085_v5 = vpack.c.bf16 %v6942_v23, %v6939_v4  ;;  %v6970_v23 = vld [vmem:[#allocation52 + $0x138] sm:$0xff] }
0x1173   :  { %13412 = vmatprep.mubr.msk.f32.mxu1 %vm16030_vm1, %v18974_v39  ;;  %14031 = vmatprep.subr.bf16.mxu0 %v16029_v17 }
0x1175   :  { %13394 = vmatmul.mubr.msk.f32.gmra.mrb[148].mxu0 %vm6269_vm14, %v6593_v0  ;;  %13413 = vmatmul.mubr.msk.f32.gmra.mrb[168].mxu1 %vm6269_vm14, %v6703_v53  ;;  %v6948_v0 = vld [vmem:[#allocation52 + $0x88] sm:$0xff]  ;;  %v6950_v53 = vld [vmem:[#allocation52 + $0x98] sm:$0xff] }
0x1176   :  { %14033 = vmatpush3.bf16.msra.mxu0 %v14032_v58  ;;  %13447 = vmatprep.mubr.msk.f32.mxu0 %vm16030_vm1, %v18974_v39  ;;  %v14059_v58 = vpack.c.bf16 %v6946_v3, %v6943_v25  ;;  %v14088_v10 = vpack.c.bf16 %v6948_v0, %v6945_v52  ;;  %v6974_v25 = vld [vmem:[#allocation52 + $0x158] sm:$0xff]  ;;  %v6977_v3 = vld [vmem:[#allocation52 + $0x170] sm:$0xff]  ;;  %v6976_v0 = vld [vmem:[#allocation52 + $0x168] sm:$0xff] }
0x1177   :  { %14034 = vmatprep.subr.bf16.mxu0 %v16029_v17  ;;  %7060 = vmatprep.mubr.f32.mxu1 %v18974_v39  ;;  %v14077_v52 = vpack.c.bf16 %v6977_v3, %v6974_v25 }
0x117a   :  { %14036 = vmatpush3.bf16.msra.mxu0 %v14035_v33  ;;  %v14061_v33 = vpack.c.bf16 %v6953_v60, %v6950_v53  ;;  %v6975_v53 = vld [vmem:[#allocation52 + $0x160] sm:$0xff] }
0x117b   :  { %14037 = vmatprep.subr.bf16.mxu0 %v16029_v17 }
0x117e   :  { %14039 = vmatpush3.bf16.msra.mxu0 %v14038_v50  ;;  %v6951_v50 = vld [vmem:[#allocation52 + $0xa0] sm:$0xff] }
0x117f   :  { %14040 = vmatprep.subr.bf16.mxu0 %v16029_v17  ;;  %v14091_v27 = vpack.c.bf16 %v6954_v29, %v6951_v50  ;;  %v14105_v50 = vpack.c.bf16 %v7166_v16, %v7164_v28  ;;  %v6170_v29 = vrot.slane %v17842_v59, %v17230_v8 }
0x1182   :  { %14042 = vmatpush3.bf16.msra.mxu0 %v14041_v13  ;;  %v6959_v13 = vld [vmem:[#allocation52 + $0xe0] sm:$0xff] }
0x1183   :  { %14043 = vmatprep.subr.bf16.mxu0 %v16029_v17 }
0x1186   :  { %14045 = vmatpush3.bf16.msra.mxu0 %v14044_v55  ;;  %v14065_v55 = vpack.c.bf16 %v6959_v13, %v6956_v34  ;;  %v6244_v34 = vadd.f32 %v17846_v41, %v6170_v29 }
0x1187   :  { %14046 = vmatprep.subr.bf16.mxu0 %v16029_v17 }
0x118a   :  { %14048 = vmatpush3.bf16.msra.mxu0 %v14047_v2  ;;  %v6957_v2 = vld [vmem:[#allocation52 + $0xd0] sm:$0xff] }
0x118b   :  { %14081 = vmatprep.subr.bf16.mxu0 %v16029_v17 }
0x118d   :  { %13448 = vmatmul.mubr.f32.vlgmr.msra.gmra.mrb[150].mxu0 %v17829_v22  ;;  %v14051_v22 = vpack.c.bf16 %v6934_v6, %v6931_v37  ;;  %v14067_v37 = vpack.c.bf16 %v6958_v14, %v6955_v18  ;;  %v14094_v6 = vpack.c.bf16 %v6960_v63, %v6957_v2  ;;  %v6256_v63 = vadd.f32 %v17856_v57, %v6170_v29 }
0x118e   :  { %13450 = vmatprep.mubr.msk.f32.mxu0 %vm16030_vm1, %v18974_v39  ;;  %14083 = vmatpush3.bf16.msra.mxu0 %v14082_v49  ;;  %v6963_v49 = vld [vmem:[#allocation52 + $0x100] sm:$0xff] }
0x118f   :  { %14052 = vmatpush1.bf16.msra.mxu1 %v14051_v22  ;;  %14084 = vmatprep.subr.bf16.mxu0 %v16029_v17  ;;  %v6961_v22 = vld [vmem:[#allocation52 + $0xf0] sm:$0xff] }
0x1191   :  { %13451 = vmatmul.mubr.f32.gmra.mrb[152].mxu0 %v17831_v36  ;;  %v6938_v36 = vld [vmem:[#allocation52 + $0x38] sm:$0xff] }
0x1192   :  { %13453 = vmatprep.mubr.msk.f32.mxu0 %vm16030_vm1, %v18974_v39  ;;  %v14053_v7 = vpack.c.bf16 %v6941_v46, %v6938_v36  ;;  %14086 = vmatpush3.bf16.msra.mxu0 %v14085_v5  ;;  %v6966_v36 = vld [vmem:[#allocation52 + $0x118] sm:$0xff]  ;;  %v6968_v46 = vld [vmem:[#allocation52 + $0x128] sm:$0xff] }
0x1193   :  { %14087 = vmatprep.subr.bf16.mxu0 %v16029_v17 }
0x1194   :  { %14054 = vmatprep.subr.bf16.mxu1 %v14053_v7  ;;  %v6971_v7 = vld [vmem:[#allocation52 + $0x140] sm:$0xff] }
0x1195   :  { %13454 = vmatmul.mubr.f32.gmra.mrb[154].mxu0 %v17833_v21  ;;  %v6940_v21 = vld [vmem:[#allocation52 + $0x48] sm:$0xff]  ;;  %v14073_v4 = vpack.c.bf16 %v6971_v7, %v6968_v46 }
0x1196   :  { %13488 = vmatprep.mubr.msk.f32.mxu0 %vm16030_vm1, %v18974_v39  ;;  %v14055_v20 = vpack.c.bf16 %v6940_v21, %v6937_v45  ;;  %14089 = vmatpush3.bf16.msra.mxu0 %v14088_v10  ;;  %v14071_v45 = vpack.c.bf16 %v6964_v56, %v6961_v22  ;;  %v14097_v21 = vpack.c.bf16 %v6966_v36, %v6963_v49  ;;  %v6978_v10 = vld [vmem:[#allocation52 + $0x178] sm:$0xff] }
0x1197   :  { %14090 = vmatprep.subr.bf16.mxu0 %v16029_v17 }
0x1198   :  { %14056 = vmatpush1.bf16.msra.mxu1 %v14055_v20  ;;  %v6967_v20 = vld [vmem:[#allocation52 + $0x120] sm:$0xff] }
0x1199   :  { %14058 = vmatprep.subr.bf16.mxu1 %v14057_v44  ;;  %v14075_v5 = vpack.c.bf16 %v6970_v23, %v6967_v20  ;;  %v14100_v44 = vpack.c.bf16 %v6972_v40, %v6969_v32 }
0x119a   :  { %14092 = vmatpush3.bf16.msra.mxu0 %v14091_v27 }
0x119b   :  { %14093 = vmatprep.subr.bf16.mxu0 %v16029_v17 }
0x119c   :  { %14060 = vmatpush1.bf16.msra.mxu1 %v14059_v58  ;;  %v6973_v58 = vld [vmem:[#allocation52 + $0x150] sm:$0xff] }
0x119d   :  { %14062 = vmatprep.subr.bf16.mxu1 %v14061_v33  ;;  %v14079_v60 = vpack.c.bf16 %v6976_v0, %v6973_v58  ;;  %v14103_v33 = vpack.c.bf16 %v6978_v10, %v6975_v53 }
0x119e   :  { %14095 = vmatpush3.bf16.msra.mxu0 %v14094_v6 }
0x119f   :  { %14096 = vmatprep.subr.bf16.mxu0 %v16029_v17 }
0x11a0   :  { %14064 = vmatpush1.bf16.msra.mxu1 %v14063_v24 }
0x11a1   :  { %14066 = vmatprep.subr.bf16.mxu1 %v14065_v55  ;;  %v6250_v55 = vadd.f32 %v17850_v42, %v6170_v29 }
0x11a2   :  { %14098 = vmatpush3.bf16.msra.mxu0 %v14097_v21 }
0x11a3   :  { %14099 = vmatprep.subr.bf16.mxu0 %v16029_v17 }
0x11a4   :  { %14068 = vmatpush1.bf16.msra.mxu1 %v14067_v37 }
0x11a5   :  { %14070 = vmatprep.subr.bf16.mxu1 %v14069_v61 }
0x11a6   :  { %14101 = vmatpush3.bf16.msra.mxu0 %v14100_v44 }
0x11a7   :  { %14102 = vmatprep.subr.bf16.mxu0 %v16029_v17 }
0x11a8   :  { %14072 = vmatpush1.bf16.msra.mxu1 %v14071_v45 }
0x11a9   :  { %14074 = vmatprep.subr.bf16.mxu1 %v14073_v4 }
0x11aa   :  { %14104 = vmatpush3.bf16.msra.mxu0 %v14103_v33 }
0x11ac   :  { %14076 = vmatpush1.bf16.msra.mxu1 %v14075_v5 }
0x11ad   :  { %14078 = vmatprep.subr.bf16.mxu1 %v14077_v52 }
0x11b0   :  { %14080 = vmatpush1.bf16.msra.mxu1 %v14079_v60 }
0x11b1   :  { %14106 = vmatprep.subr.bf16.mxu1 %v14105_v50 }
0x1227   :  { %v6349_v13 = vpop.f32.mrb[152].mxu1 }
0x1228   :  { %v6363_v24 = vadd.f32 %v6349_v13, %v6244_v34  ;;  %v13332_v27 = vpop.f32.mrb[153].mxu1 }
0x1229   :  { %v7163_v27 = vld [vmem:[#allocation50 + $0xc0] sm:$0xff] }
0x122b   :  { %v6354_v18 = vpop.f32.mrb[154].mxu1 }
0x122c   :  { %v6364_v14 = vadd.f32 %v6354_v18, %v6250_v55  ;;  %v13335_v2 = vpop.f32.mrb[155].mxu1  ;;  %v7165_v55 = vld [vmem:[#allocation50 + $0xd0] sm:$0xff] }
0x122d   :  { %v7168_v2 = vld [vmem:[#allocation50 + $0xe8] sm:$0xff] }
0x122f   :  { %v6359_v15 = vpop.f32.mrb[156].mxu1 }
0x1230   :  { %v6365_v26 = vadd.f32 %v6359_v15, %v6256_v63  ;;  %v13338_v37 = vpop.f32.mrb[157].mxu1  ;;  %v7170_v63 = vld [vmem:[#allocation50 + $0xf8] sm:$0xff] }
0x1234   :  { %v6458_v6 = vpop.f32.mrb[138].mxu0  ;;  %v6568_v61 = vpop.f32.mrb[158].mxu1 }
0x1235   :  { %v6472_v22 = vadd.f32 %v6458_v6, %v6363_v24  ;;  %v13351_v56 = vpop.f32.mrb[139].mxu0  ;;  %v13370_v59 = vpop.f32.mrb[159].mxu1  ;;  %v14109_v6 = vpack.c.bf16 %v7170_v63, %v7168_v2  ;;  %v7290_v2 = vld [vmem:[#allocation50 + $0x8] sm:$0xff]  ;;  %v7292_v63 = vld [vmem:[#allocation50 + $0x18] sm:$0xff] }
0x1237   :  { %v6582_v49 = vadd.f32 %v6568_v61, %v6472_v22  ;;  %v7167_v61 = vld [vmem:[#allocation50 + $0xe0] sm:$0xff]  ;;  %v7169_v22 = vld [vmem:[#allocation50 + $0xf0] sm:$0xff] }
0x1238   :  { %v6463_v41 = vpop.f32.mrb[140].mxu0  ;;  %v6573_v36 = vpop.f32.mrb[160].mxu1 }
0x1239   :  { %v6473_v46 = vadd.f32 %v6463_v41, %v6364_v14  ;;  %v13354_v7 = vpop.f32.mrb[141].mxu0  ;;  %v13373_v45 = vpop.f32.mrb[161].mxu1  ;;  %v14111_v41 = vpack.c.bf16 %v7169_v22, %v7167_v61  ;;  %v7937_v22 = vld [vmem:[#allocation55 + $0x18] sm:$0xff] }
0x123b   :  { %v6583_v42 = vadd.f32 %v6573_v36, %v6473_v46 }
0x123c   :  { %v6468_v21 = vpop.f32.mrb[142].mxu0  ;;  %v6578_v4 = vpop.f32.mrb[162].mxu1 }
0x123d   :  { %v6474_v20 = vadd.f32 %v6468_v21, %v6365_v26  ;;  %v13357_v23 = vpop.f32.mrb[143].mxu0  ;;  %v13376_v57 = vpop.f32.mrb[163].mxu1  ;;  %v14107_v26 = vpack.c.bf16 %v7165_v55, %v7163_v27  ;;  %v7171_v55 = vld [vmem:[#allocation50 + $0x100] sm:$0xff] }
0x123f   :  { %v6584_v32 = vadd.f32 %v6578_v4, %v6474_v20 }
0x1240   :  { %v6678_v40 = vpop.f32.mrb[144].mxu0  ;;  %v6788_v5 = vpop.f32.mrb[164].mxu1 }
0x1241   :  { %v6692_v44 = vadd.f32 %v6678_v40, %v6582_v49  ;;  %v13389_v25 = vpop.f32.mrb[145].mxu0  ;;  %v13408_v3 = vpop.f32.mrb[165].mxu1 }
0x1243   :  { %v6802_v52 = vadd.f32 %v6788_v5, %v6692_v44 }
0x1244   :  { %v6683_v58 = vpop.f32.mrb[146].mxu0  ;;  %v6793_v0 = vpop.f32.mrb[166].mxu1 }
0x1245   :  { %v6693_v53 = vadd.f32 %v6683_v58, %v6583_v42  ;;  %v13392_v60 = vpop.f32.mrb[147].mxu0  ;;  %v13411_v10 = vpop.f32.mrb[167].mxu1 }
0x1247   :  { %v6803_v33 = vadd.f32 %v6793_v0, %v6693_v53 }
0x1248   :  { %v6688_v28 = vpop.f32.mrb[148].mxu0  ;;  %v6798_v16 = vpop.f32.mrb[168].mxu1 }
0x1249   :  { %v6694_v50 = vadd.f32 %v6688_v28, %v6584_v32  ;;  %v13395_v29 = vpop.f32.mrb[149].mxu0  ;;  %v13414_v34 = vpop.f32.mrb[169].mxu1 }
0x124b   :  { %v6804_v13 = vadd.f32 %v6798_v16, %v6694_v50 }
0x1260   :  { %v6911_v24 = vpop.f32.mrb[150].mxu0 }
0x1261   :  { %v6925_v18 = vadd.f32 %v6911_v24, %v6802_v52  ;;  %v13449_v14 = vpop.f32.mrb[151].mxu0  ;;  %v7174_v24 = vld [vmem:[#allocation50 + $0x118] sm:$0xf] }
0x1263   :  { %v6928_v15 = vmax.f32 %v6925_v18, 0.0  ;;  %v7173_v18 = vld [vmem:[#allocation50 + $0x110] sm:$0xf] }
0x1264   :  { %v6916_v37 = vpop.f32.mrb[152].mxu0  ;;  %v14116_v14 = vpack.c.bf16 %v7173_v18, %v7171_v55 }
0x1265   :  { %v6926_v56 = vadd.f32 %v6916_v37, %v6803_v33  ;;  %v13452_v59 = vpop.f32.mrb[153].mxu0  ;;  %7061 = vmatmul.mubr.f32.vlgmr.msra.gmra.mrb[170].mxu1 %v6928_v15  ;;  %13489 = vmatmul.mubr.f32.vlgmr.msra.gmra.mrb[156].mxu0 %v6928_v15  ;;  %v7783_v36 = vrot.slane %v6928_v15, 7  ;;  %v7792_v7 = vrot.slane %v6928_v15, 1  ;;  %v7938_v37 = vld [vmem:[#allocation55 + $0x20] sm:$0xff] }
0x1266   :  { %7066 = vmatprep.mubr.f32.mxu1 %v18974_v39  ;;  %13491 = vmatprep.mubr.msk.f32.mxu0 %vm16030_vm1, %v18974_v39  ;;  %v7944_v59 = vld [vmem:[#allocation55 + $0x50] sm:$0xff] }
0x1267   :  { %v6929_v49 = vmax.f32 %v6926_v56, 0.0  ;;  %14108 = vmatpush1.bf16.msra.mxu1 %v14107_v26  ;;  %v7935_v26 = vld [vmem:[#allocation55 + $0x8] sm:$0xff]  ;;  %v7941_v56 = vld [vmem:[#allocation55 + $0x38] sm:$0xff] }
0x1268   :  { %v6921_v46 = vpop.f32.mrb[154].mxu0  ;;  %14110 = vmatprep.subr.bf16.mxu1 %v14109_v6  ;;  %v7934_v6 = vld [vmem:[#allocation55] sm:$0xff]  ;;  %v14207_v61 = vpack.c.bf16 %v7938_v37, %v7935_v26 }
0x1269   :  { %v7793_v45 = vrot.slane %v6929_v49, 1  ;;  %v6927_v42 = vadd.f32 %v6921_v46, %v6804_v13  ;;  %v13455_v21 = vpop.f32.mrb[155].mxu0  ;;  %7067 = vmatmul.mubr.f32.gmra.mrb[172].mxu1 %v6929_v49  ;;  %13492 = vmatmul.mubr.f32.gmra.mrb[158].mxu0 %v6929_v49  ;;  %v7784_v4 = vrot.slane %v6929_v49, 7  ;;  %v7172_v13 = vld [vmem:[#allocation50 + $0x108] sm:$0xff]  ;;  %v18023_v26 = vld [vmem:[#allocation40 + $0xd] sm:$0x7] }
0x126a   :  { %7072 = vmatprep.mubr.f32.mxu1 %v18974_v39  ;;  %13494 = vmatprep.mubr.msk.f32.mxu0 %vm16030_vm1, %v18974_v39  ;;  %v14113_v27 = vpack.c.bf16 %v7174_v24, %v7172_v13  ;;  %v7943_v46 = vld [vmem:[#allocation55 + $0x48] sm:$0xff]  ;;  %vm7175_vm1 = vcmask 359424  }
0x126b   :  { %v6930_v20 = vmax.f32 %v6927_v42, 0.0  ;;  %14112 = vmatpush1.bf16.msra.mxu1 %v14111_v41  ;;  %v7796_v23 = vsel %vm1802_vm3, %v7792_v7, %v7793_v45  ;;  %v7787_v57 = vsel %vm1581_vm4, %v7783_v36, %v7784_v4  ;;  %v14211_v41 = vpack.c.bf16 %v7944_v59, %v7941_v56  ;;  %14208 = vmatprep.subr.bf16.mxu0 %v14207_v61  ;;  %v7967_v13 = vld [vmem:[#allocation55 + $0x108] sm:$0xff]  ;;  %v7291_v61 = vld [vmem:[#allocation50 + $0x10] sm:$0xff]  ;;  %v7296_v59 = vld [vmem:[#allocation50 + $0x38] sm:$0xff] }
0x126c   :  { %v7798_v5 = vmul.f32 %v7796_v23, %v17425_v35  ;;  %v7790_v44 = vmul.f32 %v7787_v57, %v17439_v38  ;;  %14115 = vmatprep.subr.msk.bf16.mxu1 %vm17088_vm9, %v14113_v27  ;;  %v7953_v23 = vld [vmem:[#allocation55 + $0x98] sm:$0xff]  ;;  %v7956_v57 = vld [vmem:[#allocation55 + $0xb0] sm:$0xff]  ;;  %v7971_v24 = vld [vmem:[#allocation55 + $0x128] sm:$0xff] }
0x126d   :  { %v7785_v32 = vrot.slane %v6930_v20, 7  ;;  %7073 = vmatmul.mubr.f32.gmra.mrb[174].mxu1 %v6930_v20  ;;  %13495 = vmatmul.mubr.f32.gmra.mrb[160].mxu0 %v6930_v20  ;;  %v7794_v40 = vrot.slane %v6930_v20, 1  ;;  %v7974_v27 = vld [vmem:[#allocation55 + $0x140] sm:$0xff]  ;;  %v7294_v56 = vld [vmem:[#allocation50 + $0x28] sm:$0xff] }
0x126e   :  { %7255 = vmatprep.mubr.f32.mxu1 %v18974_v39  ;;  %v14231_v18 = vpack.c.bf16 %v7974_v27, %v7971_v24 }
0x126f   :  { %v7788_v25 = vsel %vm1581_vm4, %v7785_v32, %v7783_v36  ;;  %v7795_v3 = vsel %vm1802_vm3, %v7793_v45, %v7794_v40  ;;  %v7786_v52 = vsel %vm1581_vm4, %v7784_v4, %v7785_v32  ;;  %v7797_v58 = vsel %vm1802_vm3, %v7794_v40, %v7792_v7  ;;  %14118 = vmatpush1.bf16.msk.msra.mxu1 %vm17088_vm9, %v14116_v14  ;;  %v7940_v36 = vld [vmem:[#allocation55 + $0x30] sm:$0xff]  ;;  %v7947_v7 = vld [vmem:[#allocation55 + $0x68] sm:$0xff]  ;;  %v7950_v45 = vld [vmem:[#allocation55 + $0x80] sm:$0xff] }
0x1270   :  { %v7789_v0 = vmul.f32 %v7788_v25, %v17431_v12  ;;  %v7799_v53 = vmul.f32 %v7795_v3, %v17437_v47  ;;  %v7791_v60 = vmul.f32 %v7786_v52, %v17454_v11  ;;  %v7800_v10 = vmul.f32 %v7797_v58, %v17452_v1  ;;  %v7946_v4 = vld [vmem:[#allocation55 + $0x60] sm:$0xff]  ;;  %v7959_v25 = vld [vmem:[#allocation55 + $0xc8] sm:$0xff] }
0x1271   :  { %v14213_v42 = vpack.c.bf16 %v7943_v46, %v7940_v36  ;;  %v14215_v21 = vpack.c.bf16 %v7950_v45, %v7947_v7  ;;  %v14219_v40 = vpack.c.bf16 %v7956_v57, %v7953_v23  ;;  %v7962_v3 = vld [vmem:[#allocation55 + $0xe0] sm:$0xff]  ;;  %v14123_v7 = vpack.c.bf16 %v7296_v59, %v7294_v56  ;;  %v7300_v23 = vld [vmem:[#allocation50 + $0x58] sm:$0xf] }
0x1272   :  { %v7801_v33 = vmax.f32 %v7789_v0, %v7798_v5  ;;  %v7802_v28 = vmax.f32 %v7790_v44, %v7799_v53  ;;  %v7803_v16 = vmax.f32 %v7791_v60, %v7800_v10  ;;  %v7952_v5 = vld [vmem:[#allocation55 + $0x90] sm:$0xff]  ;;  %v7955_v44 = vld [vmem:[#allocation55 + $0xa8] sm:$0xff]  ;;  %v14223_v58 = vpack.c.bf16 %v7962_v3, %v7959_v25  ;;  %v7958_v0 = vld [vmem:[#allocation55 + $0xc0] sm:$0xff] }
0x1273   :  { %v14221_v52 = vpack.c.bf16 %v7955_v44, %v7952_v5  ;;  %v7961_v53 = vld [vmem:[#allocation55 + $0xd8] sm:$0xff]  ;;  %v7968_v10 = vld [vmem:[#allocation55 + $0x110] sm:$0xff]  ;;  %v7970_v14 = vld [vmem:[#allocation55 + $0x120] sm:$0xff] }
0x1274   :  { %v18010_v50 = vmax.f32 %v6928_v15, %v7801_v33  ;;  %v18012_v29 = vmax.f32 %v6929_v49, %v7802_v28  ;;  %v18014_v34 = vmax.f32 %v6930_v20, %v7803_v16  ;;  %v14119_v15 = vpack.c.bf16 %v7292_v63, %v7290_v2  ;;  %v7949_v20 = vld [vmem:[#allocation55 + $0x78] sm:$0xff]  ;;  %v7964_v16 = vld [vmem:[#allocation55 + $0xf0] sm:$0xff] }
0x1275   :  { %v14209_v49 = vpack.c.bf16 %v7937_v22, %v7934_v6  ;;  %v14217_v32 = vpack.c.bf16 %v7949_v20, %v7946_v4  ;;  %v7965_v60 = vld [vmem:[#allocation55 + $0xf8] sm:$0xff]  ;;  %v14225_v33 = vpack.c.bf16 %v7961_v53, %v7958_v0  ;;  %v14229_v55 = vpack.c.bf16 %v7967_v13, %v7964_v16  ;;  %v7289_v6 = vld [vmem:[#allocation50] sm:$0xff]  ;;  %v7298_v20 = vld [vmem:[#allocation50 + $0x48] sm:$0xff] }
0x1276   :  { %14120 = vmatprep.subr.bf16.mxu1 %v14119_v15  ;;  %v14227_v28 = vpack.c.bf16 %v7968_v10, %v7965_v60  ;;  %v7973_v2 = vld [vmem:[#allocation55 + $0x138] sm:$0xff]  ;;  %v18021_v15 = vsub.s32 2, %v16838_v43  ;;  %v14121_v36 = vpack.c.bf16 %v7291_v61, %v7289_v6  ;;  %v14127_v3 = vpack.c.bf16 %v7300_v23, %v7298_v20  ;;  %v7419_v23 = vld [vmem:[#allocation50 + $0x80] sm:$0xff] }
0x1277   :  { %14210 = vmatpush1.bf16.msra.mxu0 %v14209_v49  ;;  %v14233_v63 = vpack.c.bf16 %v7973_v2, %v7970_v14  ;;  %v7418_v0 = vld [vmem:[#allocation50 + $0x78] sm:$0xff]  ;;  %v7415_v2 = vld [vmem:[#allocation50 + $0x60] sm:$0xff] }
0x1278   :  { %14212 = vmatprep.subr.bf16.mxu0 %v14211_v41  ;;  %v6992_v37 = vrot.slane %v18023_v26, %v18021_v15 }
0x127b   :  { %14214 = vmatpush1.bf16.msra.mxu0 %v14213_v42  ;;  %v7293_v42 = vld [vmem:[#allocation50 + $0x20] sm:$0xff] }
0x127c   :  { %14216 = vmatprep.subr.bf16.mxu0 %v14215_v21  ;;  %v7295_v21 = vld [vmem:[#allocation50 + $0x30] sm:$0xff] }
0x127f   :  { %14218 = vmatpush1.bf16.msra.mxu0 %v14217_v32  ;;  %v14125_v32 = vpack.c.bf16 %v7295_v21, %v7293_v42 }
0x1280   :  { %14220 = vmatprep.subr.bf16.mxu0 %v14219_v40  ;;  %v7299_v40 = vld [vmem:[#allocation50 + $0x50] sm:$0xf] }
0x1283   :  { %14222 = vmatpush1.bf16.msra.mxu0 %v14221_v52  ;;  %v7297_v52 = vld [vmem:[#allocation50 + $0x40] sm:$0xff] }
0x1284   :  { %14224 = vmatprep.subr.bf16.mxu0 %v14223_v58  ;;  %v7416_v58 = vld [vmem:[#allocation50 + $0x68] sm:$0xff] }
0x1285   :  { %v14133_v14 = vpack.c.bf16 %v7418_v0, %v7416_v58 }
0x1287   :  { %14226 = vmatpush1.bf16.msra.mxu0 %v14225_v33 }
0x1288   :  { %14228 = vmatprep.subr.bf16.mxu0 %v14227_v28 }
0x128b   :  { %14230 = vmatpush1.bf16.msra.mxu0 %v14229_v55 }
0x128c   :  { %14232 = vmatprep.subr.bf16.mxu0 %v14231_v18  ;;  %v14130_v18 = vpack.c.bf16 %v7299_v40, %v7297_v52  ;;  %v7424_v40 = vld [vmem:[#allocation50 + $0xa8] sm:$0xff] }
0x128f   :  { %14234 = vmatpush1.bf16.msra.mxu0 %v14233_v63  ;;  %v7417_v63 = vld [vmem:[#allocation50 + $0x70] sm:$0xff] }
0x1338   :  { %v7145_v22 = vpop.f32.mrb[156].mxu0 }
0x1339   :  { %v7146_v49 = vadd.f32 %v7145_v22, %v6992_v37  ;;  %v13490_v41 = vpop.f32.mrb[157].mxu0 }
0x133a   :  { %v7422_v41 = vld [vmem:[#allocation50 + $0x98] sm:$0xff] }
0x133b   :  { %v18027_v46 = vmax.f32 %v7146_v49, 0.0  ;;  %v7420_v49 = vld [vmem:[#allocation50 + $0x88] sm:$0xff] }
0x133c   :  { %v7150_v45 = vpop.f32.mrb[158].mxu0  ;;  %v14137_v20 = vpack.c.bf16 %v7422_v41, %v7420_v49  ;;  %v7550_v49 = vld [vmem:[#allocation50 + $0x168] sm:$0xff]  ;;  %v7552_v41 = vld [vmem:[#allocation50 + $0x178] sm:$0xf] }
0x133d   :  { %v13493_v4 = vpop.f32.mrb[159].mxu0  ;;  %11724 = vmatmul.mubr.msk.f32.vlgmr.msra.gmra.mrb[170].mxu1 %vm7175_vm1, %v18027_v46  ;;  %v7151_v57 = vadd.f32 %v7150_v45, %v6992_v37  ;;  %v7280_v5 = vrot.slane %v18027_v46, 6  ;;  %v7405_v53 = vrot.slane %v18027_v46, 7  ;;  %v7531_v60 = vrot.slane %v18027_v46, 1 }
0x133e   :  { %14122 = vmatpush1.bf16.msra.mxu1 %v14121_v36  ;;  %7261 = vmatprep.mubr.f32.mxu1 %v18974_v39  ;;  %v7657_v10 = vrot.slane %v18027_v46, 2  ;;  %v14135_v36 = vpack.c.bf16 %v7417_v63, %v7415_v2 }
0x133f   :  { %14124 = vmatprep.subr.bf16.mxu1 %v14123_v7  ;;  %v7160_v44 = vmax.f32 %v7151_v57, 0.0  ;;  %v7421_v57 = vld [vmem:[#allocation50 + $0x90] sm:$0xff] }
0x1340   :  { %v7155_v25 = vpop.f32.mrb[160].mxu0  ;;  %v14139_v58 = vpack.c.bf16 %v7421_v57, %v7419_v23 }
0x1341   :  { %v7156_v33 = vadd.f32 %v7155_v25, %v6992_v37  ;;  %v13496_v28 = vpop.f32.mrb[161].mxu0  ;;  %v7532_v16 = vrot.slane %v7160_v44, 1  ;;  %v7658_v13 = vrot.slane %v7160_v44, 2  ;;  %11725 = vmatmul.mubr.msk.f32.gmra.mrb[172].mxu1 %vm7175_vm1, %v7160_v44  ;;  %v7281_v24 = vrot.slane %v7160_v44, 6 }
0x1342   :  { %v7406_v27 = vrot.slane %v7160_v44, 7  ;;  %14126 = vmatpush1.bf16.msra.mxu1 %v14125_v32  ;;  %7267 = vmatprep.mubr.f32.mxu1 %v18974_v39  ;;  %v7542_v28 = vld [vmem:[#allocation50 + $0x128] sm:$0xff] }
0x1343   :  { %v7161_v55 = vmax.f32 %v7156_v33, 0.0  ;;  %v18040_v6 = vsel %vm1802_vm3, %v7531_v60, %v7532_v16  ;;  %v18044_v37 = vsel %vm3025_vm12, %v7657_v10, %v7658_v13  ;;  %14129 = vmatprep.subr.msk.bf16.mxu1 %vm17088_vm9, %v14127_v3  ;;  %v7284_v61 = vsel %vm2602_vm11, %v7280_v5, %v7281_v24  ;;  %v7425_v33 = vld [vmem:[#allocation50 + $0xb0] sm:$0xf] }
0x1344   :  { %v18052_v22 = vsel %vm1581_vm4, %v7405_v53, %v7406_v27  ;;  %v7287_v0 = vmul.f32 %v7284_v61, %v17427_v54 }
0x1345   :  { %v7282_v56 = vrot.slane %v7161_v55, 6  ;;  %v7407_v59 = vrot.slane %v7161_v55, 7  ;;  %11726 = vmatmul.mubr.msk.f32.gmra.mrb[174].mxu1 %vm7175_vm1, %v7161_v55  ;;  %v7533_v46 = vrot.slane %v7161_v55, 1  ;;  %v7659_v7 = vrot.slane %v7161_v55, 2  ;;  %v7543_v55 = vld [vmem:[#allocation50 + $0x130] sm:$0xff] }
0x1346   :  { %14132 = vmatpush1.bf16.msk.msra.mxu1 %vm17088_vm9, %v14130_v18  ;;  %7380 = vmatprep.mubr.f32.mxu1 %v18974_v39  ;;  %v7546_v18 = vld [vmem:[#allocation50 + $0x148] sm:$0xff] }
0x1347   :  { %v7285_v45 = vsel %vm2602_vm11, %v7282_v56, %v7280_v5  ;;  %v7410_v42 = vsel %vm1581_vm4, %v7407_v59, %v7405_v53  ;;  %v7283_v21 = vsel %vm2602_vm11, %v7281_v24, %v7282_v56  ;;  %14134 = vmatprep.subr.bf16.mxu1 %v14133_v14  ;;  %v7408_v32 = vsel %vm1581_vm4, %v7406_v27, %v7407_v59  ;;  %v7426_v5 = vld [vmem:[#allocation50 + $0xb8] sm:$0xf]  ;;  %v7541_v27 = vld [vmem:[#allocation50 + $0x120] sm:$0xff]  ;;  %v7547_v59 = vld [vmem:[#allocation50 + $0x150] sm:$0xff] }
0x1348   :  { %v7286_v4 = vmul.f32 %v7285_v45, %v17429_v31  ;;  %v18069_v44 = vsel %vm1802_vm3, %v7532_v16, %v7533_v46  ;;  %v18073_v25 = vsel %vm1802_vm3, %v7533_v46, %v7531_v60  ;;  %v18077_v3 = vsel %vm3025_vm12, %v7658_v13, %v7659_v7  ;;  %v7423_v60 = vld [vmem:[#allocation50 + $0xa0] sm:$0xff]  ;;  %v7544_v16 = vld [vmem:[#allocation50 + $0x138] sm:$0xff] }
0x1349   :  { %v18082_v52 = vsel %vm3025_vm12, %v7659_v7, %v7657_v10  ;;  %v14141_v53 = vpack.c.bf16 %v7426_v5, %v7424_v40  ;;  %v14144_v13 = vpack.c.bf16 %v7425_v33, %v7423_v60  ;;  %v7288_v10 = vmul.f32 %v7283_v21, %v17433_v48  ;;  %v7548_v14 = vld [vmem:[#allocation50 + $0x158] sm:$0xff]  ;;  %v7545_v56 = vld [vmem:[#allocation50 + $0x140] sm:$0xff]  ;;  %v7551_v21 = vld [vmem:[#allocation50 + $0x170] sm:$0xf] }
0x134a   :  { %11729 = vmatmul.mubr.msk.f32.vlgmr.msra.gmra.mrb[170].mxu1 %vm7175_vm1, %v7286_v4  ;;  %v14147_v24 = vpack.c.bf16 %v7544_v16, %v7542_v28  ;;  %v14149_v2 = vpack.c.bf16 %v7543_v55, %v7541_v27  ;;  %v7411_v63 = vmul.f32 %v7410_v42, %v17431_v12  ;;  %v14151_v61 = vpack.c.bf16 %v7548_v14, %v7546_v18  ;;  %v7549_v45 = vld [vmem:[#allocation50 + $0x160] sm:$0xff]  ;;  %v7668_v4 = vld [vmem:[#allocation50 + $0x188] sm:$0xff]  ;;  %v7670_v42 = vld [vmem:[#allocation50 + $0x198] sm:$0xff] }
0x134b   :  { %14136 = vmatpush1.bf16.msra.mxu1 %v14135_v36  ;;  %7386 = vmatprep.mubr.f32.mxu1 %v18974_v39  ;;  %v14153_v36 = vpack.c.bf16 %v7547_v59, %v7545_v56  ;;  %v7412_v46 = vmul.f32 %v18052_v22, %v17439_v38  ;;  %v14155_v7 = vpack.c.bf16 %v7552_v41, %v7550_v49  ;;  %v7667_v40 = vld [vmem:[#allocation50 + $0x180] sm:$0xff]  ;;  %v7669_v5 = vld [vmem:[#allocation50 + $0x190] sm:$0xff]  ;;  %v7672_v22 = vld [vmem:[#allocation50 + $0x1a8] sm:$0xff] }
0x134c   :  { %14138 = vmatprep.subr.bf16.mxu1 %v14137_v20  ;;  %v14158_v20 = vpack.c.bf16 %v7551_v21, %v7549_v45  ;;  %v7413_v23 = vmul.f32 %v7408_v32, %v17454_v11  ;;  %v14161_v57 = vpack.c.bf16 %v7670_v42, %v7668_v4  ;;  %v7671_v60 = vld [vmem:[#allocation50 + $0x1a0] sm:$0xff]  ;;  %v7673_v33 = vld [vmem:[#allocation50 + $0x1b0] sm:$0xff]  ;;  %v7676_v28 = vld [vmem:[#allocation50 + $0x1c8] sm:$0xff]  ;;  %v7664_v4 = vmul.f32 %v18077_v3, %v17599_v30 }
0x134d   :  { %v7678_v16 = vld [vmem:[#allocation50 + $0x1d8] sm:$0xf]  ;;  %v7677_v27 = vld [vmem:[#allocation50 + $0x1d0] sm:$0xf]  ;;  %v7810_v18 = vld [vmem:[%s18975_s19 + $0x18] sm:$0xff]  ;;  %v7665_v3 = vmul.f32 %v18082_v52, %v17611_v51 }
0x134e   :  { %11730 = vmatmul.mubr.msk.f32.gmra.mrb[172].mxu1 %vm7175_vm1, %v7287_v0  ;;  %v14163_v0 = vpack.c.bf16 %v7669_v5, %v7667_v40  ;;  %v7808_v55 = vld [vmem:[%s18975_s19 + $0x8] sm:$0xff]  ;;  %v7814_v59 = vld [vmem:[%s18975_s19 + $0x38] sm:$0xff]  ;;  %v7815_v42 = vld [vmem:[%s18975_s19 + $0x40] sm:$0xff] }
0x134f   :  { %14140 = vmatpush1.bf16.msra.mxu1 %v14139_v58  ;;  %7392 = vmatprep.mubr.f32.mxu1 %v18974_v39  ;;  %v7674_v58 = vld [vmem:[#allocation50 + $0x1b8] sm:$0xff]  ;;  %v7818_v45 = vld [vmem:[%s18975_s19 + $0x58] sm:$0xff] }
0x1350   :  { %14143 = vmatprep.subr.msk.bf16.mxu1 %vm17088_vm9, %v14141_v53  ;;  %v7537_v53 = vmul.f32 %v18040_v6, %v17425_v35  ;;  %v14165_v32 = vpack.c.bf16 %v7674_v58, %v7672_v22  ;;  %v14169_v6 = vpack.c.bf16 %v7678_v16, %v7676_v28  ;;  %v7812_v56 = vld [vmem:[%s18975_s19 + $0x28] sm:$0xff]  ;;  %v7819_v22 = vld [vmem:[%s18975_s19 + $0x60] sm:$0xff]  ;;  %v7821_v58 = vld [vmem:[%s18975_s19 + $0x70] sm:$0xff] }
0x1351   :  { %v14179_v41 = vpack.c.bf16 %v7814_v59, %v7812_v56  ;;  %v7825_v52 = vld [vmem:[%s18975_s19 + $0x90] sm:$0xff]  ;;  %v7828_v28 = vld [vmem:[%s18975_s19 + $0xa8] sm:$0xff]  ;;  %v7830_v16 = vld [vmem:[%s18975_s19 + $0xb8] sm:$0xff] }
0x1352   :  { %11731 = vmatmul.mubr.msk.f32.gmra.mrb[174].mxu1 %vm7175_vm1, %v7288_v10  ;;  %v7538_v10 = vmul.f32 %v18069_v44, %v17437_v47  ;;  %v7539_v44 = vmul.f32 %v18073_v25, %v17452_v1  ;;  %v7663_v25 = vmul.f32 %v18044_v37, %v17591_v19 }
0x1353   :  { %14146 = vmatpush1.bf16.msk.msra.mxu1 %vm17088_vm9, %v14144_v13  ;;  %7506 = vmatprep.mubr.f32.mxu1 %v18974_v39  ;;  %v14167_v13 = vpack.c.bf16 %v7673_v33, %v7671_v60  ;;  %v7823_v33 = vld [vmem:[%s18975_s19 + $0x80] sm:$0xff] }
0x1354   :  { %14148 = vmatprep.subr.bf16.mxu1 %v14147_v24  ;;  %v7675_v24 = vld [vmem:[#allocation50 + $0x1c0] sm:$0xff] }
0x1355   :  { %v14172_v14 = vpack.c.bf16 %v7677_v27, %v7675_v24  ;;  %v7829_v24 = vld [vmem:[%s18975_s19 + $0xb0] sm:$0xff]  ;;  %v7832_v27 = vld [vmem:[%s18975_s19 + $0xc8] sm:$0xff] }
0x1356   :  { %11734 = vmatmul.mubr.msk.f32.vlgmr.msra.gmra.mrb[170].mxu1 %vm7175_vm1, %v7411_v63  ;;  %v7807_v63 = vld [vmem:[%s18975_s19] sm:$0xff] }
0x1357   :  { %14150 = vmatpush1.bf16.msra.mxu1 %v14149_v2  ;;  %7512 = vmatprep.mubr.f32.mxu1 %v18974_v39  ;;  %v14175_v2 = vpack.c.bf16 %v7810_v18, %v7808_v55  ;;  %v7834_v55 = vld [vmem:[%s18975_s19 + $0xd8] sm:$0xff] }
0x1358   :  { %14152 = vmatprep.subr.bf16.mxu1 %v14151_v61  ;;  %v7809_v61 = vld [vmem:[%s18975_s19 + $0x10] sm:$0xff] }
0x1359   :  { %v14177_v49 = vpack.c.bf16 %v7809_v61, %v7807_v63  ;;  %v7836_v63 = vld [vmem:[%s18975_s19 + $0xe8] sm:$0xff]  ;;  %v7838_v61 = vld [vmem:[%s18975_s19 + $0xf8] sm:$0xff] }
0x135a   :  { %11735 = vmatmul.mubr.msk.f32.gmra.mrb[172].mxu1 %vm7175_vm1, %v7412_v46  ;;  %v7813_v46 = vld [vmem:[%s18975_s19 + $0x30] sm:$0xff]  ;;  %v14203_v59 = vpack.c.bf16 %v7838_v61, %v7836_v63 }
0x135b   :  { %14154 = vmatpush1.bf16.msra.mxu1 %v14153_v36  ;;  %7518 = vmatprep.mubr.f32.mxu1 %v18974_v39  ;;  %v7811_v36 = vld [vmem:[%s18975_s19 + $0x20] sm:$0xff] }
0x135c   :  { %14157 = vmatprep.subr.msk.bf16.mxu1 %vm17088_vm9, %v14155_v7  ;;  %v7816_v7 = vld [vmem:[%s18975_s19 + $0x48] sm:$0xff]  ;;  %v14181_v21 = vpack.c.bf16 %v7813_v46, %v7811_v36 }
0x135d   :  { %v14183_v37 = vpack.c.bf16 %v7818_v45, %v7816_v7  ;;  %v7977_v36 = vld [vmem:[#allocation55 + $0x158] sm:$0xff]  ;;  %v7980_v46 = vld [vmem:[#allocation55 + $0x170] sm:$0xff] }
0x135e   :  { %11736 = vmatmul.mubr.msk.f32.gmra.mrb[174].mxu1 %vm7175_vm1, %v7413_v23  ;;  %v7820_v23 = vld [vmem:[%s18975_s19 + $0x68] sm:$0xff]  ;;  %v14235_v7 = vpack.c.bf16 %v7980_v46, %v7977_v36 }
0x135f   :  { %14160 = vmatpush1.bf16.msk.msra.mxu1 %vm17088_vm9, %v14158_v20  ;;  %7632 = vmatprep.mubr.f32.mxu1 %v18974_v39  ;;  %v7817_v20 = vld [vmem:[%s18975_s19 + $0x50] sm:$0xff]  ;;  %v7976_v45 = vld [vmem:[#allocation55 + $0x150] sm:$0xff] }
0x1360   :  { %14162 = vmatprep.subr.bf16.mxu1 %v14161_v57  ;;  %v7822_v57 = vld [vmem:[%s18975_s19 + $0x78] sm:$0xff]  ;;  %v14185_v40 = vpack.c.bf16 %v7817_v20, %v7815_v42  ;;  %14236 = vmatprep.subr.bf16.mxu0 %v14235_v7 }
0x1361   :  { %v14187_v5 = vpack.c.bf16 %v7822_v57, %v7820_v23  ;;  %v7936_v57 = vld [vmem:[#allocation55 + $0x10] sm:$0xff] }
0x1362   :  { %11739 = vmatmul.mubr.msk.f32.vlgmr.msra.gmra.mrb[170].mxu1 %vm7175_vm1, %v7537_v53  ;;  %v7826_v53 = vld [vmem:[%s18975_s19 + $0x98] sm:$0xff] }
0x1363   :  { %14164 = vmatpush1.bf16.msra.mxu1 %v14163_v0  ;;  %7638 = vmatprep.mubr.f32.mxu1 %v18974_v39  ;;  %v7824_v0 = vld [vmem:[%s18975_s19 + $0x88] sm:$0xff] }
0x1364   :  { %14166 = vmatprep.subr.bf16.mxu1 %v14165_v32  ;;  %v14189_v32 = vpack.c.bf16 %v7821_v58, %v7819_v22  ;;  %v14191_v60 = vpack.c.bf16 %v7826_v53, %v7824_v0 }
0x1366   :  { %11740 = vmatmul.mubr.msk.f32.gmra.mrb[172].mxu1 %vm7175_vm1, %v7538_v10  ;;  %v14195_v10 = vpack.c.bf16 %v7830_v16, %v7828_v28 }
0x1367   :  { %14168 = vmatpush1.bf16.msra.mxu1 %v14167_v13  ;;  %7644 = vmatprep.mubr.f32.mxu1 %v18974_v39  ;;  %v14193_v13 = vpack.c.bf16 %v7825_v52, %v7823_v33  ;;  %v7945_v33 = vld [vmem:[#allocation55 + $0x58] sm:$0xff] }
0x1368   :  { %14171 = vmatprep.subr.msk.bf16.mxu1 %vm17088_vm9, %v14169_v6  ;;  %v7827_v6 = vld [vmem:[%s18975_s19 + $0xa0] sm:$0xff] }
0x1369   :  { %v14197_v18 = vpack.c.bf16 %v7829_v24, %v7827_v6 }
0x136a   :  { %11741 = vmatmul.mubr.msk.f32.gmra.mrb[174].mxu1 %vm7175_vm1, %v7539_v44  ;;  %v7831_v44 = vld [vmem:[%s18975_s19 + $0xc0] sm:$0xff] }
0x136b   :  { %14174 = vmatpush1.bf16.msk.msra.mxu1 %vm17088_vm9, %v14172_v14  ;;  %7758 = vmatprep.mubr.f32.mxu1 %v18974_v39  ;;  %v14199_v14 = vpack.c.bf16 %v7834_v55, %v7832_v27 }
0x136c   :  { %14176 = vmatprep.subr.bf16.mxu1 %v14175_v2  ;;  %v7833_v2 = vld [vmem:[%s18975_s19 + $0xd0] sm:$0xff] }
0x136d   :  { %v14201_v56 = vpack.c.bf16 %v7833_v2, %v7831_v44  ;;  %v7951_v44 = vld [vmem:[#allocation55 + $0x88] sm:$0xff] }
0x136e   :  { %11744 = vmatmul.mubr.msk.f32.vlgmr.msra.gmra.mrb[170].mxu1 %vm7175_vm1, %v7663_v25  ;;  %v7837_v25 = vld [vmem:[%s18975_s19 + $0xf0] sm:$0xff] }
0x136f   :  { %14178 = vmatpush1.bf16.msra.mxu1 %v14177_v49  ;;  %7764 = vmatprep.mubr.f32.mxu1 %v18974_v39  ;;  %v7835_v49 = vld [vmem:[%s18975_s19 + $0xe0] sm:$0xff] }
0x1370   :  { %14180 = vmatprep.subr.bf16.mxu1 %v14179_v41  ;;  %v14205_v41 = vpack.c.bf16 %v7837_v25, %v7835_v49  ;;  %v7954_v49 = vld [vmem:[#allocation55 + $0xa0] sm:$0xff]  ;;  %v7957_v25 = vld [vmem:[#allocation55 + $0xb8] sm:$0xff] }
0x1372   :  { %11745 = vmatmul.mubr.msk.f32.gmra.mrb[172].mxu1 %vm7175_vm1, %v7664_v4 }
0x1373   :  { %14182 = vmatpush1.bf16.msra.mxu1 %v14181_v21  ;;  %7770 = vmatprep.mubr.f32.mxu1 %v18974_v39  ;;  %v7979_v21 = vld [vmem:[#allocation55 + $0x168] sm:$0xff] }
0x1374   :  { %14184 = vmatprep.subr.bf16.mxu1 %v14183_v37  ;;  %v14237_v4 = vpack.c.bf16 %v7979_v21, %v7976_v45  ;;  %v7983_v37 = vld [vmem:[#allocation55 + $0x188] sm:$0xf] }
0x1376   :  { %11746 = vmatmul.mubr.msk.f32.gmra.mrb[174].mxu1 %vm7175_vm1, %v7665_v3  ;;  %14238 = vmatpush1.bf16.msra.mxu0 %v14237_v4 }
0x1377   :  { %14186 = vmatpush1.bf16.msra.mxu1 %v14185_v40  ;;  %7903 = vmatprep.mubr.f32.mxu1 %v18974_v39  ;;  %v7939_v40 = vld [vmem:[#allocation55 + $0x28] sm:$0xff] }
0x1378   :  { %14188 = vmatprep.subr.bf16.mxu1 %v14187_v5  ;;  %11747 = vmatprep.subr.msk.mxu0 %vm2505_vm7, %v7983_v37  ;;  %v14240_v0 = vpack.c.bf16 %v7939_v40, %v7936_v57 }
0x137b   :  { %14190 = vmatpush1.bf16.msra.mxu1 %v14189_v32 }
0x137c   :  { %14192 = vmatprep.subr.bf16.mxu1 %v14191_v60  ;;  %v7942_v60 = vld [vmem:[#allocation55 + $0x40] sm:$0xff] }
0x137d   :  { %v14243_v6 = vpack.c.bf16 %v7945_v33, %v7942_v60  ;;  %v7960_v60 = vld [vmem:[#allocation55 + $0xd0] sm:$0xff]  ;;  %v7963_v33 = vld [vmem:[#allocation55 + $0xe8] sm:$0xff] }
0x137f   :  { %14194 = vmatpush1.bf16.msra.mxu1 %v14193_v13 }
0x1380   :  { %14196 = vmatprep.subr.bf16.mxu1 %v14195_v10 }
0x1383   :  { %14198 = vmatpush1.bf16.msra.mxu1 %v14197_v18 }
0x1384   :  { %14200 = vmatprep.subr.bf16.mxu1 %v14199_v14  ;;  %v7948_v14 = vld [vmem:[#allocation55 + $0x70] sm:$0xff] }
0x1385   :  { %v14246_v45 = vpack.c.bf16 %v7951_v44, %v7948_v14 }
0x1387   :  { %14202 = vmatpush1.bf16.msra.mxu1 %v14201_v56 }
0x1388   :  { %14204 = vmatprep.subr.bf16.mxu1 %v14203_v59 }
0x138b   :  { %14206 = vmatpush1.bf16.msra.mxu1 %v14205_v41 }
0x138e   :  { %7904 = vmatmul.mubr.f32.vlgmr.msra.gmra.mrb[170].mxu1 %v18010_v50  ;;  %v7982_v50 = vld [vmem:[#allocation55 + $0x180] sm:$0xf] }
0x138f   :  { %7909 = vmatprep.mubr.f32.mxu1 %v18974_v39  ;;  %11748 = vmatpush1.msk.msra.mxu0 %vm2505_vm7, %v7982_v50  ;;  %v14249_v50 = vpack.c.bf16 %v7957_v25, %v7954_v49  ;;  %v14252_v49 = vpack.c.bf16 %v7963_v33, %v7960_v60  ;;  %v8195_v60 = vld [vmem:[#allocation53 + $0xf8] sm:$0xff]  ;;  %v7984_v33 = vld [vmem:[#allocation55 + $0x190] sm:$0xf] }
0x1390   :  { %14239 = vmatprep.subr.bf16.mxu0 %v16029_v17 }
0x1392   :  { %7910 = vmatmul.mubr.f32.gmra.mrb[172].mxu1 %v18012_v29  ;;  %v6984_v29 = vrot.slane %v18023_v26, %v17230_v8 }
0x1393   :  { %7915 = vmatprep.mubr.f32.mxu1 %v18974_v39 }
0x1396   :  { %7916 = vmatmul.mubr.f32.gmra.mrb[174].mxu1 %v18014_v34  ;;  %v6988_v34 = vrot.slane %v18023_v26, %v17097_v9 }
0x1397   :  { %9042 = vmatprep.mubr.f32.mxu1 %v18974_v39 }
0x1461   :  { %v7905_v42 = vpop.f32.mrb[170].mxu1 }
0x1462   :  { %v14849_v20 = vadd.f32 %v7905_v42, %v6984_v29  ;;  %v7907_v23 = vpop.f32.mrb[171].mxu1 }
0x1463   :  { %v14850_v3 = vadd.f32 %v7907_v23, %v6988_v34 }
0x1464   :  { %v18182_v5 = vmax.f32 %v14849_v20, 0.0 }
0x1465   :  { %v18184_v22 = vmax.f32 %v14850_v3, 0.0  ;;  %v7911_v58 = vpop.f32.mrb[172].mxu1 }
0x1466   :  { %v14851_v53 = vadd.f32 %v7911_v58, %v6984_v29  ;;  %v7913_v32 = vpop.f32.mrb[173].mxu1  ;;  %v8777_v28 = vrot.slane %v18182_v5, 7  ;;  %v8795_v16 = vrot.slane %v18182_v5, 1 }
0x1467   :  { %v14852_v52 = vadd.f32 %v7913_v32, %v6988_v34  ;;  %11749 = vmatprep.mubr.msk.f32.mxu0 %vm8002_vm15, %v18184_v22  ;;  %v8778_v24 = vrot.slane %v18184_v22, 7  ;;  %v8796_v63 = vrot.slane %v18184_v22, 1 }
0x1468   :  { %v18188_v26 = vmax.f32 %v14851_v53, 0.0  ;;  %8086 = vmatmul.mubr.f32.vlgmr.msra.gmra.mrb[162].mxu0 %v18182_v5 }
0x1469   :  { %v18193_v13 = vmax.f32 %v14852_v52, 0.0  ;;  %14241 = vmatpush1.bf16.msra.mxu0 %v14240_v0  ;;  %v7917_v10 = vpop.f32.mrb[174].mxu1 }
0x146a   :  { %v8797_v27 = vrot.slane %v18188_v26, 1  ;;  %v14853_v55 = vadd.f32 %v7917_v10, %v6984_v29  ;;  %v7919_v18 = vpop.f32.mrb[175].mxu1  ;;  %14242 = vmatprep.subr.bf16.mxu0 %v16029_v17  ;;  %v8779_v2 = vrot.slane %v18188_v26, 7 }
0x146b   :  { %v8780_v61 = vrot.slane %v18193_v13, 7  ;;  %v8798_v56 = vrot.slane %v18193_v13, 1  ;;  %v14854_v59 = vadd.f32 %v7919_v18, %v6988_v34  ;;  %11750 = vmatprep.mubr.msk.f32.mxu0 %vm8002_vm15, %v18193_v13 }
0x146c   :  { %v18204_v41 = vmax.f32 %v14853_v55, 0.0  ;;  %8092 = vmatmul.mubr.f32.gmra.mrb[164].mxu0 %v18188_v26  ;;  %v8803_v36 = vsel %vm1802_vm3, %v8795_v16, %v8797_v27  ;;  %v8785_v46 = vsel %vm1581_vm4, %v8777_v28, %v8779_v2 }
0x146d   :  { %v18213_v7 = vmax.f32 %v14854_v59, 0.0  ;;  %14244 = vmatpush1.bf16.msra.mxu0 %v14243_v6  ;;  %v8804_v21 = vsel %vm1802_vm3, %v8796_v63, %v8798_v56  ;;  %v8786_v4 = vsel %vm1581_vm4, %v8778_v24, %v8780_v61  ;;  %v8807_v29 = vmul.f32 %v8803_v36, %v17425_v35  ;;  %v7969_v36 = vld [vmem:[#allocation55 + $0x118] sm:$0xff] }
0x146e   :  { %v8781_v37 = vrot.slane %v18204_v41, 7  ;;  %14245 = vmatprep.subr.bf16.mxu0 %v16029_v17  ;;  %v8808_v20 = vmul.f32 %v8804_v21, %v17425_v35  ;;  %v8799_v23 = vrot.slane %v18204_v41, 1  ;;  %v8792_v40 = vmul.f32 %v8786_v4, %v17439_v38 }
0x146f   :  { %v8782_v34 = vrot.slane %v18213_v7, 7  ;;  %v8800_v42 = vrot.slane %v18213_v7, 1  ;;  %11751 = vmatprep.mubr.msk.f32.mxu0 %vm8002_vm15, %v18213_v7  ;;  %v8791_v3 = vmul.f32 %v8785_v46, %v17439_v38 }
0x1470   :  { %8098 = vmatmul.mubr.f32.gmra.mrb[166].mxu0 %v18204_v41  ;;  %v8787_v57 = vsel %vm1581_vm4, %v8781_v37, %v8777_v28  ;;  %v8783_v58 = vsel %vm1581_vm4, %v8779_v2, %v8781_v37  ;;  %v8801_v10 = vsel %vm1802_vm3, %v8797_v27, %v8799_v23  ;;  %v8805_v25 = vsel %vm1802_vm3, %v8799_v23, %v8795_v16  ;;  %v7978_v23 = vld [vmem:[#allocation55 + $0x160] sm:$0xff] }
0x1471   :  { %14247 = vmatpush1.bf16.msra.mxu0 %v14246_v45  ;;  %11753 = vmatprep.mubr.msk.f32.mxu0 %vm8002_vm15, %v18184_v22  ;;  %v8788_v0 = vsel %vm1581_vm4, %v8782_v34, %v8778_v24  ;;  %v8789_v53 = vmul.f32 %v8787_v57, %v17431_v12  ;;  %v8802_v32 = vsel %vm1802_vm3, %v8798_v56, %v8800_v42  ;;  %v7981_v57 = vld [vmem:[#allocation55 + $0x178] sm:$0xff] }
0x1472   :  { %14248 = vmatprep.subr.bf16.mxu0 %v16029_v17  ;;  %v8790_v52 = vmul.f32 %v8788_v0, %v17431_v12  ;;  %v8810_v28 = vmul.f32 %v8802_v32, %v17437_v47  ;;  %v8784_v6 = vsel %vm1581_vm4, %v8780_v61, %v8782_v34  ;;  %v8809_v55 = vmul.f32 %v8801_v10, %v17437_v47  ;;  %v7972_v34 = vld [vmem:[#allocation55 + $0x130] sm:$0xff]  ;;  %v8188_v0 = vld [vmem:[#allocation53 + $0xc0] sm:$0xff]  ;;  %v8193_v32 = vld [vmem:[#allocation53 + $0xe8] sm:$0xff] }
0x1473   :  { %v8813_v24 = vmax.f32 %v8789_v53, %v8807_v29  ;;  %v8794_v18 = vmul.f32 %v8784_v6, %v17454_v11  ;;  %v8806_v14 = vsel %vm1802_vm3, %v8800_v42, %v8796_v63  ;;  %v8793_v59 = vmul.f32 %v8783_v58, %v17454_v11  ;;  %v7966_v63 = vld [vmem:[#allocation55 + $0x100] sm:$0xff]  ;;  %v8191_v58 = vld [vmem:[#allocation53 + $0xd8] sm:$0xff]  ;;  %v8190_v53 = vld [vmem:[#allocation53 + $0xd0] sm:$0xff] }
0x1474   :  { %v8814_v44 = vmax.f32 %v8790_v52, %v8808_v20  ;;  %v8816_v2 = vmax.f32 %v8792_v40, %v8810_v28  ;;  %v8812_v56 = vmul.f32 %v8806_v14, %v17452_v1  ;;  %v8815_v61 = vmax.f32 %v8791_v3, %v8809_v55  ;;  %v8189_v3 = vld [vmem:[#allocation53 + $0xc8] sm:$0xff]  ;;  %v8192_v6 = vld [vmem:[#allocation53 + $0xe0] sm:$0xff]  ;;  %v8199_v14 = vld [vmem:[#allocation53 + $0x118] sm:$0xff] }
0x1475   :  { %14250 = vmatpush1.bf16.msra.mxu0 %v14249_v50  ;;  %v18256_v27 = vmax.f32 %v18182_v5, %v8813_v24  ;;  %v8811_v4 = vmul.f32 %v8805_v25, %v17452_v1  ;;  %v14255_v29 = vpack.c.bf16 %v7969_v36, %v7966_v63  ;;  %v14261_v40 = vpack.c.bf16 %v7981_v57, %v7978_v23  ;;  %v8194_v24 = vld [vmem:[#allocation53 + $0xf0] sm:$0xff]  ;;  %v8312_v63 = vld [vmem:[#allocation53 + $0x28] sm:$0xff]  ;;  %v8314_v36 = vld [vmem:[#allocation53 + $0x38] sm:$0xff] }
0x1476   :  { %14251 = vmatprep.subr.bf16.mxu0 %v16029_v17  ;;  %v18264_v46 = vmax.f32 %v18184_v22, %v8814_v44  ;;  %v18267_v45 = vmax.f32 %v18193_v13, %v8816_v2  ;;  %v8818_v21 = vmax.f32 %v8794_v18, %v8812_v56  ;;  %v18271_v37 = vmax.f32 %v18188_v26, %v8815_v61  ;;  %v7975_v22 = vld [vmem:[#allocation55 + $0x148] sm:$0xff]  ;;  %v8196_v44 = vld [vmem:[#allocation53 + $0x100] sm:$0xff]  ;;  %v8198_v2 = vld [vmem:[#allocation53 + $0x110] sm:$0xff] }
0x1477   :  { %v8817_v16 = vmax.f32 %v8793_v59, %v8811_v4  ;;  %v14258_v20 = vpack.c.bf16 %v7975_v22, %v7972_v34  ;;  %v14263_v52 = vpack.c.bf16 %v8191_v58, %v8189_v3  ;;  %v14265_v28 = vpack.c.bf16 %v8190_v53, %v8188_v0  ;;  %v8197_v18 = vld [vmem:[#allocation53 + $0x108] sm:$0xff]  ;;  %v8310_v59 = vld [vmem:[#allocation53 + $0x18] sm:$0xff]  ;;  %v8309_v61 = vld [vmem:[#allocation53 + $0x10] sm:$0xff] }
0x1478   :  { %v18274_v50 = vmax.f32 %v18213_v7, %v8818_v21  ;;  %v14267_v10 = vpack.c.bf16 %v8195_v60, %v8193_v32  ;;  %v14269_v55 = vpack.c.bf16 %v8194_v24, %v8192_v6  ;;  %v14273_v56 = vpack.c.bf16 %v8198_v2, %v8196_v44  ;;  %v8313_v23 = vld [vmem:[#allocation53 + $0x30] sm:$0xff]  ;;  %v8318_v3 = vld [vmem:[#allocation53 + $0x58] sm:$0xff]  ;;  %v8315_v53 = vld [vmem:[#allocation53 + $0x40] sm:$0xff] }
0x1479   :  { %14253 = vmatpush1.bf16.msra.mxu0 %v14252_v49  ;;  %v18278_v42 = vmax.f32 %v18204_v41, %v8817_v16  ;;  %v14279_v34 = vpack.c.bf16 %v8314_v36, %v8312_v63  ;;  %v8430_v6 = vld [vmem:[#allocation53 + $0x78] sm:$0xff] }
0x147a   :  { %14254 = vmatprep.subr.bf16.mxu0 %v16029_v17 }
0x147d   :  { %14256 = vmatpush1.bf16.msra.mxu0 %v14255_v29 }
0x147e   :  { %14257 = vmatprep.subr.bf16.mxu0 %v16029_v17 }
0x1481   :  { %14259 = vmatpush1.bf16.msra.mxu0 %v14258_v20  ;;  %v8311_v20 = vld [vmem:[#allocation53 + $0x20] sm:$0xff] }
0x1482   :  { %14260 = vmatprep.subr.bf16.mxu0 %v16029_v17  ;;  %v14281_v0 = vpack.c.bf16 %v8313_v23, %v8311_v20 }
0x1485   :  { %14262 = vmatpush1.bf16.msra.mxu0 %v14261_v40  ;;  %v8316_v40 = vld [vmem:[#allocation53 + $0x48] sm:$0xff] }
0x1486   :  { %8136 = vmatprep.subr.mxu0 %v18974_v39 }
0x1489   :  { %11752 = vmatpush1.msk.msra.mxu0 %vm2505_vm7, %v7984_v33 }
0x148a   :  { %8169 = vmatmul.mubr.f32.vlgmr.msra.gmra.mrb[168].mxu0 %v18182_v5  ;;  %14264 = vmatprep.subr.bf16.mxu0 %v14263_v52  ;;  %v14271_v5 = vpack.c.bf16 %v8199_v14, %v8197_v18  ;;  %v14283_v52 = vpack.c.bf16 %v8318_v3, %v8316_v40 }
0x148b   :  { %11754 = vmatprep.mubr.msk.f32.mxu0 %vm8002_vm15, %v18193_v13  ;;  %14266 = vmatpush1.bf16.msra.mxu0 %v14265_v28  ;;  %v8308_v13 = vld [vmem:[#allocation53 + $0x8] sm:$0xff]  ;;  %v8317_v28 = vld [vmem:[#allocation53 + $0x50] sm:$0xff] }
0x148c   :  { %14268 = vmatprep.subr.bf16.mxu0 %v14267_v10  ;;  %v14275_v49 = vpack.c.bf16 %v8310_v59, %v8308_v13  ;;  %v8428_v10 = vld [vmem:[#allocation53 + $0x68] sm:$0xff] }
0x148e   :  { %8174 = vmatmul.mubr.f32.gmra.mrb[170].mxu0 %v18188_v26  ;;  %v18292_v26 = vld [vmem:[#allocation40 + $0x10] sm:$0x7] }
0x148f   :  { %11755 = vmatprep.mubr.msk.f32.mxu0 %vm8002_vm15, %v18213_v7  ;;  %14270 = vmatpush1.bf16.msra.mxu0 %v14269_v55  ;;  %v7998_v7 = vrot.slane %v18292_v26, %v18021_v15 }
0x1490   :  { %14272 = vmatprep.subr.bf16.mxu0 %v14271_v5 }
0x1492   :  { %8179 = vmatmul.mubr.f32.gmra.mrb[172].mxu0 %v18204_v41  ;;  %v8307_v41 = vld [vmem:[#allocation53] sm:$0xff] }
0x1493   :  { %8273 = vmatprep.mubr.f32.mxu0 %v18974_v39  ;;  %14274 = vmatpush1.bf16.msra.mxu0 %v14273_v56  ;;  %v14277_v16 = vpack.c.bf16 %v8309_v61, %v8307_v41  ;;  %v14287_v41 = vpack.c.bf16 %v8430_v6, %v8428_v10  ;;  %v8427_v61 = vld [vmem:[#allocation53 + $0x60] sm:$0xff] }
0x1494   :  { %14276 = vmatprep.subr.bf16.mxu0 %v14275_v49  ;;  %v14285_v49 = vpack.c.bf16 %v8317_v28, %v8315_v53  ;;  %v8431_v53 = vld [vmem:[#allocation53 + $0x80] sm:$0xff] }
0x155d   :  { %v8170_v25 = vpop.f32.mrb[168].mxu0 }
0x155e   :  { %v8171_v21 = vadd.f32 %v8170_v25, %v7998_v7  ;;  %v8172_v4 = vpop.f32.mrb[169].mxu0  ;;  %v8429_v25 = vld [vmem:[#allocation53 + $0x70] sm:$0xff] }
0x1560   :  { %v18296_v29 = vmax.f32 %v8171_v21, 0.0 }
0x1561   :  { %v8175_v22 = vpop.f32.mrb[170].mxu0 }
0x1562   :  { %v8177_v57 = vpop.f32.mrb[171].mxu0  ;;  %11756 = vmatmul.mubr.msk.f32.vlgmr.msra.gmra.mrb[162].mxu0 %vm2381_vm6, %v18296_v29  ;;  %v8176_v58 = vadd.f32 %v8175_v22, %v7998_v7  ;;  %v8298_v32 = vrot.slane %v18296_v29, 6  ;;  %v8417_v24 = vrot.slane %v18296_v29, 7  ;;  %v8537_v55 = vrot.slane %v18296_v29, 1 }
0x1563   :  { %14278 = vmatpush1.bf16.msra.mxu0 %v14277_v16  ;;  %8279 = vmatprep.mubr.f32.mxu0 %v18974_v39  ;;  %v8657_v18 = vrot.slane %v18296_v29, 2  ;;  %v8432_v29 = vld [vmem:[#allocation53 + $0x88] sm:$0xff]  ;;  %v14289_v22 = vpack.c.bf16 %v8429_v25, %v8427_v61  ;;  %v8554_v25 = vld [vmem:[#allocation53 + $0x158] sm:$0xff] }
0x1564   :  { %14280 = vmatprep.subr.bf16.mxu0 %v14279_v34  ;;  %v8185_v60 = vmax.f32 %v8176_v58, 0.0  ;;  %v8434_v34 = vld [vmem:[#allocation53 + $0x98] sm:$0xff]  ;;  %v8552_v61 = vld [vmem:[#allocation53 + $0x148] sm:$0xff] }
0x1565   :  { %v8180_v33 = vpop.f32.mrb[172].mxu0 }
0x1566   :  { %v8181_v14 = vadd.f32 %v8180_v33, %v7998_v7  ;;  %v8182_v5 = vpop.f32.mrb[173].mxu0  ;;  %v8538_v44 = vrot.slane %v8185_v60, 1  ;;  %v8658_v2 = vrot.slane %v8185_v60, 2  ;;  %11757 = vmatmul.mubr.msk.f32.gmra.mrb[164].mxu0 %vm2381_vm6, %v8185_v60  ;;  %v8299_v56 = vrot.slane %v8185_v60, 6 }
0x1567   :  { %v8418_v13 = vrot.slane %v8185_v60, 7  ;;  %14282 = vmatpush1.bf16.msra.mxu0 %v14281_v0  ;;  %8285 = vmatprep.mubr.f32.mxu0 %v18974_v39  ;;  %v14291_v0 = vpack.c.bf16 %v8434_v34, %v8432_v29  ;;  %v8433_v60 = vld [vmem:[#allocation53 + $0x90] sm:$0xff]  ;;  %v8556_v34 = vld [vmem:[#allocation53 + $0x168] sm:$0xff] }
0x1568   :  { %v8186_v59 = vmax.f32 %v8181_v14, 0.0  ;;  %v18309_v63 = vsel %vm1802_vm3, %v8537_v55, %v8538_v44  ;;  %v18313_v7 = vsel %vm3025_vm12, %v8657_v18, %v8658_v2  ;;  %14284 = vmatprep.subr.bf16.mxu0 %v14283_v52  ;;  %v8302_v36 = vsel %vm2602_vm11, %v8298_v32, %v8299_v56  ;;  %v8436_v52 = vld [vmem:[#allocation53 + $0xa8] sm:$0xff]  ;;  %v8553_v29 = vld [vmem:[#allocation53 + $0x150] sm:$0xff] }
0x1569   :  { %v18319_v21 = vsel %vm1581_vm4, %v8417_v24, %v8418_v13  ;;  %v8305_v14 = vmul.f32 %v8302_v36, %v17427_v54 }
0x156a   :  { %v8300_v4 = vrot.slane %v8186_v59, 6  ;;  %v8419_v16 = vrot.slane %v8186_v59, 7  ;;  %11758 = vmatmul.mubr.msk.f32.gmra.mrb[166].mxu0 %vm2381_vm6, %v8186_v59  ;;  %v8539_v20 = vrot.slane %v8186_v59, 1  ;;  %v8659_v23 = vrot.slane %v8186_v59, 2 }
0x156b   :  { %14286 = vmatpush1.bf16.msra.mxu0 %v14285_v49  ;;  %8392 = vmatprep.mubr.f32.mxu0 %v18974_v39  ;;  %v8547_v49 = vld [vmem:[#allocation53 + $0x120] sm:$0xff] }
0x156c   :  { %v8303_v57 = vsel %vm2602_vm11, %v8300_v4, %v8298_v32  ;;  %v8422_v40 = vsel %vm1581_vm4, %v8419_v16, %v8417_v24  ;;  %v8301_v3 = vsel %vm2602_vm11, %v8299_v56, %v8300_v4  ;;  %14288 = vmatprep.subr.bf16.mxu0 %v14287_v41  ;;  %v8420_v33 = vsel %vm1581_vm4, %v8418_v13, %v8419_v16  ;;  %v8438_v32 = vld [vmem:[#allocation53 + $0xb8] sm:$0xff]  ;;  %v8548_v56 = vld [vmem:[#allocation53 + $0x128] sm:$0xff]  ;;  %v8549_v41 = vld [vmem:[#allocation53 + $0x130] sm:$0xff] }
0x156d   :  { %v8304_v58 = vmul.f32 %v8303_v57, %v17429_v31  ;;  %v18334_v28 = vsel %vm1802_vm3, %v8538_v44, %v8539_v20  ;;  %v18338_v10 = vsel %vm1802_vm3, %v8539_v20, %v8537_v55  ;;  %v18342_v6 = vsel %vm3025_vm12, %v8658_v2, %v8659_v23  ;;  %v8435_v55 = vld [vmem:[#allocation53 + $0xa0] sm:$0xff]  ;;  %v8437_v44 = vld [vmem:[#allocation53 + $0xb0] sm:$0xff]  ;;  %v8550_v13 = vld [vmem:[#allocation53 + $0x138] sm:$0xff] }
0x156e   :  { %v18347_v31 = vsel %vm3025_vm12, %v8659_v23, %v8657_v18  ;;  %v14293_v24 = vpack.c.bf16 %v8433_v60, %v8431_v53  ;;  %v14295_v5 = vpack.c.bf16 %v8438_v32, %v8436_v52  ;;  %v14297_v2 = vpack.c.bf16 %v8437_v44, %v8435_v55  ;;  %v8551_v16 = vld [vmem:[#allocation53 + $0x140] sm:$0xff]  ;;  %v8669_v52 = vld [vmem:[#allocation53 + $0x190] sm:$0xff]  ;;  %v8672_v32 = vld [vmem:[#allocation53 + $0x1a8] sm:$0xff] }
0x156f   :  { %11759 = vmatmul.mubr.msk.f32.vlgmr.msra.gmra.mrb[162].mxu0 %vm2381_vm6, %v8304_v58  ;;  %v8306_v18 = vmul.f32 %v8301_v3, %v17433_v48  ;;  %v14299_v59 = vpack.c.bf16 %v8550_v13, %v8548_v56  ;;  %v14301_v54 = vpack.c.bf16 %v8549_v41, %v8547_v49  ;;  %v8423_v36 = vmul.f32 %v8422_v40, %v17431_v12  ;;  %v8555_v57 = vld [vmem:[#allocation53 + $0x160] sm:$0xff]  ;;  %v8557_v3 = vld [vmem:[#allocation53 + $0x170] sm:$0xff]  ;;  %v8668_v58 = vld [vmem:[#allocation53 + $0x188] sm:$0xff] }
0x1570   :  { %14290 = vmatpush1.bf16.msra.mxu0 %v14289_v22  ;;  %8398 = vmatprep.mubr.f32.mxu0 %v18974_v39  ;;  %v14303_v4 = vpack.c.bf16 %v8554_v25, %v8552_v61  ;;  %v8558_v22 = vld [vmem:[#allocation53 + $0x178] sm:$0xff]  ;;  %v14305_v48 = vpack.c.bf16 %v8553_v29, %v8551_v16  ;;  %v8424_v20 = vmul.f32 %v18319_v21, %v17439_v38  ;;  %v8667_v60 = vld [vmem:[#allocation53 + $0x180] sm:$0xff]  ;;  %v8677_v13 = vld [vmem:[#allocation53 + $0x1d0] sm:$0xff] }
0x1571   :  { %14292 = vmatprep.subr.bf16.mxu0 %v14291_v0  ;;  %v14307_v23 = vpack.c.bf16 %v8558_v22, %v8556_v34  ;;  %v8670_v12 = vld [vmem:[#allocation53 + $0x198] sm:$0xff]  ;;  %v14309_v40 = vpack.c.bf16 %v8557_v3, %v8555_v57  ;;  %v8425_v0 = vmul.f32 %v8420_v33, %v17454_v11  ;;  %v14313_v38 = vpack.c.bf16 %v8669_v52, %v8667_v60  ;;  %v8673_v11 = vld [vmem:[#allocation53 + $0x1b0] sm:$0xff]  ;;  %v8676_v33 = vld [vmem:[#allocation53 + $0x1c8] sm:$0xff] }
0x1572   :  { %v14311_v53 = vpack.c.bf16 %v8670_v12, %v8668_v58  ;;  %v8543_v21 = vmul.f32 %v18309_v63, %v17425_v35  ;;  %v8678_v55 = vld [vmem:[#allocation53 + $0x1d8] sm:$0xff]  ;;  %v8544_v56 = vmul.f32 %v18334_v28, %v17437_v47  ;;  %v8675_v63 = vld [vmem:[#allocation53 + $0x1c0] sm:$0xff]  ;;  %v8545_v49 = vmul.f32 %v18338_v10, %v17452_v1  ;;  %v8825_v28 = vld [vmem:[%s18976_s18] sm:$0xff] }
0x1573   :  { %11760 = vmatmul.mubr.msk.f32.gmra.mrb[164].mxu0 %vm2381_vm6, %v8305_v14  ;;  %v14319_v35 = vpack.c.bf16 %v8678_v55, %v8676_v33  ;;  %v8827_v41 = vld [vmem:[%s18976_s18 + $0x10] sm:$0xff]  ;;  %v8830_v61 = vld [vmem:[%s18976_s18 + $0x28] sm:$0xff]  ;;  %v8832_v25 = vld [vmem:[%s18976_s18 + $0x38] sm:$0xff]  ;;  %v8664_v22 = vmul.f32 %v18342_v6, %v17599_v30  ;;  %v8665_v30 = vmul.f32 %v18347_v31, %v17611_v51 }
0x1574   :  { %14294 = vmatpush1.bf16.msra.mxu0 %v14293_v24  ;;  %8404 = vmatprep.mubr.f32.mxu0 %v18974_v39  ;;  %v8674_v24 = vld [vmem:[#allocation53 + $0x1b8] sm:$0xff]  ;;  %v14327_v1 = vpack.c.bf16 %v8832_v25, %v8830_v61  ;;  %v8829_v10 = vld [vmem:[%s18976_s18 + $0x20] sm:$0xff]  ;;  %v8836_v29 = vld [vmem:[%s18976_s18 + $0x58] sm:$0xff] }
0x1575   :  { %14296 = vmatprep.subr.bf16.mxu0 %v14295_v5  ;;  %v14315_v14 = vpack.c.bf16 %v8674_v24, %v8672_v32  ;;  %v8671_v5 = vld [vmem:[#allocation53 + $0x1a0] sm:$0xff]  ;;  %v8834_v16 = vld [vmem:[%s18976_s18 + $0x48] sm:$0xff]  ;;  %v8837_v3 = vld [vmem:[%s18976_s18 + $0x60] sm:$0xff] }
0x1576   :  { %v14317_v44 = vpack.c.bf16 %v8673_v11, %v8671_v5  ;;  %v8839_v58 = vld [vmem:[%s18976_s18 + $0x70] sm:$0xff]  ;;  %v8842_v12 = vld [vmem:[%s18976_s18 + $0x88] sm:$0xff]  ;;  %v8841_v60 = vld [vmem:[%s18976_s18 + $0x80] sm:$0xff] }
0x1577   :  { %11761 = vmatmul.mubr.msk.f32.gmra.mrb[166].mxu0 %vm2381_vm6, %v8306_v18  ;;  %v8828_v18 = vld [vmem:[%s18976_s18 + $0x18] sm:$0xff]  ;;  %v8843_v51 = vld [vmem:[%s18976_s18 + $0x90] sm:$0xff]  ;;  %v8846_v31 = vld [vmem:[%s18976_s18 + $0xa8] sm:$0xff] }
0x1578   :  { %14298 = vmatpush1.bf16.msra.mxu0 %v14297_v2  ;;  %8512 = vmatprep.mubr.f32.mxu0 %v18974_v39  ;;  %v8826_v2 = vld [vmem:[%s18976_s18 + $0x8] sm:$0xff]  ;;  %v8848_v52 = vld [vmem:[%s18976_s18 + $0xb8] sm:$0xff]  ;;  %v14341_v32 = vpack.c.bf16 %v8843_v51, %v8841_v60  ;;  %v8849_v33 = vld [vmem:[%s18976_s18 + $0xc0] sm:$0xff] }
0x1579   :  { %14300 = vmatprep.subr.bf16.mxu0 %v14299_v59  ;;  %v14321_v59 = vpack.c.bf16 %v8677_v13, %v8675_v63  ;;  %v14323_v47 = vpack.c.bf16 %v8828_v18, %v8826_v2  ;;  %v14343_v24 = vpack.c.bf16 %v8848_v52, %v8846_v31  ;;  %v8851_v55 = vld [vmem:[%s18976_s18 + $0xd0] sm:$0xff]  ;;  %v8853_v13 = vld [vmem:[%s18976_s18 + $0xe0] sm:$0xff]  ;;  %v9252_v31 = vld [vmem:[#allocation26 + $0x30] sm:$0xff] }
0x157a   :  { %v8855_v2 = vld [vmem:[%s18976_s18 + $0xf0] sm:$0xff]  ;;  %v9255_v52 = vld [vmem:[#allocation26 + $0x48] sm:$0xff] }
0x157b   :  { %11762 = vmatmul.mubr.msk.f32.vlgmr.msra.gmra.mrb[162].mxu0 %vm2381_vm6, %v8423_v36  ;;  %v8663_v36 = vmul.f32 %v18313_v7, %v17591_v19  ;;  %v14331_v19 = vpack.c.bf16 %v8836_v29, %v8834_v16  ;;  %v8833_v7 = vld [vmem:[%s18976_s18 + $0x40] sm:$0xff]  ;;  %v14353_v18 = vpack.c.bf16 %v8855_v2, %v8853_v13  ;;  %v9274_v13 = vld [vmem:[#allocation26 + $0xe0] sm:$0xff] }
0x157c   :  { %14302 = vmatpush1.bf16.msra.mxu0 %v14301_v54  ;;  %8518 = vmatprep.mubr.f32.mxu0 %v18974_v39  ;;  %v14325_v54 = vpack.c.bf16 %v8827_v41, %v8825_v28  ;;  %v7994_v41 = vrot.slane %v18292_v26, %v17097_v9 }
0x157d   :  { %14304 = vmatprep.subr.bf16.mxu0 %v14303_v4  ;;  %v8831_v4 = vld [vmem:[%s18976_s18 + $0x30] sm:$0xff] }
0x157e   :  { %v14329_v34 = vpack.c.bf16 %v8831_v4, %v8829_v10 }
0x157f   :  { %11763 = vmatmul.mubr.msk.f32.gmra.mrb[164].mxu0 %vm2381_vm6, %v8424_v20  ;;  %v8838_v20 = vld [vmem:[%s18976_s18 + $0x68] sm:$0xff] }
0x1580   :  { %14306 = vmatpush1.bf16.msra.mxu0 %v14305_v48  ;;  %8524 = vmatprep.mubr.f32.mxu0 %v18974_v39  ;;  %v8835_v48 = vld [vmem:[%s18976_s18 + $0x50] sm:$0xff] }
0x1581   :  { %14308 = vmatprep.subr.bf16.mxu0 %v14307_v23  ;;  %v8840_v23 = vld [vmem:[%s18976_s18 + $0x78] sm:$0xff]  ;;  %v14333_v57 = vpack.c.bf16 %v8835_v48, %v8833_v7  ;;  %v8969_v48 = vld [vmem:[#allocation13] sm:$0xff] }
0x1582   :  { %v14335_v6 = vpack.c.bf16 %v8840_v23, %v8838_v20  ;;  %v8970_v20 = vld [vmem:[#allocation13 + $0x8] sm:$0xff]  ;;  %v9056_v23 = vld [vmem:[#allocation13 + $0x10] sm:$0xff] }
0x1583   :  { %11764 = vmatmul.mubr.msk.f32.gmra.mrb[166].mxu0 %vm2381_vm6, %v8425_v0  ;;  %v14337_v0 = vpack.c.bf16 %v8839_v58, %v8837_v3  ;;  %v9246_v58 = vld [vmem:[#allocation26] sm:$0xff] }
0x1584   :  { %14310 = vmatpush1.bf16.msra.mxu0 %v14309_v40  ;;  %8632 = vmatprep.mubr.f32.mxu0 %v18974_v39  ;;  %v8844_v40 = vld [vmem:[%s18976_s18 + $0x98] sm:$0xff] }
0x1585   :  { %14312 = vmatprep.subr.bf16.mxu0 %v14311_v53  ;;  %v14339_v53 = vpack.c.bf16 %v8844_v40, %v8842_v12  ;;  %v9249_v12 = vld [vmem:[#allocation26 + $0x18] sm:$0xff] }
0x1586   :  { %v9253_v40 = vld [vmem:[#allocation26 + $0x38] sm:$0xff]  ;;  %v14369_v60 = vpack.c.bf16 %v9249_v12, %v9246_v58  ;;  %v9303_v58 = vld [vmem:[#allocation26 + $0x1c8] sm:$0xff] }
0x1587   :  { %11765 = vmatmul.mubr.msk.f32.vlgmr.msra.gmra.mrb[162].mxu0 %vm2381_vm6, %v8543_v21  ;;  %v8847_v21 = vld [vmem:[%s18976_s18 + $0xb0] sm:$0xff] }
0x1588   :  { %14314 = vmatpush1.bf16.msra.mxu0 %v14313_v38  ;;  %8638 = vmatprep.mubr.f32.mxu0 %v18974_v39  ;;  %v8845_v38 = vld [vmem:[%s18976_s18 + $0xa0] sm:$0xff] }
0x1589   :  { %14316 = vmatprep.subr.bf16.mxu0 %v14315_v14  ;;  %v8852_v14 = vld [vmem:[%s18976_s18 + $0xd8] sm:$0xff]  ;;  %v14345_v5 = vpack.c.bf16 %v8847_v21, %v8845_v38  ;;  %v14373_v21 = vpack.c.bf16 %v9255_v52, %v9252_v31  ;;  %v9313_v52 = vld [vmem:[#allocation26 + $0x218] sm:$0xff] }
0x158a   :  { %v9147_v38 = vld [vmem:[#allocation13 + $0x28] sm:$0xff] }
0x158b   :  { %11766 = vmatmul.mubr.msk.f32.gmra.mrb[164].mxu0 %vm2381_vm6, %v8544_v56  ;;  %v8856_v56 = vld [vmem:[%s18976_s18 + $0xf8] sm:$0xff] }
0x158c   :  { %14318 = vmatpush1.bf16.msra.mxu0 %v14317_v44  ;;  %8644 = vmatprep.mubr.f32.mxu0 %v18974_v39  ;;  %v8854_v44 = vld [vmem:[%s18976_s18 + $0xe8] sm:$0xff] }
0x158d   :  { %14320 = vmatprep.subr.bf16.mxu0 %v14319_v35  ;;  %v14349_v35 = vpack.c.bf16 %v8851_v55, %v8849_v33  ;;  %v14351_v63 = vpack.c.bf16 %v8856_v56, %v8854_v44  ;;  %v9268_v33 = vld [vmem:[#allocation26 + $0xb0] sm:$0xff] }
0x158e   :  { %v9264_v56 = vld [vmem:[#allocation26 + $0x90] sm:$0xff] }
0x158f   :  { %11767 = vmatmul.mubr.msk.f32.gmra.mrb[166].mxu0 %vm2381_vm6, %v8545_v49  ;;  %v8857_v49 = vld [vmem:[%s18976_s18 + $0x100] sm:$0xf] }
0x1590   :  { %14322 = vmatpush1.bf16.msra.mxu0 %v14321_v59  ;;  %8752 = vmatprep.mubr.f32.mxu0 %v18974_v39  ;;  %v8858_v59 = vld [vmem:[%s18976_s18 + $0x108] sm:$0xf] }
0x1591   :  { %14324 = vmatprep.subr.bf16.mxu0 %v14323_v47  ;;  %v7990_v47 = vrot.slane %v18292_v26, %v17230_v8 }
0x1593   :  { %11768 = vmatmul.mubr.msk.f32.vlgmr.msra.gmra.mrb[162].mxu0 %vm2381_vm6, %v8663_v36 }
0x1594   :  { %14326 = vmatpush1.bf16.msra.mxu0 %v14325_v54  ;;  %8758 = vmatprep.mubr.f32.mxu0 %v18974_v39 }
0x1595   :  { %14328 = vmatprep.subr.bf16.mxu0 %v14327_v1 }
0x1597   :  { %11769 = vmatmul.mubr.msk.f32.gmra.mrb[164].mxu0 %vm2381_vm6, %v8664_v22 }
0x1598   :  { %14330 = vmatpush1.bf16.msra.mxu0 %v14329_v34  ;;  %8764 = vmatprep.mubr.f32.mxu0 %v18974_v39 }
0x1599   :  { %14332 = vmatprep.subr.bf16.mxu0 %v14331_v19 }
0x159b   :  { %11770 = vmatmul.mubr.msk.f32.gmra.mrb[166].mxu0 %vm2381_vm6, %v8665_v30  ;;  %v9250_v30 = vld [vmem:[#allocation26 + $0x20] sm:$0xff] }
0x159c   :  { %14334 = vmatpush1.bf16.msra.mxu0 %v14333_v57  ;;  %11773 = vmatprep.mubr.msk.f32.mxu0 %vm8002_vm15, %v18264_v46  ;;  %v8850_v46 = vld [vmem:[%s18976_s18 + $0xc8] sm:$0xff]  ;;  %v9247_v57 = vld [vmem:[#allocation26 + $0x8] sm:$0xff] }
0x159d   :  { %14336 = vmatprep.subr.bf16.mxu0 %v14335_v6  ;;  %v14347_v11 = vpack.c.bf16 %v8852_v14, %v8850_v46  ;;  %v9057_v6 = vld [vmem:[#allocation13 + $0x18] sm:$0xff]  ;;  %v14367_v3 = vpack.c.bf16 %v9250_v30, %v9247_v57  ;;  %v9258_v14 = vld [vmem:[#allocation26 + $0x60] sm:$0xff]  ;;  %v9301_v57 = vld [vmem:[#allocation26 + $0x1b8] sm:$0xff] }
0x159e   :  { %v9304_v30 = vld [vmem:[#allocation26 + $0x1d0] sm:$0xff] }
0x15a0   :  { %14338 = vmatpush1.bf16.msra.mxu0 %v14337_v0  ;;  %v9256_v0 = vld [vmem:[#allocation26 + $0x50] sm:$0xff] }
0x15a1   :  { %14340 = vmatprep.subr.bf16.mxu0 %v14339_v53  ;;  %v9146_v53 = vld [vmem:[#allocation13 + $0x20] sm:$0xff]  ;;  %v14371_v51 = vpack.c.bf16 %v9256_v0, %v9253_v40  ;;  %v9307_v40 = vld [vmem:[#allocation26 + $0x1e8] sm:$0xff]  ;;  %v9310_v0 = vld [vmem:[#allocation26 + $0x200] sm:$0xff] }
0x15a4   :  { %14342 = vmatpush1.bf16.msra.mxu0 %v14341_v32  ;;  %v9259_v32 = vld [vmem:[#allocation26 + $0x68] sm:$0xff] }
0x15a5   :  { %14344 = vmatprep.subr.bf16.mxu0 %v14343_v24  ;;  %v9262_v24 = vld [vmem:[#allocation26 + $0x80] sm:$0xff] }
0x15a6   :  { %v14375_v46 = vpack.c.bf16 %v9262_v24, %v9259_v32  ;;  %v9316_v32 = vld [vmem:[#allocation26 + $0x230] sm:$0xff] }
0x15a7   :  { %v14411_v24 = vpack.c.bf16 %v9316_v32, %v9313_v52 }
0x15a8   :  { %14346 = vmatpush1.bf16.msra.mxu0 %v14345_v5  ;;  %v9261_v5 = vld [vmem:[#allocation26 + $0x78] sm:$0xff] }
0x15a9   :  { %14348 = vmatprep.subr.bf16.mxu0 %v14347_v11  ;;  %v9265_v11 = vld [vmem:[#allocation26 + $0x98] sm:$0xff]  ;;  %v14377_v55 = vpack.c.bf16 %v9261_v5, %v9258_v14  ;;  %v9319_v14 = vld [vmem:[#allocation26 + $0x248] sm:$0xff]  ;;  %v9322_v5 = vld [vmem:[#allocation26 + $0x260] sm:$0xff] }
0x15aa   :  { %v14379_v44 = vpack.c.bf16 %v9268_v33, %v9265_v11  ;;  %v14415_v11 = vpack.c.bf16 %v9322_v5, %v9319_v14  ;;  %v9318_v33 = vld [vmem:[#allocation26 + $0x240] sm:$0xff]  ;;  %v9269_v14 = vld [vmem:[#allocation26 + $0xb8] sm:$0xff] }
0x15ac   :  { %14350 = vmatpush1.bf16.msra.mxu0 %v14349_v35  ;;  %v9267_v35 = vld [vmem:[#allocation26 + $0xa8] sm:$0xff] }
0x15ad   :  { %14352 = vmatprep.subr.bf16.mxu0 %v14351_v63  ;;  %v9271_v63 = vld [vmem:[#allocation26 + $0xc8] sm:$0xff]  ;;  %v14381_v2 = vpack.c.bf16 %v9267_v35, %v9264_v56 }
0x15b0   :  { %14354 = vmatpush1.bf16.msra.mxu0 %v14353_v18  ;;  %v14383_v18 = vpack.c.bf16 %v9274_v13, %v9271_v63 }
0x15b1   :  { %11771 = vmatprep.subr.msk.mxu0 %vm2505_vm7, %v8858_v59  ;;  %v9270_v59 = vld [vmem:[#allocation26 + $0xc0] sm:$0xff] }
0x15b4   :  { %11772 = vmatpush1.msk.msra.mxu0 %vm2505_vm7, %v8857_v49  ;;  %vm8971_vm7 = vcmask 195584   ;;  %v9273_v49 = vld [vmem:[#allocation26 + $0xd8] sm:$0xff] }
0x15b5   :  { %8939 = vmatmul.mubr.f32.vlgmr.msra.gmra.mrb[162].mxu0 %v18256_v27 }
0x15b6   :  { %11774 = vmatprep.mubr.msk.f32.mxu0 %vm8002_vm15, %v18267_v45 }
0x15b9   :  { %8945 = vmatmul.mubr.f32.gmra.mrb[164].mxu0 %v18271_v37 }
0x15ba   :  { %11775 = vmatprep.mubr.msk.f32.mxu0 %vm8002_vm15, %v18274_v50 }
0x15bd   :  { %8951 = vmatmul.mubr.f32.gmra.mrb[166].mxu0 %v18278_v42 }
0x1688   :  { %v8940_v28 = vpop.f32.mrb[162].mxu0 }
0x1689   :  { %v8942_v61 = vpop.f32.mrb[163].mxu0  ;;  %v14855_v25 = vadd.f32 %v8940_v28, %v7990_v47  ;;  %v9280_v28 = vld [vmem:[#allocation26 + $0x110] sm:$0xff] }
0x168a   :  { %v14856_v27 = vadd.f32 %v8942_v61, %v7994_v41 }
0x168b   :  { %v8963_v37 = vmax.f32 %v14855_v25, 0.0  ;;  %v9276_v25 = vld [vmem:[#allocation26 + $0xf0] sm:$0xff] }
0x168c   :  { %v8946_v54 = vpop.f32.mrb[164].mxu0  ;;  %v8964_v4 = vmax.f32 %v14856_v27, 0.0  ;;  %v9279_v27 = vld [vmem:[#allocation26 + $0x108] sm:$0xff] }
0x168d   :  { %v14857_v36 = vadd.f32 %v8946_v54, %v7990_v47  ;;  %v8948_v45 = vpop.f32.mrb[165].mxu0  ;;  %v9283_v54 = vld [vmem:[#allocation26 + $0x128] sm:$0xff] }
0x168e   :  { %v14858_v1 = vadd.f32 %v8948_v45, %v7994_v41  ;;  %v14389_v45 = vpack.c.bf16 %v9279_v27, %v9276_v25  ;;  %v18452_v27 = vpop.permute.xlu1 %9613 }
0x168f   :  { %v8965_v10 = vmax.f32 %v14857_v36, 0.0  ;;  %v9286_v36 = vld [vmem:[#allocation26 + $0x140] sm:$0xff] }
0x1690   :  { %v8966_v50 = vmax.f32 %v14858_v1, 0.0  ;;  %v8952_v16 = vpop.f32.mrb[166].mxu0  ;;  %v14391_v1 = vpack.c.bf16 %v9286_v36, %v9283_v54  ;;  %v9248_v54 = vld [vmem:[#allocation26 + $0x10] sm:$0xff]  ;;  %v9251_v36 = vld [vmem:[#allocation26 + $0x28] sm:$0xff] }
0x1691   :  { %v14357_v42 = vpack.c.bf16 %v8965_v10, %v8963_v37  ;;  %v8954_v29 = vpop.f32.mrb[167].mxu0  ;;  %v14859_v19 = vadd.f32 %v8952_v16, %v7990_v47  ;;  %v9277_v47 = vld [vmem:[#allocation26 + $0xf8] sm:$0xff]  ;;  %v9282_v37 = vld [vmem:[#allocation26 + $0x120] sm:$0xff] }
0x1692   :  { %v14355_v34 = vpack.c.bf16 %v8966_v50, %v8964_v4  ;;  %v14860_v22 = vadd.f32 %v8954_v29, %v7994_v41  ;;  %v14385_v41 = vpack.c.bf16 %v9273_v49, %v9270_v59  ;;  %v14387_v61 = vpack.c.bf16 %v9280_v28, %v9277_v47  ;;  %v9285_v10 = vld [vmem:[#allocation26 + $0x138] sm:$0xff]  ;;  %v9292_v50 = vld [vmem:[#allocation26 + $0x170] sm:$0xff] }
0x1693   :  { %v8967_v26 = vmax.f32 %v14859_v19, 0.0  ;;  %v9289_v4 = vld [vmem:[#allocation26 + $0x158] sm:$0xff]  ;;  %v14393_v16 = vpack.c.bf16 %v9285_v10, %v9282_v37  ;;  %v9288_v29 = vld [vmem:[#allocation26 + $0x150] sm:$0xff]  ;;  %v9298_v19 = vld [vmem:[#allocation26 + $0x1a0] sm:$0xff] }
0x1694   :  { %v8968_v7 = vmax.f32 %v14860_v22, 0.0  ;;  %14356 = vmatprep.subr.bf16.mxu1 %v14355_v34  ;;  %v9295_v22 = vld [vmem:[#allocation26 + $0x188] sm:$0xff] }
0x1695   :  { %14358 = vmatpush1.bf16.msra.mxu1 %v14357_v42 }
0x1696   :  { %8982 = vmatprep.subr.mxu1 %v8968_v7 }
0x1699   :  { %8983 = vmatpush1.msra.mxu1 %v8967_v26 }
0x169a   :  { %11776 = vmatmul.mubr.msk.f32.vlgmr.msra.gmra.mrb[176].mxu1 %vm8971_vm7, %v8969_v48  ;;  %14360 = vmatprep.subr.bf16.mxu1 %v14355_v34  ;;  %v9294_v48 = vld [vmem:[#allocation26 + $0x180] sm:$0xff] }
0x169b   :  { %14362 = vmatpush1.bf16.msra.mxu1 %v14357_v42  ;;  %9048 = vmatprep.mubr.f32.mxu1 %v18974_v39 }
0x169c   :  { %9068 = vmatprep.subr.mxu1 %v8968_v7 }
0x169e   :  { %11777 = vmatmul.mubr.msk.f32.gmra.mrb[178].mxu1 %vm8971_vm7, %v8970_v20  ;;  %v9297_v20 = vld [vmem:[#allocation26 + $0x198] sm:$0xff] }
0x169f   :  { %9069 = vmatpush1.msra.mxu1 %v8967_v26  ;;  %9128 = vmatprep.mubr.f32.mxu1 %v18974_v39 }
0x16a0   :  { %14364 = vmatprep.subr.bf16.mxu1 %v14355_v34  ;;  %v9291_v34 = vld [vmem:[#allocation26 + $0x168] sm:$0xff] }
0x16a2   :  { %11778 = vmatmul.mubr.msk.f32.vlgmr.msra.gmra.mrb[180].mxu1 %vm8971_vm7, %v9056_v23  ;;  %v14401_v23 = vpack.c.bf16 %v9297_v20, %v9294_v48 }
0x16a3   :  { %14366 = vmatpush1.bf16.msra.mxu1 %v14357_v42  ;;  %9134 = vmatprep.mubr.f32.mxu1 %v18974_v39  ;;  %v14395_v42 = vpack.c.bf16 %v9292_v50, %v9289_v4  ;;  %v14420_v4 = vpack.c.bf16 %v9251_v36, %v9248_v54  ;;  %v9254_v50 = vld [vmem:[#allocation26 + $0x40] sm:$0xff] }
0x16a4   :  { %9158 = vmatprep.subr.mxu1 %v8968_v7  ;;  %v14397_v7 = vpack.c.bf16 %v9291_v34, %v9288_v29  ;;  %v9263_v29 = vld [vmem:[#allocation26 + $0x88] sm:$0xff] }
0x16a6   :  { %11779 = vmatmul.mubr.msk.f32.gmra.mrb[182].mxu1 %vm8971_vm7, %v9057_v6  ;;  %v9300_v6 = vld [vmem:[#allocation26 + $0x1b0] sm:$0xff] }
0x16a7   :  { %9159 = vmatpush1.msra.mxu1 %v8967_v26  ;;  %9218 = vmatprep.mubr.f32.mxu1 %v18974_v39  ;;  %v14399_v26 = vpack.c.bf16 %v9298_v19, %v9295_v22  ;;  %v14405_v12 = vpack.c.bf16 %v9303_v58, %v9300_v6  ;;  %v18459_v19 = vpop.permute.xlu1 %9728 }
0x16a8   :  { %14368 = vmatprep.subr.bf16.mxu1 %v14367_v3  ;;  %v14403_v3 = vpack.c.bf16 %v9304_v30, %v9301_v57 }
0x16aa   :  { %11780 = vmatmul.mubr.msk.f32.vlgmr.msra.gmra.mrb[184].mxu1 %vm8971_vm7, %v9146_v53  ;;  %v14407_v53 = vpack.c.bf16 %v9310_v0, %v9307_v40 }
0x16ab   :  { %9224 = vmatprep.mubr.f32.mxu1 %v18974_v39  ;;  %14370 = vmatpush1.bf16.msra.mxu1 %v14369_v60  ;;  %v9306_v60 = vld [vmem:[#allocation26 + $0x1e0] sm:$0xff] }
0x16ac   :  { %14372 = vmatprep.subr.bf16.mxu1 %v14371_v51  ;;  %v9309_v51 = vld [vmem:[#allocation26 + $0x1f8] sm:$0xff] }
0x16ad   :  { %v14409_v31 = vpack.c.bf16 %v9309_v51, %v9306_v60 }
0x16ae   :  { %11781 = vmatmul.mubr.msk.f32.gmra.mrb[186].mxu1 %vm8971_vm7, %v9147_v38  ;;  %v9312_v38 = vld [vmem:[#allocation26 + $0x210] sm:$0xff] }
0x16af   :  { %14374 = vmatpush1.bf16.msra.mxu1 %v14373_v21  ;;  %v9315_v21 = vld [vmem:[#allocation26 + $0x228] sm:$0xff] }
0x16b0   :  { %14376 = vmatprep.subr.bf16.mxu1 %v14375_v46  ;;  %v14413_v46 = vpack.c.bf16 %v9315_v21, %v9312_v38  ;;  %v18492_v21 = vpop.permute.xlu1 %9844 }
0x16b3   :  { %14378 = vmatpush1.bf16.msra.mxu1 %v14377_v55  ;;  %v9321_v55 = vld [vmem:[#allocation26 + $0x258] sm:$0xff] }
0x16b4   :  { %14380 = vmatprep.subr.bf16.mxu1 %v14379_v44  ;;  %v14417_v44 = vpack.c.bf16 %v9321_v55, %v9318_v33 }
0x16b7   :  { %14382 = vmatpush1.bf16.msra.mxu1 %v14381_v2 }
0x16b8   :  { %14384 = vmatprep.subr.bf16.mxu1 %v14383_v18 }
0x16bb   :  { %14386 = vmatpush1.bf16.msra.mxu1 %v14385_v41 }
0x16bc   :  { %14388 = vmatprep.subr.bf16.mxu1 %v14387_v61  ;;  %v18450_v61 = vpop.permute.xlu0 %9608 }
0x16bf   :  { %14390 = vmatpush1.bf16.msra.mxu1 %v14389_v45 }
0x16c0   :  { %14392 = vmatprep.subr.bf16.mxu1 %v14391_v1  ;;  %v18456_v34 = vpop.permute.xlu0 %9723 }
0x16c3   :  { %14394 = vmatpush1.bf16.msra.mxu1 %v14393_v16  ;;  %v9257_v16 = vld [vmem:[#allocation26 + $0x58] sm:$0xff] }
0x16c4   :  { %14396 = vmatprep.subr.bf16.mxu1 %v14395_v42  ;;  %v9260_v42 = vld [vmem:[#allocation26 + $0x70] sm:$0xff]  ;;  %v14423_v20 = vpack.c.bf16 %v9257_v16, %v9254_v50  ;;  %v18484_v52 = vpop.permute.xlu0 %9839  ;;  %v9281_v50 = vld [vmem:[#allocation26 + $0x118] sm:$0xff] }
0x16c7   :  { %14398 = vmatpush1.bf16.msra.mxu1 %v14397_v7 }
0x16c8   :  { %14400 = vmatprep.subr.bf16.mxu1 %v14399_v26 }
0x16cb   :  { %14402 = vmatpush1.bf16.msra.mxu1 %v14401_v23  ;;  %v14426_v23 = vpack.c.bf16 %v9263_v29, %v9260_v42  ;;  %v9287_v42 = vld [vmem:[#allocation26 + $0x148] sm:$0xff] }
0x16cc   :  { %14404 = vmatprep.subr.bf16.mxu1 %v14403_v3 }
0x16cf   :  { %14406 = vmatpush1.bf16.msra.mxu1 %v14405_v12 }
0x16d0   :  { %14408 = vmatprep.subr.bf16.mxu1 %v14407_v53 }
0x16d3   :  { %14410 = vmatpush1.bf16.msra.mxu1 %v14409_v31 }
0x16d4   :  { %14412 = vmatprep.subr.bf16.mxu1 %v14411_v24 }
0x16d7   :  { %14414 = vmatpush1.bf16.msra.mxu1 %v14413_v46  ;;  %v9266_v46 = vld [vmem:[#allocation26 + $0xa0] sm:$0xff] }
0x16d8   :  { %14416 = vmatprep.subr.bf16.mxu1 %v14415_v11 }
0x16db   :  { %14418 = vmatpush1.bf16.msra.mxu1 %v14417_v44 }
0x16dc   :  { %14419 = vmatprep.subr.bf16.mxu1 %v16029_v17 }
0x176d   :  { %v9044_v56 = vpop.f32.mrb[176].mxu1 }
0x176e   :  { %v9046_v35 = vpop.f32.mrb[177].mxu1 }
0x1771   :  { %v9050_v63 = vpop.f32.mrb[178].mxu1 }
0x1772   :  { %v9052_v13 = vpop.f32.mrb[179].mxu1 }
0x1775   :  { %v9130_v2 = vpop.f32.mrb[180].mxu1 }
0x1776   :  { %v9141_v18 = vmax.f32 %v9044_v56, %v9130_v2  ;;  %v9132_v59 = vpop.f32.mrb[181].mxu1 }
0x1777   :  { %v9142_v49 = vmax.f32 %v9046_v35, %v9132_v59  ;;  %v14429_v59 = vpack.c.bf16 %v9269_v14, %v9266_v46 }
0x1779   :  { %v9136_v47 = vpop.f32.mrb[182].mxu1 }
0x177a   :  { %v9143_v28 = vmax.f32 %v9050_v63, %v9136_v47  ;;  %v9138_v41 = vpop.f32.mrb[183].mxu1  ;;  %v9272_v47 = vld [vmem:[#allocation26 + $0xd0] sm:$0xff] }
0x177b   :  { %v9144_v25 = vmax.f32 %v9052_v13, %v9138_v41 }
0x177d   :  { %v9220_v45 = vpop.f32.mrb[184].mxu1 }
0x177e   :  { %v18454_v1 = vmax.f32 %v9141_v18, %v9220_v45  ;;  %v9222_v37 = vpop.f32.mrb[185].mxu1 }
0x177f   :  { %v9232_v10 = vmax.f32 %v9142_v49, %v9222_v37 }
0x1780   :  { %v10065_v57 = vrot.slane %v18454_v1, 7  ;;  %v10077_v30 = vrot.slane %v18454_v1, 1 }
0x1781   :  { %v9226_v22 = vpop.f32.mrb[186].mxu1  ;;  %11782 = vmatprep.mubr.msk.f32.mxu1 %vm9341_vm0, %v9232_v10  ;;  %v10066_v58 = vrot.slane %v9232_v10, 7  ;;  %v10078_v12 = vrot.slane %v9232_v10, 1 }
0x1782   :  { %v18461_v7 = vmax.f32 %v9143_v28, %v9226_v22  ;;  %v9228_v26 = vpop.f32.mrb[187].mxu1  ;;  %9413 = vmatmul.mubr.f32.vlgmr.msra.gmra.mrb[188].mxu1 %v18454_v1  ;;  %v9275_v28 = vld [vmem:[#allocation26 + $0xe8] sm:$0xff]  ;;  %v9290_v22 = vld [vmem:[#allocation26 + $0x160] sm:$0xff] }
0x1783   :  { %v18464_v48 = vmax.f32 %v9144_v25, %v9228_v26  ;;  %14421 = vmatpush1.bf16.msra.mxu1 %v14420_v4  ;;  %v14432_v37 = vpack.c.bf16 %v9275_v28, %v9272_v47  ;;  %v9278_v4 = vld [vmem:[#allocation26 + $0x100] sm:$0xff]  ;;  %v9293_v26 = vld [vmem:[#allocation26 + $0x178] sm:$0xff]  ;;  %v9513_v47 = vld [vmem:[#allocation23 + $0x110] sm:$0xff] }
0x1784   :  { %v10067_v6 = vrot.slane %v18461_v7, 7  ;;  %v10079_v3 = vrot.slane %v18461_v7, 1  ;;  %14422 = vmatprep.subr.bf16.mxu1 %v16029_v17  ;;  %v14435_v16 = vpack.c.bf16 %v9281_v50, %v9278_v4  ;;  %v10244_v4 = vld [vmem:[#allocation38 + $0x20] sm:$0xff] }
0x1785   :  { %v10068_v40 = vrot.slane %v18464_v48, 7  ;;  %v10080_v0 = vrot.slane %v18464_v48, 1  ;;  %11783 = vmatprep.mubr.msk.f32.mxu1 %vm9341_vm0, %v18464_v48  ;;  %v10240_v50 = vld [vmem:[#allocation38] sm:$0xff] }
0x1786   :  { %9419 = vmatmul.mubr.f32.gmra.mrb[190].mxu1 %v18461_v7  ;;  %v10071_v53 = vsel %vm1581_vm4, %v10067_v6, %v10065_v57  ;;  %v10081_v60 = vsel %vm1802_vm3, %v10077_v30, %v10079_v3  ;;  %v10069_v51 = vsel %vm1581_vm4, %v10065_v57, %v10067_v6  ;;  %v10083_v31 = vsel %vm1802_vm3, %v10079_v3, %v10077_v30  ;;  %v9299_v57 = vld [vmem:[#allocation26 + $0x1a8] sm:$0xff]  ;;  %v9302_v6 = vld [vmem:[#allocation26 + $0x1c0] sm:$0xff]  ;;  %v9305_v3 = vld [vmem:[#allocation26 + $0x1d8] sm:$0xff] }
0x1787   :  { %14424 = vmatpush1.bf16.msra.mxu1 %v14423_v20  ;;  %11784 = vmatprep.mubr.msk.f32.mxu1 %vm9341_vm0, %v9232_v10  ;;  %v10072_v32 = vsel %vm1581_vm4, %v10068_v40, %v10066_v58  ;;  %v10082_v24 = vsel %vm1802_vm3, %v10078_v12, %v10080_v0  ;;  %v10073_v38 = vmul.f32 %v10071_v53, %v18456_v34  ;;  %v9314_v53 = vld [vmem:[#allocation26 + $0x220] sm:$0xff] }
0x1788   :  { %14425 = vmatprep.subr.bf16.mxu1 %v16029_v17  ;;  %v10074_v5 = vmul.f32 %v10072_v32, %v18456_v34  ;;  %v10086_v11 = vmul.f32 %v10082_v24, %v18484_v52  ;;  %v10085_v33 = vmul.f32 %v10081_v60, %v18484_v52  ;;  %v10070_v55 = vsel %vm1581_vm4, %v10066_v58, %v10068_v40  ;;  %v9311_v40 = vld [vmem:[#allocation26 + $0x208] sm:$0xff]  ;;  %v9317_v60 = vld [vmem:[#allocation26 + $0x238] sm:$0xff] }
0x1789   :  { %v10076_v44 = vmul.f32 %v10070_v55, %v18459_v19  ;;  %v10084_v56 = vsel %vm1802_vm3, %v10080_v0, %v10078_v12  ;;  %v10075_v35 = vmul.f32 %v10069_v51, %v18459_v19  ;;  %v10087_v63 = vmul.f32 %v10083_v31, %v18492_v21  ;;  %v9308_v12 = vld [vmem:[#allocation26 + $0x1f0] sm:$0xff]  ;;  %v9323_v32 = vld [vmem:[#allocation26 + $0x268] sm:$0xff]  ;;  %v9510_v55 = vld [vmem:[#allocation23 + $0xf8] sm:$0xff] }
0x178a   :  { %v10090_v13 = vmax.f32 %v10074_v5, %v10086_v11  ;;  %v10089_v2 = vmax.f32 %v10073_v38, %v10085_v33  ;;  %v10088_v18 = vmul.f32 %v10084_v56, %v18492_v21  ;;  %v14441_v20 = vpack.c.bf16 %v9293_v26, %v9290_v22  ;;  %v9320_v31 = vld [vmem:[#allocation26 + $0x250] sm:$0xff]  ;;  %v9504_v24 = vld [vmem:[#allocation23 + $0xc8] sm:$0xff]  ;;  %v9506_v38 = vld [vmem:[#allocation23 + $0xd8] sm:$0xff] }
0x178b   :  { %14427 = vmatpush1.bf16.msra.mxu1 %v14426_v23  ;;  %v10091_v49 = vmax.f32 %v10075_v35, %v10087_v63  ;;  %v9296_v23 = vld [vmem:[#allocation26 + $0x190] sm:$0xff]  ;;  %v14447_v58 = vpack.c.bf16 %v9305_v3, %v9302_v6  ;;  %v14450_v0 = vpack.c.bf16 %v9311_v40, %v9308_v12  ;;  %v14453_v51 = vpack.c.bf16 %v9317_v60, %v9314_v53  ;;  %v9503_v5 = vld [vmem:[#allocation23 + $0xc0] sm:$0xff]  ;;  %v9508_v33 = vld [vmem:[#allocation23 + $0xe8] sm:$0xff] }
0x178c   :  { %14428 = vmatprep.subr.bf16.mxu1 %v16029_v17  ;;  %v18507_v41 = vmax.f32 %v9232_v10, %v10090_v13  ;;  %v18510_v25 = vmax.f32 %v18454_v1, %v10089_v2  ;;  %v10092_v54 = vmax.f32 %v10076_v44, %v10088_v18  ;;  %v9284_v10 = vld [vmem:[#allocation26 + $0x130] sm:$0xff]  ;;  %v14444_v30 = vpack.c.bf16 %v9299_v57, %v9296_v23  ;;  %v9507_v35 = vld [vmem:[#allocation23 + $0xe0] sm:$0xff]  ;;  %v9512_v2 = vld [vmem:[#allocation23 + $0x108] sm:$0xff] }
0x178d   :  { %v18513_v36 = vmax.f32 %v18461_v7, %v10091_v49  ;;  %v14438_v29 = vpack.c.bf16 %v9287_v42, %v9284_v10  ;;  %v14456_v46 = vpack.c.bf16 %v9323_v32, %v9320_v31  ;;  %v14458_v14 = vpack.c.bf16 %v9506_v38, %v9504_v24  ;;  %v9505_v11 = vld [vmem:[#allocation23 + $0xd0] sm:$0xff]  ;;  %v9514_v18 = vld [vmem:[#allocation23 + $0x118] sm:$0xff]  ;;  %v9511_v49 = vld [vmem:[#allocation23 + $0x100] sm:$0xff] }
0x178e   :  { %v18516_v45 = vmax.f32 %v18464_v48, %v10092_v54  ;;  %v14460_v44 = vpack.c.bf16 %v9505_v11, %v9503_v5  ;;  %v14462_v56 = vpack.c.bf16 %v9510_v55, %v9508_v33  ;;  %v9509_v63 = vld [vmem:[#allocation23 + $0xf0] sm:$0xff]  ;;  %v14468_v28 = vpack.c.bf16 %v9513_v47, %v9511_v49  ;;  %v9621_v54 = vld [vmem:[#allocation23 + $0x18] sm:$0xff]  ;;  %v10253_v23 = vld [vmem:[#allocation38 + $0x68] sm:$0xff] }
0x178f   :  { %14430 = vmatpush1.bf16.msra.mxu1 %v14429_v59  ;;  %v14464_v13 = vpack.c.bf16 %v9509_v63, %v9507_v35  ;;  %v14466_v59 = vpack.c.bf16 %v9514_v18, %v9512_v2  ;;  %v10247_v10 = vld [vmem:[#allocation38 + $0x38] sm:$0xff]  ;;  %v10250_v42 = vld [vmem:[#allocation38 + $0x50] sm:$0xff]  ;;  %v10256_v57 = vld [vmem:[#allocation38 + $0x80] sm:$0xff] }
0x1790   :  { %14431 = vmatprep.subr.bf16.mxu1 %v16029_v17  ;;  %v14574_v22 = vpack.c.bf16 %v10250_v42, %v10247_v10  ;;  %v10246_v26 = vld [vmem:[#allocation38 + $0x30] sm:$0xff]  ;;  %v14578_v6 = vpack.c.bf16 %v10256_v57, %v10253_v23  ;;  %v10252_v3 = vld [vmem:[#allocation38 + $0x60] sm:$0xff]  ;;  %v10259_v12 = vld [vmem:[#allocation38 + $0x98] sm:$0xff] }
0x1791   :  { %v10262_v40 = vld [vmem:[#allocation38 + $0xb0] sm:$0xff]  ;;  %v10265_v31 = vld [vmem:[#allocation38 + $0xc8] sm:$0xff]  ;;  %v10268_v32 = vld [vmem:[#allocation38 + $0xe0] sm:$0xff] }
0x1792   :  { %v14582_v53 = vpack.c.bf16 %v10262_v40, %v10259_v12  ;;  %v10258_v60 = vld [vmem:[#allocation38 + $0x90] sm:$0xff]  ;;  %v18532_v24 = vld [vmem:[#allocation40 + $0x13] sm:$0x7]  ;;  %v10267_v5 = vld [vmem:[#allocation38 + $0xd8] sm:$0xff] }
0x1793   :  { %14433 = vmatpush1.bf16.msra.mxu1 %v14432_v37  ;;  %v10271_v11 = vld [vmem:[#allocation38 + $0xf8] sm:$0xff]  ;;  %v10274_v33 = vld [vmem:[#allocation38 + $0x110] sm:$0xff]  ;;  %v9337_v55 = vrot.slane %v18532_v24, %v18021_v15  ;;  %v9623_v63 = vld [vmem:[#allocation23 + $0x28] sm:$0xff] }
0x1794   :  { %14434 = vmatprep.subr.bf16.mxu1 %v16029_v17  ;;  %v9620_v35 = vld [vmem:[#allocation23 + $0x10] sm:$0xff]  ;;  %v9625_v18 = vld [vmem:[#allocation23 + $0x38] sm:$0xff]  ;;  %v10273_v49 = vld [vmem:[#allocation38 + $0x108] sm:$0xff] }
0x1795   :  { %v9627_v42 = vld [vmem:[#allocation23 + $0x48] sm:$0xff]  ;;  %v10279_v23 = vld [vmem:[#allocation38 + $0x138] sm:$0xff] }
0x1796   :  { %v10283_v57 = vld [vmem:[#allocation38 + $0x158] sm:$0xff] }
0x1797   :  { %14436 = vmatpush1.bf16.msra.mxu1 %v14435_v16 }
0x1798   :  { %14437 = vmatprep.subr.bf16.mxu1 %v16029_v17 }
0x179b   :  { %14439 = vmatpush1.bf16.msra.mxu1 %v14438_v29 }
0x179c   :  { %14440 = vmatprep.subr.bf16.mxu1 %v16029_v17 }
0x179f   :  { %14442 = vmatpush1.bf16.msra.mxu1 %v14441_v20  ;;  %v10249_v20 = vld [vmem:[#allocation38 + $0x48] sm:$0xff] }
0x17a0   :  { %14443 = vmatprep.subr.bf16.mxu1 %v16029_v17 }
0x17a3   :  { %14445 = vmatpush1.bf16.msra.mxu1 %v14444_v30  ;;  %v14576_v30 = vpack.c.bf16 %v10249_v20, %v10246_v26  ;;  %v10276_v26 = vld [vmem:[#allocation38 + $0x120] sm:$0xff] }
0x17a4   :  { %14446 = vmatprep.subr.bf16.mxu1 %v16029_v17 }
0x17a7   :  { %14448 = vmatpush1.bf16.msra.mxu1 %v14447_v58  ;;  %v10255_v58 = vld [vmem:[#allocation38 + $0x78] sm:$0xff] }
0x17a8   :  { %14449 = vmatprep.subr.bf16.mxu1 %v16029_v17 }
0x17ab   :  { %14451 = vmatpush1.bf16.msra.mxu1 %v14450_v0  ;;  %v14580_v0 = vpack.c.bf16 %v10255_v58, %v10252_v3  ;;  %v9626_v58 = vld [vmem:[#allocation23 + $0x40] sm:$0xff] }
0x17ac   :  { %14452 = vmatprep.subr.bf16.mxu1 %v16029_v17 }
0x17af   :  { %14454 = vmatpush1.bf16.msra.mxu1 %v14453_v51  ;;  %v10261_v51 = vld [vmem:[#allocation38 + $0xa8] sm:$0xff] }
0x17b0   :  { %14455 = vmatprep.subr.bf16.mxu1 %v16029_v17  ;;  %v14584_v38 = vpack.c.bf16 %v10261_v51, %v10258_v60  ;;  %v9737_v60 = vld [vmem:[#allocation23 + $0x78] sm:$0xff]  ;;  %v14596_v51 = vpack.c.bf16 %v10279_v23, %v10276_v26 }
0x17b1   :  { %v10295_v26 = vld [vmem:[#allocation38 + $0x1b8] sm:$0xff] }
0x17b3   :  { %14457 = vmatpush1.bf16.msra.mxu1 %v14456_v46  ;;  %v14586_v46 = vpack.c.bf16 %v10268_v32, %v10265_v31 }
0x17b4   :  { %14459 = vmatprep.subr.bf16.mxu1 %v14458_v14  ;;  %v10264_v14 = vld [vmem:[#allocation38 + $0xc0] sm:$0xff] }
0x17b6   :  { %9490 = vmatmul.mubr.f32.vlgmr.msra.gmra.mrb[192].mxu1 %v18454_v1  ;;  %v9619_v1 = vld [vmem:[#allocation23 + $0x8] sm:$0xff] }
0x17b7   :  { %11785 = vmatprep.mubr.msk.f32.mxu1 %vm9341_vm0, %v18464_v48  ;;  %14461 = vmatpush1.bf16.msra.mxu1 %v14460_v44  ;;  %v14470_v37 = vpack.c.bf16 %v9621_v54, %v9619_v1  ;;  %v10241_v48 = vld [vmem:[#allocation38 + $0x8] sm:$0xff]  ;;  %v14588_v44 = vpack.c.bf16 %v10267_v5, %v10264_v14  ;;  %v10280_v54 = vld [vmem:[#allocation38 + $0x140] sm:$0xff] }
0x17b8   :  { %14463 = vmatprep.subr.bf16.mxu1 %v14462_v56  ;;  %v14570_v16 = vpack.c.bf16 %v10244_v4, %v10241_v48  ;;  %v9618_v56 = vld [vmem:[#allocation23] sm:$0xff]  ;;  %v10277_v1 = vld [vmem:[#allocation38 + $0x128] sm:$0xff]  ;;  %v14474_v4 = vpack.c.bf16 %v9625_v18, %v9623_v63 }
0x17ba   :  { %9495 = vmatmul.mubr.f32.gmra.mrb[194].mxu1 %v18461_v7  ;;  %v10243_v7 = vld [vmem:[#allocation38 + $0x18] sm:$0xff]  ;;  %14571 = vmatprep.subr.bf16.mxu0 %v14570_v16  ;;  %v9624_v16 = vld [vmem:[#allocation23 + $0x30] sm:$0xff] }
0x17bb   :  { %14465 = vmatpush1.bf16.msra.mxu1 %v14464_v13  ;;  %9585 = vmatprep.mubr.f32.mxu1 %v18974_v39  ;;  %v14572_v29 = vpack.c.bf16 %v10243_v7, %v10240_v50  ;;  %v14590_v13 = vpack.c.bf16 %v10274_v33, %v10271_v11  ;;  %v9622_v50 = vld [vmem:[#allocation23 + $0x20] sm:$0xff] }
0x17bc   :  { %14467 = vmatprep.subr.bf16.mxu1 %v14466_v59  ;;  %v10270_v59 = vld [vmem:[#allocation38 + $0xf0] sm:$0xff]  ;;  %v14476_v3 = vpack.c.bf16 %v9624_v16, %v9622_v50 }
0x17bd   :  { %14573 = vmatpush1.bf16.msra.mxu0 %v14572_v29  ;;  %v14592_v7 = vpack.c.bf16 %v10273_v49, %v10270_v59  ;;  %v9629_v29 = vld [vmem:[#allocation23 + $0x58] sm:$0xff] }
0x17be   :  { %14575 = vmatprep.subr.bf16.mxu0 %v14574_v22  ;;  %v14594_v22 = vpack.c.bf16 %v10280_v54, %v10277_v1  ;;  %v14478_v40 = vpack.c.bf16 %v9629_v29, %v9627_v42  ;;  %v9736_v1 = vld [vmem:[#allocation23 + $0x70] sm:$0xff]  ;;  %v10291_v42 = vld [vmem:[#allocation38 + $0x198] sm:$0xff] }
0x17bf   :  { %14469 = vmatpush1.bf16.msra.mxu1 %v14468_v28 }
0x17c0   :  { %14471 = vmatprep.subr.bf16.mxu1 %v14470_v37  ;;  %v14472_v37 = vpack.c.bf16 %v9620_v35, %v9618_v56  ;;  %v10285_v56 = vld [vmem:[#allocation38 + $0x168] sm:$0xff] }
0x17c1   :  { %14577 = vmatpush1.bf16.msra.mxu0 %v14576_v30  ;;  %v10286_v30 = vld [vmem:[#allocation38 + $0x170] sm:$0xff] }
0x17c2   :  { %14579 = vmatprep.subr.bf16.mxu0 %v14578_v6  ;;  %v14598_v31 = vpack.c.bf16 %v10286_v30, %v10283_v57  ;;  %v9738_v30 = vld [vmem:[#allocation23 + $0x80] sm:$0xff] }
0x17c5   :  { %14581 = vmatpush1.bf16.msra.mxu0 %v14580_v0  ;;  %v9628_v0 = vld [vmem:[#allocation23 + $0x50] sm:$0xff] }
0x17c6   :  { %14583 = vmatprep.subr.bf16.mxu0 %v14582_v53  ;;  %v9735_v53 = vld [vmem:[#allocation23 + $0x68] sm:$0xff]  ;;  %v14480_v35 = vpack.c.bf16 %v9628_v0, %v9626_v58  ;;  %v9745_v58 = vld [vmem:[#allocation23 + $0xb8] sm:$0xff]  ;;  %v10294_v0 = vld [vmem:[#allocation38 + $0x1b0] sm:$0xff] }
0x17c7   :  { %v14482_v63 = vpack.c.bf16 %v9737_v60, %v9735_v53  ;;  %v10297_v53 = vld [vmem:[#allocation38 + $0x1c8] sm:$0xff] }
0x17c9   :  { %14585 = vmatpush1.bf16.msra.mxu0 %v14584_v38 }
0x17ca   :  { %14587 = vmatprep.subr.bf16.mxu0 %v14586_v46 }
0x17cd   :  { %14589 = vmatpush1.bf16.msra.mxu0 %v14588_v44  ;;  %v10282_v44 = vld [vmem:[#allocation38 + $0x150] sm:$0xff] }
0x17ce   :  { %14591 = vmatprep.subr.bf16.mxu0 %v14590_v13  ;;  %v10289_v13 = vld [vmem:[#allocation38 + $0x188] sm:$0xff]  ;;  %v14600_v50 = vpack.c.bf16 %v10285_v56, %v10282_v44  ;;  %v10300_v44 = vld [vmem:[#allocation38 + $0x1e0] sm:$0xff]  ;;  %v10303_v56 = vld [vmem:[#allocation38 + $0x1f8] sm:$0xff] }
0x17d1   :  { %14593 = vmatpush1.bf16.msra.mxu0 %v14592_v7 }
0x17d2   :  { %14595 = vmatprep.subr.bf16.mxu0 %v14594_v22 }
0x17d5   :  { %14597 = vmatpush1.bf16.msra.mxu0 %v14596_v51  ;;  %v10301_v51 = vld [vmem:[#allocation38 + $0x1e8] sm:$0xff] }
0x17d6   :  { %14599 = vmatprep.subr.bf16.mxu0 %v14598_v31  ;;  %v10304_v31 = vld [vmem:[#allocation38 + $0x200] sm:$0xff] }
0x17d9   :  { %14601 = vmatpush1.bf16.msra.mxu0 %v14600_v50  ;;  %v10306_v50 = vld [vmem:[#allocation38 + $0x210] sm:$0xff] }
0x1889   :  { %v9491_v2 = vpop.f32.mrb[192].mxu1 }
0x188a   :  { %v9492_v47 = vadd.f32 %v9491_v2, %v9337_v55  ;;  %v9493_v28 = vpop.f32.mrb[193].mxu1  ;;  %v10292_v2 = vld [vmem:[#allocation38 + $0x1a0] sm:$0xff] }
0x188b   :  { %v9734_v28 = vld [vmem:[#allocation23 + $0x60] sm:$0xff]  ;;  %v14602_v7 = vpack.c.bf16 %v10292_v2, %v10289_v13  ;;  %v10310_v13 = vld [vmem:[#allocation38 + $0x230] sm:$0xff] }
0x188c   :  { %v18536_v48 = vmax.f32 %v9492_v47, 0.0  ;;  %v14484_v29 = vpack.c.bf16 %v9736_v1, %v9734_v28  ;;  %v9852_v28 = vld [vmem:[#allocation23 + $0x130] sm:$0xff]  ;;  %v9855_v1 = vld [vmem:[#allocation23 + $0x148] sm:$0xff] }
0x188d   :  { %v9496_v10 = vpop.f32.mrb[194].mxu1  ;;  %14603 = vmatprep.subr.bf16.mxu0 %v14602_v7  ;;  %v10309_v7 = vld [vmem:[#allocation38 + $0x228] sm:$0xff] }
0x188e   :  { %v9498_v20 = vpop.f32.mrb[195].mxu1  ;;  %11786 = vmatmul.mubr.msk.f32.vlgmr.msra.gmra.mrb[188].mxu1 %vm2381_vm6, %v18536_v48  ;;  %v9497_v6 = vadd.f32 %v9496_v10, %v9337_v55  ;;  %v9602_v32 = vrot.slane %v18536_v48, 6  ;;  %v9717_v38 = vrot.slane %v18536_v48, 7  ;;  %v9833_v46 = vrot.slane %v18536_v48, 1  ;;  %v10288_v10 = vld [vmem:[#allocation38 + $0x180] sm:$0xff] }
0x188f   :  { %14473 = vmatpush1.bf16.msra.mxu1 %v14472_v37  ;;  %9591 = vmatprep.mubr.f32.mxu1 %v18974_v39  ;;  %v9949_v14 = vrot.slane %v18536_v48, 2  ;;  %v9739_v37 = vld [vmem:[#allocation23 + $0x88] sm:$0xff]  ;;  %v9741_v48 = vld [vmem:[#allocation23 + $0x98] sm:$0xff]  ;;  %v10298_v20 = vld [vmem:[#allocation38 + $0x1d0] sm:$0xff] }
0x1890   :  { %14475 = vmatprep.subr.bf16.mxu1 %v14474_v4  ;;  %v9501_v12 = vmax.f32 %v9497_v6, 0.0  ;;  %v14486_v57 = vpack.c.bf16 %v9741_v48, %v9739_v37  ;;  %v9740_v6 = vld [vmem:[#allocation23 + $0x90] sm:$0xff]  ;;  %v14612_v37 = vpack.c.bf16 %v10303_v56, %v10300_v44 }
0x1891   :  { %v14488_v60 = vpack.c.bf16 %v9740_v6, %v9738_v30  ;;  %v14616_v30 = vpack.c.bf16 %v10309_v7, %v10306_v50  ;;  %v18597_v50 = vpop.permute.xlu0 %9955 }
0x1892   :  { %v9603_v5 = vrot.slane %v9501_v12, 6  ;;  %v9718_v11 = vrot.slane %v9501_v12, 7  ;;  %v9834_v33 = vrot.slane %v9501_v12, 1  ;;  %v9950_v55 = vrot.slane %v9501_v12, 2  ;;  %11787 = vmatmul.mubr.msk.f32.gmra.mrb[190].mxu1 %vm2381_vm6, %v9501_v12 }
0x1893   :  { %14477 = vmatpush1.bf16.msra.mxu1 %v14476_v3  ;;  %9700 = vmatprep.mubr.f32.mxu1 %v18974_v39  ;;  %v9743_v3 = vld [vmem:[#allocation23 + $0xa8] sm:$0xff]  ;;  %v14604_v12 = vpack.c.bf16 %v10291_v42, %v10288_v10 }
0x1894   :  { %v9605_v18 = vsel %vm2602_vm11, %v9603_v5, %v9602_v32  ;;  %v18551_v59 = vsel %vm1581_vm4, %v9718_v11, %v9717_v38  ;;  %v18555_v49 = vsel %vm1802_vm3, %v9833_v46, %v9834_v33  ;;  %v18559_v47 = vsel %vm3025_vm12, %v9949_v14, %v9950_v55  ;;  %14479 = vmatprep.subr.bf16.mxu1 %v14478_v40 }
0x1895   :  { %v9604_v54 = vsel %vm2602_vm11, %v9602_v32, %v9603_v5  ;;  %v18565_v4 = vsel %vm1581_vm4, %v9717_v38, %v9718_v11  ;;  %v18569_v16 = vsel %vm1802_vm3, %v9834_v33, %v9833_v46  ;;  %v18573_v22 = vsel %vm3025_vm12, %v9950_v55, %v9949_v14  ;;  %v9742_v46 = vld [vmem:[#allocation23 + $0xa0] sm:$0xff]  ;;  %v9744_v14 = vld [vmem:[#allocation23 + $0xb0] sm:$0xff]  ;;  %v9851_v5 = vld [vmem:[#allocation23 + $0x128] sm:$0xff]  ;;  %14605 = vmatpush1.bf16.msra.mxu0 %v14604_v12 }
0x1896   :  { %v9616_v23 = vmul.f32 %v18450_v61, %v9605_v18  ;;  %v14606_v40 = vpack.c.bf16 %v10298_v20, %v10295_v26  ;;  %v9617_v32 = vmul.f32 %v18452_v27, %v9604_v54  ;;  %v14490_v38 = vpack.c.bf16 %v9745_v58, %v9743_v3  ;;  %v9853_v11 = vld [vmem:[#allocation23 + $0x138] sm:$0xff]  ;;  %v9850_v18 = vld [vmem:[#allocation23 + $0x120] sm:$0xff]  ;;  %v9856_v20 = vld [vmem:[#allocation23 + $0x150] sm:$0xff] }
0x1897   :  { %14481 = vmatpush1.bf16.msra.mxu1 %v14480_v35  ;;  %v14608_v33 = vpack.c.bf16 %v10297_v53, %v10294_v0  ;;  %v14610_v55 = vpack.c.bf16 %v10304_v31, %v10301_v51  ;;  %v14492_v35 = vpack.c.bf16 %v9744_v14, %v9742_v46  ;;  %v14494_v2 = vpack.c.bf16 %v9853_v11, %v9851_v5  ;;  %v9857_v54 = vld [vmem:[#allocation23 + $0x158] sm:$0xff]  ;;  %v9854_v26 = vld [vmem:[#allocation23 + $0x140] sm:$0xff]  ;;  %v9860_v12 = vld [vmem:[#allocation23 + $0x170] sm:$0xff] }
0x1898   :  { %14483 = vmatprep.subr.bf16.mxu1 %v14482_v63  ;;  %14607 = vmatprep.subr.bf16.mxu0 %v14606_v40  ;;  %v10307_v63 = vld [vmem:[#allocation38 + $0x218] sm:$0xff]  ;;  %v14496_v10 = vpack.c.bf16 %v9852_v28, %v9850_v18  ;;  %v9731_v42 = vmul.f32 %v18456_v34, %v18551_v59  ;;  %v14500_v6 = vpack.c.bf16 %v9856_v20, %v9854_v26  ;;  %v9858_v58 = vld [vmem:[#allocation23 + $0x160] sm:$0xff]  ;;  %v9967_v40 = vld [vmem:[#allocation23 + $0x188] sm:$0xff] }
0x1899   :  { %14609 = vmatpush1.bf16.msra.mxu0 %v14608_v33  ;;  %v14614_v48 = vpack.c.bf16 %v10310_v13, %v10307_v63  ;;  %v9732_v3 = vmul.f32 %v18459_v19, %v18565_v4  ;;  %v9969_v0 = vld [vmem:[#allocation23 + $0x198] sm:$0xff]  ;;  %v14504_v53 = vpack.c.bf16 %v9860_v12, %v9858_v58  ;;  %v9966_v51 = vld [vmem:[#allocation23 + $0x180] sm:$0xff]  ;;  %v9968_v31 = vld [vmem:[#allocation23 + $0x190] sm:$0xff]  ;;  %v9847_v46 = vmul.f32 %v18484_v52, %v18555_v49 }
0x189a   :  { %11788 = vmatmul.mubr.msk.f32.vlgmr.msra.gmra.mrb[188].mxu1 %vm2381_vm6, %v9616_v23  ;;  %14611 = vmatprep.subr.bf16.mxu0 %v14610_v55  ;;  %v9859_v23 = vld [vmem:[#allocation23 + $0x168] sm:$0xff]  ;;  %v14508_v4 = vpack.c.bf16 %v9968_v31, %v9966_v51  ;;  %v9970_v5 = vld [vmem:[#allocation23 + $0x1a0] sm:$0xff]  ;;  %v9972_v11 = vld [vmem:[#allocation23 + $0x1b0] sm:$0xff]  ;;  %v9848_v56 = vmul.f32 %v18492_v21, %v18569_v16  ;;  %v9963_v7 = vmul.f32 %v18597_v50, %v18559_v47 }
0x189b   :  { %14485 = vmatpush1.bf16.msra.mxu1 %v14484_v29  ;;  %9706 = vmatprep.mubr.f32.mxu1 %v18974_v39  ;;  %v14498_v29 = vpack.c.bf16 %v9857_v54, %v9855_v1  ;;  %v9975_v33 = vld [vmem:[#allocation23 + $0x1c8] sm:$0xff]  ;;  %v9977_v55 = vld [vmem:[#allocation23 + $0x1d8] sm:$0xff]  ;;  %v14512_v44 = vpack.c.bf16 %v9972_v11, %v9970_v5  ;;  %v9974_v63 = vld [vmem:[#allocation23 + $0x1c0] sm:$0xff] }
0x189c   :  { %14487 = vmatprep.subr.bf16.mxu1 %v14486_v57  ;;  %v9861_v57 = vld [vmem:[#allocation23 + $0x178] sm:$0xff]  ;;  %v9976_v13 = vld [vmem:[#allocation23 + $0x1d0] sm:$0xff]  ;;  %v10098_v49 = vld [vmem:[#allocation25 + $0x8] sm:$0xff] }
0x189d   :  { %14613 = vmatpush1.bf16.msra.mxu0 %v14612_v37  ;;  %v14502_v59 = vpack.c.bf16 %v9861_v57, %v9859_v23  ;;  %v14516_v18 = vpack.c.bf16 %v9976_v13, %v9974_v63  ;;  %v10097_v1 = vld [vmem:[#allocation25] sm:$0xff]  ;;  %v10099_v54 = vld [vmem:[#allocation25 + $0x10] sm:$0xff]  ;;  %v10102_v37 = vld [vmem:[#allocation25 + $0x28] sm:$0xff]  ;;  %v18602_v23 = vpop.permute.xlu1 %9960 }
0x189e   :  { %11789 = vmatmul.mubr.msk.f32.gmra.mrb[190].mxu1 %vm2381_vm6, %v9617_v32  ;;  %14615 = vmatprep.subr.bf16.mxu0 %v14614_v48  ;;  %v9971_v32 = vld [vmem:[#allocation23 + $0x1a8] sm:$0xff]  ;;  %v10104_v48 = vld [vmem:[#allocation25 + $0x38] sm:$0xff]  ;;  %v14520_v16 = vpack.c.bf16 %v10099_v54, %v10097_v1  ;;  %v10105_v47 = vld [vmem:[#allocation25 + $0x40] sm:$0xff] }
0x189f   :  { %14489 = vmatpush1.bf16.msra.mxu1 %v14488_v60  ;;  %9816 = vmatprep.mubr.f32.mxu1 %v18974_v39  ;;  %v14506_v60 = vpack.c.bf16 %v9969_v0, %v9967_v40  ;;  %v10106_v26 = vld [vmem:[#allocation25 + $0x48] sm:$0xff]  ;;  %v10108_v20 = vld [vmem:[#allocation25 + $0x58] sm:$0xff]  ;;  %v10109_v0 = vld [vmem:[#allocation25 + $0x60] sm:$0xff] }
0x18a0   :  { %14491 = vmatprep.subr.bf16.mxu1 %v14490_v38  ;;  %v9973_v38 = vld [vmem:[#allocation23 + $0x1b8] sm:$0xff]  ;;  %v10119_v11 = vld [vmem:[#allocation25 + $0xb0] sm:$0xff]  ;;  %v10126_v13 = vld [vmem:[#allocation25 + $0xe8] sm:$0xff] }
0x18a1   :  { %14617 = vmatpush1.bf16.msra.mxu0 %v14616_v30  ;;  %v14510_v14 = vpack.c.bf16 %v9973_v38, %v9971_v32  ;;  %v9964_v30 = vmul.f32 %v18602_v23, %v18573_v22  ;;  %v10112_v58 = vld [vmem:[#allocation25 + $0x78] sm:$0xff]  ;;  %v10113_v32 = vld [vmem:[#allocation25 + $0x80] sm:$0xff]  ;;  %v10115_v38 = vld [vmem:[#allocation25 + $0x90] sm:$0xff] }
0x18a2   :  { %v10116_v51 = vld [vmem:[#allocation25 + $0x98] sm:$0xff]  ;;  %v10123_v63 = vld [vmem:[#allocation25 + $0xd0] sm:$0xff]  ;;  %v10130_v54 = vld [vmem:[#allocation25 + $0x108] sm:$0xff] }
0x18a3   :  { %14493 = vmatpush1.bf16.msra.mxu1 %v14492_v35  ;;  %v14514_v35 = vpack.c.bf16 %v9977_v55, %v9975_v33  ;;  %v10122_v33 = vld [vmem:[#allocation25 + $0xc8] sm:$0xff]  ;;  %v10124_v55 = vld [vmem:[#allocation25 + $0xd8] sm:$0xff]  ;;  %v10127_v1 = vld [vmem:[#allocation25 + $0xf0] sm:$0xff] }
0x18a4   :  { %14495 = vmatprep.subr.bf16.mxu1 %v14494_v2  ;;  %v10100_v2 = vld [vmem:[#allocation25 + $0x18] sm:$0xff] }
0x18a5   :  { %v14518_v28 = vpack.c.bf16 %v10100_v2, %v10098_v49  ;;  %v10128_v49 = vld [vmem:[#allocation25 + $0xf8] sm:$0xff] }
0x18a6   :  { %11790 = vmatmul.mubr.msk.f32.vlgmr.msra.gmra.mrb[188].mxu1 %vm2381_vm6, %v9731_v42  ;;  %v10101_v42 = vld [vmem:[#allocation25 + $0x20] sm:$0xff] }
0x18a7   :  { %14497 = vmatpush1.bf16.msra.mxu1 %v14496_v10  ;;  %9822 = vmatprep.mubr.f32.mxu1 %v18974_v39  ;;  %v14522_v10 = vpack.c.bf16 %v10104_v48, %v10102_v37  ;;  %v10132_v37 = vld [vmem:[#allocation25 + $0x118] sm:$0xff] }
0x18a8   :  { %14499 = vmatprep.subr.bf16.mxu1 %v14498_v29  ;;  %v10103_v29 = vld [vmem:[#allocation25 + $0x30] sm:$0xff] }
0x18a9   :  { %v14524_v57 = vpack.c.bf16 %v10103_v29, %v10101_v42  ;;  %v10134_v42 = vld [vmem:[#allocation25 + $0x128] sm:$0xff]  ;;  %v10136_v29 = vld [vmem:[#allocation25 + $0x138] sm:$0xff] }
0x18aa   :  { %11791 = vmatmul.mubr.msk.f32.gmra.mrb[190].mxu1 %vm2381_vm6, %v9732_v3  ;;  %v10107_v3 = vld [vmem:[#allocation25 + $0x50] sm:$0xff] }
0x18ab   :  { %14501 = vmatpush1.bf16.msra.mxu1 %v14500_v6  ;;  %9932 = vmatprep.mubr.f32.mxu1 %v18974_v39  ;;  %v14526_v6 = vpack.c.bf16 %v10108_v20, %v10106_v26  ;;  %v14528_v12 = vpack.c.bf16 %v10107_v3, %v10105_v47  ;;  %v14554_v20 = vpack.c.bf16 %v10136_v29, %v10134_v42  ;;  %v10140_v47 = vld [vmem:[#allocation25 + $0x158] sm:$0xff]  ;;  %v10257_v42 = vld [vmem:[#allocation38 + $0x88] sm:$0xff] }
0x18ac   :  { %14503 = vmatprep.subr.bf16.mxu1 %v14502_v59  ;;  %v10110_v59 = vld [vmem:[#allocation25 + $0x68] sm:$0xff] }
0x18ad   :  { %v14530_v40 = vpack.c.bf16 %v10112_v58, %v10110_v59  ;;  %v10137_v58 = vld [vmem:[#allocation25 + $0x140] sm:$0xff] }
0x18af   :  { %14505 = vmatpush1.bf16.msra.mxu1 %v14504_v53  ;;  %v10111_v53 = vld [vmem:[#allocation25 + $0x70] sm:$0xff] }
0x18b0   :  { %14507 = vmatprep.subr.bf16.mxu1 %v14506_v60  ;;  %v10114_v60 = vld [vmem:[#allocation25 + $0x88] sm:$0xff]  ;;  %v14532_v22 = vpack.c.bf16 %v10111_v53, %v10109_v0  ;;  %v10144_v0 = vld [vmem:[#allocation25 + $0x178] sm:$0xff] }
0x18b1   :  { %v14534_v31 = vpack.c.bf16 %v10116_v51, %v10114_v60  ;;  %v10141_v51 = vld [vmem:[#allocation25 + $0x160] sm:$0xff] }
0x18b2   :  { %11792 = vmatmul.mubr.msk.f32.vlgmr.msra.gmra.mrb[188].mxu1 %vm2381_vm6, %v9847_v46  ;;  %v10120_v46 = vld [vmem:[#allocation25 + $0xb8] sm:$0xff] }
0x18b3   :  { %14509 = vmatpush1.bf16.msra.mxu1 %v14508_v4  ;;  %9938 = vmatprep.mubr.f32.mxu1 %v18974_v39  ;;  %v10118_v4 = vld [vmem:[#allocation25 + $0xa8] sm:$0xff] }
0x18b4   :  { %14511 = vmatprep.subr.bf16.mxu1 %v14510_v14  ;;  %v14536_v14 = vpack.c.bf16 %v10115_v38, %v10113_v32  ;;  %v14538_v5 = vpack.c.bf16 %v10120_v46, %v10118_v4  ;;  %v10148_v32 = vld [vmem:[#allocation25 + $0x198] sm:$0xff]  ;;  %v10145_v46 = vld [vmem:[#allocation25 + $0x180] sm:$0xff] }
0x18b6   :  { %11793 = vmatmul.mubr.msk.f32.gmra.mrb[190].mxu1 %vm2381_vm6, %v9848_v56  ;;  %v14542_v56 = vpack.c.bf16 %v10124_v55, %v10122_v33  ;;  %v10312_v55 = vld [vmem:[#allocation38 + $0x240] sm:$0xff] }
0x18b7   :  { %14513 = vmatpush1.bf16.msra.mxu1 %v14512_v44  ;;  %10048 = vmatprep.mubr.f32.mxu1 %v18974_v39 }
0x18b8   :  { %14515 = vmatprep.subr.bf16.mxu1 %v14514_v35  ;;  %v10121_v35 = vld [vmem:[#allocation25 + $0xc0] sm:$0xff] }
0x18b9   :  { %v14544_v2 = vpack.c.bf16 %v10123_v63, %v10121_v35 }
0x18bb   :  { %14517 = vmatpush1.bf16.msra.mxu1 %v14516_v18  ;;  %v14546_v18 = vpack.c.bf16 %v10128_v49, %v10126_v13  ;;  %v10242_v13 = vld [vmem:[#allocation38 + $0x10] sm:$0xff]  ;;  %v10245_v49 = vld [vmem:[#allocation38 + $0x28] sm:$0xff] }
0x18bc   :  { %14519 = vmatprep.subr.bf16.mxu1 %v14518_v28  ;;  %v10125_v28 = vld [vmem:[#allocation25 + $0xe0] sm:$0xff] }
0x18bd   :  { %v14548_v48 = vpack.c.bf16 %v10127_v1, %v10125_v28  ;;  %v14623_v1 = vpack.c.bf16 %v10245_v49, %v10242_v13  ;;  %v10269_v13 = vld [vmem:[#allocation38 + $0xe8] sm:$0xff] }
0x18be   :  { %11794 = vmatmul.mubr.msk.f32.vlgmr.msra.gmra.mrb[188].mxu1 %vm2381_vm6, %v9963_v7  ;;  %v10129_v7 = vld [vmem:[#allocation25 + $0x100] sm:$0xff] }
0x18bf   :  { %14521 = vmatpush1.bf16.msra.mxu1 %v14520_v16  ;;  %10054 = vmatprep.mubr.f32.mxu1 %v18974_v39  ;;  %v14550_v16 = vpack.c.bf16 %v10132_v37, %v10130_v54  ;;  %v10248_v54 = vld [vmem:[#allocation38 + $0x40] sm:$0xff] }
0x18c0   :  { %14523 = vmatprep.subr.bf16.mxu1 %v14522_v10  ;;  %v10131_v10 = vld [vmem:[#allocation25 + $0x110] sm:$0xff] }
0x18c1   :  { %v14552_v26 = vpack.c.bf16 %v10131_v10, %v10129_v7  ;;  %v10251_v7 = vld [vmem:[#allocation38 + $0x58] sm:$0xff]  ;;  %v10254_v10 = vld [vmem:[#allocation38 + $0x70] sm:$0xff] }
0x18c2   :  { %11795 = vmatmul.mubr.msk.f32.gmra.mrb[190].mxu1 %vm2381_vm6, %v9964_v30  ;;  %v10135_v30 = vld [vmem:[#allocation25 + $0x130] sm:$0xff]  ;;  %vm10512_vm6 = vcmask 490496  }
0x18c3   :  { %14525 = vmatpush1.bf16.msra.mxu1 %v14524_v57  ;;  %11796 = vmatprep.mubr.msk.f32.mxu1 %vm9341_vm0, %v18507_v41  ;;  %v10117_v41 = vld [vmem:[#allocation25 + $0xa0] sm:$0xff] }
0x18c4   :  { %14527 = vmatprep.subr.bf16.mxu1 %v14526_v6  ;;  %v14540_v44 = vpack.c.bf16 %v10119_v11, %v10117_v41  ;;  %v10133_v57 = vld [vmem:[#allocation25 + $0x120] sm:$0xff]  ;;  %v10138_v6 = vld [vmem:[#allocation25 + $0x148] sm:$0xff] }
0x18c5   :  { %v14556_v3 = vpack.c.bf16 %v10135_v30, %v10133_v57  ;;  %v14558_v59 = vpack.c.bf16 %v10140_v47, %v10138_v6  ;;  %v10313_v41 = vld [vmem:[#allocation38 + $0x248] sm:$0xff]  ;;  %v10316_v11 = vld [vmem:[#allocation38 + $0x260] sm:$0xff]  ;;  %v14629_v57 = vpack.c.bf16 %v10257_v42, %v10254_v10 }
0x18c6   :  { %v14618_v33 = vpack.c.bf16 %v10316_v11, %v10313_v41  ;;  %v10281_v42 = vld [vmem:[#allocation38 + $0x148] sm:$0xff] }
0x18c7   :  { %14529 = vmatpush1.bf16.msra.mxu1 %v14528_v12  ;;  %v10139_v12 = vld [vmem:[#allocation25 + $0x150] sm:$0xff] }
0x18c8   :  { %14531 = vmatprep.subr.bf16.mxu1 %v14530_v40  ;;  %v10142_v40 = vld [vmem:[#allocation25 + $0x168] sm:$0xff]  ;;  %v14560_v53 = vpack.c.bf16 %v10139_v12, %v10137_v58  ;;  %14619 = vmatprep.subr.bf16.mxu0 %v14618_v33 }
0x18c9   :  { %v14562_v60 = vpack.c.bf16 %v10144_v0, %v10142_v40 }
0x18cb   :  { %14533 = vmatpush1.bf16.msra.mxu1 %v14532_v22  ;;  %v10143_v22 = vld [vmem:[#allocation25 + $0x170] sm:$0xff] }
0x18cc   :  { %14535 = vmatprep.subr.bf16.mxu1 %v14534_v31  ;;  %v10146_v31 = vld [vmem:[#allocation25 + $0x188] sm:$0xff]  ;;  %v14564_v38 = vpack.c.bf16 %v10143_v22, %v10141_v51 }
0x18cd   :  { %v14566_v4 = vpack.c.bf16 %v10148_v32, %v10146_v31 }
0x18cf   :  { %14537 = vmatpush1.bf16.msra.mxu1 %v14536_v14  ;;  %v10147_v14 = vld [vmem:[#allocation25 + $0x190] sm:$0xff] }
0x18d0   :  { %14539 = vmatprep.subr.bf16.mxu1 %v14538_v5  ;;  %v14568_v5 = vpack.c.bf16 %v10147_v14, %v10145_v46 }
0x18d3   :  { %14541 = vmatpush1.bf16.msra.mxu1 %v14540_v44  ;;  %v10315_v44 = vld [vmem:[#allocation38 + $0x258] sm:$0xff] }
0x18d4   :  { %14543 = vmatprep.subr.bf16.mxu1 %v14542_v56  ;;  %v14620_v56 = vpack.c.bf16 %v10315_v44, %v10312_v55 }
0x18d6   :  { %14621 = vmatpush1.bf16.msra.mxu0 %v14620_v56 }
0x18d7   :  { %14545 = vmatpush1.bf16.msra.mxu1 %v14544_v2  ;;  %14622 = vmatprep.subr.bf16.mxu0 %v16029_v17 }
0x18d8   :  { %14547 = vmatprep.subr.bf16.mxu1 %v14546_v18 }
0x18db   :  { %14549 = vmatpush1.bf16.msra.mxu1 %v14548_v48 }
0x18dc   :  { %14551 = vmatprep.subr.bf16.mxu1 %v14550_v16 }
0x18df   :  { %14553 = vmatpush1.bf16.msra.mxu1 %v14552_v26 }
0x18e0   :  { %14555 = vmatprep.subr.bf16.mxu1 %v14554_v20  ;;  %v14626_v20 = vpack.c.bf16 %v10251_v7, %v10248_v54  ;;  %v10275_v7 = vld [vmem:[#allocation38 + $0x118] sm:$0xff] }
0x18e3   :  { %14557 = vmatpush1.bf16.msra.mxu1 %v14556_v3 }
0x18e4   :  { %14559 = vmatprep.subr.bf16.mxu1 %v14558_v59 }
0x18e7   :  { %14561 = vmatpush1.bf16.msra.mxu1 %v14560_v53 }
0x18e8   :  { %14563 = vmatprep.subr.bf16.mxu1 %v14562_v60 }
0x18eb   :  { %14565 = vmatpush1.bf16.msra.mxu1 %v14564_v38  ;;  %v10260_v38 = vld [vmem:[#allocation38 + $0xa0] sm:$0xff] }
0x18ec   :  { %14567 = vmatprep.subr.bf16.mxu1 %v14566_v4  ;;  %v10263_v4 = vld [vmem:[#allocation38 + $0xb8] sm:$0xff] }
0x18ef   :  { %14569 = vmatpush1.bf16.msra.mxu1 %v14568_v5 }
0x18f2   :  { %10220 = vmatmul.mubr.f32.vlgmr.msra.gmra.mrb[188].mxu1 %v18510_v25  ;;  %v9329_v25 = vrot.slane %v18532_v24, %v17230_v8 }
0x18f3   :  { %11797 = vmatprep.mubr.msk.f32.mxu1 %vm9341_vm0, %v18516_v45  ;;  %v9333_v45 = vrot.slane %v18532_v24, %v17097_v9 }
0x18f6   :  { %10226 = vmatmul.mubr.f32.gmra.mrb[190].mxu1 %v18513_v36 }
0x18f7   :  { %11312 = vmatprep.mubr.f32.mxu1 %v18974_v39 }
0x19c5   :  { %v10221_v35 = vpop.f32.mrb[188].mxu1 }
0x19c6   :  { %v14861_v36 = vadd.f32 %v10221_v35, %v9329_v25  ;;  %v10223_v63 = vpop.f32.mrb[189].mxu1  ;;  %v14632_v35 = vpack.c.bf16 %v10263_v4, %v10260_v38  ;;  %v11803_v38 = vld [vmem:[%s18977_s20 + $0x108] sm:$0xff]  ;;  %v11805_v4 = vld [vmem:[%s18977_s20 + $0x118] sm:$0xff] }
0x19c7   :  { %v14862_v2 = vadd.f32 %v10223_v63, %v9333_v45  ;;  %v10266_v63 = vld [vmem:[#allocation38 + $0xd0] sm:$0xff] }
0x19c8   :  { %v18620_v37 = vmax.f32 %v14861_v36, 0.0 }
0x19c9   :  { %v10237_v18 = vmax.f32 %v14862_v2, 0.0  ;;  %v10227_v28 = vpop.f32.mrb[190].mxu1 }
0x19ca   :  { %v14863_v48 = vadd.f32 %v10227_v28, %v9329_v25  ;;  %v10229_v16 = vpop.f32.mrb[191].mxu1  ;;  %v11069_v30 = vrot.slane %v18620_v37, 7  ;;  %v11081_v6 = vrot.slane %v18620_v37, 1 }
0x19cb   :  { %v14864_v29 = vadd.f32 %v10229_v16, %v9333_v45  ;;  %11798 = vmatprep.mubr.msk.f32.mxu0 %vm9341_vm0, %v10237_v18  ;;  %v11070_v59 = vrot.slane %v10237_v18, 7  ;;  %v11082_v58 = vrot.slane %v10237_v18, 1  ;;  %v10272_v16 = vld [vmem:[#allocation38 + $0x100] sm:$0xff] }
0x19cc   :  { %v18623_v24 = vmax.f32 %v14863_v48, 0.0  ;;  %10406 = vmatmul.mubr.f32.vlgmr.msra.gmra.mrb[174].mxu0 %v18620_v37  ;;  %v14635_v48 = vpack.c.bf16 %v10269_v13, %v10266_v63  ;;  %v14638_v10 = vpack.c.bf16 %v10275_v7, %v10272_v16  ;;  %v11810_v63 = vld [vmem:[%s18977_s20 + $0x140] sm:$0xff]  ;;  %v11812_v13 = vld [vmem:[%s18977_s20 + $0x150] sm:$0xff] }
0x19cd   :  { %v18626_v26 = vmax.f32 %v14864_v29, 0.0  ;;  %14624 = vmatpush1.bf16.msra.mxu0 %v14623_v1  ;;  %v11814_v16 = vld [vmem:[%s18977_s20 + $0x160] sm:$0xff]  ;;  %v11816_v7 = vld [vmem:[%s18977_s20 + $0x170] sm:$0xf] }
0x19ce   :  { %v11071_v47 = vrot.slane %v18623_v24, 7  ;;  %v11083_v3 = vrot.slane %v18623_v24, 1  ;;  %14625 = vmatprep.subr.bf16.mxu0 %v16029_v17 }
0x19cf   :  { %v11072_v12 = vrot.slane %v18626_v26, 7  ;;  %v11084_v40 = vrot.slane %v18626_v26, 1  ;;  %11799 = vmatprep.mubr.msk.f32.mxu0 %vm9341_vm0, %v18626_v26 }
0x19d0   :  { %10412 = vmatmul.mubr.f32.gmra.mrb[176].mxu0 %v18623_v24  ;;  %v11075_v0 = vsel %vm1581_vm4, %v11071_v47, %v11069_v30  ;;  %v11085_v53 = vsel %vm1802_vm3, %v11081_v6, %v11083_v3  ;;  %v11073_v60 = vsel %vm1581_vm4, %v11069_v30, %v11071_v47  ;;  %v11087_v51 = vsel %vm1802_vm3, %v11083_v3, %v11081_v6  ;;  %v10290_v6 = vld [vmem:[#allocation38 + $0x190] sm:$0xff]  ;;  %v10293_v47 = vld [vmem:[#allocation38 + $0x1a8] sm:$0xff] }
0x19d1   :  { %14627 = vmatpush1.bf16.msra.mxu0 %v14626_v20  ;;  %11800 = vmatprep.mubr.msk.f32.mxu0 %vm9341_vm0, %v10237_v18  ;;  %v11076_v22 = vsel %vm1581_vm4, %v11072_v12, %v11070_v59  ;;  %v11086_v31 = vsel %vm1802_vm3, %v11082_v58, %v11084_v40  ;;  %v11077_v32 = vmul.f32 %v11075_v0, %v18456_v34  ;;  %v10284_v20 = vld [vmem:[#allocation38 + $0x160] sm:$0xff]  ;;  %v10305_v0 = vld [vmem:[#allocation38 + $0x208] sm:$0xff] }
0x19d2   :  { %14628 = vmatprep.subr.bf16.mxu0 %v16029_v17  ;;  %v11078_v46 = vmul.f32 %v11076_v22, %v18456_v34  ;;  %v11090_v14 = vmul.f32 %v11086_v31, %v18484_v52  ;;  %v11089_v5 = vmul.f32 %v11085_v53, %v18484_v52  ;;  %v11074_v41 = vsel %vm1581_vm4, %v11070_v59, %v11072_v12  ;;  %v10296_v59 = vld [vmem:[#allocation38 + $0x1c0] sm:$0xff]  ;;  %v10314_v31 = vld [vmem:[#allocation38 + $0x250] sm:$0xff] }
0x19d3   :  { %v11080_v11 = vmul.f32 %v11074_v41, %v18459_v19  ;;  %v11088_v33 = vsel %vm1802_vm3, %v11084_v40, %v11082_v58  ;;  %v11079_v55 = vmul.f32 %v11073_v60, %v18459_v19  ;;  %v11091_v44 = vmul.f32 %v11087_v51, %v18492_v21  ;;  %v10299_v58 = vld [vmem:[#allocation38 + $0x1d8] sm:$0xff]  ;;  %v10302_v40 = vld [vmem:[#allocation38 + $0x1f0] sm:$0xff]  ;;  %v10308_v60 = vld [vmem:[#allocation38 + $0x220] sm:$0xff] }
0x19d4   :  { %v11094_v56 = vmax.f32 %v11078_v46, %v11090_v14  ;;  %v11093_v25 = vmax.f32 %v11077_v32, %v11089_v5  ;;  %v11092_v45 = vmul.f32 %v11088_v33, %v18492_v21  ;;  %v14647_v3 = vpack.c.bf16 %v10293_v47, %v10290_v6  ;;  %v10311_v51 = vld [vmem:[#allocation38 + $0x238] sm:$0xff]  ;;  %v10317_v32 = vld [vmem:[#allocation38 + $0x268] sm:$0xff]  ;;  %v11809_v33 = vld [vmem:[%s18977_s20 + $0x138] sm:$0xff] }
0x19d5   :  { %14630 = vmatpush1.bf16.msra.mxu0 %v14629_v57  ;;  %v11095_v36 = vmax.f32 %v11079_v55, %v11091_v44  ;;  %v10287_v57 = vld [vmem:[#allocation38 + $0x178] sm:$0xff]  ;;  %v14650_v12 = vpack.c.bf16 %v10299_v58, %v10296_v59  ;;  %v14653_v53 = vpack.c.bf16 %v10305_v0, %v10302_v40  ;;  %v14656_v22 = vpack.c.bf16 %v10311_v51, %v10308_v60  ;;  %v11802_v5 = vld [vmem:[%s18977_s20 + $0x100] sm:$0xff]  ;;  %v10617_v47 = vld [vmem:[%s18977_s20 + $0x28] sm:$0xff] }
0x19d6   :  { %14631 = vmatprep.subr.bf16.mxu0 %v16029_v17  ;;  %v18665_v49 = vmax.f32 %v10237_v18, %v11094_v56  ;;  %v18668_v2 = vmax.f32 %v18620_v37, %v11093_v25  ;;  %v11096_v28 = vmax.f32 %v11080_v11, %v11092_v45  ;;  %v10278_v18 = vld [vmem:[#allocation38 + $0x130] sm:$0xff]  ;;  %v14644_v30 = vpack.c.bf16 %v10287_v57, %v10284_v20  ;;  %v11804_v41 = vld [vmem:[%s18977_s20 + $0x110] sm:$0xff]  ;;  %v11806_v56 = vld [vmem:[%s18977_s20 + $0x120] sm:$0xff] }
0x19d7   :  { %v18671_v1 = vmax.f32 %v18623_v24, %v11095_v36  ;;  %v14641_v29 = vpack.c.bf16 %v10281_v42, %v10278_v18  ;;  %v14659_v46 = vpack.c.bf16 %v10317_v32, %v10314_v31  ;;  %v14661_v14 = vpack.c.bf16 %v11805_v4, %v11803_v38  ;;  %v11807_v11 = vld [vmem:[%s18977_s20 + $0x128] sm:$0xff]  ;;  %v11808_v25 = vld [vmem:[%s18977_s20 + $0x130] sm:$0xff]  ;;  %v10615_v18 = vld [vmem:[%s18977_s20 + $0x18] sm:$0xff] }
0x19d8   :  { %v18674_v54 = vmax.f32 %v18626_v26, %v11096_v28  ;;  %v14663_v55 = vpack.c.bf16 %v11804_v41, %v11802_v5  ;;  %v14665_v44 = vpack.c.bf16 %v11809_v33, %v11807_v11  ;;  %v11811_v45 = vld [vmem:[%s18977_s20 + $0x148] sm:$0xff]  ;;  %v14671_v28 = vpack.c.bf16 %v11812_v13, %v11810_v63  ;;  %v10612_v57 = vld [vmem:[%s18977_s20] sm:$0xff]  ;;  %v10623_v31 = vld [vmem:[%s18977_s20 + $0x58] sm:$0xff] }
0x19d9   :  { %14633 = vmatpush1.bf16.msra.mxu0 %v14632_v35  ;;  %v11813_v35 = vld [vmem:[%s18977_s20 + $0x158] sm:$0xff]  ;;  %v10616_v60 = vld [vmem:[%s18977_s20 + $0x20] sm:$0xff]  ;;  %v10622_v5 = vld [vmem:[%s18977_s20 + $0x50] sm:$0xff] }
0x19da   :  { %14634 = vmatprep.subr.bf16.mxu0 %v16029_v17  ;;  %v14669_v36 = vpack.c.bf16 %v11813_v35, %v11811_v45  ;;  %v10620_v4 = vld [vmem:[%s18977_s20 + $0x40] sm:$0xff]  ;;  %v10625_v41 = vld [vmem:[%s18977_s20 + $0x68] sm:$0xff]  ;;  %v10627_v11 = vld [vmem:[%s18977_s20 + $0x78] sm:$0xf] }
0x19db   :  { %v14691_v63 = vpack.c.bf16 %v10627_v11, %v10625_v41  ;;  %v11849_v41 = vld [vmem:[%s18977_s20 + $0x198] sm:$0xff] }
0x19dd   :  { %14636 = vmatpush1.bf16.msra.mxu0 %v14635_v48 }
0x19de   :  { %14637 = vmatprep.subr.bf16.mxu0 %v16029_v17 }
0x19e1   :  { %14639 = vmatpush1.bf16.msra.mxu0 %v14638_v10  ;;  %v14676_v10 = vpack.c.bf16 %v11816_v7, %v11814_v16  ;;  %v10626_v16 = vld [vmem:[%s18977_s20 + $0x70] sm:$0xf]  ;;  %v11827_v7 = vld [vmem:[%s18977_s20 + $0x88] sm:$0xff] }
0x19e2   :  { %14640 = vmatprep.subr.bf16.mxu0 %v16029_v17 }
0x19e5   :  { %14642 = vmatpush1.bf16.msra.mxu0 %v14641_v29  ;;  %v18712_v29 = vld [vmem:[#allocation40 + $0x16] sm:$0x7] }
0x19e6   :  { %14643 = vmatprep.subr.bf16.mxu0 %v16029_v17  ;;  %v10331_v20 = vrot.slane %v18712_v29, %v18021_v15  ;;  %v10618_v15 = vld [vmem:[%s18977_s20 + $0x30] sm:$0xff] }
0x19e7   :  { %v14685_v38 = vpack.c.bf16 %v10618_v15, %v10616_v60  ;;  %v11837_v60 = vld [vmem:[%s18977_s20 + $0xd8] sm:$0xff] }
0x19e9   :  { %14645 = vmatpush1.bf16.msra.mxu0 %v14644_v30  ;;  %v10614_v30 = vld [vmem:[%s18977_s20 + $0x10] sm:$0xff] }
0x19ea   :  { %14646 = vmatprep.subr.bf16.mxu0 %v16029_v17 }
0x19ed   :  { %14648 = vmatpush1.bf16.msra.mxu0 %v14647_v3  ;;  %v10619_v3 = vld [vmem:[%s18977_s20 + $0x38] sm:$0xff] }
0x19ee   :  { %14649 = vmatprep.subr.bf16.mxu0 %v16029_v17  ;;  %v14683_v0 = vpack.c.bf16 %v10619_v3, %v10617_v47  ;;  %v11828_v47 = vld [vmem:[%s18977_s20 + $0x90] sm:$0xff]  ;;  %v11831_v3 = vld [vmem:[%s18977_s20 + $0xa8] sm:$0xff] }
0x19f1   :  { %14651 = vmatpush1.bf16.msra.mxu0 %v14650_v12  ;;  %v14681_v12 = vpack.c.bf16 %v10614_v30, %v10612_v57 }
0x19f2   :  { %14652 = vmatprep.subr.bf16.mxu0 %v16029_v17 }
0x19f5   :  { %14654 = vmatpush1.bf16.msra.mxu0 %v14653_v53 }
0x19f6   :  { %14655 = vmatprep.subr.bf16.mxu0 %v16029_v17 }
0x19f9   :  { %14657 = vmatpush1.bf16.msra.mxu0 %v14656_v22  ;;  %v10621_v22 = vld [vmem:[%s18977_s20 + $0x48] sm:$0xff] }
0x19fa   :  { %14658 = vmatprep.subr.bf16.mxu0 %v16029_v17  ;;  %v14667_v17 = vpack.c.bf16 %v11808_v25, %v11806_v56 }
0x19fd   :  { %14660 = vmatpush1.bf16.msra.mxu0 %v14659_v46 }
0x19fe   :  { %14662 = vmatprep.subr.bf16.mxu0 %v14661_v14  ;;  %v14687_v14 = vpack.c.bf16 %v10623_v31, %v10621_v22  ;;  %v11834_v22 = vld [vmem:[%s18977_s20 + $0xc0] sm:$0xff]  ;;  %v11836_v31 = vld [vmem:[%s18977_s20 + $0xd0] sm:$0xff] }
0x1a00   :  { %10483 = vmatmul.mubr.f32.vlgmr.msra.gmra.mrb[178].mxu0 %v18620_v37  ;;  %v11815_v37 = vld [vmem:[%s18977_s20 + $0x168] sm:$0xff] }
0x1a01   :  { %11801 = vmatprep.mubr.msk.f32.mxu0 %vm9341_vm0, %v18626_v26  ;;  %14664 = vmatpush1.bf16.msra.mxu0 %v14663_v55  ;;  %v11817_v26 = vld [vmem:[%s18977_s20 + $0x178] sm:$0xf] }
0x1a02   :  { %14666 = vmatprep.subr.bf16.mxu0 %v14665_v44  ;;  %v14673_v48 = vpack.c.bf16 %v11817_v26, %v11815_v37 }
0x1a04   :  { %10488 = vmatmul.mubr.f32.gmra.mrb[180].mxu0 %v18623_v24  ;;  %v10613_v24 = vld [vmem:[%s18977_s20 + $0x8] sm:$0xff] }
0x1a05   :  { %14668 = vmatpush1.bf16.msra.mxu0 %v14667_v17  ;;  %10589 = vmatprep.mubr.f32.mxu0 %v18974_v39  ;;  %v14679_v42 = vpack.c.bf16 %v10615_v18, %v10613_v24 }
0x1a06   :  { %14670 = vmatprep.subr.bf16.mxu0 %v14669_v36  ;;  %v14689_v36 = vpack.c.bf16 %v10622_v5, %v10620_v4  ;;  %v14707_v4 = vpack.c.bf16 %v11836_v31, %v11834_v22  ;;  %v11847_v5 = vld [vmem:[%s18977_s20 + $0x188] sm:$0xff]  ;;  %v11877_v31 = vld [vmem:[%s18977_s20 + $0x258] sm:$0xff] }
0x1a07   :  { %v11875_v22 = vld [vmem:[%s18977_s20 + $0x248] sm:$0xff] }
0x1a09   :  { %14672 = vmatpush1.bf16.msra.mxu0 %v14671_v28 }
0x1a0a   :  { %14675 = vmatprep.subr.msk.bf16.mxu0 %vm17088_vm9, %v14673_v48  ;;  %v10624_v48 = vld [vmem:[%s18977_s20 + $0x60] sm:$0xff] }
0x1a0d   :  { %14678 = vmatpush1.bf16.msk.msra.mxu0 %vm17088_vm9, %v14676_v10  ;;  %v11829_v10 = vld [vmem:[%s18977_s20 + $0x98] sm:$0xff] }
0x1a0e   :  { %14680 = vmatprep.subr.bf16.mxu0 %v14679_v42  ;;  %v14697_v30 = vpack.c.bf16 %v11829_v10, %v11827_v7  ;;  %v11856_v10 = vld [vmem:[%s18977_s20 + $0x1d0] sm:$0xff] }
0x1ad3   :  { %v10484_v6 = vpop.f32.mrb[178].mxu0 }
0x1ad4   :  { %v10485_v59 = vadd.f32 %v10484_v6, %v10331_v20  ;;  %v10486_v58 = vpop.f32.mrb[179].mxu0  ;;  %v11826_v6 = vld [vmem:[%s18977_s20 + $0x80] sm:$0xff] }
0x1ad5   :  { %v14699_v58 = vpack.c.bf16 %v11828_v47, %v11826_v6  ;;  %v11867_v47 = vld [vmem:[%s18977_s20 + $0x208] sm:$0xff] }
0x1ad6   :  { %v10493_v40 = vmax.f32 %v10485_v59, 0.0  ;;  %v11833_v59 = vld [vmem:[%s18977_s20 + $0xb8] sm:$0xff] }
0x1ad7   :  { %v10489_v53 = vpop.f32.mrb[180].mxu0  ;;  %v14701_v43 = vpack.c.bf16 %v11833_v59, %v11831_v3  ;;  %v11869_v3 = vld [vmem:[%s18977_s20 + $0x218] sm:$0xff] }
0x1ad8   :  { %v10491_v51 = vpop.f32.mrb[181].mxu0  ;;  %11820 = vmatmul.mubr.msk.f32.vlgmr.msra.gmra.mrb[174].mxu0 %vm10512_vm6, %v10493_v40  ;;  %v10490_v32 = vadd.f32 %v10489_v53, %v10331_v20  ;;  %v10606_v33 = vrot.slane %v10493_v40, 6  ;;  %v10721_v55 = vrot.slane %v10493_v40, 7  ;;  %v10837_v44 = vrot.slane %v10493_v40, 1  ;;  %v11835_v53 = vld [vmem:[%s18977_s20 + $0xc8] sm:$0xff] }
0x1ad9   :  { %14682 = vmatpush1.bf16.msra.mxu0 %v14681_v12  ;;  %10595 = vmatprep.mubr.f32.mxu0 %v18974_v39  ;;  %v10953_v56 = vrot.slane %v10493_v40, 2  ;;  %v14694_v20 = vpack.c.bf16 %v10626_v16, %v10624_v48  ;;  %v11830_v40 = vld [vmem:[%s18977_s20 + $0xa0] sm:$0xff]  ;;  %v11857_v48 = vld [vmem:[%s18977_s20 + $0x1d8] sm:$0xff] }
0x1ada   :  { %14684 = vmatprep.subr.bf16.mxu0 %v14683_v0  ;;  %v10494_v46 = vmax.f32 %v10490_v32, 0.0  ;;  %v11832_v0 = vld [vmem:[%s18977_s20 + $0xb0] sm:$0xff]  ;;  %v11839_v32 = vld [vmem:[%s18977_s20 + $0xe8] sm:$0xff] }
0x1adb   :  { %v14703_v15 = vpack.c.bf16 %v11832_v0, %v11830_v40  ;;  %v11871_v40 = vld [vmem:[%s18977_s20 + $0x228] sm:$0xff]  ;;  %v11873_v0 = vld [vmem:[%s18977_s20 + $0x238] sm:$0xff] }
0x1adc   :  { %v10607_v25 = vrot.slane %v10494_v46, 6  ;;  %v10722_v45 = vrot.slane %v10494_v46, 7  ;;  %v10838_v35 = vrot.slane %v10494_v46, 1  ;;  %v10954_v17 = vrot.slane %v10494_v46, 2  ;;  %11821 = vmatmul.mubr.msk.f32.gmra.mrb[176].mxu0 %vm10512_vm6, %v10494_v46 }
0x1add   :  { %14686 = vmatpush1.bf16.msra.mxu0 %v14685_v38  ;;  %10704 = vmatprep.mubr.f32.mxu0 %v18974_v39  ;;  %v11841_v38 = vld [vmem:[%s18977_s20 + $0xf8] sm:$0xf] }
0x1ade   :  { %v10609_v13 = vsel %vm2602_vm11, %v10607_v25, %v10606_v33  ;;  %v10724_v28 = vsel %vm1581_vm4, %v10722_v45, %v10721_v55  ;;  %v18738_v37 = vsel %vm1802_vm3, %v10837_v44, %v10838_v35  ;;  %v18742_v26 = vsel %vm3025_vm12, %v10953_v56, %v10954_v17  ;;  %14688 = vmatprep.subr.bf16.mxu0 %v14687_v14  ;;  %v11840_v14 = vld [vmem:[%s18977_s20 + $0xf0] sm:$0xf] }
0x1adf   :  { %v10608_v24 = vsel %vm2602_vm11, %v10606_v33, %v10607_v25  ;;  %v10723_v18 = vsel %vm1581_vm4, %v10721_v55, %v10722_v45  ;;  %v18754_v42 = vsel %vm1802_vm3, %v10838_v35, %v10837_v44  ;;  %v18758_v57 = vsel %vm3025_vm12, %v10954_v17, %v10953_v56  ;;  %v11846_v55 = vld [vmem:[%s18977_s20 + $0x180] sm:$0xff]  ;;  %v11848_v44 = vld [vmem:[%s18977_s20 + $0x190] sm:$0xff]  ;;  %v11851_v56 = vld [vmem:[%s18977_s20 + $0x1a8] sm:$0xff] }
0x1ae0   :  { %v10610_v12 = vmul.f32 %v10609_v13, %v18450_v61  ;;  %v10611_v51 = vmul.f32 %v10608_v24, %v18452_v27  ;;  %v14705_v61 = vpack.c.bf16 %v11837_v60, %v11835_v53  ;;  %v14709_v46 = vpack.c.bf16 %v11841_v38, %v11839_v32  ;;  %v11838_v27 = vld [vmem:[%s18977_s20 + $0xe0] sm:$0xff]  ;;  %v11853_v25 = vld [vmem:[%s18977_s20 + $0x1b8] sm:$0xff]  ;;  %v11855_v13 = vld [vmem:[%s18977_s20 + $0x1c8] sm:$0xff] }
0x1ae1   :  { %14690 = vmatpush1.bf16.msra.mxu0 %v14689_v36  ;;  %v14712_v11 = vpack.c.bf16 %v11840_v14, %v11838_v27  ;;  %v14715_v33 = vpack.c.bf16 %v11849_v41, %v11847_v5  ;;  %v14717_v45 = vpack.c.bf16 %v11848_v44, %v11846_v55  ;;  %v10725_v35 = vmul.f32 %v10724_v28, %v18456_v34  ;;  %v11850_v36 = vld [vmem:[%s18977_s20 + $0x1a0] sm:$0xff]  ;;  %v11859_v24 = vld [vmem:[%s18977_s20 + $0x1e8] sm:$0xff]  ;;  %v11881_v27 = vld [vmem:[%s18977_s20 + $0x278] sm:$0xf] }
0x1ae2   :  { %14693 = vmatprep.subr.msk.bf16.mxu0 %vm17088_vm9, %v14691_v63  ;;  %v14719_v17 = vpack.c.bf16 %v11853_v25, %v11851_v56  ;;  %v11852_v63 = vld [vmem:[%s18977_s20 + $0x1b0] sm:$0xff]  ;;  %v10726_v7 = vmul.f32 %v10723_v18, %v18459_v19  ;;  %v14723_v34 = vpack.c.bf16 %v11857_v48, %v11855_v13  ;;  %v11854_v28 = vld [vmem:[%s18977_s20 + $0x1c0] sm:$0xff]  ;;  %v10841_v60 = vmul.f32 %v18738_v37, %v18484_v52  ;;  %v11101_v44 = vld [vmem:[#allocation37] sm:$0xff] }
0x1ae3   :  { %v14721_v16 = vpack.c.bf16 %v11852_v63, %v11850_v36  ;;  %v11858_v19 = vld [vmem:[%s18977_s20 + $0x1e0] sm:$0xff]  ;;  %v11860_v18 = vld [vmem:[%s18977_s20 + $0x1f0] sm:$0xf]  ;;  %v10842_v38 = vmul.f32 %v18754_v42, %v18492_v21  ;;  %v14741_v52 = vpack.c.bf16 %v11877_v31, %v11875_v22  ;;  %v11103_v56 = vld [vmem:[#allocation37 + $0x10] sm:$0xff]  ;;  %v10958_v62 = vmul.f32 %v18758_v57, %v18602_v23 }
0x1ae4   :  { %v14730_v59 = vpack.c.bf16 %v11860_v18, %v11858_v19  ;;  %v11874_v37 = vld [vmem:[%s18977_s20 + $0x240] sm:$0xff]  ;;  %v11104_v55 = vld [vmem:[#allocation37 + $0x18] sm:$0xff]  ;;  %v11105_v63 = vld [vmem:[#allocation37 + $0x20] sm:$0xff]  ;;  %vm11358_vm3 = vcmask 1031168   ;;  %vm11435_vm4 = vcmask 74752  }
0x1ae5   :  { %14696 = vmatpush1.bf16.msk.msra.mxu0 %vm17088_vm9, %v14694_v20  ;;  %v11861_v20 = vld [vmem:[%s18977_s20 + $0x1f8] sm:$0xf]  ;;  %v11878_v41 = vld [vmem:[%s18977_s20 + $0x260] sm:$0xff]  ;;  %v11107_v13 = vld [vmem:[#allocation37 + $0x30] sm:$0xff] }
0x1ae6   :  { %14698 = vmatprep.subr.bf16.mxu0 %v14697_v30  ;;  %v14725_v30 = vpack.c.bf16 %v11856_v10, %v11854_v28  ;;  %v14727_v6 = vpack.c.bf16 %v11861_v20, %v11859_v24  ;;  %v11106_v25 = vld [vmem:[#allocation37 + $0x28] sm:$0xff]  ;;  %v11109_v28 = vld [vmem:[#allocation37 + $0x40] sm:$0xff]  ;;  %v11111_v10 = vld [vmem:[#allocation37 + $0x50] sm:$0xff] }
0x1ae7   :  { %v11110_v48 = vld [vmem:[#allocation37 + $0x48] sm:$0xff]  ;;  %v14761_v24 = vpack.c.bf16 %v11111_v10, %v11109_v28  ;;  %v11120_v19 = vld [vmem:[#allocation37 + $0x98] sm:$0xff]  ;;  %v11117_v18 = vld [vmem:[#allocation37 + $0x80] sm:$0xff] }
0x1ae8   :  { %11824 = vmatmul.mubr.msk.f32.vlgmr.msra.gmra.mrb[174].mxu0 %vm10512_vm6, %v10610_v12  ;;  %v11866_v12 = vld [vmem:[%s18977_s20 + $0x200] sm:$0xff]  ;;  %v11132_v22 = vld [vmem:[#allocation37 + $0xf8] sm:$0xff] }
0x1ae9   :  { %14700 = vmatpush1.bf16.msra.mxu0 %v14699_v58  ;;  %10710 = vmatprep.mubr.f32.mxu0 %v18974_v39  ;;  %v14733_v58 = vpack.c.bf16 %v11869_v3, %v11867_v47  ;;  %v11119_v47 = vld [vmem:[#allocation37 + $0x90] sm:$0xff]  ;;  %v11122_v3 = vld [vmem:[#allocation37 + $0xa8] sm:$0xff] }
0x1aea   :  { %14702 = vmatprep.subr.bf16.mxu0 %v14701_v43  ;;  %v11868_v43 = vld [vmem:[%s18977_s20 + $0x210] sm:$0xff] }
0x1aeb   :  { %v14735_v53 = vpack.c.bf16 %v11868_v43, %v11866_v12  ;;  %v11123_v43 = vld [vmem:[#allocation37 + $0xb0] sm:$0xff] }
0x1aec   :  { %11825 = vmatmul.mubr.msk.f32.gmra.mrb[176].mxu0 %vm10512_vm6, %v10611_v51  ;;  %v11870_v51 = vld [vmem:[%s18977_s20 + $0x220] sm:$0xff] }
0x1aed   :  { %14704 = vmatpush1.bf16.msra.mxu0 %v14703_v15  ;;  %10820 = vmatprep.mubr.f32.mxu0 %v18974_v39  ;;  %v14737_v15 = vpack.c.bf16 %v11873_v0, %v11871_v40  ;;  %v11126_v40 = vld [vmem:[#allocation37 + $0xc8] sm:$0xff]  ;;  %v11128_v0 = vld [vmem:[#allocation37 + $0xd8] sm:$0xff] }
0x1aee   :  { %14706 = vmatprep.subr.bf16.mxu0 %v14705_v61  ;;  %v11872_v61 = vld [vmem:[%s18977_s20 + $0x230] sm:$0xff] }
0x1aef   :  { %v14739_v32 = vpack.c.bf16 %v11872_v61, %v11870_v51  ;;  %v11127_v51 = vld [vmem:[#allocation37 + $0xd0] sm:$0xff]  ;;  %v11130_v61 = vld [vmem:[#allocation37 + $0xe8] sm:$0xff] }
0x1af1   :  { %14708 = vmatpush1.bf16.msra.mxu0 %v14707_v4  ;;  %v11876_v4 = vld [vmem:[%s18977_s20 + $0x250] sm:$0xff] }
0x1af2   :  { %14711 = vmatprep.subr.msk.bf16.mxu0 %vm17088_vm9, %v14709_v46  ;;  %v11879_v46 = vld [vmem:[%s18977_s20 + $0x268] sm:$0xff]  ;;  %v14743_v14 = vpack.c.bf16 %v11876_v4, %v11874_v37  ;;  %v11134_v37 = vld [vmem:[#allocation37 + $0x108] sm:$0xff]  ;;  %v11136_v4 = vld [vmem:[#allocation37 + $0x118] sm:$0xff] }
0x1af3   :  { %v14745_v5 = vpack.c.bf16 %v11881_v27, %v11879_v46  ;;  %v14783_v27 = vpack.c.bf16 %v11136_v4, %v11134_v37  ;;  %v11324_v37 = vld [vmem:[%s16243_s17 + $0x28] sm:$0xff]  ;;  %v11341_v4 = vld [vmem:[%s16243_s17 + $0xb0] sm:$0xff] }
0x1af5   :  { %14714 = vmatpush1.bf16.msk.msra.mxu0 %vm17088_vm9, %v14712_v11  ;;  %v11880_v11 = vld [vmem:[%s18977_s20 + $0x270] sm:$0xf] }
0x1af6   :  { %14716 = vmatprep.subr.bf16.mxu0 %v14715_v33  ;;  %v11102_v33 = vld [vmem:[#allocation37 + $0x8] sm:$0xff]  ;;  %v14748_v21 = vpack.c.bf16 %v11880_v11, %v11878_v41  ;;  %v11140_v11 = vld [vmem:[#allocation37 + $0x138] sm:$0xff] }
0x1af7   :  { %v14751_v42 = vpack.c.bf16 %v11104_v55, %v11102_v33  ;;  %v11138_v41 = vld [vmem:[#allocation37 + $0x128] sm:$0xff] }
0x1af8   :  { %11844 = vmatmul.mubr.msk.f32.vlgmr.msra.gmra.mrb[174].mxu0 %vm10512_vm6, %v10725_v35  ;;  %v14753_v35 = vpack.c.bf16 %v11103_v56, %v11101_v44  ;;  %v14787_v55 = vpack.c.bf16 %v11140_v11, %v11138_v41  ;;  %v11142_v44 = vld [vmem:[#allocation37 + $0x148] sm:$0xff]  ;;  %v11144_v56 = vld [vmem:[#allocation37 + $0x158] sm:$0xff]  ;;  %v11326_v41 = vld [vmem:[%s16243_s17 + $0x38] sm:$0xff] }
0x1af9   :  { %14718 = vmatpush1.bf16.msra.mxu0 %v14717_v45  ;;  %10826 = vmatprep.mubr.f32.mxu0 %v18974_v39  ;;  %v11108_v45 = vld [vmem:[#allocation37 + $0x38] sm:$0xff]  ;;  %v11343_v11 = vld [vmem:[%s16243_s17 + $0xc0] sm:$0xff] }
0x1afa   :  { %14720 = vmatprep.subr.bf16.mxu0 %v14719_v17  ;;  %v10957_v17 = vmul.f32 %v18742_v26, %v18597_v50  ;;  %v14755_v36 = vpack.c.bf16 %v11108_v45, %v11106_v25  ;;  %v11114_v50 = vld [vmem:[#allocation37 + $0x68] sm:$0xff]  ;;  %v11116_v26 = vld [vmem:[#allocation37 + $0x78] sm:$0xff]  ;;  %v14791_v45 = vpack.c.bf16 %v11144_v56, %v11142_v44  ;;  %v11328_v44 = vld [vmem:[%s16243_s17 + $0x48] sm:$0xff] }
0x1afb   :  { %v14763_v20 = vpack.c.bf16 %v11116_v26, %v11114_v50  ;;  %v11149_v50 = vld [vmem:[#allocation37 + $0x180] sm:$0xff]  ;;  %v11151_v26 = vld [vmem:[#allocation37 + $0x190] sm:$0xff]  ;;  %v11345_v56 = vld [vmem:[%s16243_s17 + $0xd0] sm:$0xff] }
0x1afc   :  { %11845 = vmatmul.mubr.msk.f32.gmra.mrb[176].mxu0 %vm10512_vm6, %v10726_v7  ;;  %v14757_v7 = vpack.c.bf16 %v11107_v13, %v11105_v63  ;;  %v11148_v63 = vld [vmem:[#allocation37 + $0x178] sm:$0xff] }
0x1afd   :  { %14722 = vmatpush1.bf16.msra.mxu0 %v14721_v16  ;;  %10936 = vmatprep.mubr.f32.mxu0 %v18974_v39  ;;  %v11112_v16 = vld [vmem:[#allocation37 + $0x58] sm:$0xff] }
0x1afe   :  { %14724 = vmatprep.subr.bf16.mxu0 %v14723_v34  ;;  %v14759_v34 = vpack.c.bf16 %v11112_v16, %v11110_v48  ;;  %v11145_v16 = vld [vmem:[#allocation37 + $0x160] sm:$0xff] }
0x1b01   :  { %14726 = vmatpush1.bf16.msra.mxu0 %v14725_v30  ;;  %v11115_v30 = vld [vmem:[#allocation37 + $0x70] sm:$0xff] }
0x1b02   :  { %14729 = vmatprep.subr.msk.bf16.mxu0 %vm17088_vm9, %v14727_v6  ;;  %v11118_v6 = vld [vmem:[#allocation37 + $0x88] sm:$0xff] }
0x1b03   :  { %v14767_v57 = vpack.c.bf16 %v11120_v19, %v11118_v6 }
0x1b05   :  { %14732 = vmatpush1.bf16.msk.msra.mxu0 %vm17088_vm9, %v14730_v59  ;;  %v11124_v59 = vld [vmem:[#allocation37 + $0xb8] sm:$0xff] }
0x1b06   :  { %14734 = vmatprep.subr.bf16.mxu0 %v14733_v58  ;;  %v14769_v58 = vpack.c.bf16 %v11119_v47, %v11117_v18  ;;  %v14771_v12 = vpack.c.bf16 %v11124_v59, %v11122_v3  ;;  %v11335_v3 = vld [vmem:[%s16243_s17 + $0x80] sm:$0xff] }
0x1b08   :  { %11864 = vmatmul.mubr.msk.f32.vlgmr.msra.gmra.mrb[174].mxu0 %vm10512_vm6, %v10841_v60  ;;  %v14775_v60 = vpack.c.bf16 %v11128_v0, %v11126_v40  ;;  %v11337_v40 = vld [vmem:[%s16243_s17 + $0x90] sm:$0xff]  ;;  %v11338_v0 = vld [vmem:[%s16243_s17 + $0x98] sm:$0xff] }
0x1b09   :  { %14736 = vmatpush1.bf16.msra.mxu0 %v14735_v53  ;;  %10942 = vmatprep.mubr.f32.mxu0 %v18974_v39 }
0x1b0a   :  { %14738 = vmatprep.subr.bf16.mxu0 %v14737_v15  ;;  %v11125_v15 = vld [vmem:[#allocation37 + $0xc0] sm:$0xff] }
0x1b0b   :  { %v14777_v31 = vpack.c.bf16 %v11127_v51, %v11125_v15  ;;  %v14811_v15 = vpack.c.bf16 %v11338_v0, %v11337_v40  ;;  %v11321_v51 = vld [vmem:[%s16243_s17 + $0x10] sm:$0xff] }
0x1b0c   :  { %11865 = vmatmul.mubr.msk.f32.gmra.mrb[176].mxu0 %vm10512_vm6, %v10842_v38  ;;  %v11129_v38 = vld [vmem:[#allocation37 + $0xe0] sm:$0xff] }
0x1b0d   :  { %14740 = vmatpush1.bf16.msra.mxu0 %v14739_v32  ;;  %11052 = vmatprep.mubr.f32.mxu0 %v18974_v39  ;;  %v14779_v32 = vpack.c.bf16 %v11132_v22, %v11130_v61  ;;  %v11322_v61 = vld [vmem:[%s16243_s17 + $0x18] sm:$0xff]  ;;  %v11339_v22 = vld [vmem:[%s16243_s17 + $0xa0] sm:$0xff] }
0x1b0e   :  { %14742 = vmatprep.subr.bf16.mxu0 %v14741_v52  ;;  %v11131_v52 = vld [vmem:[#allocation37 + $0xf0] sm:$0xff] }
0x1b0f   :  { %v14781_v46 = vpack.c.bf16 %v11131_v52, %v11129_v38  ;;  %v11323_v52 = vld [vmem:[%s16243_s17 + $0x20] sm:$0xff] }
0x1b11   :  { %14744 = vmatpush1.bf16.msra.mxu0 %v14743_v14  ;;  %v11133_v14 = vld [vmem:[#allocation37 + $0x100] sm:$0xff] }
0x1b12   :  { %14747 = vmatprep.subr.msk.bf16.mxu0 %vm17088_vm9, %v14745_v5  ;;  %v11135_v5 = vld [vmem:[#allocation37 + $0x110] sm:$0xff] }
0x1b13   :  { %v14785_v33 = vpack.c.bf16 %v11135_v5, %v11133_v14  ;;  %v11325_v5 = vld [vmem:[%s16243_s17 + $0x30] sm:$0xff] }
0x1b15   :  { %14750 = vmatpush1.bf16.msk.msra.mxu0 %vm17088_vm9, %v14748_v21  ;;  %v11137_v21 = vld [vmem:[#allocation37 + $0x120] sm:$0xff] }
0x1b16   :  { %14752 = vmatprep.subr.bf16.mxu0 %v14751_v42  ;;  %v11139_v42 = vld [vmem:[#allocation37 + $0x130] sm:$0xff] }
0x1b17   :  { %v14789_v25 = vpack.c.bf16 %v11139_v42, %v11137_v21  ;;  %v11327_v42 = vld [vmem:[%s16243_s17 + $0x40] sm:$0xff] }
0x1b18   :  { %11884 = vmatmul.mubr.msk.f32.vlgmr.msra.gmra.mrb[174].mxu0 %vm10512_vm6, %v10957_v17  ;;  %v11143_v17 = vld [vmem:[#allocation37 + $0x150] sm:$0xff] }
0x1b19   :  { %14754 = vmatpush1.bf16.msra.mxu0 %v14753_v35  ;;  %11058 = vmatprep.mubr.f32.mxu0 %v18974_v39  ;;  %v11113_v39 = vld [vmem:[#allocation37 + $0x60] sm:$0xff] }
0x1b1a   :  { %14756 = vmatprep.subr.bf16.mxu0 %v14755_v36  ;;  %v14765_v23 = vpack.c.bf16 %v11115_v30, %v11113_v39  ;;  %v11141_v35 = vld [vmem:[#allocation37 + $0x140] sm:$0xff]  ;;  %v11146_v36 = vld [vmem:[#allocation37 + $0x168] sm:$0xff]  ;;  %v10327_v30 = vrot.slane %v18712_v29, %v17097_v9 }
0x1b1b   :  { %v14793_v13 = vpack.c.bf16 %v11143_v17, %v11141_v35  ;;  %v14795_v48 = vpack.c.bf16 %v11148_v63, %v11146_v36  ;;  %v11329_v17 = vld [vmem:[%s16243_s17 + $0x50] sm:$0xff]  ;;  %v11330_v36 = vld [vmem:[%s16243_s17 + $0x58] sm:$0xff]  ;;  %v11347_v63 = vld [vmem:[%s16243_s17 + $0xe0] sm:$0xff] }
0x1b1c   :  { %11885 = vmatmul.mubr.msk.f32.gmra.mrb[176].mxu0 %vm10512_vm6, %v10958_v62  ;;  %v11150_v62 = vld [vmem:[#allocation37 + $0x188] sm:$0xff] }
0x1b1d   :  { %14758 = vmatpush1.bf16.msra.mxu0 %v14757_v7  ;;  %11886 = vmatprep.mubr.msk.f32.mxu0 %vm9341_vm0, %v18665_v49  ;;  %v11121_v49 = vld [vmem:[#allocation37 + $0xa0] sm:$0xff]  ;;  %v11147_v7 = vld [vmem:[#allocation37 + $0x170] sm:$0xff] }
0x1b1e   :  { %14760 = vmatprep.subr.bf16.mxu0 %v14759_v34  ;;  %v14773_v53 = vpack.c.bf16 %v11123_v43, %v11121_v49  ;;  %v11152_v34 = vld [vmem:[#allocation37 + $0x198] sm:$0xff]  ;;  %v14797_v28 = vpack.c.bf16 %v11147_v7, %v11145_v16  ;;  %v11319_v49 = vld [vmem:[%s16243_s17] sm:$0xff]  ;;  %v11320_v43 = vld [vmem:[%s16243_s17 + $0x8] sm:$0xff] }
0x1b1f   :  { %v14799_v10 = vpack.c.bf16 %v11152_v34, %v11150_v62  ;;  %v11331_v7 = vld [vmem:[%s16243_s17 + $0x60] sm:$0xff]  ;;  %v11332_v62 = vld [vmem:[%s16243_s17 + $0x68] sm:$0xff]  ;;  %v11349_v34 = vld [vmem:[%s16243_s17 + $0xf0] sm:$0xff] }
0x1b21   :  { %14762 = vmatpush1.bf16.msra.mxu0 %v14761_v24  ;;  %v14801_v24 = vpack.c.bf16 %v11151_v26, %v11149_v50  ;;  %v11333_v26 = vld [vmem:[%s16243_s17 + $0x70] sm:$0xff] }
0x1b22   :  { %14764 = vmatprep.subr.bf16.mxu0 %v14763_v20  ;;  %v10323_v20 = vrot.slane %v18712_v29, %v17230_v8  ;;  %v11336_v8 = vld [vmem:[%s16243_s17 + $0x88] sm:$0xff] }
0x1b25   :  { %14766 = vmatpush1.bf16.msra.mxu0 %v14765_v23 }
0x1b26   :  { %14768 = vmatprep.subr.bf16.mxu0 %v14767_v57 }
0x1b29   :  { %14770 = vmatpush1.bf16.msra.mxu0 %v14769_v58 }
0x1b2a   :  { %14772 = vmatprep.subr.bf16.mxu0 %v14771_v12  ;;  %v14807_v12 = vpack.c.bf16 %v11336_v8, %v11335_v3 }
0x1b2d   :  { %14774 = vmatpush1.bf16.msra.mxu0 %v14773_v53  ;;  %v11244_v53 = vld [vmem:[%s18978_s2] sm:$0x3] }
0x1b2e   :  { %14776 = vmatprep.subr.bf16.mxu0 %v14775_v60  ;;  %v14809_v60 = vpack.c.bf16 %v11320_v43, %v11319_v49 }
0x1b31   :  { %14778 = vmatpush1.bf16.msra.mxu0 %v14777_v31  ;;  %v11340_v31 = vld [vmem:[%s16243_s17 + $0xa8] sm:$0xff] }
0x1b32   :  { %14780 = vmatprep.subr.bf16.mxu0 %v14779_v32  ;;  %v14813_v32 = vpack.c.bf16 %v11322_v61, %v11321_v51  ;;  %v14815_v38 = vpack.c.bf16 %v11340_v31, %v11339_v22 }
0x1b35   :  { %14782 = vmatpush1.bf16.msra.mxu0 %v14781_v46  ;;  %v11342_v46 = vld [vmem:[%s16243_s17 + $0xb8] sm:$0xff] }
0x1b36   :  { %14784 = vmatprep.subr.bf16.mxu0 %v14783_v27  ;;  %v14817_v27 = vpack.c.bf16 %v11324_v37, %v11323_v52  ;;  %v14819_v14 = vpack.c.bf16 %v11342_v46, %v11341_v4 }
0x1b39   :  { %14786 = vmatpush1.bf16.msra.mxu0 %v14785_v33  ;;  %v11344_v33 = vld [vmem:[%s16243_s17 + $0xc8] sm:$0xff] }
0x1b3a   :  { %14788 = vmatprep.subr.bf16.mxu0 %v14787_v55  ;;  %v14821_v55 = vpack.c.bf16 %v11326_v41, %v11325_v5  ;;  %v14823_v21 = vpack.c.bf16 %v11344_v33, %v11343_v11 }
0x1b3d   :  { %14790 = vmatpush1.bf16.msra.mxu0 %v14789_v25  ;;  %v11346_v25 = vld [vmem:[%s16243_s17 + $0xd8] sm:$0xff] }
0x1b3e   :  { %14792 = vmatprep.subr.bf16.mxu0 %v14791_v45  ;;  %v14825_v45 = vpack.c.bf16 %v11328_v44, %v11327_v42  ;;  %v14827_v35 = vpack.c.bf16 %v11346_v25, %v11345_v56 }
0x1b41   :  { %14794 = vmatpush1.bf16.msra.mxu0 %v14793_v13  ;;  %v11348_v13 = vld [vmem:[%s16243_s17 + $0xe8] sm:$0xff] }
0x1b42   :  { %14796 = vmatprep.subr.bf16.mxu0 %v14795_v48  ;;  %v14829_v48 = vpack.c.bf16 %v11330_v36, %v11329_v17  ;;  %v14831_v16 = vpack.c.bf16 %v11348_v13, %v11347_v63 }
0x1b45   :  { %14798 = vmatpush1.bf16.msra.mxu0 %v14797_v28  ;;  %v11350_v28 = vld [vmem:[%s16243_s17 + $0xf8] sm:$0x3f] }
0x1b46   :  { %14800 = vmatprep.subr.bf16.mxu0 %v14799_v10  ;;  %v14833_v10 = vpack.c.bf16 %v11332_v62, %v11331_v7  ;;  %v14835_v50 = vpack.c.bf16 %v11350_v28, %v11349_v34 }
0x1b49   :  { %14802 = vmatpush1.bf16.msra.mxu0 %v14801_v24  ;;  %v11334_v24 = vld [vmem:[%s16243_s17 + $0x78] sm:$0xff] }
0x1b4c   :  { %11224 = vmatmul.mubr.f32.vlgmr.msra.gmra.mrb[174].mxu0 %v18668_v2 }
0x1b4d   :  { %11887 = vmatprep.mubr.msk.f32.mxu0 %vm9341_vm0, %v18674_v54 }
0x1b50   :  { %11230 = vmatmul.mubr.f32.gmra.mrb[176].mxu0 %v18671_v1 }
0x1c1f   :  { %v11225_v39 = vpop.f32.mrb[174].mxu0 }
0x1c20   :  { %v11227_v6 = vpop.f32.mrb[175].mxu0  ;;  %v14865_v19 = vadd.f32 %v11225_v39, %v10323_v20 }
0x1c21   :  { %v14866_v23 = vadd.f32 %v11227_v6, %v10327_v30 }
0x1c22   :  { %v11240_v1 = vmax.f32 %v14865_v19, 0.0  ;;  %v11889_v19 = vld [vmem:[#allocation40 + $0x2] ss:$0 sm:$0xff] }
0x1c23   :  { %v11231_v2 = vpop.f32.mrb[176].mxu0  ;;  %v11241_v59 = vmax.f32 %v14866_v23, 0.0 }
0x1c24   :  { %v14867_v57 = vadd.f32 %v11231_v2, %v10323_v20  ;;  %v11233_v18 = vpop.f32.mrb[177].mxu0  ;;  %v14838_v20 = vpack.c.bf16 %v11334_v24, %v11333_v26 }
0x1c25   :  { %v14868_v54 = vadd.f32 %v11233_v18, %v10327_v30 }
0x1c26   :  { %v11242_v47 = vmax.f32 %v14867_v57, 0.0 }
0x1c27   :  { %v11243_v9 = vmax.f32 %v14868_v54, 0.0 }
0x1c28   :  { %v14805_v29 = vpack.c.bf16 %v11242_v47, %v11240_v1 }
0x1c29   :  { %v14803_v58 = vpack.c.bf16 %v11243_v9, %v11241_v59 }
0x1c2b   :  { %14804 = vmatprep.subr.bf16.mxu1 %v14803_v58 }
0x1c2c   :  { %14806 = vmatpush1.bf16.msra.mxu1 %v14805_v29 }
0x1c2d   :  { %14808 = vmatprep.subr.bf16.mxu1 %v14807_v12 }
0x1c2f   :  { %11888 = vmatmul.mubr.msk.f32.vlgmr.msra.gmra.mrb[196].mxu1 %vm1257_vm2, %v11244_v53  ;;  %vm14836_vm2 = vmpackc.low %vm6279_vm13, %vm16033_vm8 }
0x1c30   :  { %14810 = vmatpush3.bf16.msra.mxu1 %v14809_v60 }
0x1c31   :  { %14812 = vmatprep.subr.bf16.mxu1 %v14811_v15 }
0x1c34   :  { %14814 = vmatpush3.bf16.msra.mxu1 %v14813_v32 }
0x1c35   :  { %14816 = vmatprep.subr.bf16.mxu1 %v14815_v38 }
0x1c38   :  { %14818 = vmatpush3.bf16.msra.mxu1 %v14817_v27 }
0x1c39   :  { %14820 = vmatprep.subr.bf16.mxu1 %v14819_v14 }
0x1c3c   :  { %14822 = vmatpush3.bf16.msra.mxu1 %v14821_v55 }
0x1c3d   :  { %14824 = vmatprep.subr.bf16.mxu1 %v14823_v21 }
0x1c40   :  { %14826 = vmatpush3.bf16.msra.mxu1 %v14825_v45 }
0x1c41   :  { %14828 = vmatprep.subr.bf16.mxu1 %v14827_v35 }
0x1c44   :  { %14830 = vmatpush3.bf16.msra.mxu1 %v14829_v48 }
0x1c45   :  { %14832 = vmatprep.subr.bf16.mxu1 %v14831_v16 }
0x1c48   :  { %14834 = vmatpush3.bf16.msra.mxu1 %v14833_v10 }
0x1c49   :  { %14837 = vmatprep.subr.msk.bf16.mxu1 %vm14836_vm2, %v14835_v50 }
0x1c4c   :  { %14839 = vmatpush3.bf16.msra.mxu1 %v14838_v20 }
0x1d02   :  { %v11314_v39 = vpop.f32.mrb[196].mxu1 }
0x1d03   :  { %v11316_v30 = vpop.f32.mrb[197].mxu1 }
0x1d04   :  { %11891 = vmatprep.mubr.msk.f32.mxu1 %vm11358_vm3, %v11316_v30 }
0x1d05   :  { %11430 = vmatmul.mubr.f32.vlgmr.msra.gmra.mrb[198].mxu1 %v11314_v39 }
0x1dd8   :  { %v12417_v6 = vpop.f32.mrb[198].mxu1 }
0x1dd9   :  { %v12418_v23 = vpop.f32.mrb[199].mxu1 }
0x1dda   :  { %v12419_v2 = vadd.f32 %v12418_v23, %v12417_v6 }
0x1ddc   :  { %v11432_v57 = vadd.f32 %v12419_v2, %v11889_v19 }
0x1dde   :  { %11436 = vst.msk [vmem:[#allocation56] sm:$0x3] %vm11435_vm4, %v11432_v57 }
0x1ddf   :  { %15897 = shalt.err (!%p15894_p4)
}
0x1de0   :  { %s15898_s17 = scalar_lea.hbm %s16253_s5, 32 }
0x1de1   :  { %p15899_p5 = scmp.ne.s32.totalorder %s16253_s5, %s15898_s17  ;;  %p15902_p6 = scmp.lt.u32.totalorder %s15898_s17, %s16253_s5 }
0x1de3   :  { %p15904_p7 = pnand %p15902_p6, %p15899_p5 }
0x1de5   :  { %15907 = shalt.err (!%p15904_p7)
}
0x1de6   :  { %11446 = dma.vmem_to_hbm [thread:$0]  %s11444_s21, 32, %s16253_s5, [#allocation4]  }
0x1de7   :  { %15944 = dma.done.wait [#allocation4], 32  }
0x1de8   :  { %15945 = vsyncadd [#allocation4], 4294967264 }
0x1de9   :  { %11450 = vsyncpa [#allocation3], 1 }
0x1dea   :  { %11451 = vsyncpa [#allocation6], 1 }
0x1deb   :  { %11452 = vsyncpa [#allocation9], 1 }
0x1dec   :  { %11453 = vsyncpa [#allocation12], 1 }
0x1ded   :  { %11454 = vsyncpa [#allocation15], 1 }
0x1dee   :  { %11455 = vsyncpa [#allocation18], 1 }
0x1def   :  { %11456 = vsyncpa [#allocation21], 1 }
0x1df0   :  { %11457 = vsyncpa [#allocation24], 1 }
0x1df1   :  { %11458 = vsyncpa [#allocation27], 1 }
0x1df2   :  { %11459 = vsyncpa [#allocation30], 1 }
0x1df3   :  { %11460 = vsyncpa [#allocation33], 1 }
0x1df4   :  { %11461 = vsyncpa [#allocation36], 1 }
0x1df5   :  { %11462 = vsyncpa [#allocation39], 1 }
0x1df6   :  { %11463 = vsyncpa [#allocation42], 1 }
0x1df7   :  { %11464 = vsyncpa [#allocation45], 1 }
0x1df8   :  { %11465 = vsyncpa [#allocation48], 1 }
0x1df9   :  { %11466 = vsyncpa [#allocation51], 1 }
0x1dfa   :  { %11467 = vsyncpa [#allocation54], 1 }
0x1dfb   :  { %11468 = vsyncpa [#allocation4], 1 }

</bundles_post_ra>
